<compile_context>
chip_gen: v6e
topology: v6e:2x2x1
jax: 0.10.0
libtpu: 0.0.40
codegen_flags: <defaults>
</compile_context>

<pallas_src>
import functools

import jax
import jax.numpy as jnp
from jax.experimental import pallas as pl
from jax.experimental.pallas import tpu as pltpu

_PADL = 8  # sublane-aligned left halo offset inside the VMEM scratch buffer


def _upblock_kernel(x_ref, w1_ref, w2_ref, w3_ref, o_ref, pad_ref, *, H, W, Cin):
    """Fused UpBlock body for one batch element.

    x_ref  : (1, H, W, Cin)          NHWC input tile
    w*_ref : (9, Cin, Cout)          3x3 taps flattened as 3*ky + kx (HWIO order)
    o_ref  : (1, H*W, 4*out_ch)      pre-PixelShuffle conv3 output, row index = h*W + w
    pad_ref: (H+2, _PADL+W+8, Cin)   zero halo buffer; the live activation occupies
             [1:H+1, _PADL:_PADL+W, :] so every in-kernel store is tile aligned.
    """

    def conv3x3(w_ref, relu):
        cout = w_ref.shape[-1]
        acc = jnp.zeros((H * W, cout), jnp.float32)
        for ky in range(3):                      # 9 taps, statically unrolled
            for kx in range(3):
                patch = pad_ref[ky:ky + H, _PADL - 1 + kx:_PADL - 1 + kx + W, :]
                acc = acc + jnp.dot(patch.reshape(H * W, Cin),
                                    w_ref[3 * ky + kx],
                                    preferred_element_type=jnp.float32)
        return jnp.maximum(acc, 0.0) if relu else acc

    # Zero the halo once; only the interior is rewritten between the three convs,
    # so the zero padding remains valid for all of them.
    pad_ref[...] = jnp.zeros_like(pad_ref)
    pad_ref[1:H + 1, _PADL:_PADL + W, :] = x_ref[0]

    a = conv3x3(w1_ref, relu=True)                                   # CvBlock conv 1 + ReLU
    pad_ref[1:H + 1, _PADL:_PADL + W, :] = a.reshape(H, W, Cin)
    a = conv3x3(w2_ref, relu=True)                                   # CvBlock conv 2 + ReLU
    pad_ref[1:H + 1, _PADL:_PADL + W, :] = a.reshape(H, W, Cin)
    o_ref[0] = conv3x3(w3_ref, relu=False).astype(o_ref.dtype)       # conv3 (no ReLU)


def up_block(x_nchw, params):
    """Equivalent of UpBlock.forward: (N, in_ch, H, W) -> (N, out_ch, 2H, 2W)."""
    w1, w2, w3 = params                       # HWIO: (3, 3, cin, cout)
    N, Cin, H, W = x_nchw.shape
    C3 = w3.shape[-1]                          # 4 * out_ch
    Cout = C3 // 4

    x = jnp.transpose(x_nchw, (0, 2, 3, 1))    # NCHW -> NHWC (channels on lanes)

    flops = 2 * N * H * W * 9 * Cin * (Cin + Cin + C3)
    bytes_accessed = 4 * (N * H * W * Cin + N * H * W * C3 + 9 * Cin * (2 * Cin + C3))

    kernel = functools.partial(_upblock_kernel, H=H, W=W, Cin=Cin)
    y3 = pl.pallas_call(
        kernel,
        out_shape=jax.ShapeDtypeStruct((N, H * W, C3), x.dtype),
        grid=(N,),
        in_specs=[
            pl.BlockSpec((1, H, W, Cin), lambda n: (n, 0, 0, 0)),
            pl.BlockSpec((9, Cin, Cin), lambda n: (0, 0, 0)),
            pl.BlockSpec((9, Cin, Cin), lambda n: (0, 0, 0)),
            pl.BlockSpec((9, Cin, C3), lambda n: (0, 0, 0)),
        ],
        out_specs=pl.BlockSpec((1, H * W, C3), lambda n: (n, 0, 0)),
        scratch_shapes=[pltpu.VMEM((H + 2, _PADL + W + 8, Cin), jnp.float32)],
        compiler_params=pltpu.CompilerParams(dimension_semantics=("parallel",)),
        cost_estimate=pl.CostEstimate(flops=flops, transcendentals=0,
                                      bytes_accessed=bytes_accessed),
    )(x, w1.reshape(9, Cin, Cin), w2.reshape(9, Cin, Cin), w3.reshape(9, Cin, C3))

    # PixelShuffle(2): out[n, c, 2h+i, 2w+j] = y3[n, h*W + w, 4*c + 2*i + j]  (pure layout).
    y3 = y3.reshape(N, H, W, Cout, 2, 2)
    return jnp.transpose(y3, (0, 3, 1, 4, 2, 5)).reshape(N, Cout, 2 * H, 2 * W)


def _ref_up_block(x_nchw, params):
    """Pure-JAX reference (lax.conv + pixel shuffle) for correctness checking."""
    w1, w2, w3 = params
    dn = ("NCHW", "HWIO", "NCHW")
    y = jax.lax.conv_general_dilated(x_nchw, w1, (1, 1), ((1, 1), (1, 1)),
                                     dimension_numbers=dn)
    y = jnp.maximum(y, 0.0)
    y = jax.lax.conv_general_dilated(y, w2, (1, 1), ((1, 1), (1, 1)),
                                     dimension_numbers=dn)
    y = jnp.maximum(y, 0.0)
    y = jax.lax.conv_general_dilated(y, w3, (1, 1), ((1, 1), (1, 1)),
                                     dimension_numbers=dn)            # no ReLU after conv3
    N, C4, H, W = y.shape
    C = C4 // 4
    y = y.reshape(N, C, 2, 2, H, W)
    return jnp.transpose(y, (0, 1, 4, 2, 5, 3)).reshape(N, C, 2 * H, 2 * W)


if __name__ == "__main__":
    N, in_ch, out_ch, H, W = 2, 4, 8, 16, 16

    key = jax.random.PRNGKey(0)
    kx_, k1, k2, k3 = jax.random.split(key, 4)
    x = jax.random.normal(kx_, (N, in_ch, H, W), dtype=jnp.float32)

    def init_w(k, cin, cout):
        # Deterministic kaiming-uniform-style init (synthetic weights, HWIO layout).
        bound = (1.0 / (cin * 9)) ** 0.5
        return jax.random.uniform(k, (3, 3, cin, cout), jnp.float32, -bound, bound)

    params = (
        init_w(k1, in_ch, in_ch),          # CvBlock conv1: in_ch -> in_ch
        init_w(k2, in_ch, in_ch),          # CvBlock conv2: in_ch -> in_ch
        init_w(k3, in_ch, out_ch * 4),     # conv3: in_ch -> 4*out_ch (feeds PixelShuffle)
    )

    out = jax.block_until_ready(jax.jit(up_block)(x, params))
    assert out.shape == (N, out_ch, 2 * H, 2 * W), out.shape

    ref = _ref_up_block(x, params)
    assert jnp.allclose(out, ref, atol=1e-4, rtol=1e-4), float(
        jnp.max(jnp.abs(out - ref)))

    print("KERNEL_OK")
</pallas_src>

<mosaic_0001>
module attributes {stable_mosaic.version = 11 : i64} {
  func.func @_upblock_kernel(%arg0: i32, %arg1: memref<1x16x16x4xf32, #tpu.memory_space<vmem>>, %arg2: memref<9x4x4xf32, #tpu.memory_space<vmem>>, %arg3: memref<9x4x4xf32, #tpu.memory_space<vmem>>, %arg4: memref<9x4x32xf32, #tpu.memory_space<vmem>>, %arg5: memref<1x256x32xf32, #tpu.memory_space<vmem>>, %arg6: memref<18x32x4xf32, #tpu.memory_space<vmem>>) attributes {dimension_semantics = [#tpu.dimension_semantics<parallel>], iteration_bounds = array<i64: 2>, scalar_prefetch = 0 : i64, scratch_operands = 1 : i64, tpu.core_type = #tpu.core_type<tc>, window_params = [{transform_indices = @transform_0, window_bounds = array<i64: 1, 16, 16, 4>}, {pipeline_mode = #tpu.pipeline_mode<synchronous>, transform_indices = @transform_1, window_bounds = array<i64: 9, 4, 4>}, {pipeline_mode = #tpu.pipeline_mode<synchronous>, transform_indices = @transform_2, window_bounds = array<i64: 9, 4, 4>}, {pipeline_mode = #tpu.pipeline_mode<synchronous>, transform_indices = @transform_3, window_bounds = array<i64: 9, 4, 32>}, {transform_indices = @transform_4, window_bounds = array<i64: 1, 256, 32>}]} {
    %cst = arith.constant 0.000000e+00 : f32
    %0 = vector.broadcast %cst : f32 to vector<18x32x4xf32>
    %c0 = arith.constant 0 : index
    %c0_0 = arith.constant 0 : index
    %c0_1 = arith.constant 0 : index
    %1 = vector.load %arg6[%c0, %c0_0, %c0_1] : memref<18x32x4xf32, #tpu.memory_space<vmem>>, vector<18x32x4xf32>
    tpu.vector_store %arg6[%c0, %c0_0, %c0_1], %0 {strides = array<i32>} : memref<18x32x4xf32, #tpu.memory_space<vmem>>, vector<18x32x4xf32>,
    %c0_2 = arith.constant 0 : index
    %c0_3 = arith.constant 0 : index
    %c0_4 = arith.constant 0 : index
    %c0_5 = arith.constant 0 : index
    %2 = vector.load %arg1[%c0_2, %c0_3, %c0_4, %c0_5] : memref<1x16x16x4xf32, #tpu.memory_space<vmem>>, vector<1x16x16x4xf32>
    %3 = vector.shape_cast %2 : vector<1x16x16x4xf32> to vector<16x16x4xf32>
    %c1 = arith.constant 1 : index
    %c8 = arith.constant 8 : index
    %c0_6 = arith.constant 0 : index
    %4 = vector.load %arg6[%c1, %c8, %c0_6] : memref<18x32x4xf32, #tpu.memory_space<vmem>>, vector<16x16x4xf32>
    tpu.vector_store %arg6[%c1, %c8, %c0_6], %3 {strides = array<i32>} : memref<18x32x4xf32, #tpu.memory_space<vmem>>, vector<16x16x4xf32>,
    %cst_7 = arith.constant 0.000000e+00 : f32
    %5 = vector.broadcast %cst_7 : f32 to vector<256x4xf32>
    %c0_8 = arith.constant 0 : index
    %c7 = arith.constant 7 : index
    %c0_9 = arith.constant 0 : index
    %6 = vector.load %arg6[%c0_8, %c7, %c0_9] : memref<18x32x4xf32, #tpu.memory_space<vmem>>, vector<16x16x4xf32>
    %7 = vector.shape_cast %6 : vector<16x16x4xf32> to vector<256x4xf32>
    %c0_10 = arith.constant 0 : index
    %c0_11 = arith.constant 0 : index
    %c0_12 = arith.constant 0 : index
    %8 = vector.load %arg2[%c0_10, %c0_11, %c0_12] : memref<9x4x4xf32, #tpu.memory_space<vmem>>, vector<1x4x4xf32>
    %9 = vector.shape_cast %8 : vector<1x4x4xf32> to vector<4x4xf32>
    %cst_13 = arith.constant dense<0.000000e+00> : vector<256x4xf32>
    %10 = tpu.matmul %7, %9, %cst_13 {dimension_numbers = #tpu.dot_dimension_numbers<[1], [0], [0], [1], [0, 0, 1, 1], [], []>} : vector<256x4xf32>, vector<4x4xf32>, vector<256x4xf32> -> vector<256x4xf32>
    %11 = arith.addf %5, %10 : vector<256x4xf32>
    %c0_14 = arith.constant 0 : index
    %c8_15 = arith.constant 8 : index
    %c0_16 = arith.constant 0 : index
    %12 = vector.load %arg6[%c0_14, %c8_15, %c0_16] : memref<18x32x4xf32, #tpu.memory_space<vmem>>, vector<16x16x4xf32>
    %13 = vector.shape_cast %12 : vector<16x16x4xf32> to vector<256x4xf32>
    %c1_17 = arith.constant 1 : index
    %c0_18 = arith.constant 0 : index
    %c0_19 = arith.constant 0 : index
    %14 = vector.load %arg2[%c1_17, %c0_18, %c0_19] : memref<9x4x4xf32, #tpu.memory_space<vmem>>, vector<1x4x4xf32>
    %15 = vector.shape_cast %14 : vector<1x4x4xf32> to vector<4x4xf32>
    %cst_20 = arith.constant dense<0.000000e+00> : vector<256x4xf32>
    %16 = tpu.matmul %13, %15, %cst_20 {dimension_numbers = #tpu.dot_dimension_numbers<[1], [0], [0], [1], [0, 0, 1, 1], [], []>} : vector<256x4xf32>, vector<4x4xf32>, vector<256x4xf32> -> vector<256x4xf32>
    %17 = arith.addf %11, %16 : vector<256x4xf32>
    %c0_21 = arith.constant 0 : index
    %c9 = arith.constant 9 : index
    %c0_22 = arith.constant 0 : index
    %18 = vector.load %arg6[%c0_21, %c9, %c0_22] : memref<18x32x4xf32, #tpu.memory_space<vmem>>, vector<16x16x4xf32>
    %19 = vector.shape_cast %18 : vector<16x16x4xf32> to vector<256x4xf32>
    %c2 = arith.constant 2 : index
    %c0_23 = arith.constant 0 : index
    %c0_24 = arith.constant 0 : index
    %20 = vector.load %arg2[%c2, %c0_23, %c0_24] : memref<9x4x4xf32, #tpu.memory_space<vmem>>, vector<1x4x4xf32>
    %21 = vector.shape_cast %20 : vector<1x4x4xf32> to vector<4x4xf32>
    %cst_25 = arith.constant dense<0.000000e+00> : vector<256x4xf32>
    %22 = tpu.matmul %19, %21, %cst_25 {dimension_numbers = #tpu.dot_dimension_numbers<[1], [0], [0], [1], [0, 0, 1, 1], [], []>} : vector<256x4xf32>, vector<4x4xf32>, vector<256x4xf32> -> vector<256x4xf32>
    %23 = arith.addf %17, %22 : vector<256x4xf32>
    %c1_26 = arith.constant 1 : index
    %c7_27 = arith.constant 7 : index
    %c0_28 = arith.constant 0 : index
    %24 = vector.load %arg6[%c1_26, %c7_27, %c0_28] : memref<18x32x4xf32, #tpu.memory_space<vmem>>, vector<16x16x4xf32>
    %25 = vector.shape_cast %24 : vector<16x16x4xf32> to vector<256x4xf32>
    %c3 = arith.constant 3 : index
    %c0_29 = arith.constant 0 : index
    %c0_30 = arith.constant 0 : index
    %26 = vector.load %arg2[%c3, %c0_29, %c0_30] : memref<9x4x4xf32, #tpu.memory_space<vmem>>, vector<1x4x4xf32>
    %27 = vector.shape_cast %26 : vector<1x4x4xf32> to vector<4x4xf32>
    %cst_31 = arith.constant dense<0.000000e+00> : vector<256x4xf32>
    %28 = tpu.matmul %25, %27, %cst_31 {dimension_numbers = #tpu.dot_dimension_numbers<[1], [0], [0], [1], [0, 0, 1, 1], [], []>} : vector<256x4xf32>, vector<4x4xf32>, vector<256x4xf32> -> vector<256x4xf32>
    %29 = arith.addf %23, %28 : vector<256x4xf32>
    %c1_32 = arith.constant 1 : index
    %c8_33 = arith.constant 8 : index
    %c0_34 = arith.constant 0 : index
    %30 = vector.load %arg6[%c1_32, %c8_33, %c0_34] : memref<18x32x4xf32, #tpu.memory_space<vmem>>, vector<16x16x4xf32>
    %31 = vector.shape_cast %30 : vector<16x16x4xf32> to vector<256x4xf32>
    %c4 = arith.constant 4 : index
    %c0_35 = arith.constant 0 : index
    %c0_36 = arith.constant 0 : index
    %32 = vector.load %arg2[%c4, %c0_35, %c0_36] : memref<9x4x4xf32, #tpu.memory_space<vmem>>, vector<1x4x4xf32>
    %33 = vector.shape_cast %32 : vector<1x4x4xf32> to vector<4x4xf32>
    %cst_37 = arith.constant dense<0.000000e+00> : vector<256x4xf32>
    %34 = tpu.matmul %31, %33, %cst_37 {dimension_numbers = #tpu.dot_dimension_numbers<[1], [0], [0], [1], [0, 0, 1, 1], [], []>} : vector<256x4xf32>, vector<4x4xf32>, vector<256x4xf32> -> vector<256x4xf32>
    %35 = arith.addf %29, %34 : vector<256x4xf32>
    %c1_38 = arith.constant 1 : index
    %c9_39 = arith.constant 9 : index
    %c0_40 = arith.constant 0 : index
    %36 = vector.load %arg6[%c1_38, %c9_39, %c0_40] : memref<18x32x4xf32, #tpu.memory_space<vmem>>, vector<16x16x4xf32>
    %37 = vector.shape_cast %36 : vector<16x16x4xf32> to vector<256x4xf32>
    %c5 = arith.constant 5 : index
    %c0_41 = arith.constant 0 : index
    %c0_42 = arith.constant 0 : index
    %38 = vector.load %arg2[%c5, %c0_41, %c0_42] : memref<9x4x4xf32, #tpu.memory_space<vmem>>, vector<1x4x4xf32>
    %39 = vector.shape_cast %38 : vector<1x4x4xf32> to vector<4x4xf32>
    %cst_43 = arith.constant dense<0.000000e+00> : vector<256x4xf32>
    %40 = tpu.matmul %37, %39, %cst_43 {dimension_numbers = #tpu.dot_dimension_numbers<[1], [0], [0], [1], [0, 0, 1, 1], [], []>} : vector<256x4xf32>, vector<4x4xf32>, vector<256x4xf32> -> vector<256x4xf32>
    %41 = arith.addf %35, %40 : vector<256x4xf32>
    %c2_44 = arith.constant 2 : index
    %c7_45 = arith.constant 7 : index
    %c0_46 = arith.constant 0 : index
    %42 = vector.load %arg6[%c2_44, %c7_45, %c0_46] : memref<18x32x4xf32, #tpu.memory_space<vmem>>, vector<16x16x4xf32>
    %43 = vector.shape_cast %42 : vector<16x16x4xf32> to vector<256x4xf32>
    %c6 = arith.constant 6 : index
    %c0_47 = arith.constant 0 : index
    %c0_48 = arith.constant 0 : index
    %44 = vector.load %arg2[%c6, %c0_47, %c0_48] : memref<9x4x4xf32, #tpu.memory_space<vmem>>, vector<1x4x4xf32>
    %45 = vector.shape_cast %44 : vector<1x4x4xf32> to vector<4x4xf32>
    %cst_49 = arith.constant dense<0.000000e+00> : vector<256x4xf32>
    %46 = tpu.matmul %43, %45, %cst_49 {dimension_numbers = #tpu.dot_dimension_numbers<[1], [0], [0], [1], [0, 0, 1, 1], [], []>} : vector<256x4xf32>, vector<4x4xf32>, vector<256x4xf32> -> vector<256x4xf32>
    %47 = arith.addf %41, %46 : vector<256x4xf32>
    %c2_50 = arith.constant 2 : index
    %c8_51 = arith.constant 8 : index
    %c0_52 = arith.constant 0 : index
    %48 = vector.load %arg6[%c2_50, %c8_51, %c0_52] : memref<18x32x4xf32, #tpu.memory_space<vmem>>, vector<16x16x4xf32>
    %49 = vector.shape_cast %48 : vector<16x16x4xf32> to vector<256x4xf32>
    %c7_53 = arith.constant 7 : index
    %c0_54 = arith.constant 0 : index
    %c0_55 = arith.constant 0 : index
    %50 = vector.load %arg2[%c7_53, %c0_54, %c0_55] : memref<9x4x4xf32, #tpu.memory_space<vmem>>, vector<1x4x4xf32>
    %51 = vector.shape_cast %50 : vector<1x4x4xf32> to vector<4x4xf32>
    %cst_56 = arith.constant dense<0.000000e+00> : vector<256x4xf32>
    %52 = tpu.matmul %49, %51, %cst_56 {dimension_numbers = #tpu.dot_dimension_numbers<[1], [0], [0], [1], [0, 0, 1, 1], [], []>} : vector<256x4xf32>, vector<4x4xf32>, vector<256x4xf32> -> vector<256x4xf32>
    %53 = arith.addf %47, %52 : vector<256x4xf32>
    %c2_57 = arith.constant 2 : index
    %c9_58 = arith.constant 9 : index
    %c0_59 = arith.constant 0 : index
    %54 = vector.load %arg6[%c2_57, %c9_58, %c0_59] : memref<18x32x4xf32, #tpu.memory_space<vmem>>, vector<16x16x4xf32>
    %55 = vector.shape_cast %54 : vector<16x16x4xf32> to vector<256x4xf32>
    %c8_60 = arith.constant 8 : index
    %c0_61 = arith.constant 0 : index
    %c0_62 = arith.constant 0 : index
    %56 = vector.load %arg2[%c8_60, %c0_61, %c0_62] : memref<9x4x4xf32, #tpu.memory_space<vmem>>, vector<1x4x4xf32>
    %57 = vector.shape_cast %56 : vector<1x4x4xf32> to vector<4x4xf32>
    %cst_63 = arith.constant dense<0.000000e+00> : vector<256x4xf32>
    %58 = tpu.matmul %55, %57, %cst_63 {dimension_numbers = #tpu.dot_dimension_numbers<[1], [0], [0], [1], [0, 0, 1, 1], [], []>} : vector<256x4xf32>, vector<4x4xf32>, vector<256x4xf32> -> vector<256x4xf32>
    %59 = arith.addf %53, %58 : vector<256x4xf32>
    %cst_64 = arith.constant 0.000000e+00 : f32
    %60 = vector.broadcast %cst_64 : f32 to vector<256x4xf32>
    %61 = arith.maximumf %59, %60 : vector<256x4xf32>
    %62 = vector.shape_cast %61 : vector<256x4xf32> to vector<16x16x4xf32>
    %c1_65 = arith.constant 1 : index
    %c8_66 = arith.constant 8 : index
    %c0_67 = arith.constant 0 : index
    %63 = vector.load %arg6[%c1_65, %c8_66, %c0_67] : memref<18x32x4xf32, #tpu.memory_space<vmem>>, vector<16x16x4xf32>
    tpu.vector_store %arg6[%c1_65, %c8_66, %c0_67], %62 {strides = array<i32>} : memref<18x32x4xf32, #tpu.memory_space<vmem>>, vector<16x16x4xf32>,
    %cst_68 = arith.constant 0.000000e+00 : f32
    %64 = vector.broadcast %cst_68 : f32 to vector<256x4xf32>
    %c0_69 = arith.constant 0 : index
    %c7_70 = arith.constant 7 : index
    %c0_71 = arith.constant 0 : index
    %65 = vector.load %arg6[%c0_69, %c7_70, %c0_71] : memref<18x32x4xf32, #tpu.memory_space<vmem>>, vector<16x16x4xf32>
    %66 = vector.shape_cast %65 : vector<16x16x4xf32> to vector<256x4xf32>
    %c0_72 = arith.constant 0 : index
    %c0_73 = arith.constant 0 : index
    %c0_74 = arith.constant 0 : index
    %67 = vector.load %arg3[%c0_72, %c0_73, %c0_74] : memref<9x4x4xf32, #tpu.memory_space<vmem>>, vector<1x4x4xf32>
    %68 = vector.shape_cast %67 : vector<1x4x4xf32> to vector<4x4xf32>
    %cst_75 = arith.constant dense<0.000000e+00> : vector<256x4xf32>
    %69 = tpu.matmul %66, %68, %cst_75 {dimension_numbers = #tpu.dot_dimension_numbers<[1], [0], [0], [1], [0, 0, 1, 1], [], []>} : vector<256x4xf32>, vector<4x4xf32>, vector<256x4xf32> -> vector<256x4xf32>
    %70 = arith.addf %64, %69 : vector<256x4xf32>
    %c0_76 = arith.constant 0 : index
    %c8_77 = arith.constant 8 : index
    %c0_78 = arith.constant 0 : index
    %71 = vector.load %arg6[%c0_76, %c8_77, %c0_78] : memref<18x32x4xf32, #tpu.memory_space<vmem>>, vector<16x16x4xf32>
    %72 = vector.shape_cast %71 : vector<16x16x4xf32> to vector<256x4xf32>
    %c1_79 = arith.constant 1 : index
    %c0_80 = arith.constant 0 : index
    %c0_81 = arith.constant 0 : index
    %73 = vector.load %arg3[%c1_79, %c0_80, %c0_81] : memref<9x4x4xf32, #tpu.memory_space<vmem>>, vector<1x4x4xf32>
    %74 = vector.shape_cast %73 : vector<1x4x4xf32> to vector<4x4xf32>
    %cst_82 = arith.constant dense<0.000000e+00> : vector<256x4xf32>
    %75 = tpu.matmul %72, %74, %cst_82 {dimension_numbers = #tpu.dot_dimension_numbers<[1], [0], [0], [1], [0, 0, 1, 1], [], []>} : vector<256x4xf32>, vector<4x4xf32>, vector<256x4xf32> -> vector<256x4xf32>
    %76 = arith.addf %70, %75 : vector<256x4xf32>
    %c0_83 = arith.constant 0 : index
    %c9_84 = arith.constant 9 : index
    %c0_85 = arith.constant 0 : index
    %77 = vector.load %arg6[%c0_83, %c9_84, %c0_85] : memref<18x32x4xf32, #tpu.memory_space<vmem>>, vector<16x16x4xf32>
    %78 = vector.shape_cast %77 : vector<16x16x4xf32> to vector<256x4xf32>
    %c2_86 = arith.constant 2 : index
    %c0_87 = arith.constant 0 : index
    %c0_88 = arith.constant 0 : index
    %79 = vector.load %arg3[%c2_86, %c0_87, %c0_88] : memref<9x4x4xf32, #tpu.memory_space<vmem>>, vector<1x4x4xf32>
    %80 = vector.shape_cast %79 : vector<1x4x4xf32> to vector<4x4xf32>
    %cst_89 = arith.constant dense<0.000000e+00> : vector<256x4xf32>
    %81 = tpu.matmul %78, %80, %cst_89 {dimension_numbers = #tpu.dot_dimension_numbers<[1], [0], [0], [1], [0, 0, 1, 1], [], []>} : vector<256x4xf32>, vector<4x4xf32>, vector<256x4xf32> -> vector<256x4xf32>
    %82 = arith.addf %76, %81 : vector<256x4xf32>
    %c1_90 = arith.constant 1 : index
    %c7_91 = arith.constant 7 : index
    %c0_92 = arith.constant 0 : index
    %83 = vector.load %arg6[%c1_90, %c7_91, %c0_92] : memref<18x32x4xf32, #tpu.memory_space<vmem>>, vector<16x16x4xf32>
    %84 = vector.shape_cast %83 : vector<16x16x4xf32> to vector<256x4xf32>
    %c3_93 = arith.constant 3 : index
    %c0_94 = arith.constant 0 : index
    %c0_95 = arith.constant 0 : index
    %85 = vector.load %arg3[%c3_93, %c0_94, %c0_95] : memref<9x4x4xf32, #tpu.memory_space<vmem>>, vector<1x4x4xf32>
    %86 = vector.shape_cast %85 : vector<1x4x4xf32> to vector<4x4xf32>
    %cst_96 = arith.constant dense<0.000000e+00> : vector<256x4xf32>
    %87 = tpu.matmul %84, %86, %cst_96 {dimension_numbers = #tpu.dot_dimension_numbers<[1], [0], [0], [1], [0, 0, 1, 1], [], []>} : vector<256x4xf32>, vector<4x4xf32>, vector<256x4xf32> -> vector<256x4xf32>
    %88 = arith.addf %82, %87 : vector<256x4xf32>
    %c1_97 = arith.constant 1 : index
    %c8_98 = arith.constant 8 : index
    %c0_99 = arith.constant 0 : index
    %89 = vector.load %arg6[%c1_97, %c8_98, %c0_99] : memref<18x32x4xf32, #tpu.memory_space<vmem>>, vector<16x16x4xf32>
    %90 = vector.shape_cast %89 : vector<16x16x4xf32> to vector<256x4xf32>
    %c4_100 = arith.constant 4 : index
    %c0_101 = arith.constant 0 : index
    %c0_102 = arith.constant 0 : index
    %91 = vector.load %arg3[%c4_100, %c0_101, %c0_102] : memref<9x4x4xf32, #tpu.memory_space<vmem>>, vector<1x4x4xf32>
    %92 = vector.shape_cast %91 : vector<1x4x4xf32> to vector<4x4xf32>
    %cst_103 = arith.constant dense<0.000000e+00> : vector<256x4xf32>
    %93 = tpu.matmul %90, %92, %cst_103 {dimension_numbers = #tpu.dot_dimension_numbers<[1], [0], [0], [1], [0, 0, 1, 1], [], []>} : vector<256x4xf32>, vector<4x4xf32>, vector<256x4xf32> -> vector<256x4xf32>
    %94 = arith.addf %88, %93 : vector<256x4xf32>
    %c1_104 = arith.constant 1 : index
    %c9_105 = arith.constant 9 : index
    %c0_106 = arith.constant 0 : index
    %95 = vector.load %arg6[%c1_104, %c9_105, %c0_106] : memref<18x32x4xf32, #tpu.memory_space<vmem>>, vector<16x16x4xf32>
    %96 = vector.shape_cast %95 : vector<16x16x4xf32> to vector<256x4xf32>
    %c5_107 = arith.constant 5 : index
    %c0_108 = arith.constant 0 : index
    %c0_109 = arith.constant 0 : index
    %97 = vector.load %arg3[%c5_107, %c0_108, %c0_109] : memref<9x4x4xf32, #tpu.memory_space<vmem>>, vector<1x4x4xf32>
    %98 = vector.shape_cast %97 : vector<1x4x4xf32> to vector<4x4xf32>
    %cst_110 = arith.constant dense<0.000000e+00> : vector<256x4xf32>
    %99 = tpu.matmul %96, %98, %cst_110 {dimension_numbers = #tpu.dot_dimension_numbers<[1], [0], [0], [1], [0, 0, 1, 1], [], []>} : vector<256x4xf32>, vector<4x4xf32>, vector<256x4xf32> -> vector<256x4xf32>
    %100 = arith.addf %94, %99 : vector<256x4xf32>
    %c2_111 = arith.constant 2 : index
    %c7_112 = arith.constant 7 : index
    %c0_113 = arith.constant 0 : index
    %101 = vector.load %arg6[%c2_111, %c7_112, %c0_113] : memref<18x32x4xf32, #tpu.memory_space<vmem>>, vector<16x16x4xf32>
    %102 = vector.shape_cast %101 : vector<16x16x4xf32> to vector<256x4xf32>
    %c6_114 = arith.constant 6 : index
    %c0_115 = arith.constant 0 : index
    %c0_116 = arith.constant 0 : index
    %103 = vector.load %arg3[%c6_114, %c0_115, %c0_116] : memref<9x4x4xf32, #tpu.memory_space<vmem>>, vector<1x4x4xf32>
    %104 = vector.shape_cast %103 : vector<1x4x4xf32> to vector<4x4xf32>
    %cst_117 = arith.constant dense<0.000000e+00> : vector<256x4xf32>
    %105 = tpu.matmul %102, %104, %cst_117 {dimension_numbers = #tpu.dot_dimension_numbers<[1], [0], [0], [1], [0, 0, 1, 1], [], []>} : vector<256x4xf32>, vector<4x4xf32>, vector<256x4xf32> -> vector<256x4xf32>
    %106 = arith.addf %100, %105 : vector<256x4xf32>
    %c2_118 = arith.constant 2 : index
    %c8_119 = arith.constant 8 : index
    %c0_120 = arith.constant 0 : index
    %107 = vector.load %arg6[%c2_118, %c8_119, %c0_120] : memref<18x32x4xf32, #tpu.memory_space<vmem>>, vector<16x16x4xf32>
    %108 = vector.shape_cast %107 : vector<16x16x4xf32> to vector<256x4xf32>
    %c7_121 = arith.constant 7 : index
    %c0_122 = arith.constant 0 : index
    %c0_123 = arith.constant 0 : index
    %109 = vector.load %arg3[%c7_121, %c0_122, %c0_123] : memref<9x4x4xf32, #tpu.memory_space<vmem>>, vector<1x4x4xf32>
    %110 = vector.shape_cast %109 : vector<1x4x4xf32> to vector<4x4xf32>
    %cst_124 = arith.constant dense<0.000000e+00> : vector<256x4xf32>
    %111 = tpu.matmul %108, %110, %cst_124 {dimension_numbers = #tpu.dot_dimension_numbers<[1], [0], [0], [1], [0, 0, 1, 1], [], []>} : vector<256x4xf32>, vector<4x4xf32>, vector<256x4xf32> -> vector<256x4xf32>
    %112 = arith.addf %106, %111 : vector<256x4xf32>
    %c2_125 = arith.constant 2 : index
    %c9_126 = arith.constant 9 : index
    %c0_127 = arith.constant 0 : index
    %113 = vector.load %arg6[%c2_125, %c9_126, %c0_127] : memref<18x32x4xf32, #tpu.memory_space<vmem>>, vector<16x16x4xf32>
    %114 = vector.shape_cast %113 : vector<16x16x4xf32> to vector<256x4xf32>
    %c8_128 = arith.constant 8 : index
    %c0_129 = arith.constant 0 : index
    %c0_130 = arith.constant 0 : index
    %115 = vector.load %arg3[%c8_128, %c0_129, %c0_130] : memref<9x4x4xf32, #tpu.memory_space<vmem>>, vector<1x4x4xf32>
    %116 = vector.shape_cast %115 : vector<1x4x4xf32> to vector<4x4xf32>
    %cst_131 = arith.constant dense<0.000000e+00> : vector<256x4xf32>
    %117 = tpu.matmul %114, %116, %cst_131 {dimension_numbers = #tpu.dot_dimension_numbers<[1], [0], [0], [1], [0, 0, 1, 1], [], []>} : vector<256x4xf32>, vector<4x4xf32>, vector<256x4xf32> -> vector<256x4xf32>
    %118 = arith.addf %112, %117 : vector<256x4xf32>
    %cst_132 = arith.constant 0.000000e+00 : f32
    %119 = vector.broadcast %cst_132 : f32 to vector<256x4xf32>
    %120 = arith.maximumf %118, %119 : vector<256x4xf32>
    %121 = vector.shape_cast %120 : vector<256x4xf32> to vector<16x16x4xf32>
    %c1_133 = arith.constant 1 : index
    %c8_134 = arith.constant 8 : index
    %c0_135 = arith.constant 0 : index
    %122 = vector.load %arg6[%c1_133, %c8_134, %c0_135] : memref<18x32x4xf32, #tpu.memory_space<vmem>>, vector<16x16x4xf32>
    tpu.vector_store %arg6[%c1_133, %c8_134, %c0_135], %121 {strides = array<i32>} : memref<18x32x4xf32, #tpu.memory_space<vmem>>, vector<16x16x4xf32>,
    %cst_136 = arith.constant 0.000000e+00 : f32
    %123 = vector.broadcast %cst_136 : f32 to vector<256x32xf32>
    %c0_137 = arith.constant 0 : index
    %c7_138 = arith.constant 7 : index
    %c0_139 = arith.constant 0 : index
    %124 = vector.load %arg6[%c0_137, %c7_138, %c0_139] : memref<18x32x4xf32, #tpu.memory_space<vmem>>, vector<16x16x4xf32>
    %125 = vector.shape_cast %124 : vector<16x16x4xf32> to vector<256x4xf32>
    %c0_140 = arith.constant 0 : index
    %c0_141 = arith.constant 0 : index
    %c0_142 = arith.constant 0 : index
    %126 = vector.load %arg4[%c0_140, %c0_141, %c0_142] : memref<9x4x32xf32, #tpu.memory_space<vmem>>, vector<1x4x32xf32>
    %127 = vector.shape_cast %126 : vector<1x4x32xf32> to vector<4x32xf32>
    %cst_143 = arith.constant dense<0.000000e+00> : vector<256x32xf32>
    %128 = tpu.matmul %125, %127, %cst_143 {dimension_numbers = #tpu.dot_dimension_numbers<[1], [0], [0], [1], [0, 0, 1, 1], [], []>} : vector<256x4xf32>, vector<4x32xf32>, vector<256x32xf32> -> vector<256x32xf32>
    %129 = arith.addf %123, %128 : vector<256x32xf32>
    %c0_144 = arith.constant 0 : index
    %c8_145 = arith.constant 8 : index
    %c0_146 = arith.constant 0 : index
    %130 = vector.load %arg6[%c0_144, %c8_145, %c0_146] : memref<18x32x4xf32, #tpu.memory_space<vmem>>, vector<16x16x4xf32>
    %131 = vector.shape_cast %130 : vector<16x16x4xf32> to vector<256x4xf32>
    %c1_147 = arith.constant 1 : index
    %c0_148 = arith.constant 0 : index
    %c0_149 = arith.constant 0 : index
    %132 = vector.load %arg4[%c1_147, %c0_148, %c0_149] : memref<9x4x32xf32, #tpu.memory_space<vmem>>, vector<1x4x32xf32>
    %133 = vector.shape_cast %132 : vector<1x4x32xf32> to vector<4x32xf32>
    %cst_150 = arith.constant dense<0.000000e+00> : vector<256x32xf32>
    %134 = tpu.matmul %131, %133, %cst_150 {dimension_numbers = #tpu.dot_dimension_numbers<[1], [0], [0], [1], [0, 0, 1, 1], [], []>} : vector<256x4xf32>, vector<4x32xf32>, vector<256x32xf32> -> vector<256x32xf32>
    %135 = arith.addf %129, %134 : vector<256x32xf32>
    %c0_151 = arith.constant 0 : index
    %c9_152 = arith.constant 9 : index
    %c0_153 = arith.constant 0 : index
    %136 = vector.load %arg6[%c0_151, %c9_152, %c0_153] : memref<18x32x4xf32, #tpu.memory_space<vmem>>, vector<16x16x4xf32>
    %137 = vector.shape_cast %136 : vector<16x16x4xf32> to vector<256x4xf32>
    %c2_154 = arith.constant 2 : index
    %c0_155 = arith.constant 0 : index
    %c0_156 = arith.constant 0 : index
    %138 = vector.load %arg4[%c2_154, %c0_155, %c0_156] : memref<9x4x32xf32, #tpu.memory_space<vmem>>, vector<1x4x32xf32>
    %139 = vector.shape_cast %138 : vector<1x4x32xf32> to vector<4x32xf32>
    %cst_157 = arith.constant dense<0.000000e+00> : vector<256x32xf32>
    %140 = tpu.matmul %137, %139, %cst_157 {dimension_numbers = #tpu.dot_dimension_numbers<[1], [0], [0], [1], [0, 0, 1, 1], [], []>} : vector<256x4xf32>, vector<4x32xf32>, vector<256x32xf32> -> vector<256x32xf32>
    %141 = arith.addf %135, %140 : vector<256x32xf32>
    %c1_158 = arith.constant 1 : index
    %c7_159 = arith.constant 7 : index
    %c0_160 = arith.constant 0 : index
    %142 = vector.load %arg6[%c1_158, %c7_159, %c0_160] : memref<18x32x4xf32, #tpu.memory_space<vmem>>, vector<16x16x4xf32>
    %143 = vector.shape_cast %142 : vector<16x16x4xf32> to vector<256x4xf32>
    %c3_161 = arith.constant 3 : index
    %c0_162 = arith.constant 0 : index
    %c0_163 = arith.constant 0 : index
    %144 = vector.load %arg4[%c3_161, %c0_162, %c0_163] : memref<9x4x32xf32, #tpu.memory_space<vmem>>, vector<1x4x32xf32>
    %145 = vector.shape_cast %144 : vector<1x4x32xf32> to vector<4x32xf32>
    %cst_164 = arith.constant dense<0.000000e+00> : vector<256x32xf32>
    %146 = tpu.matmul %143, %145, %cst_164 {dimension_numbers = #tpu.dot_dimension_numbers<[1], [0], [0], [1], [0, 0, 1, 1], [], []>} : vector<256x4xf32>, vector<4x32xf32>, vector<256x32xf32> -> vector<256x32xf32>
    %147 = arith.addf %141, %146 : vector<256x32xf32>
    %c1_165 = arith.constant 1 : index
    %c8_166 = arith.constant 8 : index
    %c0_167 = arith.constant 0 : index
    %148 = vector.load %arg6[%c1_165, %c8_166, %c0_167] : memref<18x32x4xf32, #tpu.memory_space<vmem>>, vector<16x16x4xf32>
    %149 = vector.shape_cast %148 : vector<16x16x4xf32> to vector<256x4xf32>
    %c4_168 = arith.constant 4 : index
    %c0_169 = arith.constant 0 : index
    %c0_170 = arith.constant 0 : index
    %150 = vector.load %arg4[%c4_168, %c0_169, %c0_170] : memref<9x4x32xf32, #tpu.memory_space<vmem>>, vector<1x4x32xf32>
    %151 = vector.shape_cast %150 : vector<1x4x32xf32> to vector<4x32xf32>
    %cst_171 = arith.constant dense<0.000000e+00> : vector<256x32xf32>
    %152 = tpu.matmul %149, %151, %cst_171 {dimension_numbers = #tpu.dot_dimension_numbers<[1], [0], [0], [1], [0, 0, 1, 1], [], []>} : vector<256x4xf32>, vector<4x32xf32>, vector<256x32xf32> -> vector<256x32xf32>
    %153 = arith.addf %147, %152 : vector<256x32xf32>
    %c1_172 = arith.constant 1 : index
    %c9_173 = arith.constant 9 : index
    %c0_174 = arith.constant 0 : index
    %154 = vector.load %arg6[%c1_172, %c9_173, %c0_174] : memref<18x32x4xf32, #tpu.memory_space<vmem>>, vector<16x16x4xf32>
    %155 = vector.shape_cast %154 : vector<16x16x4xf32> to vector<256x4xf32>
    %c5_175 = arith.constant 5 : index
    %c0_176 = arith.constant 0 : index
    %c0_177 = arith.constant 0 : index
    %156 = vector.load %arg4[%c5_175, %c0_176, %c0_177] : memref<9x4x32xf32, #tpu.memory_space<vmem>>, vector<1x4x32xf32>
    %157 = vector.shape_cast %156 : vector<1x4x32xf32> to vector<4x32xf32>
    %cst_178 = arith.constant dense<0.000000e+00> : vector<256x32xf32>
    %158 = tpu.matmul %155, %157, %cst_178 {dimension_numbers = #tpu.dot_dimension_numbers<[1], [0], [0], [1], [0, 0, 1, 1], [], []>} : vector<256x4xf32>, vector<4x32xf32>, vector<256x32xf32> -> vector<256x32xf32>
    %159 = arith.addf %153, %158 : vector<256x32xf32>
    %c2_179 = arith.constant 2 : index
    %c7_180 = arith.constant 7 : index
    %c0_181 = arith.constant 0 : index
    %160 = vector.load %arg6[%c2_179, %c7_180, %c0_181] : memref<18x32x4xf32, #tpu.memory_space<vmem>>, vector<16x16x4xf32>
    %161 = vector.shape_cast %160 : vector<16x16x4xf32> to vector<256x4xf32>
    %c6_182 = arith.constant 6 : index
    %c0_183 = arith.constant 0 : index
    %c0_184 = arith.constant 0 : index
    %162 = vector.load %arg4[%c6_182, %c0_183, %c0_184] : memref<9x4x32xf32, #tpu.memory_space<vmem>>, vector<1x4x32xf32>
    %163 = vector.shape_cast %162 : vector<1x4x32xf32> to vector<4x32xf32>
    %cst_185 = arith.constant dense<0.000000e+00> : vector<256x32xf32>
    %164 = tpu.matmul %161, %163, %cst_185 {dimension_numbers = #tpu.dot_dimension_numbers<[1], [0], [0], [1], [0, 0, 1, 1], [], []>} : vector<256x4xf32>, vector<4x32xf32>, vector<256x32xf32> -> vector<256x32xf32>
    %165 = arith.addf %159, %164 : vector<256x32xf32>
    %c2_186 = arith.constant 2 : index
    %c8_187 = arith.constant 8 : index
    %c0_188 = arith.constant 0 : index
    %166 = vector.load %arg6[%c2_186, %c8_187, %c0_188] : memref<18x32x4xf32, #tpu.memory_space<vmem>>, vector<16x16x4xf32>
    %167 = vector.shape_cast %166 : vector<16x16x4xf32> to vector<256x4xf32>
    %c7_189 = arith.constant 7 : index
    %c0_190 = arith.constant 0 : index
    %c0_191 = arith.constant 0 : index
    %168 = vector.load %arg4[%c7_189, %c0_190, %c0_191] : memref<9x4x32xf32, #tpu.memory_space<vmem>>, vector<1x4x32xf32>
    %169 = vector.shape_cast %168 : vector<1x4x32xf32> to vector<4x32xf32>
    %cst_192 = arith.constant dense<0.000000e+00> : vector<256x32xf32>
    %170 = tpu.matmul %167, %169, %cst_192 {dimension_numbers = #tpu.dot_dimension_numbers<[1], [0], [0], [1], [0, 0, 1, 1], [], []>} : vector<256x4xf32>, vector<4x32xf32>, vector<256x32xf32> -> vector<256x32xf32>
    %171 = arith.addf %165, %170 : vector<256x32xf32>
    %c2_193 = arith.constant 2 : index
    %c9_194 = arith.constant 9 : index
    %c0_195 = arith.constant 0 : index
    %172 = vector.load %arg6[%c2_193, %c9_194, %c0_195] : memref<18x32x4xf32, #tpu.memory_space<vmem>>, vector<16x16x4xf32>
    %173 = vector.shape_cast %172 : vector<16x16x4xf32> to vector<256x4xf32>
    %c8_196 = arith.constant 8 : index
    %c0_197 = arith.constant 0 : index
    %c0_198 = arith.constant 0 : index
    %174 = vector.load %arg4[%c8_196, %c0_197, %c0_198] : memref<9x4x32xf32, #tpu.memory_space<vmem>>, vector<1x4x32xf32>
    %175 = vector.shape_cast %174 : vector<1x4x32xf32> to vector<4x32xf32>
    %cst_199 = arith.constant dense<0.000000e+00> : vector<256x32xf32>
    %176 = tpu.matmul %173, %175, %cst_199 {dimension_numbers = #tpu.dot_dimension_numbers<[1], [0], [0], [1], [0, 0, 1, 1], [], []>} : vector<256x4xf32>, vector<4x32xf32>, vector<256x32xf32> -> vector<256x32xf32>
    %177 = arith.addf %171, %176 : vector<256x32xf32>
    %c0_200 = arith.constant 0 : index
    %c0_201 = arith.constant 0 : index
    %c0_202 = arith.constant 0 : index
    %178 = vector.load %arg5[%c0_200, %c0_201, %c0_202] : memref<1x256x32xf32, #tpu.memory_space<vmem>>, vector<1x256x32xf32>
    %179 = vector.shape_cast %178 : vector<1x256x32xf32> to vector<256x32xf32>
    %180 = vector.shape_cast %177 : vector<256x32xf32> to vector<1x256x32xf32>
    tpu.vector_store %arg5[%c0_200, %c0_201, %c0_202], %180 {strides = array<i32>} : memref<1x256x32xf32, #tpu.memory_space<vmem>>, vector<1x256x32xf32>,
    return
  }
  func.func @transform_0(%arg0: i32) -> (i32, i32, i32, i32) {
    %c0_i32 = arith.constant 0 : i32
    %c0_i32_0 = arith.constant 0 : i32
    %c0_i32_1 = arith.constant 0 : i32
    %c0_i32_2 = arith.constant 0 : i32
    return %arg0, %c0_i32, %c0_i32_0, %c0_i32_1 : i32, i32, i32, i32
  }
  func.func @transform_1(%arg0: i32) -> (i32, i32, i32) {
    %c0_i32 = arith.constant 0 : i32
    %c0_i32_0 = arith.constant 0 : i32
    %c0_i32_1 = arith.constant 0 : i32
    %c0_i32_2 = arith.constant 0 : i32
    return %c0_i32, %c0_i32_0, %c0_i32_1 : i32, i32, i32
  }
  func.func @transform_2(%arg0: i32) -> (i32, i32, i32) {
    %c0_i32 = arith.constant 0 : i32
    %c0_i32_0 = arith.constant 0 : i32
    %c0_i32_1 = arith.constant 0 : i32
    %c0_i32_2 = arith.constant 0 : i32
    return %c0_i32, %c0_i32_0, %c0_i32_1 : i32, i32, i32
  }
  func.func @transform_3(%arg0: i32) -> (i32, i32, i32) {
    %c0_i32 = arith.constant 0 : i32
    %c0_i32_0 = arith.constant 0 : i32
    %c0_i32_1 = arith.constant 0 : i32
    %c0_i32_2 = arith.constant 0 : i32
    return %c0_i32, %c0_i32_0, %c0_i32_1 : i32, i32, i32
  }
  func.func @transform_4(%arg0: i32) -> (i32, i32, i32) {
    %c0_i32 = arith.constant 0 : i32
    %c0_i32_0 = arith.constant 0 : i32
    %c0_i32_1 = arith.constant 0 : i32
    return %arg0, %c0_i32, %c0_i32_0 : i32, i32, i32
  }
}

</mosaic_0001>

<bundles_post_ra>
// kernel: up_block.1
= control target key start
LH: loop header
LB: loop body
LE: loop exit
PB: predicated region body
PF: predicated region fallthrough
CT: control target
= control target key end

     0   :  { %s14103_s15 = smov 0   ;;  %s18612_s0 = inlined_call_operand.vmem [shape: f32[2,16,16,4], index: 0, kind: input, shape index: {}]   ;;  %s18613_s1 = inlined_call_operand.vmem [shape: f32[9,4,4], index: 1, kind: input, shape index: {}]   ;;  %s18614_s2 = inlined_call_operand.vmem [shape: f32[9,4,4], index: 2, kind: input, shape index: {}]   ;;  %s18615_s3 = inlined_call_operand.vmem [shape: f32[9,4,32], index: 3, kind: input, shape index: {}]   ;;  %s18616_s4 = inlined_call_operand.vmem [shape: f32[2,256,32], index: 4, kind: output, shape index: {}]  }
   0x1 LB: > { %s10889_s16 = sadd.s32 4294967295, %s14075_s15   ;;  %p10893_p0 = scmp.ge.s32.totalorder %s14075_s15, 1  ;;  %s14075_s15 = sphi %s14103_s15, %s14_s15  }
   0x2   : > { %p162_p1 = scmp.lt.s32.totalorder %s14075_s15, 3 }
   0x4   : > { %p163_p2 = pnand %p10893_p0, %p162_p1 }
   0x6   : > { %166 = sbr.rel (%p163_p2) target bundleno = 1468 (0x5bc), region = 36 }
   0xb   : > { %v14114_v0 = vld [vmem:[%s18613_s1 + $0x4] sm:$0xf]  ;;  %vm499_vm0 = vcmask 1043456   ;;  %vm198_vm1 = vcmask 31744   ;;  %p14118_p3 = scmp.lt.s32.totalorder %s10889_s16, 1  ;;  %v14077_v1 = vmov 0.0  }
   0xc   : > { %14058 = vmatprep.subr.msk.mxu1 %vm499_vm0, %v14114_v0  ;;  %12708 = vmatprep.subr.msk.mxu0 %vm499_vm0, %v14114_v0  ;;  %200 = vst.msk [vmem:[#allocation2 + $0x8] sm:$0xff] %vm198_vm1, %v14077_v1  ;;  %199 = vst.msk [vmem:[#allocation2] sm:$0xff] %vm198_vm1, %v14077_v1  ;;  %v14273_v2 = vld [vmem:[%s18613_s1] sm:$0xf]  ;;  %v10965_v3 = vld [vmem:[%s18613_s1 + $0x8] sm:$0xf] }
   0xd   : > { %201 = vst.msk [vmem:[#allocation2 + $0x10] sm:$0xff] %vm198_vm1, %v14077_v1  ;;  %202 = vst.msk [vmem:[#allocation2 + $0x18] sm:$0xff] %vm198_vm1, %v14077_v1  ;;  %14059 = vmatpush3.msk.msra.mxu1 %vm499_vm0, %v14114_v0  ;;  %12709 = vmatpush3.msk.msra.mxu0 %vm499_vm0, %v14114_v0  ;;  %s19403_s16 = smov (!%p14118_p3, %s10889_s16), 1  ;;  %v14311_v10 = vld [vmem:[%s18613_s1 + $0x10] sm:$0xf]  ;;  %vm10801_vm2 = vcmask 261120  }
   0xe   : > { %203 = vst.msk [vmem:[#allocation2 + $0x20] sm:$0xff] %vm198_vm1, %v14077_v1  ;;  %204 = vst.msk [vmem:[#allocation2 + $0x28] sm:$0xff] %vm198_vm1, %v14077_v1  ;;  %12758 = vmatprep.subr.msk.mxu1 %vm499_vm0, %v14273_v2  ;;  %12808 = vmatprep.subr.msk.mxu0 %vm499_vm0, %v10965_v3  ;;  %s11815_s24 = sshll.u32 %s19403_s16, 8  ;;  %v14370_v34 = vld [vmem:[%s18613_s1 + $0xc] sm:$0xf] }
   0xf   : > { %205 = vst.msk [vmem:[#allocation2 + $0x30] sm:$0xff] %vm198_vm1, %v14077_v1  ;;  %206 = vst.msk [vmem:[#allocation2 + $0x38] sm:$0xff] %vm198_vm1, %v14077_v1  ;;  %s14297_s27 = scalar_lea.vmem %s18612_s0, %s11815_s24  ;;  %s18431_s6 = scalar_lea.vmem %s18616_s4, %s11815_s24 }
  0x10   : > { %207 = vst.msk [vmem:[#allocation2 + $0x40] sm:$0xff] %vm198_vm1, %v14077_v1  ;;  %208 = vst.msk [vmem:[#allocation2 + $0x48] sm:$0xff] %vm198_vm1, %v14077_v1  ;;  %v285_v4 = vld [vmem:[%s14297_s27 + $0x70] sm:$0xff]  ;;  %v286_v5 = vld [vmem:[%s14297_s27 + $0x78] sm:$0xff] }
  0x11   : > { %209 = vst.msk [vmem:[#allocation2 + $0x50] sm:$0xff] %vm198_vm1, %v14077_v1  ;;  %210 = vst.msk [vmem:[#allocation2 + $0x58] sm:$0xff] %vm198_vm1, %v14077_v1  ;;  %v271_v6 = vld [vmem:[%s14297_s27] sm:$0xff]  ;;  %v272_v8 = vld [vmem:[%s14297_s27 + $0x8] sm:$0xff] }
  0x12   : > { %211 = vst.msk [vmem:[#allocation2 + $0x60] sm:$0xff] %vm198_vm1, %v14077_v1  ;;  %212 = vst.msk [vmem:[#allocation2 + $0x68] sm:$0xff] %vm198_vm1, %v14077_v1  ;;  %v287_v7 = vld [vmem:[%s14297_s27 + $0x80] sm:$0xff]  ;;  %v288_v9 = vld [vmem:[%s14297_s27 + $0x88] sm:$0xff] }
  0x13   : > { %213 = vst.msk [vmem:[#allocation2 + $0x70] sm:$0xff] %vm198_vm1, %v14077_v1  ;;  %214 = vst.msk [vmem:[#allocation2 + $0x78] sm:$0xff] %vm198_vm1, %v14077_v1  ;;  %v369_v11 = vld [vmem:[#allocation2 + $0x8] sm:$0xff]  ;;  %v273_v13 = vld [vmem:[%s14297_s27 + $0x10] sm:$0xff] }
  0x14   : > { %215 = vst.msk [vmem:[#allocation2 + $0x80] sm:$0xff] %vm198_vm1, %v14077_v1  ;;  %216 = vst.msk [vmem:[#allocation2 + $0x88] sm:$0xff] %vm198_vm1, %v14077_v1  ;;  %v370_v12 = vld [vmem:[#allocation2 + $0x10] sm:$0xff]  ;;  %12710 = vmatprep.mubr.msk.f32.mxu0 %vm198_vm1, %v369_v11  ;;  %v274_v15 = vld [vmem:[%s14297_s27 + $0x18] sm:$0xff] }
  0x15   : > { %217 = vst.msk [vmem:[#allocation2 + $0x90] sm:$0xff] %vm198_vm1, %v14077_v1  ;;  %218 = vst.msk [vmem:[#allocation2 + $0x98] sm:$0xff] %vm198_vm1, %v14077_v1  ;;  %v289_v14 = vld [vmem:[%s14297_s27 + $0x90] sm:$0xff]  ;;  %v290_v16 = vld [vmem:[%s14297_s27 + $0x98] sm:$0xff]  ;;  %12711 = vmatmul.mubr.msk.f32.vlgmr.msra.gmra.mxu0 %vm198_vm1, %v370_v12 }
  0x16   : > { %219 = vst.msk [vmem:[#allocation2 + $0xa0] sm:$0xff] %vm198_vm1, %v14077_v1  ;;  %220 = vst.msk [vmem:[#allocation2 + $0xa8] sm:$0xff] %vm198_vm1, %v14077_v1  ;;  %v275_v17 = vld [vmem:[%s14297_s27 + $0x20] sm:$0xff]  ;;  %v276_v19 = vld [vmem:[%s14297_s27 + $0x28] sm:$0xff]  ;;  %12809 = vmatpush3.msk.msra.mxu0 %vm499_vm0, %v10965_v3 }
  0x17   : > { %221 = vst.msk [vmem:[#allocation2 + $0xb0] sm:$0xff] %vm198_vm1, %v14077_v1  ;;  %222 = vst.msk [vmem:[#allocation2 + $0xb8] sm:$0xff] %vm198_vm1, %v14077_v1  ;;  %v291_v18 = vld [vmem:[%s14297_s27 + $0xa0] sm:$0xff]  ;;  %v292_v20 = vld [vmem:[%s14297_s27 + $0xa8] sm:$0xff]  ;;  %12908 = vmatprep.subr.msk.mxu0 %vm499_vm0, %v14311_v10 }
  0x18   : > { %223 = vst.msk [vmem:[#allocation2 + $0xc0] sm:$0xff] %vm198_vm1, %v14077_v1  ;;  %224 = vst.msk [vmem:[#allocation2 + $0xc8] sm:$0xff] %vm198_vm1, %v14077_v1  ;;  %v277_v21 = vld [vmem:[%s14297_s27 + $0x30] sm:$0xff]  ;;  %v278_v23 = vld [vmem:[%s14297_s27 + $0x38] sm:$0xff] }
  0x19   : > { %225 = vst.msk [vmem:[#allocation2 + $0xd0] sm:$0xff] %vm198_vm1, %v14077_v1  ;;  %226 = vst.msk [vmem:[#allocation2 + $0xd8] sm:$0xff] %vm198_vm1, %v14077_v1  ;;  %v293_v22 = vld [vmem:[%s14297_s27 + $0xb0] sm:$0xff]  ;;  %v294_v24 = vld [vmem:[%s14297_s27 + $0xb8] sm:$0xff] }
  0x1a   : > { %227 = vst.msk [vmem:[#allocation2 + $0xe0] sm:$0xff] %vm198_vm1, %v14077_v1  ;;  %228 = vst.msk [vmem:[#allocation2 + $0xe8] sm:$0xff] %vm198_vm1, %v14077_v1  ;;  %v279_v25 = vld [vmem:[%s14297_s27 + $0x40] sm:$0xff]  ;;  %v280_v27 = vld [vmem:[%s14297_s27 + $0x48] sm:$0xff] }
  0x1b   : > { %229 = vst.msk [vmem:[#allocation2 + $0xf0] sm:$0xff] %vm198_vm1, %v14077_v1  ;;  %230 = vst.msk [vmem:[#allocation2 + $0xf8] sm:$0xff] %vm198_vm1, %v14077_v1  ;;  %v295_v26 = vld [vmem:[%s14297_s27 + $0xc0] sm:$0xff]  ;;  %v296_v28 = vld [vmem:[%s14297_s27 + $0xc8] sm:$0xff] }
  0x1c   : > { %231 = vst.msk [vmem:[#allocation2 + $0x100] sm:$0xff] %vm198_vm1, %v14077_v1  ;;  %232 = vst.msk [vmem:[#allocation2 + $0x108] sm:$0xff] %vm198_vm1, %v14077_v1  ;;  %v281_v36 = vld [vmem:[%s14297_s27 + $0x50] sm:$0xff]  ;;  %v282_v46 = vld [vmem:[%s14297_s27 + $0x58] sm:$0xff] }
  0x1d   : > { %233 = vst.msk [vmem:[#allocation2 + $0x110] sm:$0xff] %vm198_vm1, %v14077_v1  ;;  %234 = vst.msk [vmem:[#allocation2 + $0x118] sm:$0xff] %vm198_vm1, %v14077_v1  ;;  %v297_v37 = vld [vmem:[%s14297_s27 + $0xd0] sm:$0xff]  ;;  %v298_v47 = vld [vmem:[%s14297_s27 + $0xd8] sm:$0xff] }
  0x1e   : > { %235 = vst.msk [vmem:[#allocation2 + $0x120] sm:$0xff] %vm198_vm1, %v14077_v1  ;;  %236 = vst.msk [vmem:[#allocation2 + $0x128] sm:$0xff] %vm198_vm1, %v14077_v1  ;;  %v283_v48 = vld [vmem:[%s14297_s27 + $0x60] sm:$0xff]  ;;  %v284_v50 = vld [vmem:[%s14297_s27 + $0x68] sm:$0xff] }
  0x1f   : > { %237 = vst.msk [vmem:[#allocation2 + $0x130] sm:$0xff] %vm198_vm1, %v14077_v1  ;;  %238 = vst.msk [vmem:[#allocation2 + $0x138] sm:$0xff] %vm198_vm1, %v14077_v1  ;;  %v299_v49 = vld [vmem:[%s14297_s27 + $0xe0] sm:$0xff]  ;;  %v300_v51 = vld [vmem:[%s14297_s27 + $0xe8] sm:$0xff] }
  0x20   : > { %239 = vst.msk [vmem:[#allocation2 + $0x140] sm:$0xff] %vm198_vm1, %v14077_v1  ;;  %240 = vst.msk [vmem:[#allocation2 + $0x148] sm:$0xff] %vm198_vm1, %v14077_v1  ;;  %v1052_v3 = vld [vmem:[#allocation2 + $0x9] sm:$0xff] }
  0x21   : > { %241 = vst.msk [vmem:[#allocation2 + $0x150] sm:$0xff] %vm198_vm1, %v14077_v1  ;;  %242 = vst.msk [vmem:[#allocation2 + $0x158] sm:$0xff] %vm198_vm1, %v14077_v1 }
  0x22   : > { %243 = vst.msk [vmem:[#allocation2 + $0x160] sm:$0xff] %vm198_vm1, %v14077_v1  ;;  %244 = vst.msk [vmem:[#allocation2 + $0x168] sm:$0xff] %vm198_vm1, %v14077_v1 }
  0x23   : > { %245 = vst.msk [vmem:[#allocation2 + $0x170] sm:$0xff] %vm198_vm1, %v14077_v1  ;;  %246 = vst.msk [vmem:[#allocation2 + $0x178] sm:$0xff] %vm198_vm1, %v14077_v1 }
  0x24   : > { %247 = vst.msk [vmem:[#allocation2 + $0x180] sm:$0xff] %vm198_vm1, %v14077_v1  ;;  %248 = vst.msk [vmem:[#allocation2 + $0x188] sm:$0xff] %vm198_vm1, %v14077_v1 }
  0x25   : > { %249 = vst.msk [vmem:[#allocation2 + $0x190] sm:$0xff] %vm198_vm1, %v14077_v1  ;;  %250 = vst.msk [vmem:[#allocation2 + $0x198] sm:$0xff] %vm198_vm1, %v14077_v1 }
  0x26   : > { %251 = vst.msk [vmem:[#allocation2 + $0x1a0] sm:$0xff] %vm198_vm1, %v14077_v1  ;;  %252 = vst.msk [vmem:[#allocation2 + $0x1a8] sm:$0xff] %vm198_vm1, %v14077_v1 }
  0x27   : > { %253 = vst.msk [vmem:[#allocation2 + $0x1b0] sm:$0xff] %vm198_vm1, %v14077_v1  ;;  %254 = vst.msk [vmem:[#allocation2 + $0x1b8] sm:$0xff] %vm198_vm1, %v14077_v1 }
  0x28   : > { %255 = vst.msk [vmem:[#allocation2 + $0x1c0] sm:$0xff] %vm198_vm1, %v14077_v1  ;;  %256 = vst.msk [vmem:[#allocation2 + $0x1c8] sm:$0xff] %vm198_vm1, %v14077_v1 }
  0x29   : > { %257 = vst.msk [vmem:[#allocation2 + $0x1d0] sm:$0xff] %vm198_vm1, %v14077_v1  ;;  %258 = vst.msk [vmem:[#allocation2 + $0x1d8] sm:$0xff] %vm198_vm1, %v14077_v1 }
  0x2a   : > { %259 = vst.msk [vmem:[#allocation2 + $0x1e0] sm:$0xff] %vm198_vm1, %v14077_v1  ;;  %260 = vst.msk [vmem:[#allocation2 + $0x1e8] sm:$0xff] %vm198_vm1, %v14077_v1 }
  0x2b   : > { %261 = vst.msk [vmem:[#allocation2 + $0x1f0] sm:$0xff] %vm198_vm1, %v14077_v1  ;;  %262 = vst.msk [vmem:[#allocation2 + $0x1f8] sm:$0xff] %vm198_vm1, %v14077_v1 }
  0x2c   : > { %263 = vst.msk [vmem:[#allocation2 + $0x200] sm:$0xff] %vm198_vm1, %v14077_v1  ;;  %264 = vst.msk [vmem:[#allocation2 + $0x208] sm:$0xff] %vm198_vm1, %v14077_v1 }
  0x2d   : > { %265 = vst.msk [vmem:[#allocation2 + $0x210] sm:$0xff] %vm198_vm1, %v14077_v1  ;;  %266 = vst.msk [vmem:[#allocation2 + $0x218] sm:$0xff] %vm198_vm1, %v14077_v1 }
  0x2e   : > { %267 = vst.msk [vmem:[#allocation2 + $0x220] sm:$0xff] %vm198_vm1, %v14077_v1  ;;  %268 = vst.msk [vmem:[#allocation2 + $0x228] sm:$0xff] %vm198_vm1, %v14077_v1 }
  0x2f   : > { %269 = vst.msk [vmem:[#allocation2 + $0x230] sm:$0xff] %vm198_vm1, %v14077_v1  ;;  %270 = vst.msk [vmem:[#allocation2 + $0x238] sm:$0xff] %vm198_vm1, %v14077_v1 }
  0x30   : > { %318 = vst.msk [vmem:[#allocation2 + $0x108] sm:$0xff] %vm198_vm1, %v285_v4  ;;  %319 = vst.msk [vmem:[#allocation2 + $0x110] sm:$0xff] %vm198_vm1, %v286_v5  ;;  %v1053_v5 = vld [vmem:[#allocation2 + $0x11] sm:$0xff] }
  0x31   : > { %304 = vst.msk [vmem:[#allocation2 + $0x28] sm:$0xff] %vm198_vm1, %v271_v6  ;;  %320 = vst.msk [vmem:[#allocation2 + $0x128] sm:$0xff] %vm198_vm1, %v287_v7  ;;  %v336_v6 = vld [vmem:[#allocation2 + $0x7] sm:$0xff] }
  0x32   : > { %305 = vst.msk [vmem:[#allocation2 + $0x30] sm:$0xff] %vm198_vm1, %v272_v8  ;;  %321 = vst.msk [vmem:[#allocation2 + $0x130] sm:$0xff] %vm198_vm1, %v288_v9  ;;  %v14502_v8 = vld [vmem:[%s18613_s1 + $0x18] sm:$0xf]  ;;  %v337_v9 = vld [vmem:[#allocation2 + $0xf] sm:$0xff] }
  0x33   : > { %306 = vst.msk [vmem:[#allocation2 + $0x48] sm:$0xff] %vm198_vm1, %v273_v13  ;;  %322 = vst.msk [vmem:[#allocation2 + $0x148] sm:$0xff] %vm198_vm1, %v289_v14  ;;  %v14523_v14 = vld [vmem:[%s18613_s1 + $0x14] sm:$0xf] }
  0x34   : > { %307 = vst.msk [vmem:[#allocation2 + $0x50] sm:$0xff] %vm198_vm1, %v274_v15  ;;  %323 = vst.msk [vmem:[#allocation2 + $0x150] sm:$0xff] %vm198_vm1, %v290_v16  ;;  %v302_v15 = vld [vmem:[%s14297_s27 + $0xf8] sm:$0xff] }
  0x35   : > { %308 = vst.msk [vmem:[#allocation2 + $0x68] sm:$0xff] %vm198_vm1, %v275_v17  ;;  %324 = vst.msk [vmem:[#allocation2 + $0x168] sm:$0xff] %vm198_vm1, %v291_v18 }
  0x36   : > { %309 = vst.msk [vmem:[#allocation2 + $0x70] sm:$0xff] %vm198_vm1, %v276_v19  ;;  %325 = vst.msk [vmem:[#allocation2 + $0x170] sm:$0xff] %vm198_vm1, %v292_v20 }
  0x37   : > { %310 = vst.msk [vmem:[#allocation2 + $0x88] sm:$0xff] %vm198_vm1, %v277_v21  ;;  %326 = vst.msk [vmem:[#allocation2 + $0x188] sm:$0xff] %vm198_vm1, %v293_v22  ;;  %v14350_v29 = vld [vmem:[#allocation2 + $0x108] sm:$0xff]  ;;  %v14352_v30 = vld [vmem:[#allocation2 + $0x110] sm:$0xff] }
  0x38   : > { %311 = vst.msk [vmem:[#allocation2 + $0x90] sm:$0xff] %vm198_vm1, %v278_v23  ;;  %327 = vst.msk [vmem:[#allocation2 + $0x190] sm:$0xff] %vm198_vm1, %v294_v24  ;;  %v14354_v31 = vld [vmem:[#allocation2 + $0x28] sm:$0xff]  ;;  %12734 = vmatprep.mubr.msk.f32.mxu1 %vm198_vm1, %v14350_v29 }
  0x39   : > { %312 = vst.msk [vmem:[#allocation2 + $0xa8] sm:$0xff] %vm198_vm1, %v279_v25  ;;  %328 = vst.msk [vmem:[#allocation2 + $0x1a8] sm:$0xff] %vm198_vm1, %v295_v26  ;;  %12713 = vmatprep.mubr.msk.f32.mxu0 %vm198_vm1, %v14354_v31  ;;  %v14363_v32 = vld [vmem:[#allocation2 + $0x128] sm:$0xff]  ;;  %v14365_v33 = vld [vmem:[#allocation2 + $0x30] sm:$0xff]  ;;  %12735 = vmatmul.mubr.msk.f32.vlgmr.msra.gmra.mxu1 %vm198_vm1, %v14352_v30 }
  0x3a   : > { %313 = vst.msk [vmem:[#allocation2 + $0xb0] sm:$0xff] %vm198_vm1, %v280_v27  ;;  %329 = vst.msk [vmem:[#allocation2 + $0x1b0] sm:$0xff] %vm198_vm1, %v296_v28  ;;  %12714 = vmatmul.mubr.msk.f32.gmra.mxu0 %vm198_vm1, %v14365_v33  ;;  %v14376_v35 = vld [vmem:[#allocation2 + $0x48] sm:$0xff]  ;;  %12759 = vmatpush3.msk.msra.mxu1 %vm499_vm0, %v14273_v2  ;;  %v14384_v38 = vld [vmem:[#allocation2 + $0x130] sm:$0xff] }
  0x3b   : > { %12737 = vmatprep.mubr.msk.f32.mxu1 %vm198_vm1, %v14363_v32  ;;  %v14386_v39 = vld [vmem:[#allocation2 + $0x50] sm:$0xff]  ;;  %314 = vst.msk [vmem:[#allocation2 + $0xc8] sm:$0xff] %vm198_vm1, %v281_v36  ;;  %330 = vst.msk [vmem:[#allocation2 + $0x1c8] sm:$0xff] %vm198_vm1, %v297_v37  ;;  %12716 = vmatprep.mubr.msk.f32.mxu0 %vm198_vm1, %v14376_v35  ;;  %v14392_v40 = vld [vmem:[#allocation2 + $0x148] sm:$0xff] }
  0x3c   : > { %v14394_v41 = vld [vmem:[#allocation2 + $0x68] sm:$0xff]  ;;  %12858 = vmatprep.subr.msk.mxu1 %vm499_vm0, %v14370_v34  ;;  %v14402_v42 = vld [vmem:[#allocation2 + $0x150] sm:$0xff]  ;;  %315 = vst.msk [vmem:[#allocation2 + $0xd0] sm:$0xff] %vm198_vm1, %v282_v46  ;;  %331 = vst.msk [vmem:[#allocation2 + $0x1d0] sm:$0xff] %vm198_vm1, %v298_v47 }
  0x3d   : > { %12738 = vmatmul.mubr.msk.f32.gmra.mxu1 %vm198_vm1, %v14384_v38  ;;  %v14408_v43 = vld [vmem:[#allocation2 + $0x168] sm:$0xff]  ;;  %v14410_v44 = vld [vmem:[#allocation2 + $0x70] sm:$0xff]  ;;  %316 = vst.msk [vmem:[#allocation2 + $0xe8] sm:$0xff] %vm198_vm1, %v283_v48  ;;  %332 = vst.msk [vmem:[#allocation2 + $0x1e8] sm:$0xff] %vm198_vm1, %v299_v49 }
  0x3e   : > { %12717 = vmatmul.mubr.msk.f32.gmra.mxu0 %vm198_vm1, %v14386_v39  ;;  %12740 = vmatprep.mubr.msk.f32.mxu1 %vm198_vm1, %v14392_v40  ;;  %v14412_v45 = vld [vmem:[#allocation2 + $0x88] sm:$0xff]  ;;  %317 = vst.msk [vmem:[#allocation2 + $0xf0] sm:$0xff] %vm198_vm1, %v284_v50  ;;  %333 = vst.msk [vmem:[#allocation2 + $0x1f0] sm:$0xff] %vm198_vm1, %v300_v51  ;;  %v14432_v52 = vld [vmem:[#allocation2 + $0x170] sm:$0xff] }
  0x3f   : > { %12719 = vmatprep.mubr.msk.f32.mxu0 %vm198_vm1, %v14394_v41  ;;  %v14436_v53 = vld [vmem:[#allocation2 + $0x90] sm:$0xff]  ;;  %v14438_v54 = vld [vmem:[#allocation2 + $0x188] sm:$0xff]  ;;  %335 = vst.msk [vmem:[#allocation2 + $0x210] sm:$0xff] %vm198_vm1, %v302_v15 }
  0x40   : > { %v14440_v55 = vld [vmem:[#allocation2 + $0xa8] sm:$0xff]  ;;  %v14448_v56 = vld [vmem:[#allocation2 + $0x190] sm:$0xff] }
  0x41   : > { %12741 = vmatmul.mubr.msk.f32.gmra.mxu1 %vm198_vm1, %v14402_v42  ;;  %v14452_v57 = vld [vmem:[#allocation2 + $0xb0] sm:$0xff]  ;;  %v14454_v58 = vld [vmem:[#allocation2 + $0x1a8] sm:$0xff] }
  0x42   : > { %12720 = vmatmul.mubr.msk.f32.gmra.mxu0 %vm198_vm1, %v14410_v44  ;;  %12743 = vmatprep.mubr.msk.f32.mxu1 %vm198_vm1, %v14408_v43  ;;  %v14456_v59 = vld [vmem:[#allocation2 + $0xc8] sm:$0xff]  ;;  %v14464_v60 = vld [vmem:[#allocation2 + $0x1b0] sm:$0xff] }
  0x43   : > { %12722 = vmatprep.mubr.msk.f32.mxu0 %vm198_vm1, %v14412_v45  ;;  %v14468_v61 = vld [vmem:[#allocation2 + $0xd0] sm:$0xff]  ;;  %v14470_v62 = vld [vmem:[#allocation2 + $0x1c8] sm:$0xff] }
  0x44   : > { %v14472_v63 = vld [vmem:[#allocation2 + $0xe8] sm:$0xff]  ;;  %v14480_v0 = vld [vmem:[#allocation2 + $0x1d0] sm:$0xff] }
  0x45   : > { %12744 = vmatmul.mubr.msk.f32.gmra.mxu1 %vm198_vm1, %v14432_v52  ;;  %v14484_v1 = vld [vmem:[#allocation2 + $0xf0] sm:$0xff]  ;;  %v14486_v2 = vld [vmem:[#allocation2 + $0x1e8] sm:$0xff] }
  0x46   : > { %12723 = vmatmul.mubr.msk.f32.gmra.mxu0 %vm198_vm1, %v14436_v53  ;;  %12746 = vmatprep.mubr.msk.f32.mxu1 %vm198_vm1, %v14438_v54  ;;  %v14494_v4 = vld [vmem:[#allocation2 + $0x1f0] sm:$0xff]  ;;  %v14512_v12 = vld [vmem:[#allocation2 + $0x27] sm:$0xff] }
  0x47   : > { %12725 = vmatprep.mubr.msk.f32.mxu0 %vm198_vm1, %v14440_v55  ;;  %v14497_v7 = vld [vmem:[#allocation2 + $0x29] sm:$0xff]  ;;  %v14510_v11 = vld [vmem:[#allocation2 + $0x31] sm:$0xff] }
  0x48   : > { %18742 = vst [vmem:[#allocation3_spill] sm:$0xff] %v14497_v7  ;;  %18743 = vst [vmem:[#allocation4_spill] sm:$0xff] %v14510_v11  ;;  %v14518_v13 = vld [vmem:[#allocation2 + $0x49] sm:$0xff]  ;;  %v14536_v17 = vld [vmem:[#allocation2 + $0x51] sm:$0xff] }
  0x49   : > { %12747 = vmatmul.mubr.msk.f32.gmra.mxu1 %vm198_vm1, %v14448_v56  ;;  %18744 = vst [vmem:[#allocation5_spill] sm:$0xff] %v14518_v13  ;;  %v14534_v16 = vld [vmem:[#allocation2 + $0x2f] sm:$0xff]  ;;  %18745 = vst [vmem:[#allocation6_spill] sm:$0xff] %v14536_v17  ;;  %v14540_v18 = vld [vmem:[#allocation2 + $0x47] sm:$0xff] }
  0x4a   : > { %12726 = vmatmul.mubr.msk.f32.gmra.mxu0 %vm198_vm1, %v14452_v57  ;;  %12749 = vmatprep.mubr.msk.f32.mxu1 %vm198_vm1, %v14454_v58  ;;  %v14544_v19 = vld [vmem:[#allocation2 + $0x69] sm:$0xff]  ;;  %v14558_v21 = vld [vmem:[#allocation2 + $0x71] sm:$0xff] }
  0x4b   : > { %12728 = vmatprep.mubr.msk.f32.mxu0 %vm198_vm1, %v14456_v59  ;;  %18746 = vst [vmem:[#allocation7_spill] sm:$0xff] %v14544_v19  ;;  %v14554_v20 = vld [vmem:[#allocation2 + $0x4f] sm:$0xff]  ;;  %18747 = vst [vmem:[#allocation8_spill] sm:$0xff] %v14558_v21  ;;  %v14560_v22 = vld [vmem:[#allocation2 + $0x67] sm:$0xff] }
  0x4c   : > { %v14562_v23 = vld [vmem:[#allocation2 + $0x89] sm:$0xff]  ;;  %v14574_v25 = vld [vmem:[#allocation2 + $0x91] sm:$0xff] }
  0x4d   : > { %12750 = vmatmul.mubr.msk.f32.gmra.mxu1 %vm198_vm1, %v14464_v60  ;;  %18748 = vst [vmem:[#allocation9_spill] sm:$0xff] %v14562_v23  ;;  %v14570_v24 = vld [vmem:[#allocation2 + $0x6f] sm:$0xff]  ;;  %18749 = vst [vmem:[#allocation10_spill] sm:$0xff] %v14574_v25  ;;  %v14576_v26 = vld [vmem:[#allocation2 + $0x87] sm:$0xff] }
  0x4e   : > { %12729 = vmatmul.mubr.msk.f32.gmra.mxu0 %vm198_vm1, %v14468_v61  ;;  %12752 = vmatprep.mubr.msk.f32.mxu1 %vm198_vm1, %v14470_v62  ;;  %v14578_v27 = vld [vmem:[#allocation2 + $0xa9] sm:$0xff]  ;;  %v14606_v47 = vld [vmem:[#allocation2 + $0xd1] sm:$0xff] }
  0x4f   : > { %12731 = vmatprep.mubr.msk.f32.mxu0 %vm198_vm1, %v14472_v63  ;;  %18750 = vst [vmem:[#allocation11_spill] sm:$0xff] %v14578_v27  ;;  %v14586_v28 = vld [vmem:[#allocation2 + $0x8f] sm:$0xff]  ;;  %v14592_v36 = vld [vmem:[#allocation2 + $0xa7] sm:$0xff]  ;;  %18753 = vst [vmem:[#allocation14_spill] sm:$0xff] %v14606_v47 }
  0x50   : > { %v14594_v37 = vld [vmem:[#allocation2 + $0xc9] sm:$0xff]  ;;  %v14622_v51 = vld [vmem:[#allocation2 + $0xf1] sm:$0xff] }
  0x51   : > { %12753 = vmatmul.mubr.msk.f32.gmra.mxu1 %vm198_vm1, %v14480_v0  ;;  %18752 = vst [vmem:[#allocation13_spill] sm:$0xff] %v14594_v37  ;;  %v14602_v46 = vld [vmem:[#allocation2 + $0xaf] sm:$0xff]  ;;  %v14608_v48 = vld [vmem:[#allocation2 + $0xc7] sm:$0xff]  ;;  %18755 = vst [vmem:[#allocation16_spill] sm:$0xff] %v14622_v51 }
  0x52   : > { %12732 = vmatmul.mubr.msk.f32.gmra.mxu0 %vm198_vm1, %v14484_v1  ;;  %12755 = vmatprep.mubr.msk.f32.mxu1 %vm198_vm1, %v14486_v2  ;;  %v14610_v49 = vld [vmem:[#allocation2 + $0xe9] sm:$0xff] }
  0x53   : > { %12810 = vmatprep.mubr.msk.f32.mxu0 %vm198_vm1, %v1052_v3  ;;  %18754 = vst [vmem:[#allocation15_spill] sm:$0xff] %v14610_v49  ;;  %v14618_v50 = vld [vmem:[#allocation2 + $0xcf] sm:$0xff]  ;;  %v14624_v3 = vld [vmem:[#allocation2 + $0xe7] sm:$0xff] }
  0x54   : > { %v14642_v15 = vld [vmem:[#allocation2 + $0x129] sm:$0xff] }
  0x55   : > { %12756 = vmatmul.mubr.msk.f32.gmra.mxu1 %vm198_vm1, %v14494_v4  ;;  %18758 = vst [vmem:[#allocation19_spill] sm:$0xff] %v14642_v15 }
  0x56   : > { %12811 = vmatmul.mubr.msk.f32.vlgmr.msra.gmra.mxu0 %vm198_vm1, %v1053_v5  ;;  %12760 = vmatprep.mubr.msk.f32.mxu1 %vm198_vm1, %v336_v6  ;;  %v14626_v5 = vld [vmem:[#allocation2 + $0x109] sm:$0xff] }
  0x57   : > { %12909 = vmatpush3.msk.msra.mxu0 %vm499_vm0, %v14311_v10  ;;  %12813 = vmatprep.mubr.msk.f32.mxu0 %vm198_vm1, %v14497_v7  ;;  %v301_v10 = vld [vmem:[%s14297_s27 + $0xf0] sm:$0xff]  ;;  %18756 = vst [vmem:[#allocation17_spill] sm:$0xff] %v14626_v5  ;;  %v14752_v7 = vld [vmem:[#allocation2 + $0x1e7] sm:$0xff] }
  0x58   : > { %13008 = vmatprep.subr.msk.mxu0 %vm499_vm0, %v14502_v8  ;;  %334 = vst.msk [vmem:[#allocation2 + $0x208] sm:$0xff] %vm198_vm1, %v301_v10  ;;  %v14634_v6 = vld [vmem:[#allocation2 + $0xef] sm:$0xff]  ;;  %v14640_v10 = vld [vmem:[#allocation2 + $0x107] sm:$0xff] }
  0x59   : > { %12761 = vmatmul.mubr.msk.f32.vlgmr.msra.gmra.mxu1 %vm198_vm1, %v337_v9  ;;  %v14638_v9 = vld [vmem:[#allocation2 + $0x111] sm:$0xff] }
  0x5a   : > { %12814 = vmatmul.mubr.msk.f32.gmra.mxu0 %vm198_vm1, %v14510_v11  ;;  %12859 = vmatpush3.msk.msra.mxu1 %vm499_vm0, %v14370_v34  ;;  %v14590_v34 = vld [vmem:[#allocation2 + $0xb1] sm:$0xff]  ;;  %18757 = vst [vmem:[#allocation18_spill] sm:$0xff] %v14638_v9  ;;  %v14738_v11 = vld [vmem:[#allocation2 + $0x1e9] sm:$0xff] }
  0x5b   : > { %12763 = vmatprep.mubr.msk.f32.mxu1 %vm198_vm1, %v14512_v12  ;;  %12816 = vmatprep.mubr.msk.f32.mxu0 %vm198_vm1, %v14518_v13  ;;  %18751 = vst [vmem:[#allocation12_spill] sm:$0xff] %v14590_v34  ;;  %v14736_v13 = vld [vmem:[#allocation2 + $0x1c7] sm:$0xff]  ;;  %18770 = vst [vmem:[#allocation31_spill] sm:$0xff] %v14738_v11 }
  0x5c   : > { %12958 = vmatprep.subr.msk.mxu1 %vm499_vm0, %v14523_v14 }
  0x5d   : > { %12764 = vmatmul.mubr.msk.f32.gmra.mxu1 %vm198_vm1, %v14534_v16 }
  0x5e   : > { %12817 = vmatmul.mubr.msk.f32.gmra.mxu0 %vm198_vm1, %v14536_v17  ;;  %12766 = vmatprep.mubr.msk.f32.mxu1 %vm198_vm1, %v14540_v18  ;;  %v14722_v17 = vld [vmem:[#allocation2 + $0x1c9] sm:$0xff] }
  0x5f   : > { %12819 = vmatprep.mubr.msk.f32.mxu0 %vm198_vm1, %v14544_v19  ;;  %v14720_v19 = vld [vmem:[#allocation2 + $0x1a7] sm:$0xff]  ;;  %18768 = vst [vmem:[#allocation29_spill] sm:$0xff] %v14722_v17 }
  0x61   : > { %12767 = vmatmul.mubr.msk.f32.gmra.mxu1 %vm198_vm1, %v14554_v20 }
  0x62   : > { %12820 = vmatmul.mubr.msk.f32.gmra.mxu0 %vm198_vm1, %v14558_v21  ;;  %12769 = vmatprep.mubr.msk.f32.mxu1 %vm198_vm1, %v14560_v22  ;;  %v14706_v21 = vld [vmem:[#allocation2 + $0x1a9] sm:$0xff] }
  0x63   : > { %12822 = vmatprep.mubr.msk.f32.mxu0 %vm198_vm1, %v14562_v23  ;;  %v14704_v23 = vld [vmem:[#allocation2 + $0x187] sm:$0xff]  ;;  %18766 = vst [vmem:[#allocation27_spill] sm:$0xff] %v14706_v21 }
  0x65   : > { %12770 = vmatmul.mubr.msk.f32.gmra.mxu1 %vm198_vm1, %v14570_v24 }
  0x66   : > { %12823 = vmatmul.mubr.msk.f32.gmra.mxu0 %vm198_vm1, %v14574_v25  ;;  %12772 = vmatprep.mubr.msk.f32.mxu1 %vm198_vm1, %v14576_v26  ;;  %v14690_v25 = vld [vmem:[#allocation2 + $0x189] sm:$0xff] }
  0x67   : > { %12825 = vmatprep.mubr.msk.f32.mxu0 %vm198_vm1, %v14578_v27  ;;  %v14688_v27 = vld [vmem:[#allocation2 + $0x167] sm:$0xff]  ;;  %18764 = vst [vmem:[#allocation25_spill] sm:$0xff] %v14690_v25 }
  0x69   : > { %12773 = vmatmul.mubr.msk.f32.gmra.mxu1 %vm198_vm1, %v14586_v28 }
  0x6a   : > { %12826 = vmatmul.mubr.msk.f32.gmra.mxu0 %vm198_vm1, %v14590_v34  ;;  %12775 = vmatprep.mubr.msk.f32.mxu1 %vm198_vm1, %v14592_v36  ;;  %v14674_v34 = vld [vmem:[#allocation2 + $0x169] sm:$0xff] }
  0x6b   : > { %12828 = vmatprep.mubr.msk.f32.mxu0 %vm198_vm1, %v14594_v37  ;;  %v14672_v37 = vld [vmem:[#allocation2 + $0x147] sm:$0xff]  ;;  %18762 = vst [vmem:[#allocation23_spill] sm:$0xff] %v14674_v34 }
  0x6d   : > { %12776 = vmatmul.mubr.msk.f32.gmra.mxu1 %vm198_vm1, %v14602_v46 }
  0x6e   : > { %12829 = vmatmul.mubr.msk.f32.gmra.mxu0 %vm198_vm1, %v14606_v47  ;;  %12778 = vmatprep.mubr.msk.f32.mxu1 %vm198_vm1, %v14608_v48  ;;  %v14658_v47 = vld [vmem:[#allocation2 + $0x149] sm:$0xff] }
  0x6f   : > { %12831 = vmatprep.mubr.msk.f32.mxu0 %vm198_vm1, %v14610_v49  ;;  %v14656_v49 = vld [vmem:[#allocation2 + $0x127] sm:$0xff]  ;;  %18760 = vst [vmem:[#allocation21_spill] sm:$0xff] %v14658_v47 }
  0x71   : > { %12779 = vmatmul.mubr.msk.f32.gmra.mxu1 %vm198_vm1, %v14618_v50 }
  0x72   : > { %12832 = vmatmul.mubr.msk.f32.gmra.mxu0 %vm198_vm1, %v14622_v51  ;;  %12781 = vmatprep.mubr.msk.f32.mxu1 %vm198_vm1, %v14624_v3  ;;  %v14650_v51 = vld [vmem:[#allocation2 + $0x10f] sm:$0xff] }
  0x73   : > { %12834 = vmatprep.mubr.msk.f32.mxu0 %vm198_vm1, %v14626_v5  ;;  %v14654_v5 = vld [vmem:[#allocation2 + $0x131] sm:$0xff] }
  0x74   : > { %18759 = vst [vmem:[#allocation20_spill] sm:$0xff] %v14654_v5 }
  0x75   : > { %12782 = vmatmul.mubr.msk.f32.gmra.mxu1 %vm198_vm1, %v14634_v6 }
  0x76   : > { %12835 = vmatmul.mubr.msk.f32.gmra.mxu0 %vm198_vm1, %v14638_v9  ;;  %12784 = vmatprep.mubr.msk.f32.mxu1 %vm198_vm1, %v14640_v10  ;;  %v14666_v9 = vld [vmem:[#allocation2 + $0x12f] sm:$0xff] }
  0x77   : > { %12837 = vmatprep.mubr.msk.f32.mxu0 %vm198_vm1, %v14642_v15  ;;  %v14670_v15 = vld [vmem:[#allocation2 + $0x151] sm:$0xff] }
  0x78   : > { %18761 = vst [vmem:[#allocation22_spill] sm:$0xff] %v14670_v15 }
  0x79   : > { %12785 = vmatmul.mubr.msk.f32.gmra.mxu1 %vm198_vm1, %v14650_v51 }
  0x7a   : > { %12838 = vmatmul.mubr.msk.f32.gmra.mxu0 %vm198_vm1, %v14654_v5  ;;  %12787 = vmatprep.mubr.msk.f32.mxu1 %vm198_vm1, %v14656_v49  ;;  %v14682_v5 = vld [vmem:[#allocation2 + $0x14f] sm:$0xff] }
  0x7b   : > { %12840 = vmatprep.mubr.msk.f32.mxu0 %vm198_vm1, %v14658_v47  ;;  %v14686_v47 = vld [vmem:[#allocation2 + $0x171] sm:$0xff] }
  0x7c   : > { %18763 = vst [vmem:[#allocation24_spill] sm:$0xff] %v14686_v47 }
  0x7d   : > { %12788 = vmatmul.mubr.msk.f32.gmra.mxu1 %vm198_vm1, %v14666_v9 }
  0x7e   : > { %12841 = vmatmul.mubr.msk.f32.gmra.mxu0 %vm198_vm1, %v14670_v15  ;;  %12790 = vmatprep.mubr.msk.f32.mxu1 %vm198_vm1, %v14672_v37  ;;  %v14698_v15 = vld [vmem:[#allocation2 + $0x16f] sm:$0xff] }
  0x7f   : > { %12843 = vmatprep.mubr.msk.f32.mxu0 %vm198_vm1, %v14674_v34  ;;  %v14702_v34 = vld [vmem:[#allocation2 + $0x191] sm:$0xff] }
  0x80   : > { %18765 = vst [vmem:[#allocation26_spill] sm:$0xff] %v14702_v34 }
  0x81   : > { %12791 = vmatmul.mubr.msk.f32.gmra.mxu1 %vm198_vm1, %v14682_v5 }
  0x82   : > { %12844 = vmatmul.mubr.msk.f32.gmra.mxu0 %vm198_vm1, %v14686_v47  ;;  %12793 = vmatprep.mubr.msk.f32.mxu1 %vm198_vm1, %v14688_v27  ;;  %v14714_v47 = vld [vmem:[#allocation2 + $0x18f] sm:$0xff] }
  0x83   : > { %12846 = vmatprep.mubr.msk.f32.mxu0 %vm198_vm1, %v14690_v25  ;;  %v14718_v25 = vld [vmem:[#allocation2 + $0x1b1] sm:$0xff] }
  0x84   : > { %18767 = vst [vmem:[#allocation28_spill] sm:$0xff] %v14718_v25 }
  0x85   : > { %12794 = vmatmul.mubr.msk.f32.gmra.mxu1 %vm198_vm1, %v14698_v15 }
  0x86   : > { %12847 = vmatmul.mubr.msk.f32.gmra.mxu0 %vm198_vm1, %v14702_v34  ;;  %12796 = vmatprep.mubr.msk.f32.mxu1 %vm198_vm1, %v14704_v23  ;;  %v14730_v34 = vld [vmem:[#allocation2 + $0x1af] sm:$0xff] }
  0x87   : > { %12849 = vmatprep.mubr.msk.f32.mxu0 %vm198_vm1, %v14706_v21  ;;  %v14734_v21 = vld [vmem:[#allocation2 + $0x1d1] sm:$0xff] }
  0x88   : > { %18769 = vst [vmem:[#allocation30_spill] sm:$0xff] %v14734_v21 }
  0x89   : > { %12797 = vmatmul.mubr.msk.f32.gmra.mxu1 %vm198_vm1, %v14714_v47 }
  0x8a   : > { %12850 = vmatmul.mubr.msk.f32.gmra.mxu0 %vm198_vm1, %v14718_v25  ;;  %12799 = vmatprep.mubr.msk.f32.mxu1 %vm198_vm1, %v14720_v19  ;;  %v14746_v25 = vld [vmem:[#allocation2 + $0x1cf] sm:$0xff] }
  0x8b   : > { %12852 = vmatprep.mubr.msk.f32.mxu0 %vm198_vm1, %v14722_v17  ;;  %v14750_v17 = vld [vmem:[#allocation2 + $0x1f1] sm:$0xff] }
  0x8d   : > { %12800 = vmatmul.mubr.msk.f32.gmra.mxu1 %vm198_vm1, %v14730_v34 }
  0x8e   : > { %12853 = vmatmul.mubr.msk.f32.gmra.mxu0 %vm198_vm1, %v14734_v21  ;;  %12802 = vmatprep.mubr.msk.f32.mxu1 %vm198_vm1, %v14736_v13  ;;  %v14760_v21 = vld [vmem:[#allocation2 + $0x1ef] sm:$0xff] }
  0x8f   : > { %12855 = vmatprep.mubr.msk.f32.mxu0 %vm198_vm1, %v14738_v11  ;;  %v14767_v11 = vld [vmem:[%s18613_s1 + $0x20] sm:$0xf] }
  0x91   : > { %12803 = vmatmul.mubr.msk.f32.gmra.mxu1 %vm198_vm1, %v14746_v25 }
  0x92   : > { %12856 = vmatmul.mubr.msk.f32.gmra.mxu0 %vm198_vm1, %v14750_v17  ;;  %12805 = vmatprep.mubr.msk.f32.mxu1 %vm198_vm1, %v14752_v7 }
  0x93   : > { %12910 = vmatprep.mubr.msk.f32.mxu0 %vm198_vm1, %v14354_v31  ;;  %v14784_v31 = vld [vmem:[%s18613_s1 + $0x1c] sm:$0xf] }
  0x95   : > { %12806 = vmatmul.mubr.msk.f32.gmra.mxu1 %vm198_vm1, %v14760_v21 }
  0x96   : > { %12911 = vmatmul.mubr.msk.f32.vlgmr.msra.gmra.mxu0 %vm198_vm1, %v14365_v33  ;;  %12860 = vmatprep.mubr.msk.f32.mxu1 %vm198_vm1, %v14512_v12  ;;  %v14914_v33 = vld [vmem:[#allocation2 + $0x20f] sm:$0xff] }
  0x97   : > { %13009 = vmatpush3.msk.msra.mxu0 %vm499_vm0, %v14502_v8  ;;  %12913 = vmatprep.mubr.msk.f32.mxu0 %vm198_vm1, %v14376_v35  ;;  %v18771_v35 = vld [vmem:[#allocation3_spill] sm:$0xff] }
  0x98   : > { %13108 = vmatprep.subr.msk.mxu0 %vm499_vm0, %v14767_v11 }
  0x99   : > { %12861 = vmatmul.mubr.msk.f32.vlgmr.msra.gmra.mxu1 %vm198_vm1, %v14534_v16 }
  0x9a   : > { %12914 = vmatmul.mubr.msk.f32.gmra.mxu0 %vm198_vm1, %v14386_v39  ;;  %12959 = vmatpush3.msk.msra.mxu1 %vm499_vm0, %v14523_v14  ;;  %v18773_v39 = vld [vmem:[#allocation5_spill] sm:$0xff]  ;;  %v18791_v14 = vld [vmem:[#allocation23_spill] sm:$0xff] }
  0x9b   : > { %12863 = vmatprep.mubr.msk.f32.mxu1 %vm198_vm1, %v14540_v18  ;;  %12916 = vmatprep.mubr.msk.f32.mxu0 %vm198_vm1, %v14394_v41  ;;  %v18775_v41 = vld [vmem:[#allocation7_spill] sm:$0xff] }
  0x9c   : > { %13058 = vmatprep.subr.msk.mxu1 %vm499_vm0, %v14784_v31 }
  0x9d   : > { %12864 = vmatmul.mubr.msk.f32.gmra.mxu1 %vm198_vm1, %v14554_v20 }
  0x9e   : > { %12917 = vmatmul.mubr.msk.f32.gmra.mxu0 %vm198_vm1, %v14410_v44  ;;  %12866 = vmatprep.mubr.msk.f32.mxu1 %vm198_vm1, %v14560_v22  ;;  %v18778_v44 = vld [vmem:[#allocation10_spill] sm:$0xff] }
  0x9f   : > { %12919 = vmatprep.mubr.msk.f32.mxu0 %vm198_vm1, %v14412_v45  ;;  %v18779_v45 = vld [vmem:[#allocation11_spill] sm:$0xff] }
  0xa1   : > { %12867 = vmatmul.mubr.msk.f32.gmra.mxu1 %vm198_vm1, %v14570_v24 }
  0xa2   : > { %12920 = vmatmul.mubr.msk.f32.gmra.mxu0 %vm198_vm1, %v14436_v53  ;;  %12869 = vmatprep.mubr.msk.f32.mxu1 %vm198_vm1, %v14576_v26  ;;  %v18781_v53 = vld [vmem:[#allocation13_spill] sm:$0xff] }
  0xa3   : > { %12922 = vmatprep.mubr.msk.f32.mxu0 %vm198_vm1, %v14440_v55  ;;  %v18783_v55 = vld [vmem:[#allocation15_spill] sm:$0xff] }
  0xa5   : > { %12870 = vmatmul.mubr.msk.f32.gmra.mxu1 %vm198_vm1, %v14586_v28 }
  0xa6   : > { %12923 = vmatmul.mubr.msk.f32.gmra.mxu0 %vm198_vm1, %v14452_v57  ;;  %12872 = vmatprep.mubr.msk.f32.mxu1 %vm198_vm1, %v14592_v36  ;;  %v18785_v57 = vld [vmem:[#allocation17_spill] sm:$0xff] }
  0xa7   : > { %12925 = vmatprep.mubr.msk.f32.mxu0 %vm198_vm1, %v14456_v59  ;;  %v18786_v59 = vld [vmem:[#allocation18_spill] sm:$0xff] }
  0xa9   : > { %12873 = vmatmul.mubr.msk.f32.gmra.mxu1 %vm198_vm1, %v14602_v46 }
  0xaa   : > { %12926 = vmatmul.mubr.msk.f32.gmra.mxu0 %vm198_vm1, %v14468_v61  ;;  %12875 = vmatprep.mubr.msk.f32.mxu1 %vm198_vm1, %v14608_v48  ;;  %v18787_v61 = vld [vmem:[#allocation19_spill] sm:$0xff] }
  0xab   : > { %12928 = vmatprep.mubr.msk.f32.mxu0 %vm198_vm1, %v14472_v63  ;;  %v18788_v63 = vld [vmem:[#allocation20_spill] sm:$0xff] }
  0xad   : > { %12876 = vmatmul.mubr.msk.f32.gmra.mxu1 %vm198_vm1, %v14618_v50 }
  0xae   : > { %12929 = vmatmul.mubr.msk.f32.gmra.mxu0 %vm198_vm1, %v14484_v1  ;;  %12878 = vmatprep.mubr.msk.f32.mxu1 %vm198_vm1, %v14624_v3  ;;  %v18789_v1 = vld [vmem:[#allocation21_spill] sm:$0xff] }
  0xaf   : > { %12931 = vmatprep.mubr.msk.f32.mxu0 %vm198_vm1, %v14350_v29  ;;  %v14894_v29 = vld [vmem:[#allocation2 + $0x208] sm:$0xff] }
  0xb1   : > { %12879 = vmatmul.mubr.msk.f32.gmra.mxu1 %vm198_vm1, %v14634_v6 }
  0xb2   : > { %12932 = vmatmul.mubr.msk.f32.gmra.mxu0 %vm198_vm1, %v14352_v30  ;;  %12881 = vmatprep.mubr.msk.f32.mxu1 %vm198_vm1, %v14640_v10  ;;  %v14904_v30 = vld [vmem:[#allocation2 + $0x210] sm:$0xff] }
  0xb3   : > { %12934 = vmatprep.mubr.msk.f32.mxu0 %vm198_vm1, %v14363_v32  ;;  %v14906_v32 = vld [vmem:[#allocation2 + $0x207] sm:$0xff] }
  0xb5   : > { %12882 = vmatmul.mubr.msk.f32.gmra.mxu1 %vm198_vm1, %v14650_v51 }
  0xb6   : > { %12935 = vmatmul.mubr.msk.f32.gmra.mxu0 %vm198_vm1, %v14384_v38  ;;  %12884 = vmatprep.mubr.msk.f32.mxu1 %vm198_vm1, %v14656_v49  ;;  %v18772_v38 = vld [vmem:[#allocation4_spill] sm:$0xff] }
  0xb7   : > { %12937 = vmatprep.mubr.msk.f32.mxu0 %vm198_vm1, %v14392_v40  ;;  %v18774_v40 = vld [vmem:[#allocation6_spill] sm:$0xff] }
  0xb9   : > { %12885 = vmatmul.mubr.msk.f32.gmra.mxu1 %vm198_vm1, %v14666_v9 }
  0xba   : > { %12938 = vmatmul.mubr.msk.f32.gmra.mxu0 %vm198_vm1, %v14402_v42  ;;  %12887 = vmatprep.mubr.msk.f32.mxu1 %vm198_vm1, %v14672_v37  ;;  %v18776_v42 = vld [vmem:[#allocation8_spill] sm:$0xff] }
  0xbb   : > { %12940 = vmatprep.mubr.msk.f32.mxu0 %vm198_vm1, %v14408_v43  ;;  %v18777_v43 = vld [vmem:[#allocation9_spill] sm:$0xff] }
  0xbd   : > { %12888 = vmatmul.mubr.msk.f32.gmra.mxu1 %vm198_vm1, %v14682_v5 }
  0xbe   : > { %12941 = vmatmul.mubr.msk.f32.gmra.mxu0 %vm198_vm1, %v14432_v52  ;;  %12890 = vmatprep.mubr.msk.f32.mxu1 %vm198_vm1, %v14688_v27  ;;  %v18780_v52 = vld [vmem:[#allocation12_spill] sm:$0xff] }
  0xbf   : > { %12943 = vmatprep.mubr.msk.f32.mxu0 %vm198_vm1, %v14438_v54  ;;  %v18782_v54 = vld [vmem:[#allocation14_spill] sm:$0xff] }
  0xc1   : > { %12891 = vmatmul.mubr.msk.f32.gmra.mxu1 %vm198_vm1, %v14698_v15 }
  0xc2   : > { %12944 = vmatmul.mubr.msk.f32.gmra.mxu0 %vm198_vm1, %v14448_v56  ;;  %12893 = vmatprep.mubr.msk.f32.mxu1 %vm198_vm1, %v14704_v23  ;;  %v18784_v56 = vld [vmem:[#allocation16_spill] sm:$0xff] }
  0xc3   : > { %12946 = vmatprep.mubr.msk.f32.mxu0 %vm198_vm1, %v14454_v58 }
  0xc5   : > { %12894 = vmatmul.mubr.msk.f32.gmra.mxu1 %vm198_vm1, %v14714_v47 }
  0xc6   : > { %12947 = vmatmul.mubr.msk.f32.gmra.mxu0 %vm198_vm1, %v14464_v60  ;;  %12896 = vmatprep.mubr.msk.f32.mxu1 %vm198_vm1, %v14720_v19 }
  0xc7   : > { %12949 = vmatprep.mubr.msk.f32.mxu0 %vm198_vm1, %v14470_v62 }
  0xc9   : > { %12897 = vmatmul.mubr.msk.f32.gmra.mxu1 %vm198_vm1, %v14730_v34 }
  0xca   : > { %12950 = vmatmul.mubr.msk.f32.gmra.mxu0 %vm198_vm1, %v14480_v0  ;;  %12899 = vmatprep.mubr.msk.f32.mxu1 %vm198_vm1, %v14736_v13 }
  0xcb   : > { %12952 = vmatprep.mubr.msk.f32.mxu0 %vm198_vm1, %v14486_v2 }
  0xcd   : > { %12900 = vmatmul.mubr.msk.f32.gmra.mxu1 %vm198_vm1, %v14746_v25 }
  0xce   : > { %12953 = vmatmul.mubr.msk.f32.gmra.mxu0 %vm198_vm1, %v14494_v4  ;;  %12902 = vmatprep.mubr.msk.f32.mxu1 %vm198_vm1, %v14752_v7 }
  0xcf   : > { %12955 = vmatprep.mubr.msk.f32.mxu0 %vm198_vm1, %v14894_v29 }
  0xd1   : > { %12903 = vmatmul.mubr.msk.f32.gmra.mxu1 %vm198_vm1, %v14760_v21 }
  0xd2   : > { %12956 = vmatmul.mubr.msk.f32.gmra.mxu0 %vm198_vm1, %v14904_v30  ;;  %12905 = vmatprep.mubr.msk.f32.mxu1 %vm198_vm1, %v14906_v32 }
  0xd3   : > { %13010 = vmatprep.mubr.msk.f32.mxu0 %vm198_vm1, %v14540_v18 }
  0xd5   : > { %12906 = vmatmul.mubr.msk.f32.gmra.mxu1 %vm198_vm1, %v14914_v33  ;;  %v14986_v58 = vpop.f32.mrf.mxu0 }
  0xd6   : > { %13011 = vmatmul.mubr.msk.f32.vlgmr.msra.gmra.mxu0 %vm198_vm1, %v14554_v20  ;;  %12960 = vmatprep.mubr.msk.f32.mxu1 %vm198_vm1, %v18771_v35 }
  0xd7   : > { %13109 = vmatpush3.msk.msra.mxu0 %vm499_vm0, %v14767_v11  ;;  %13013 = vmatprep.mubr.msk.f32.mxu0 %vm198_vm1, %v14560_v22  ;;  %v14992_v60 = vpop.f32.mrf.mxu0  ;;  %v18790_v11 = vld [vmem:[#allocation22_spill] sm:$0xff]  ;;  %v18793_v22 = vld [vmem:[#allocation24_spill] sm:$0xff] }
  0xd9   : > { %12961 = vmatmul.mubr.msk.f32.vlgmr.msra.gmra.mxu1 %vm198_vm1, %v18772_v38 }
  0xda   : > { %13014 = vmatmul.mubr.msk.f32.gmra.mxu0 %vm198_vm1, %v14570_v24  ;;  %13059 = vmatpush3.msk.msra.mxu1 %vm499_vm0, %v14784_v31  ;;  %v18794_v24 = vld [vmem:[#allocation25_spill] sm:$0xff] }
  0xdb   : > { %12963 = vmatprep.mubr.msk.f32.mxu1 %vm198_vm1, %v18773_v39  ;;  %13016 = vmatprep.mubr.msk.f32.mxu0 %vm198_vm1, %v14576_v26 }
  0xdd   : > { %12964 = vmatmul.mubr.msk.f32.gmra.mxu1 %vm198_vm1, %v18774_v40 }
  0xde   : > { %13017 = vmatmul.mubr.msk.f32.gmra.mxu0 %vm198_vm1, %v14586_v28  ;;  %12966 = vmatprep.mubr.msk.f32.mxu1 %vm198_vm1, %v18775_v41  ;;  %v18796_v28 = vld [vmem:[#allocation26_spill] sm:$0xff] }
  0xdf   : > { %13019 = vmatprep.mubr.msk.f32.mxu0 %vm198_vm1, %v14592_v36 }
  0xe1   : > { %12967 = vmatmul.mubr.msk.f32.gmra.mxu1 %vm198_vm1, %v18776_v42 }
  0xe2   : > { %13020 = vmatmul.mubr.msk.f32.gmra.mxu0 %vm198_vm1, %v14602_v46  ;;  %12969 = vmatprep.mubr.msk.f32.mxu1 %vm198_vm1, %v18777_v43 }
  0xe3   : > { %13022 = vmatprep.mubr.msk.f32.mxu0 %vm198_vm1, %v14608_v48 }
  0xe5   : > { %12970 = vmatmul.mubr.msk.f32.gmra.mxu1 %vm198_vm1, %v18778_v44 }
  0xe6   : > { %13023 = vmatmul.mubr.msk.f32.gmra.mxu0 %vm198_vm1, %v14618_v50  ;;  %12972 = vmatprep.mubr.msk.f32.mxu1 %vm198_vm1, %v18779_v45  ;;  %v2643_v50 = vld [vmem:[#allocation2 + $0x227] sm:$0xff] }
  0xe7   : > { %13025 = vmatprep.mubr.msk.f32.mxu0 %vm198_vm1, %v14624_v3  ;;  %v18802_v3 = vld [vmem:[#allocation30_spill] sm:$0xff] }
  0xe9   : > { %12973 = vmatmul.mubr.msk.f32.gmra.mxu1 %vm198_vm1, %v18780_v52 }
  0xea   : > { %13026 = vmatmul.mubr.msk.f32.gmra.mxu0 %vm198_vm1, %v14634_v6  ;;  %12975 = vmatprep.mubr.msk.f32.mxu1 %vm198_vm1, %v18781_v53  ;;  %v2644_v6 = vld [vmem:[#allocation2 + $0x22f] sm:$0xff] }
  0xeb   : > { %13028 = vmatprep.mubr.msk.f32.mxu0 %vm198_vm1, %v14640_v10 }
  0xed   : > { %12976 = vmatmul.mubr.msk.f32.gmra.mxu1 %vm198_vm1, %v18782_v54 }
  0xee   : > { %13029 = vmatmul.mubr.msk.f32.gmra.mxu0 %vm198_vm1, %v14650_v51  ;;  %12978 = vmatprep.mubr.msk.f32.mxu1 %vm198_vm1, %v18783_v55 }
  0xef   : > { %13031 = vmatprep.mubr.msk.f32.mxu0 %vm198_vm1, %v14656_v49 }
  0xf1   : > { %12979 = vmatmul.mubr.msk.f32.gmra.mxu1 %vm198_vm1, %v18784_v56 }
  0xf2   : > { %13032 = vmatmul.mubr.msk.f32.gmra.mxu0 %vm198_vm1, %v14666_v9  ;;  %12981 = vmatprep.mubr.msk.f32.mxu1 %vm198_vm1, %v18785_v57 }
  0xf3   : > { %13034 = vmatprep.mubr.msk.f32.mxu0 %vm198_vm1, %v14672_v37 }
  0xf5   : > { %12982 = vmatmul.mubr.msk.f32.gmra.mxu1 %vm198_vm1, %v18786_v59 }
  0xf6   : > { %13035 = vmatmul.mubr.msk.f32.gmra.mxu0 %vm198_vm1, %v14682_v5  ;;  %12984 = vmatprep.mubr.msk.f32.mxu1 %vm198_vm1, %v18787_v61 }
  0xf7   : > { %13037 = vmatprep.mubr.msk.f32.mxu0 %vm198_vm1, %v14688_v27 }
  0xf9   : > { %v14998_v62 = vpop.f32.mrf.mxu1  ;;  %12985 = vmatmul.mubr.msk.f32.gmra.mxu1 %vm198_vm1, %v18788_v63 }
  0xfa   : > { %v15002_v0 = vpop.f32.mrf.mxu0  ;;  %13038 = vmatmul.mubr.msk.f32.gmra.mxu0 %vm198_vm1, %v14698_v15  ;;  %12987 = vmatprep.mubr.msk.f32.mxu1 %vm198_vm1, %v18789_v1  ;;  %v15093_v15 = vld [vmem:[#allocation2 + $0x209] sm:$0xff] }
  0xfb   : > { %13040 = vmatprep.mubr.msk.f32.mxu0 %vm198_vm1, %v14704_v23  ;;  %v15010_v2 = vpop.f32.mrf.mxu1 }
  0xfc   : > { %v15012_v4 = vpop.f32.mrf.mxu0 }
  0xfd   : > { %v15014_v8 = vpop.f32.mrf.mxu1  ;;  %12988 = vmatmul.mubr.msk.f32.gmra.mxu1 %vm198_vm1, %v18790_v11 }
  0xfe   : > { %v15018_v12 = vpop.f32.mrf.mxu0  ;;  %13041 = vmatmul.mubr.msk.f32.gmra.mxu0 %vm198_vm1, %v14714_v47  ;;  %12990 = vmatprep.mubr.msk.f32.mxu1 %vm198_vm1, %v18791_v14  ;;  %v18799_v47 = vld [vmem:[#allocation28_spill] sm:$0xff] }
  0xff   : > { %13043 = vmatprep.mubr.msk.f32.mxu0 %vm198_vm1, %v14720_v19  ;;  %v15026_v16 = vpop.f32.mrf.mxu1 }
 0x100   : > { %18792 = vst [vmem:[#allocation3_spill] sm:$0xff] %v15026_v16  ;;  %v15028_v18 = vpop.f32.mrf.mxu0 }
 0x101   : > { %v15030_v20 = vpop.f32.mrf.mxu1  ;;  %12991 = vmatmul.mubr.msk.f32.gmra.mxu1 %vm198_vm1, %v18793_v22 }
 0x102   : > { %v15034_v23 = vpop.f32.mrf.mxu0  ;;  %13044 = vmatmul.mubr.msk.f32.gmra.mxu0 %vm198_vm1, %v14730_v34  ;;  %12993 = vmatprep.mubr.msk.f32.mxu1 %vm198_vm1, %v18794_v24  ;;  %v18797_v34 = vld [vmem:[#allocation27_spill] sm:$0xff] }
 0x103   : > { %13046 = vmatprep.mubr.msk.f32.mxu0 %vm198_vm1, %v14736_v13  ;;  %v15042_v19 = vpop.f32.mrf.mxu1 }
 0x104   : > { %18795 = vst [vmem:[#allocation4_spill] sm:$0xff] %v15042_v19  ;;  %v15044_v26 = vpop.f32.mrf.mxu0 }
 0x105   : > { %v15046_v27 = vpop.f32.mrf.mxu1  ;;  %12994 = vmatmul.mubr.msk.f32.gmra.mxu1 %vm198_vm1, %v18796_v28 }
 0x106   : > { %v15050_v36 = vpop.f32.mrf.mxu0  ;;  %13047 = vmatmul.mubr.msk.f32.gmra.mxu0 %vm198_vm1, %v14746_v25  ;;  %12996 = vmatprep.mubr.msk.f32.mxu1 %vm198_vm1, %v18797_v34  ;;  %v18800_v25 = vld [vmem:[#allocation29_spill] sm:$0xff] }
 0x107   : > { %13049 = vmatprep.mubr.msk.f32.mxu0 %vm198_vm1, %v14752_v7  ;;  %v15058_v13 = vpop.f32.mrf.mxu1 }
 0x108   : > { %18798 = vst [vmem:[#allocation5_spill] sm:$0xff] %v15058_v13  ;;  %v15060_v37 = vpop.f32.mrf.mxu0 }
 0x109   : > { %v15062_v46 = vpop.f32.mrf.mxu1  ;;  %12997 = vmatmul.mubr.msk.f32.gmra.mxu1 %vm198_vm1, %v18799_v47 }
 0x10a   : > { %v15066_v48 = vpop.f32.mrf.mxu0  ;;  %13050 = vmatmul.mubr.msk.f32.gmra.mxu0 %vm198_vm1, %v14760_v21  ;;  %12999 = vmatprep.mubr.msk.f32.mxu1 %vm198_vm1, %v18800_v25  ;;  %v18803_v21 = vld [vmem:[#allocation31_spill] sm:$0xff] }
 0x10b   : > { %13052 = vmatprep.mubr.msk.f32.mxu0 %vm198_vm1, %v14906_v32  ;;  %v15074_v7 = vpop.f32.mrf.mxu1 }
 0x10c   : > { %18801 = vst [vmem:[#allocation6_spill] sm:$0xff] %v15074_v7  ;;  %v15076_v49 = vpop.f32.mrf.mxu0 }
 0x10d   : > { %v15078_v51 = vpop.f32.mrf.mxu1  ;;  %13000 = vmatmul.mubr.msk.f32.gmra.mxu1 %vm198_vm1, %v18802_v3 }
 0x10e   : > { %v15082_v5 = vpop.f32.mrf.mxu0  ;;  %13053 = vmatmul.mubr.msk.f32.gmra.mxu0 %vm198_vm1, %v14914_v33  ;;  %13002 = vmatprep.mubr.msk.f32.mxu1 %vm198_vm1, %v18803_v21  ;;  %v15104_v33 = vld [vmem:[#allocation2 + $0x211] sm:$0xff] }
 0x10f   : > { %13055 = vmatprep.mubr.msk.f32.mxu0 %vm198_vm1, %v2643_v50  ;;  %v15089_v9 = vpop.f32.mrf.mxu1  ;;  %v3003_v50 = vld [vmem:[#allocation2 + $0x48] sm:$0xff]  ;;  %v3004_v21 = vld [vmem:[#allocation2 + $0x50] sm:$0xff] }
 0x110   : > { %18804 = vst [vmem:[#allocation7_spill] sm:$0xff] %v15089_v9  ;;  %v15091_v10 = vpop.f32.mrf.mxu0 }
 0x111   : > { %v15095_v31 = vpop.f32.mrf.mxu1  ;;  %13003 = vmatmul.mubr.msk.f32.gmra.mxu1 %vm198_vm1, %v14750_v17 }
 0x112   : > { %v15099_v32 = vpop.f32.mrf.mxu0  ;;  %13056 = vmatmul.mubr.msk.f32.gmra.mxu0 %vm198_vm1, %v2644_v6  ;;  %13005 = vmatprep.mubr.msk.f32.mxu1 %vm198_vm1, %v15093_v15 }
 0x113   : > { %13110 = vmatprep.mubr.msk.f32.mxu0 %vm198_vm1, %v18773_v39  ;;  %v15108_v35 = vpop.f32.mrf.mxu1 }
 0x114   : > { %18805 = vst [vmem:[#allocation8_spill] sm:$0xff] %v15108_v35  ;;  %v15110_v38 = vpop.f32.mrf.mxu0  ;;  %v3005_v35 = vld [vmem:[#allocation2 + $0x68] sm:$0xff] }
 0x115   : > { %v15112_v3 = vpop.f32.mrf.mxu1  ;;  %13006 = vmatmul.mubr.msk.f32.gmra.mxu1 %vm198_vm1, %v15104_v33 }
 0x116   : > { %18806 = vst [vmem:[#allocation9_spill] sm:$0xff] %v15112_v3  ;;  %v12812_v17 = vpop.f32.mrf.mxu0  ;;  %13111 = vmatmul.mubr.msk.f32.vlgmr.msra.gmra.mxu0 %vm198_vm1, %v18774_v40  ;;  %13060 = vmatprep.mubr.msk.f32.mxu1 %vm198_vm1, %v3003_v50  ;;  %v3006_v40 = vld [vmem:[#allocation2 + $0x70] sm:$0xff] }
 0x117   : > { %13113 = vmatprep.mubr.msk.f32.mxu0 %vm198_vm1, %v18775_v41  ;;  %v15121_v39 = vpop.f32.mrf.mxu1 }
 0x118   : > { %18807 = vst [vmem:[#allocation10_spill] sm:$0xff] %v15121_v39  ;;  %v1251_v6 = vpop.f32.mrf.mxu0  ;;  %v3007_v39 = vld [vmem:[#allocation2 + $0x88] sm:$0xff] }
 0x119   : > { %v12762_v9 = vpop.f32.mrf.mxu1  ;;  %13061 = vmatmul.mubr.msk.f32.vlgmr.msra.gmra.mxu1 %vm198_vm1, %v3004_v21 }
 0x11a   : > { %v12815_v7 = vpop.f32.mrf.mxu0  ;;  %13114 = vmatmul.mubr.msk.f32.gmra.mxu0 %vm198_vm1, %v18776_v42  ;;  %v899_v13 = vadd.f32 %v12762_v9, %v14986_v58  ;;  %13063 = vmatprep.mubr.msk.f32.mxu1 %vm198_vm1, %v3005_v35 }
 0x11b   : > { %13116 = vmatprep.mubr.msk.f32.mxu0 %vm198_vm1, %v18777_v43  ;;  %v893_v41 = vpop.f32.mrf.mxu1  ;;  %v3008_v43 = vld [vmem:[#allocation2 + $0x90] sm:$0xff] }
 0x11c   : > { %v1261_v50 = vpop.f32.mrf.mxu0  ;;  %v15130_v19 = vadd.f32 %v12812_v17, %v899_v13  ;;  %v894_v16 = vadd.f32 %v893_v41, %v14992_v60  ;;  %v3009_v60 = vld [vmem:[#allocation2 + $0xa8] sm:$0xff] }
 0x11d   : > { %v12765_v21 = vpop.f32.mrf.mxu1  ;;  %13064 = vmatmul.mubr.msk.f32.gmra.mxu1 %vm198_vm1, %v3006_v40 }
 0x11e   : > { %v12818_v3 = vpop.f32.mrf.mxu0  ;;  %13117 = vmatmul.mubr.msk.f32.gmra.mxu0 %vm198_vm1, %v18778_v44  ;;  %v15136_v42 = vadd.f32 %v1251_v6, %v894_v16  ;;  %v909_v58 = vadd.f32 %v12765_v21, %v15002_v0  ;;  %13066 = vmatprep.mubr.msk.f32.mxu1 %vm198_vm1, %v3007_v39 }
 0x11f   : > { %13119 = vmatprep.mubr.msk.f32.mxu0 %vm198_vm1, %v18779_v45  ;;  %v903_v13 = vpop.f32.mrf.mxu1  ;;  %v3010_v45 = vld [vmem:[#allocation2 + $0xb0] sm:$0xff] }
 0x120   : > { %v1271_v9 = vpop.f32.mrf.mxu0  ;;  %v15142_v35 = vadd.f32 %v12815_v7, %v909_v58  ;;  %v904_v17 = vadd.f32 %v903_v13, %v15012_v4  ;;  %v3011_v4 = vld [vmem:[#allocation2 + $0xc8] sm:$0xff] }
 0x121   : > { %v12768_v40 = vpop.f32.mrf.mxu1  ;;  %13067 = vmatmul.mubr.msk.f32.gmra.mxu1 %vm198_vm1, %v3008_v43 }
 0x122   : > { %v12821_v44 = vpop.f32.mrf.mxu0  ;;  %13120 = vmatmul.mubr.msk.f32.gmra.mxu0 %vm198_vm1, %v18780_v52  ;;  %v15148_v0 = vadd.f32 %v1261_v50, %v904_v17  ;;  %v919_v16 = vadd.f32 %v12768_v40, %v15018_v12  ;;  %13069 = vmatprep.mubr.msk.f32.mxu1 %vm198_vm1, %v3009_v60  ;;  %v3014_v17 = vld [vmem:[#allocation2 + $0xf0] sm:$0xff] }
 0x123   : > { %13122 = vmatprep.mubr.msk.f32.mxu0 %vm198_vm1, %v18781_v53  ;;  %v913_v7 = vpop.f32.mrf.mxu1  ;;  %v3012_v53 = vld [vmem:[#allocation2 + $0xd0] sm:$0xff] }
 0x124   : > { %v1281_v39 = vpop.f32.mrf.mxu0  ;;  %v15154_v6 = vadd.f32 %v12818_v3, %v919_v16  ;;  %v914_v41 = vadd.f32 %v913_v7, %v15028_v18  ;;  %v3013_v18 = vld [vmem:[#allocation2 + $0xe8] sm:$0xff] }
 0x125   : > { %v12771_v21 = vpop.f32.mrf.mxu1  ;;  %13070 = vmatmul.mubr.msk.f32.gmra.mxu1 %vm198_vm1, %v3010_v45 }
 0x126   : > { %v12824_v52 = vpop.f32.mrf.mxu0  ;;  %13123 = vmatmul.mubr.msk.f32.gmra.mxu0 %vm198_vm1, %v18782_v54  ;;  %v15160_v12 = vadd.f32 %v1271_v9, %v914_v41  ;;  %v929_v50 = vadd.f32 %v12771_v21, %v15034_v23  ;;  %13072 = vmatprep.mubr.msk.f32.mxu1 %vm198_vm1, %v3011_v4  ;;  %v11203_v54 = vld [vmem:[%s18614_s2 + $0x4] sm:$0xf]  ;;  %v3017_v41 = vld [vmem:[#allocation2 + $0x128] sm:$0xff] }
 0x127   : > { %13125 = vmatprep.mubr.msk.f32.mxu0 %vm198_vm1, %v18783_v55  ;;  %v923_v3 = vpop.f32.mrf.mxu1  ;;  %13158 = vmatprep.subr.msk.mxu1 %vm499_vm0, %v11203_v54 }
 0x128   : > { %v1291_v58 = vpop.f32.mrf.mxu0  ;;  %v15166_v43 = vadd.f32 %v12821_v44, %v929_v50  ;;  %v924_v13 = vadd.f32 %v923_v3, %v15044_v26  ;;  %v3015_v44 = vld [vmem:[#allocation2 + $0x108] sm:$0xff]  ;;  %13159 = vmatpush3.msk.msra.mxu1 %vm499_vm0, %v11203_v54 }
 0x129   : > { %v12774_v9 = vpop.f32.mrf.mxu1  ;;  %13073 = vmatmul.mubr.msk.f32.gmra.mxu1 %vm198_vm1, %v3012_v53 }
 0x12a   : > { %v12827_v23 = vpop.f32.mrf.mxu0  ;;  %13126 = vmatmul.mubr.msk.f32.gmra.mxu0 %vm198_vm1, %v18784_v56  ;;  %v15175_v60 = vadd.f32 %v1281_v39, %v924_v13  ;;  %v939_v55 = vadd.f32 %v12774_v9, %v15050_v36  ;;  %13075 = vmatprep.mubr.msk.f32.mxu1 %vm198_vm1, %v3013_v18  ;;  %v3016_v39 = vld [vmem:[#allocation2 + $0x110] sm:$0xff] }
 0x12b   : > { %13128 = vmatprep.mubr.msk.f32.mxu0 %vm198_vm1, %v18785_v57  ;;  %v933_v26 = vpop.f32.mrf.mxu1 }
 0x12c   : > { %v1301_v40 = vpop.f32.mrf.mxu0  ;;  %v15182_v16 = vadd.f32 %v12824_v52, %v939_v55  ;;  %v934_v45 = vadd.f32 %v933_v26, %v15060_v37 }
 0x12d   : > { %v12777_v56 = vpop.f32.mrf.mxu1  ;;  %13076 = vmatmul.mubr.msk.f32.gmra.mxu1 %vm198_vm1, %v3014_v17 }
 0x12e   : > { %v12830_v36 = vpop.f32.mrf.mxu0  ;;  %13129 = vmatmul.mubr.msk.f32.gmra.mxu0 %vm198_vm1, %v18786_v59  ;;  %v15189_v7 = vadd.f32 %v1291_v58, %v934_v45  ;;  %v949_v57 = vadd.f32 %v12777_v56, %v15066_v48  ;;  %13078 = vmatprep.mubr.msk.f32.mxu1 %vm198_vm1, %v3015_v44 }
 0x12f   : > { %13131 = vmatprep.mubr.msk.f32.mxu0 %vm198_vm1, %v18787_v61  ;;  %v943_v37 = vpop.f32.mrf.mxu1  ;;  %v3018_v61 = vld [vmem:[#allocation2 + $0x130] sm:$0xff] }
 0x130   : > { %v1311_v4 = vpop.f32.mrf.mxu0  ;;  %v15195_v21 = vadd.f32 %v12827_v23, %v949_v57  ;;  %v944_v52 = vadd.f32 %v943_v37, %v15076_v49  ;;  %v3019_v49 = vld [vmem:[#allocation2 + $0x148] sm:$0xff] }
 0x131   : > { %v12780_v50 = vpop.f32.mrf.mxu1  ;;  %13079 = vmatmul.mubr.msk.f32.gmra.mxu1 %vm198_vm1, %v3016_v39 }
 0x132   : > { %v12833_v59 = vpop.f32.mrf.mxu0  ;;  %13132 = vmatmul.mubr.msk.f32.gmra.mxu0 %vm198_vm1, %v18788_v63  ;;  %v15201_v48 = vadd.f32 %v1301_v40, %v944_v52  ;;  %v959_v53 = vadd.f32 %v12780_v50, %v15082_v5  ;;  %13081 = vmatprep.mubr.msk.f32.mxu1 %vm198_vm1, %v3017_v41  ;;  %v3025_v41 = vld [vmem:[#allocation2 + $0x1a8] sm:$0xff] }
 0x133   : > { %13134 = vmatprep.mubr.msk.f32.mxu0 %vm198_vm1, %v18789_v1  ;;  %v953_v3 = vpop.f32.mrf.mxu1  ;;  %v3020_v1 = vld [vmem:[#allocation2 + $0x150] sm:$0xff] }
 0x134   : > { %v1321_v58 = vpop.f32.mrf.mxu0  ;;  %v15207_v18 = vadd.f32 %v12830_v36, %v959_v53  ;;  %v954_v13 = vadd.f32 %v953_v3, %v15091_v10  ;;  %v3021_v10 = vld [vmem:[#allocation2 + $0x168] sm:$0xff] }
 0x135   : > { %v12783_v54 = vpop.f32.mrf.mxu1  ;;  %13082 = vmatmul.mubr.msk.f32.gmra.mxu1 %vm198_vm1, %v3018_v61  ;;  %v3027_v3 = vld [vmem:[#allocation2 + $0x1c8] sm:$0xff] }
 0x136   : > { %v12836_v63 = vpop.f32.mrf.mxu0  ;;  %13135 = vmatmul.mubr.msk.f32.gmra.mxu0 %vm198_vm1, %v18790_v11  ;;  %v15213_v5 = vadd.f32 %v1311_v4, %v954_v13  ;;  %v969_v9 = vadd.f32 %v12783_v54, %v15099_v32  ;;  %13084 = vmatprep.mubr.msk.f32.mxu1 %vm198_vm1, %v3019_v49  ;;  %v3420_v54 = vld [vmem:[#allocation2 + $0x1f1] sm:$0xff] }
 0x137   : > { %13137 = vmatprep.mubr.msk.f32.mxu0 %vm198_vm1, %v18791_v14  ;;  %v963_v23 = vpop.f32.mrf.mxu1  ;;  %v3022_v14 = vld [vmem:[#allocation2 + $0x170] sm:$0xff] }
 0x138   : > { %v1331_v55 = vpop.f32.mrf.mxu0  ;;  %v15219_v17 = vadd.f32 %v12833_v59, %v969_v9  ;;  %v964_v26 = vadd.f32 %v963_v23, %v15110_v38  ;;  %v3023_v38 = vld [vmem:[#allocation2 + $0x188] sm:$0xff]  ;;  %v3026_v59 = vld [vmem:[#allocation2 + $0x1b0] sm:$0xff] }
 0x139   : > { %v12786_v40 = vpop.f32.mrf.mxu1  ;;  %13085 = vmatmul.mubr.msk.f32.gmra.mxu1 %vm198_vm1, %v3020_v1  ;;  %v3029_v1 = vld [vmem:[#allocation2 + $0x1e8] sm:$0xff] }
 0x13a   : > { %v12839_v11 = vpop.f32.mrf.mxu0  ;;  %13138 = vmatmul.mubr.msk.f32.gmra.mxu0 %vm198_vm1, %v18793_v22  ;;  %v15225_v32 = vadd.f32 %v1321_v58, %v964_v26  ;;  %v979_v44 = vadd.f32 %v12786_v40, %v14998_v62  ;;  %13087 = vmatprep.mubr.msk.f32.mxu1 %vm198_vm1, %v3021_v10  ;;  %v3419_v58 = vld [vmem:[#allocation2 + $0x1e9] sm:$0xff] }
 0x13b   : > { %13140 = vmatprep.mubr.msk.f32.mxu0 %vm198_vm1, %v18794_v24  ;;  %v973_v45 = vpop.f32.mrf.mxu1  ;;  %v3024_v24 = vld [vmem:[#allocation2 + $0x190] sm:$0xff] }
 0x13c   : > { %v15231_v56 = vpop.f32.mrf.mxu0  ;;  %v15233_v36 = vadd.f32 %v12836_v63, %v979_v44  ;;  %v974_v57 = vadd.f32 %v973_v45, %v15010_v2  ;;  %v3030_v26 = vld [vmem:[#allocation2 + $0x1f0] sm:$0xff] }
 0x13d   : > { %18808 = vst [vmem:[#allocation11_spill] sm:$0xff] %v15231_v56  ;;  %v12789_v39 = vpop.f32.mrf.mxu1  ;;  %13088 = vmatmul.mubr.msk.f32.gmra.mxu1 %vm198_vm1, %v3022_v14  ;;  %v3423_v44 = vld [vmem:[#allocation2 + $0x229] sm:$0xff] }
 0x13e   : > { %v12842_v22 = vpop.f32.mrf.mxu0  ;;  %13141 = vmatmul.mubr.msk.f32.gmra.mxu0 %vm198_vm1, %v18796_v28  ;;  %v15239_v62 = vadd.f32 %v1331_v55, %v974_v57  ;;  %v989_v37 = vadd.f32 %v12789_v39, %v15014_v8  ;;  %13090 = vmatprep.mubr.msk.f32.mxu1 %vm198_vm1, %v3023_v38 }
 0x13f   : > { %13143 = vmatprep.mubr.msk.f32.mxu0 %vm198_vm1, %v18797_v34  ;;  %v15245_v4 = vpop.f32.mrf.mxu1  ;;  %v3418_v34 = vld [vmem:[#allocation2 + $0x1d1] sm:$0xff] }
 0x140   : > { %18809 = vst [vmem:[#allocation12_spill] sm:$0xff] %v15239_v62  ;;  %18810 = vst [vmem:[#allocation13_spill] sm:$0xff] %v15245_v4  ;;  %v15247_v2 = vpop.f32.mrf.mxu0  ;;  %v15249_v52 = vadd.f32 %v12839_v11, %v989_v37 }
 0x141   : > { %18811 = vst [vmem:[#allocation14_spill] sm:$0xff] %v15247_v2  ;;  %v12792_v50 = vpop.f32.mrf.mxu1  ;;  %13091 = vmatmul.mubr.msk.f32.gmra.mxu1 %vm198_vm1, %v3024_v24 }
 0x142   : > { %v12845_v28 = vpop.f32.mrf.mxu0  ;;  %13144 = vmatmul.mubr.msk.f32.gmra.mxu0 %vm198_vm1, %v18799_v47  ;;  %v999_v8 = vadd.f32 %v12792_v50, %v15030_v20  ;;  %13093 = vmatprep.mubr.msk.f32.mxu1 %vm198_vm1, %v3025_v41 }
 0x143   : > { %13146 = vmatprep.mubr.msk.f32.mxu0 %vm198_vm1, %v18800_v25  ;;  %v15258_v53 = vpop.f32.mrf.mxu1  ;;  %v3028_v25 = vld [vmem:[#allocation2 + $0x1d0] sm:$0xff] }
 0x144   : > { %18812 = vst [vmem:[#allocation15_spill] sm:$0xff] %v15258_v53  ;;  %v15260_v61 = vpop.f32.mrf.mxu0  ;;  %v15262_v49 = vadd.f32 %v12842_v22, %v999_v8  ;;  %v3033_v22 = vld [vmem:[#allocation2 + $0x228] sm:$0xff] }
 0x145   : > { %18813 = vst [vmem:[#allocation16_spill] sm:$0xff] %v15260_v61  ;;  %v12795_v13 = vpop.f32.mrf.mxu1  ;;  %13094 = vmatmul.mubr.msk.f32.gmra.mxu1 %vm198_vm1, %v3026_v59 }
 0x146   : > { %v12848_v47 = vpop.f32.mrf.mxu0  ;;  %13147 = vmatmul.mubr.msk.f32.gmra.mxu0 %vm198_vm1, %v3418_v34  ;;  %v1009_v20 = vadd.f32 %v12795_v13, %v15046_v27  ;;  %13096 = vmatprep.mubr.msk.f32.mxu1 %vm198_vm1, %v3027_v3  ;;  %v18822_v34 = vld [vmem:[#allocation9_spill] sm:$0xff] }
 0x147   : > { %13149 = vmatprep.mubr.msk.f32.mxu0 %vm198_vm1, %v3419_v58  ;;  %v15269_v63 = vpop.f32.mrf.mxu1 }
 0x148   : > { %18814 = vst [vmem:[#allocation17_spill] sm:$0xff] %v15269_v63  ;;  %v15271_v9 = vpop.f32.mrf.mxu0  ;;  %v15273_v23 = vadd.f32 %v12845_v28, %v1009_v20 }
 0x149   : > { %18815 = vst [vmem:[#allocation18_spill] sm:$0xff] %v15271_v9  ;;  %v12798_v55 = vpop.f32.mrf.mxu1  ;;  %13097 = vmatmul.mubr.msk.f32.gmra.mxu1 %vm198_vm1, %v3028_v25 }
 0x14a   : > { %v12851_v10 = vpop.f32.mrf.mxu0  ;;  %13150 = vmatmul.mubr.msk.f32.gmra.mxu0 %vm198_vm1, %v3420_v54  ;;  %v1019_v27 = vadd.f32 %v12798_v55, %v15062_v46  ;;  %13099 = vmatprep.mubr.msk.f32.mxu1 %vm198_vm1, %v3029_v1 }
 0x14b   : > { %13152 = vmatprep.mubr.msk.f32.mxu0 %vm198_vm1, %v15093_v15  ;;  %v15281_v40 = vpop.f32.mrf.mxu1  ;;  %v3424_v15 = vld [vmem:[#allocation2 + $0x231] sm:$0xff] }
 0x14c   : > { %18816 = vst [vmem:[#allocation19_spill] sm:$0xff] %v15281_v40  ;;  %v15283_v11 = vpop.f32.mrf.mxu0  ;;  %v15285_v14 = vadd.f32 %v12848_v47, %v1019_v27 }
 0x14d   : > { %18817 = vst [vmem:[#allocation20_spill] sm:$0xff] %v15283_v11  ;;  %v12801_v45 = vpop.f32.mrf.mxu1  ;;  %13100 = vmatmul.mubr.msk.f32.gmra.mxu1 %vm198_vm1, %v3030_v26 }
 0x14e   : > { %v12854_v38 = vpop.f32.mrf.mxu0  ;;  %13153 = vmatmul.mubr.msk.f32.gmra.mxu0 %vm198_vm1, %v15104_v33  ;;  %v1029_v46 = vadd.f32 %v12801_v45, %v15078_v51  ;;  %13102 = vmatprep.mubr.msk.f32.mxu1 %vm198_vm1, %v14894_v29  ;;  %v3034_v29 = vld [vmem:[#allocation2 + $0x230] sm:$0xff] }
 0x14f   : > { %13155 = vmatprep.mubr.msk.f32.mxu0 %vm198_vm1, %v3423_v44  ;;  %v15294_v57 = vpop.f32.mrf.mxu1 }
 0x150   : > { %18818 = vst [vmem:[#allocation21_spill] sm:$0xff] %v15294_v57  ;;  %v15296_v39 = vpop.f32.mrf.mxu0  ;;  %v15298_v37 = vadd.f32 %v12851_v10, %v1029_v46 }
 0x151   : > { %18819 = vst [vmem:[#allocation22_spill] sm:$0xff] %v15296_v39  ;;  %v12804_v24 = vpop.f32.mrf.mxu1  ;;  %13103 = vmatmul.mubr.msk.f32.gmra.mxu1 %vm198_vm1, %v14904_v30 }
 0x152   : > { %v12857_v33 = vpop.f32.mrf.mxu0  ;;  %13156 = vmatmul.mubr.msk.f32.gmra.mxu0 %vm198_vm1, %v3424_v15  ;;  %v1039_v51 = vadd.f32 %v12804_v24, %v15095_v31  ;;  %13105 = vmatprep.mubr.msk.f32.mxu1 %vm198_vm1, %v3033_v22  ;;  %v3879_v15 = vld [vmem:[%s18614_s2] sm:$0xf] }
 0x153   : > { %v15305_v41 = vpop.f32.mrf.mxu1  ;;  %13208 = vmatprep.subr.msk.mxu0 %vm499_vm0, %v3879_v15 }
 0x154   : > { %18820 = vst [vmem:[#allocation23_spill] sm:$0xff] %v15305_v41  ;;  %v15307_v50 = vpop.f32.mrf.mxu0  ;;  %v15309_v28 = vadd.f32 %v12854_v38, %v1039_v51  ;;  %13209 = vmatpush3.msk.msra.mxu0 %vm499_vm0, %v3879_v15 }
 0x155   : > { %18821 = vst [vmem:[#allocation24_spill] sm:$0xff] %v15307_v50  ;;  %v12807_v8 = vpop.f32.mrf.mxu1  ;;  %13106 = vmatmul.mubr.msk.f32.gmra.mxu1 %vm198_vm1, %v3034_v29  ;;  %v3881_v29 = vld [vmem:[#allocation2 + $0x10] sm:$0xff] }
 0x156   : > { %v12912_v59 = vpop.f32.mrf.mxu0  ;;  %v1049_v30 = vadd.f32 %v12807_v8, %v18822_v34 }
 0x157   : > { %v15313_v3 = vpop.f32.mrf.mxu1 }
 0x158   : > { %18823 = vst [vmem:[#allocation25_spill] sm:$0xff] %v15313_v3  ;;  %v15315_v58 = vpop.f32.mrf.mxu0  ;;  %v15317_v31 = vadd.f32 %v12857_v33, %v1049_v30  ;;  %v3847_v33 = vld [vmem:[#allocation2 + $0x7] sm:$0xff] }
 0x159   : > { %v12862_v13 = vpop.f32.mrf.mxu1  ;;  %13210 = vmatprep.mubr.msk.f32.mxu0 %vm198_vm1, %v3847_v33 }
 0x15a   : > { %v12915_v47 = vpop.f32.mrf.mxu0  ;;  %v1801_v20 = vadd.f32 %v12862_v13, %v15130_v19 }
 0x15b   : > { %v15320_v25 = vpop.f32.mrf.mxu1 }
 0x15c   : > { %v15322_v54 = vpop.f32.mrf.mxu0  ;;  %v15324_v1 = vadd.f32 %v12912_v59, %v1801_v20 }
 0x15d   : > { %v12865_v55 = vpop.f32.mrf.mxu1 }
 0x15e   : > { %v12918_v10 = vpop.f32.mrf.mxu0  ;;  %v1803_v27 = vadd.f32 %v12865_v55, %v15142_v35  ;;  %v3880_v35 = vld [vmem:[#allocation2 + $0x8] sm:$0xff] }
 0x15f   : > { %v15327_v26 = vpop.f32.mrf.mxu1  ;;  %13160 = vmatprep.mubr.msk.f32.mxu1 %vm198_vm1, %v3880_v35 }
 0x160   : > { %v15329_v44 = vpop.f32.mrf.mxu0  ;;  %v15331_v45 = vadd.f32 %v12915_v47, %v1803_v27  ;;  %13161 = vmatmul.mubr.msk.f32.vlgmr.msra.gmra.mxu1 %vm198_vm1, %v3881_v29 }
 0x161   : > { %v12868_v38 = vpop.f32.mrf.mxu1 }
 0x162   : > { %v12921_v46 = vpop.f32.mrf.mxu0  ;;  %v1805_v19 = vadd.f32 %v12868_v38, %v15154_v6  ;;  %v3848_v6 = vld [vmem:[#allocation2 + $0xf] sm:$0xff] }
 0x163   : > { %v15337_v22 = vpop.f32.mrf.mxu1  ;;  %13211 = vmatmul.mubr.msk.f32.vlgmr.msra.gmra.mxu0 %vm198_vm1, %v3848_v6 }
 0x164   : > { %v15339_v24 = vpop.f32.mrf.mxu0  ;;  %v15342_v51 = vadd.f32 %v12918_v10, %v1805_v19 }
 0x165   : > { %v12871_v8 = vpop.f32.mrf.mxu1 }
 0x166   : > { %v12924_v59 = vpop.f32.mrf.mxu0  ;;  %v1807_v34 = vadd.f32 %v12871_v8, %v15166_v43  ;;  %v11270_v43 = vld [vmem:[%s18614_s2 + $0x8] sm:$0xf] }
 0x167   : > { %v15350_v30 = vpop.f32.mrf.mxu1  ;;  %13258 = vmatprep.subr.msk.mxu1 %vm499_vm0, %v11270_v43 }
 0x168   : > { %v15352_v13 = vpop.f32.mrf.mxu0  ;;  %v15354_v47 = vadd.f32 %v12921_v46, %v1807_v34  ;;  %13259 = vmatpush3.msk.msra.mxu1 %vm499_vm0, %v11270_v43 }
 0x169   : > { %v12874_v20 = vpop.f32.mrf.mxu1 }
 0x16a   : > { %v12927_v55 = vpop.f32.mrf.mxu0  ;;  %v1809_v10 = vadd.f32 %v12874_v20, %v15182_v16 }
 0x16b   : > { %v15357_v27 = vpop.f32.mrf.mxu1 }
 0x16c   : > { %v15359_v38 = vpop.f32.mrf.mxu0  ;;  %v15361_v19 = vadd.f32 %v12924_v59, %v1809_v10 }
 0x16d   : > { %v12877_v15 = vpop.f32.mrf.mxu1 }
 0x16e   : > { %v12930_v35 = vpop.f32.mrf.mxu0  ;;  %v1811_v46 = vadd.f32 %v12877_v15, %v15195_v21 }
 0x16f   : > { %v15369_v33 = vpop.f32.mrf.mxu1 }
 0x170   : > { %v15371_v16 = vpop.f32.mrf.mxu0  ;;  %v15373_v29 = vadd.f32 %v12927_v55, %v1811_v46 }
 0x171   : > { %v12880_v6 = vpop.f32.mrf.mxu1 }
 0x172   : > { %v12933_v8 = vpop.f32.mrf.mxu0  ;;  %v1813_v59 = vadd.f32 %v12880_v6, %v15207_v18 }
 0x173   : > { %v15376_v34 = vpop.f32.mrf.mxu1 }
 0x174   : > { %v15378_v20 = vpop.f32.mrf.mxu0  ;;  %v15380_v10 = vadd.f32 %v12930_v35, %v1813_v59 }
 0x175   : > { %18824 = vst [vmem:[#allocation26_spill] sm:$0xff] %v15378_v20  ;;  %v12883_v50 = vpop.f32.mrf.mxu1 }
 0x176   : > { %v12936_v21 = vpop.f32.mrf.mxu0  ;;  %v1815_v43 = vadd.f32 %v12883_v50, %v15219_v17 }
 0x177   : > { %v15383_v15 = vpop.f32.mrf.mxu1 }
 0x178   : > { %v15385_v3 = vpop.f32.mrf.mxu0  ;;  %v15387_v55 = vadd.f32 %v12933_v8, %v1815_v43 }
 0x179   : > { %18825 = vst [vmem:[#allocation27_spill] sm:$0xff] %v15385_v3  ;;  %v12886_v46 = vpop.f32.mrf.mxu1 }
 0x17a   : > { %18826 = vst [vmem:[#allocation28_spill] sm:$0xff] %v15387_v55  ;;  %v12939_v39 = vpop.f32.mrf.mxu0  ;;  %v1817_v18 = vadd.f32 %v12886_v46, %v15233_v36 }
 0x17b   : > { %v15390_v6 = vpop.f32.mrf.mxu1 }
 0x17c   : > { %18827 = vst [vmem:[#allocation29_spill] sm:$0xff] %v15390_v6  ;;  %v15392_v41 = vpop.f32.mrf.mxu0  ;;  %v15394_v35 = vadd.f32 %v12936_v21, %v1817_v18 }
 0x17d   : > { %18828 = vst [vmem:[#allocation30_spill] sm:$0xff] %v15392_v41  ;;  %v12889_v59 = vpop.f32.mrf.mxu1 }
 0x17e   : > { %18829 = vst [vmem:[#allocation31_spill] sm:$0xff] %v15394_v35  ;;  %v12942_v11 = vpop.f32.mrf.mxu0  ;;  %v1819_v17 = vadd.f32 %v12889_v59, %v15249_v52 }
 0x17f   : > { %v15397_v50 = vpop.f32.mrf.mxu1 }
 0x180   : > { %18830 = vst [vmem:[#allocation9_spill] sm:$0xff] %v15397_v50  ;;  %v15399_v57 = vpop.f32.mrf.mxu0  ;;  %v15401_v8 = vadd.f32 %v12939_v39, %v1819_v17 }
 0x181   : > { %18831 = vst [vmem:[#allocation32_spill] sm:$0xff] %v15399_v57  ;;  %v12892_v43 = vpop.f32.mrf.mxu1 }
 0x182   : > { %18832 = vst [vmem:[#allocation33_spill] sm:$0xff] %v15401_v8  ;;  %v12945_v9 = vpop.f32.mrf.mxu0  ;;  %v1821_v36 = vadd.f32 %v12892_v43, %v15262_v49 }
 0x183   : > { %v15404_v46 = vpop.f32.mrf.mxu1 }
 0x184   : > { %18833 = vst [vmem:[#allocation34_spill] sm:$0xff] %v15404_v46  ;;  %v15406_v40 = vpop.f32.mrf.mxu0  ;;  %v15408_v21 = vadd.f32 %v12942_v11, %v1821_v36 }
 0x185   : > { %18834 = vst [vmem:[#allocation35_spill] sm:$0xff] %v15406_v40  ;;  %v12895_v18 = vpop.f32.mrf.mxu1 }
 0x186   : > { %18835 = vst [vmem:[#allocation36_spill] sm:$0xff] %v15408_v21  ;;  %v12948_v61 = vpop.f32.mrf.mxu0  ;;  %v1823_v52 = vadd.f32 %v12895_v18, %v15273_v23 }
 0x187   : > { %v15411_v59 = vpop.f32.mrf.mxu1 }
 0x188   : > { %18836 = vst [vmem:[#allocation37_spill] sm:$0xff] %v15411_v59  ;;  %v15413_v41 = vpop.f32.mrf.mxu0  ;;  %v15415_v39 = vadd.f32 %v12945_v9, %v1823_v52 }
 0x189   : > { %18837 = vst [vmem:[#allocation38_spill] sm:$0xff] %v15413_v41  ;;  %v12898_v17 = vpop.f32.mrf.mxu1 }
 0x18a   : > { %18838 = vst [vmem:[#allocation39_spill] sm:$0xff] %v15415_v39  ;;  %v12951_v57 = vpop.f32.mrf.mxu0  ;;  %v1825_v49 = vadd.f32 %v12898_v17, %v15285_v14 }
 0x18b   : > { %v15418_v43 = vpop.f32.mrf.mxu1 }
 0x18c   : > { %18839 = vst [vmem:[#allocation40_spill] sm:$0xff] %v15418_v43  ;;  %v15420_v8 = vpop.f32.mrf.mxu0  ;;  %v15422_v11 = vadd.f32 %v12948_v61, %v1825_v49 }
 0x18d   : > { %18840 = vst [vmem:[#allocation41_spill] sm:$0xff] %v15420_v8  ;;  %v12901_v36 = vpop.f32.mrf.mxu1 }
 0x18e   : > { %18841 = vst [vmem:[#allocation42_spill] sm:$0xff] %v15422_v11  ;;  %v12954_v40 = vpop.f32.mrf.mxu0  ;;  %v1827_v23 = vadd.f32 %v12901_v36, %v15298_v37 }
 0x18f   : > { %v15425_v18 = vpop.f32.mrf.mxu1 }
 0x190   : > { %18842 = vst [vmem:[#allocation43_spill] sm:$0xff] %v15425_v18  ;;  %v15427_v21 = vpop.f32.mrf.mxu0  ;;  %v15429_v9 = vadd.f32 %v12951_v57, %v1827_v23 }
 0x191   : > { %18843 = vst [vmem:[#allocation44_spill] sm:$0xff] %v15427_v21  ;;  %v12904_v52 = vpop.f32.mrf.mxu1 }
 0x192   : > { %18844 = vst [vmem:[#allocation45_spill] sm:$0xff] %v15429_v9  ;;  %v12957_v41 = vpop.f32.mrf.mxu0  ;;  %v1829_v14 = vadd.f32 %v12904_v52, %v15309_v28  ;;  %v15478_v9 = vld [vmem:[%s18614_s2 + $0x10] sm:$0xf] }
 0x193   : > { %v15432_v17 = vpop.f32.mrf.mxu1  ;;  %18850 = vst [vmem:[#allocation51_spill] sm:$0xff] %v15478_v9  ;;  %13358 = vmatprep.subr.msk.mxu1 %vm499_vm0, %v15478_v9 }
 0x194   : > { %18845 = vst [vmem:[#allocation46_spill] sm:$0xff] %v15432_v17  ;;  %v15434_v39 = vpop.f32.mrf.mxu0  ;;  %v15436_v61 = vadd.f32 %v12954_v40, %v1829_v14 }
 0x195   : > { %18846 = vst [vmem:[#allocation47_spill] sm:$0xff] %v15434_v39  ;;  %v12907_v49 = vpop.f32.mrf.mxu1 }
 0x196   : > { %18847 = vst [vmem:[#allocation48_spill] sm:$0xff] %v15436_v61  ;;  %v15438_v8 = vpop.f32.mrf.mxu0  ;;  %v1831_v37 = vadd.f32 %v12907_v49, %v15317_v31 }
 0x197   : > { %v15441_v36 = vpop.f32.mrf.mxu1 }
 0x198   : > { %18848 = vst [vmem:[#allocation49_spill] sm:$0xff] %v15441_v36  ;;  %v15443_v21 = vpop.f32.mrf.mxu0  ;;  %v15445_v57 = vadd.f32 %v12957_v41, %v1831_v37  ;;  %v11304_v36 = vld [vmem:[%s18614_s2 + $0xc] sm:$0xf] }
 0x199   : > { %v15447_v23 = vpop.f32.mrf.mxu1  ;;  %13308 = vmatprep.subr.msk.mxu0 %vm499_vm0, %v11304_v36 }
 0x19a   : > { %18849 = vst [vmem:[#allocation50_spill] sm:$0xff] %v15445_v57  ;;  %v15449_v28 = vpop.f32.mrf.mxu0  ;;  %13309 = vmatpush3.msk.msra.mxu0 %vm499_vm0, %v11304_v36 }
 0x19b   : > { %v15451_v52 = vpop.f32.mrf.mxu1 }
 0x19c   : > { %v15453_v39 = vpop.f32.mrf.mxu0 }
 0x19d   : > { %v15455_v40 = vpop.f32.mrf.mxu1 }
 0x19e   : > { %v15457_v14 = vpop.f32.mrf.mxu0 }
 0x19f   : > { %v15459_v61 = vpop.f32.mrf.mxu1 }
 0x1a0   : > { %v15461_v31 = vpop.f32.mrf.mxu0 }
 0x1a1   : > { %v15463_v49 = vpop.f32.mrf.mxu1 }
 0x1a2   : > { %v15465_v41 = vpop.f32.mrf.mxu0 }
 0x1a3   : > { %v15467_v37 = vpop.f32.mrf.mxu1 }
 0x1a4   : > { %v15469_v57 = vpop.f32.mrf.mxu0 }
 0x1a5   : > { %v15480_v17 = vpop.f32.mrf.mxu1 }
 0x1a6   : > { %v15482_v11 = vpop.f32.mrf.mxu0 }
 0x1a7   : > { %v15487_v18 = vpop.f32.mrf.mxu1 }
 0x1a8   : > { %v15489_v43 = vpop.f32.mrf.mxu0 }
 0x1a9   : > { %v15491_v59 = vpop.f32.mrf.mxu1 }
 0x1aa   : > { %v15493_v46 = vpop.f32.mrf.mxu0 }
 0x1ab   : > { %18851 = vst [vmem:[#allocation52_spill] sm:$0xff] %v15493_v46  ;;  %v15495_v63 = vpop.f32.mrf.mxu1 }
 0x1ac   : > { %v15497_v2 = vpop.f32.mrf.mxu0 }
 0x1ad   : > { %18852 = vst [vmem:[#allocation53_spill] sm:$0xff] %v15497_v2  ;;  %v15499_v35 = vpop.f32.mrf.mxu1 }
 0x1ae   : > { %v15501_v50 = vpop.f32.mrf.mxu0 }
 0x1af   : > { %18853 = vst [vmem:[#allocation54_spill] sm:$0xff] %v15501_v50  ;;  %v15503_v36 = vpop.f32.mrf.mxu1 }
 0x1b0   : > { %v15505_v3 = vpop.f32.mrf.mxu0 }
 0x1b1   : > { %18854 = vst [vmem:[#allocation55_spill] sm:$0xff] %v15505_v3  ;;  %v15507_v9 = vpop.f32.mrf.mxu1 }
 0x1b2   : > { %v15509_v53 = vpop.f32.mrf.mxu0 }
 0x1b3   : > { %18855 = vst [vmem:[#allocation56_spill] sm:$0xff] %v15509_v53  ;;  %v15511_v56 = vpop.f32.mrf.mxu1 }
 0x1b4   : > { %18856 = vst [vmem:[#allocation57_spill] sm:$0xff] %v15511_v56  ;;  %v15513_v55 = vpop.f32.mrf.mxu0 }
 0x1b5   : > { %18857 = vst [vmem:[#allocation58_spill] sm:$0xff] %v15513_v55  ;;  %v15515_v6 = vpop.f32.mrf.mxu1 }
 0x1b6   : > { %18858 = vst [vmem:[#allocation59_spill] sm:$0xff] %v15515_v6  ;;  %v15517_v62 = vpop.f32.mrf.mxu0 }
 0x1b7   : > { %18859 = vst [vmem:[#allocation60_spill] sm:$0xff] %v15517_v62  ;;  %v15519_v20 = vpop.f32.mrf.mxu1 }
 0x1b8   : > { %18860 = vst [vmem:[#allocation61_spill] sm:$0xff] %v15519_v20  ;;  %v15521_v2 = vpop.f32.mrf.mxu0 }
 0x1b9   : > { %18861 = vst [vmem:[#allocation62_spill] sm:$0xff] %v15521_v2  ;;  %v15523_v50 = vpop.f32.mrf.mxu1 }
 0x1ba   : > { %18862 = vst [vmem:[#allocation63_spill] sm:$0xff] %v15523_v50  ;;  %v15525_v4 = vpop.f32.mrf.mxu0 }
 0x1bb   : > { %18863 = vst [vmem:[#allocation64_spill] sm:$0xff] %v15525_v4  ;;  %v15527_v3 = vpop.f32.mrf.mxu1 }
 0x1bc   : > { %18864 = vst [vmem:[#allocation65_spill] sm:$0xff] %v15527_v3  ;;  %v15529_v46 = vpop.f32.mrf.mxu0 }
 0x1bd   : > { %18865 = vst [vmem:[#allocation66_spill] sm:$0xff] %v15529_v46  ;;  %v15531_v53 = vpop.f32.mrf.mxu1 }
 0x1be   : > { %18866 = vst [vmem:[#allocation67_spill] sm:$0xff] %v15531_v53  ;;  %v15533_v56 = vpop.f32.mrf.mxu0 }
 0x1bf   : > { %18867 = vst [vmem:[#allocation68_spill] sm:$0xff] %v15533_v56  ;;  %v15535_v55 = vpop.f32.mrf.mxu1 }
 0x1c0   : > { %18868 = vst [vmem:[#allocation69_spill] sm:$0xff] %v15535_v55  ;;  %v15537_v6 = vpop.f32.mrf.mxu0 }
 0x1c1   : > { %18869 = vst [vmem:[#allocation70_spill] sm:$0xff] %v15537_v6  ;;  %v15539_v62 = vpop.f32.mrf.mxu1 }
 0x1c2   : > { %18870 = vst [vmem:[#allocation71_spill] sm:$0xff] %v15539_v62  ;;  %v15541_v20 = vpop.f32.mrf.mxu0 }
 0x1c3   : > { %18871 = vst [vmem:[#allocation72_spill] sm:$0xff] %v15541_v20  ;;  %v15543_v2 = vpop.f32.mrf.mxu1 }
 0x1c4   : > { %18872 = vst [vmem:[#allocation73_spill] sm:$0xff] %v15543_v2  ;;  %v15545_v50 = vpop.f32.mrf.mxu0 }
 0x1c5   : > { %18873 = vst [vmem:[#allocation74_spill] sm:$0xff] %v15545_v50  ;;  %v15547_v4 = vpop.f32.mrf.mxu1 }
 0x1c6   : > { %18874 = vst [vmem:[#allocation75_spill] sm:$0xff] %v15547_v4  ;;  %v15549_v3 = vpop.f32.mrf.mxu0 }
 0x1c7   : > { %18875 = vst [vmem:[#allocation76_spill] sm:$0xff] %v15549_v3  ;;  %v15551_v46 = vpop.f32.mrf.mxu1  ;;  %v1800_v3 = vadd.f32 %v15320_v25, %v15136_v42  ;;  %v1804_v25 = vadd.f32 %v15337_v22, %v15160_v12  ;;  %v1806_v12 = vadd.f32 %v15350_v30, %v15175_v60 }
 0x1c8   : > { %v15553_v53 = vpop.f32.mrf.mxu0 }
 0x1c9   : > { %18876 = vst [vmem:[#allocation77_spill] sm:$0xff] %v15553_v53  ;;  %v15555_v56 = vpop.f32.mrf.mxu1  ;;  %v2196_v60 = vadd.f32 %v15339_v24, %v1806_v12  ;;  %v15627_v12 = vld [vmem:[%s18614_s2 + $0x14] sm:$0xf] }
 0x1ca   : > { %18877 = vst [vmem:[#allocation78_spill] sm:$0xff] %v15555_v56  ;;  %v15557_v55 = vpop.f32.mrf.mxu0  ;;  %13408 = vmatprep.subr.msk.mxu0 %vm499_vm0, %v15627_v12 }
 0x1cb   : > { %18878 = vst [vmem:[#allocation79_spill] sm:$0xff] %v15557_v55  ;;  %v15559_v6 = vpop.f32.mrf.mxu1  ;;  %v2586_v24 = vadd.f32 %v15487_v18, %v2196_v60  ;;  %v1814_v60 = vadd.f32 %v15383_v15, %v15225_v32  ;;  %v18890_v32 = vld [vmem:[#allocation13_spill] sm:$0xff] }
 0x1cc   : > { %18879 = vst [vmem:[#allocation80_spill] sm:$0xff] %v15559_v6  ;;  %v15561_v62 = vpop.f32.mrf.mxu0 }
 0x1cd   : > { %18880 = vst [vmem:[#allocation81_spill] sm:$0xff] %v15561_v62  ;;  %v15563_v20 = vpop.f32.mrf.mxu1  ;;  %v2190_v62 = vadd.f32 %v15315_v58, %v1800_v3 }
 0x1ce   : > { %18881 = vst [vmem:[#allocation82_spill] sm:$0xff] %v15563_v20  ;;  %v15565_v2 = vpop.f32.mrf.mxu0 }
 0x1cf   : > { %18882 = vst [vmem:[#allocation83_spill] sm:$0xff] %v15565_v2  ;;  %v15567_v50 = vpop.f32.mrf.mxu1  ;;  %v1802_v2 = vadd.f32 %v15327_v26, %v15148_v0  ;;  %v2580_v42 = vadd.f32 %v15451_v52, %v2190_v62  ;;  %v2583_v0 = vadd.f32 %v15455_v40, %v15331_v45  ;;  %v2194_v52 = vadd.f32 %v15329_v44, %v1804_v25 }
 0x1d0   : > { %18883 = vst [vmem:[#allocation84_spill] sm:$0xff] %v15567_v50  ;;  %v15569_v4 = vpop.f32.mrf.mxu0  ;;  %v2581_v50 = vadd.f32 %v15447_v23, %v15324_v1 }
 0x1d1   : > { %18884 = vst [vmem:[#allocation85_spill] sm:$0xff] %v15569_v4  ;;  %v15573_v53 = vpop.f32.mrf.mxu1  ;;  %v2971_v26 = vadd.f32 %v15443_v21, %v2580_v42  ;;  %v2584_v40 = vadd.f32 %v15467_v37, %v2194_v52 }
 0x1d2   : > { %v15575_v56 = vpop.f32.mrf.mxu0  ;;  %v2972_v3 = vadd.f32 %v15438_v8, %v2581_v50  ;;  %v2974_v50 = vadd.f32 %v15449_v28, %v2583_v0 }
 0x1d3   : > { %18885 = vst [vmem:[#allocation86_spill] sm:$0xff] %v15575_v56  ;;  %v15577_v55 = vpop.f32.mrf.mxu1 }
 0x1d4   : > { %18886 = vst [vmem:[#allocation87_spill] sm:$0xff] %v15577_v55  ;;  %v15579_v6 = vpop.f32.mrf.mxu0 }
 0x1d5   : > { %18887 = vst [vmem:[#allocation88_spill] sm:$0xff] %v15579_v6  ;;  %v15586_v4 = vpop.f32.mrf.mxu1  ;;  %v2192_v6 = vadd.f32 %v15322_v54, %v1802_v2  ;;  %v2585_v2 = vadd.f32 %v15463_v49, %v15342_v51  ;;  %v1808_v51 = vadd.f32 %v15357_v27, %v15189_v7 }
 0x1d6   : > { %v13112_v20 = vpop.f32.mrf.mxu0 }
 0x1d7   : > { %v15591_v56 = vpop.f32.mrf.mxu1  ;;  %v2582_v23 = vadd.f32 %v15459_v61, %v2192_v6  ;;  %v2976_v30 = vadd.f32 %v15457_v14, %v2585_v2 }
 0x1d8   : > { %v3592_v55 = vpop.f32.mrf.mxu0 }
 0x1d9   : > { %v13062_v58 = vpop.f32.mrf.mxu1  ;;  %v2973_v6 = vadd.f32 %v15453_v39, %v2582_v23 }
 0x1da   : > { %v13115_v1 = vpop.f32.mrf.mxu0  ;;  %v3362_v62 = vadd.f32 %v13062_v58, %v2972_v3 }
 0x1db   : > { %v3202_v54 = vpop.f32.mrf.mxu1 }
 0x1dc   : > { %v3602_v22 = vpop.f32.mrf.mxu0  ;;  %v3752_v45 = vadd.f32 %v13112_v20, %v3362_v62  ;;  %v3361_v8 = vadd.f32 %v3202_v54, %v2971_v26  ;;  %v2587_v20 = vadd.f32 %v15480_v17, %v15354_v47  ;;  %v2198_v26 = vadd.f32 %v15352_v13, %v1808_v51 }
 0x1dd   : > { %v13065_v21 = vpop.f32.mrf.mxu1  ;;  %v1810_v47 = vadd.f32 %v15369_v33, %v15201_v48  ;;  %v2589_v17 = vadd.f32 %v15491_v59, %v15361_v19  ;;  %v2977_v19 = vadd.f32 %v15469_v57, %v2586_v24 }
 0x1de   : > { %v13118_v42 = vpop.f32.mrf.mxu0  ;;  %v3784_v61 = vmax.f32 %v3752_v45, 0.0  ;;  %v3751_v44 = vadd.f32 %v3592_v55, %v3361_v8  ;;  %v3364_v25 = vadd.f32 %v13065_v21, %v2974_v50  ;;  %v2975_v55 = vadd.f32 %v15461_v31, %v2584_v40 }
 0x1df   : > { %v3212_v49 = vpop.f32.mrf.mxu1  ;;  %v2978_v31 = vadd.f32 %v15465_v41, %v2587_v20  ;;  %v2588_v13 = vadd.f32 %v15495_v63, %v2198_v26  ;;  %v2200_v54 = vadd.f32 %v15359_v38, %v1810_v47  ;;  %v2980_v50 = vadd.f32 %v15482_v11, %v2589_v17 }
 0x1e0   : > { %v3612_v28 = vpop.f32.mrf.mxu0  ;;  %3816 = vst.msk [vmem:[#allocation2 + $0x30] sm:$0xff] %vm198_vm1, %v3784_v61  ;;  %v3783_v37 = vmax.f32 %v3751_v44, 0.0  ;;  %v3754_v3 = vadd.f32 %v13115_v1, %v3364_v25  ;;  %v3363_v39 = vadd.f32 %v3212_v49, %v2973_v6  ;;  %v2591_v8 = vadd.f32 %v15499_v35, %v15373_v29  ;;  %v18888_v49 = vld [vmem:[#allocation52_spill] sm:$0xff] }
 0x1e1   : > { %v13068_v0 = vpop.f32.mrf.mxu1  ;;  %v2590_v11 = vadd.f32 %v15503_v36, %v2200_v54  ;;  %v2593_v36 = vadd.f32 %v15507_v9, %v15380_v10 }
 0x1e2   : > { %v13121_v58 = vpop.f32.mrf.mxu0  ;;  %3815 = vst.msk [vmem:[#allocation2 + $0x28] sm:$0xff] %vm198_vm1, %v3783_v37  ;;  %v3786_v7 = vmax.f32 %v3754_v3, 0.0  ;;  %v3753_v27 = vadd.f32 %v3602_v22, %v3363_v39  ;;  %v3366_v14 = vadd.f32 %v13068_v0, %v2976_v30  ;;  %v1812_v22 = vadd.f32 %v15376_v34, %v15213_v5  ;;  %v18889_v3 = vld [vmem:[#allocation3_spill] sm:$0xff]  ;;  %v18891_v39 = vld [vmem:[#allocation57_spill] sm:$0xff] }
 0x1e3   : > { %v3222_v1 = vpop.f32.mrf.mxu1  ;;  %v984_v15 = vadd.f32 %v18890_v32, %v18889_v3  ;;  %v18907_v3 = vld [vmem:[#allocation63_spill] sm:$0xff] }
 0x1e4   : > { %v3622_v23 = vpop.f32.mrf.mxu0  ;;  %3818 = vst.msk [vmem:[#allocation2 + $0x50] sm:$0xff] %vm198_vm1, %v3786_v7  ;;  %v3785_v18 = vmax.f32 %v3753_v27, 0.0  ;;  %v3756_v62 = vadd.f32 %v13118_v42, %v3366_v14  ;;  %v3365_v52 = vadd.f32 %v3222_v1, %v2975_v55  ;;  %v2979_v42 = vadd.f32 %v15489_v43, %v2588_v13  ;;  %v18892_v7 = vld [vmem:[#allocation53_spill] sm:$0xff]  ;;  %v18893_v1 = vld [vmem:[#allocation26_spill] sm:$0xff] }
 0x1e5   : > { %v13071_v48 = vpop.f32.mrf.mxu1  ;;  %v2202_v25 = vadd.f32 %v15371_v16, %v1812_v22  ;;  %v2981_v27 = vadd.f32 %v18892_v7, %v2590_v11 }
 0x1e6   : > { %v13124_v33 = vpop.f32.mrf.mxu0  ;;  %3817 = vst.msk [vmem:[#allocation2 + $0x48] sm:$0xff] %vm198_vm1, %v3785_v18  ;;  %v3788_v59 = vmax.f32 %v3756_v62, 0.0  ;;  %v3755_v41 = vadd.f32 %v3612_v28, %v3365_v52  ;;  %v3368_v2 = vadd.f32 %v13071_v48, %v2978_v31  ;;  %v2982_v28 = vadd.f32 %v18888_v49, %v2591_v8  ;;  %v18894_v31 = vld [vmem:[#allocation12_spill] sm:$0xff]  ;;  %v18895_v18 = vld [vmem:[#allocation29_spill] sm:$0xff]  ;;  %v18896_v52 = vld [vmem:[#allocation54_spill] sm:$0xff] }
 0x1e7   : > { %v3232_v63 = vpop.f32.mrf.mxu1  ;;  %v15654_v43 = vld [vmem:[#allocation2 + $0x30] sm:$0xff]  ;;  %v2592_v10 = vadd.f32 %v18891_v39, %v2202_v25  ;;  %v1816_v62 = vadd.f32 %v18895_v18, %v18894_v31  ;;  %v2984_v13 = vadd.f32 %v18896_v52, %v2593_v36  ;;  %v18901_v8 = vld [vmem:[#allocation15_spill] sm:$0xff]  ;;  %v18908_v39 = vld [vmem:[#allocation56_spill] sm:$0xff] }
 0x1e8   : > { %v3632_v45 = vpop.f32.mrf.mxu0  ;;  %3820 = vst.msk [vmem:[#allocation2 + $0x70] sm:$0xff] %vm198_vm1, %v3788_v59  ;;  %v3787_v57 = vmax.f32 %v3755_v41, 0.0  ;;  %v3758_v40 = vadd.f32 %v13121_v58, %v3368_v2  ;;  %v3367_v21 = vadd.f32 %v3232_v63, %v2977_v19  ;;  %v18897_v19 = vld [vmem:[#allocation28_spill] sm:$0xff]  ;;  %v18898_v59 = vld [vmem:[#allocation59_spill] sm:$0xff]  ;;  %v18912_v31 = vld [vmem:[#allocation65_spill] sm:$0xff] }
 0x1e9   : > { %v13074_v6 = vpop.f32.mrf.mxu1  ;;  %v15642_v61 = vld [vmem:[#allocation2 + $0x28] sm:$0xff]  ;;  %v2595_v41 = vadd.f32 %v18898_v59, %v18897_v19  ;;  %v18904_v49 = vld [vmem:[#allocation27_spill] sm:$0xff]  ;;  %v18915_v59 = vld [vmem:[#allocation58_spill] sm:$0xff] }
 0x1ea   : > { %v15644_v38 = vld [vmem:[#allocation2 + $0x27] sm:$0xff]  ;;  %v15646_v5 = vld [vmem:[#allocation2 + $0x2f] sm:$0xff]  ;;  %v13127_v34 = vpop.f32.mrf.mxu0  ;;  %3819 = vst.msk [vmem:[#allocation2 + $0x68] sm:$0xff] %vm198_vm1, %v3787_v57  ;;  %v3790_v29 = vmax.f32 %v3758_v40, 0.0  ;;  %v3757_v35 = vadd.f32 %v3622_v23, %v3367_v21  ;;  %v3370_v44 = vadd.f32 %v13074_v6, %v2980_v50  ;;  %13163 = vmatprep.mubr.msk.f32.mxu1 %vm198_vm1, %v15642_v61  ;;  %v2204_v23 = vadd.f32 %v18893_v1, %v1814_v60 }
 0x1eb   : > { %13213 = vmatprep.mubr.msk.f32.mxu0 %vm198_vm1, %v15644_v38  ;;  %v3242_v51 = vpop.f32.mrf.mxu1  ;;  %13164 = vmatmul.mubr.msk.f32.gmra.mxu1 %vm198_vm1, %v15654_v43  ;;  %v15682_v17 = vld [vmem:[#allocation2 + $0x50] sm:$0xff]  ;;  %v18899_v50 = vld [vmem:[#allocation11_spill] sm:$0xff] }
 0x1ec   : > { %13214 = vmatmul.mubr.msk.f32.gmra.mxu0 %vm198_vm1, %v15646_v5  ;;  %v3642_v30 = vpop.f32.mrf.mxu0  ;;  %3822 = vst.msk [vmem:[#allocation2 + $0x90] sm:$0xff] %vm198_vm1, %v3790_v29  ;;  %v3789_v20 = vmax.f32 %v3757_v35, 0.0  ;;  %v3760_v16 = vadd.f32 %v13124_v33, %v3370_v44  ;;  %v3369_v37 = vadd.f32 %v3242_v51, %v2979_v42  ;;  %v1428_v63 = vadd.f32 %v18899_v50, %v984_v15  ;;  %v18902_v40 = vld [vmem:[#allocation55_spill] sm:$0xff]  ;;  %v18903_v44 = vld [vmem:[#allocation61_spill] sm:$0xff]  ;;  %v18916_v50 = vld [vmem:[#allocation30_spill] sm:$0xff] }
 0x1ed   : > { %v13077_v9 = vpop.f32.mrf.mxu1  ;;  %v15670_v55 = vld [vmem:[#allocation2 + $0x48] sm:$0xff]  ;;  %v2983_v21 = vadd.f32 %v18902_v40, %v2592_v10  ;;  %v2594_v25 = vadd.f32 %v18903_v44, %v2204_v23  ;;  %v2986_v10 = vadd.f32 %v18908_v39, %v2595_v41  ;;  %v18911_v1 = vld [vmem:[#allocation17_spill] sm:$0xff]  ;;  %v18920_v44 = vld [vmem:[#allocation67_spill] sm:$0xff] }
 0x1ee   : > { %v15672_v0 = vld [vmem:[#allocation2 + $0x47] sm:$0xff]  ;;  %v15674_v58 = vld [vmem:[#allocation2 + $0x4f] sm:$0xff]  ;;  %v13130_v24 = vpop.f32.mrf.mxu0  ;;  %3821 = vst.msk [vmem:[#allocation2 + $0x88] sm:$0xff] %vm198_vm1, %v3789_v20  ;;  %v3792_v14 = vmax.f32 %v3760_v16, 0.0  ;;  %v3759_v26 = vadd.f32 %v3632_v45, %v3369_v37  ;;  %v3372_v47 = vadd.f32 %v13077_v9, %v2982_v28  ;;  %13166 = vmatprep.mubr.msk.f32.mxu1 %vm198_vm1, %v15670_v55  ;;  %v2206_v28 = vadd.f32 %v18904_v49, %v1816_v62 }
 0x1ef   : > { %13216 = vmatprep.mubr.msk.f32.mxu0 %vm198_vm1, %v15672_v0  ;;  %v3252_v48 = vpop.f32.mrf.mxu1  ;;  %13167 = vmatmul.mubr.msk.f32.gmra.mxu1 %vm198_vm1, %v15682_v17  ;;  %v18900_v45 = vld [vmem:[#allocation4_spill] sm:$0xff]  ;;  %v15711_v51 = vld [vmem:[#allocation2 + $0x70] sm:$0xff]  ;;  %v18906_v37 = vld [vmem:[#allocation31_spill] sm:$0xff]  ;;  %v2985_v41 = vadd.f32 %v18915_v59, %v2594_v25 }
 0x1f0   : > { %13217 = vmatmul.mubr.msk.f32.gmra.mxu0 %vm198_vm1, %v15674_v58  ;;  %v3652_v33 = vpop.f32.mrf.mxu0  ;;  %3824 = vst.msk [vmem:[#allocation2 + $0xb0] sm:$0xff] %vm198_vm1, %v3792_v14  ;;  %v3791_v2 = vmax.f32 %v3759_v26, 0.0  ;;  %v3762_v54 = vadd.f32 %v13127_v34, %v3372_v47  ;;  %v3371_v22 = vadd.f32 %v3252_v48, %v2981_v27  ;;  %v994_v57 = vadd.f32 %v18901_v8, %v18900_v45  ;;  %v18905_v20 = vld [vmem:[#allocation9_spill] sm:$0xff]  ;;  %v18909_v14 = vld [vmem:[#allocation14_spill] sm:$0xff]  ;;  %v18921_v49 = vld [vmem:[#allocation16_spill] sm:$0xff] }
 0x1f1   : > { %v13080_v42 = vpop.f32.mrf.mxu1  ;;  %v15699_v6 = vld [vmem:[#allocation2 + $0x68] sm:$0xff]  ;;  %v1818_v16 = vadd.f32 %v18905_v20, %v1428_v63  ;;  %v2597_v32 = vadd.f32 %v18907_v3, %v18906_v37  ;;  %v18910_v47 = vld [vmem:[#allocation5_spill] sm:$0xff]  ;;  %v2596_v18 = vadd.f32 %v18912_v31, %v2206_v28  ;;  %v18917_v45 = vld [vmem:[#allocation34_spill] sm:$0xff] }
 0x1f2   : > { %v15701_v11 = vld [vmem:[#allocation2 + $0x67] sm:$0xff]  ;;  %v15703_v29 = vld [vmem:[#allocation2 + $0x6f] sm:$0xff]  ;;  %v13133_v35 = vpop.f32.mrf.mxu0  ;;  %3823 = vst.msk [vmem:[#allocation2 + $0xa8] sm:$0xff] %vm198_vm1, %v3791_v2  ;;  %v3794_v34 = vmax.f32 %v3762_v54, 0.0  ;;  %v3761_v60 = vadd.f32 %v3642_v30, %v3371_v22  ;;  %v3374_v36 = vadd.f32 %v13080_v42, %v2984_v13  ;;  %13169 = vmatprep.mubr.msk.f32.mxu1 %vm198_vm1, %v15699_v6  ;;  %v1430_v26 = vadd.f32 %v18909_v14, %v994_v57  ;;  %v18922_v20 = vld [vmem:[#allocation6_spill] sm:$0xff] }
 0x1f3   : > { %13219 = vmatprep.mubr.msk.f32.mxu0 %vm198_vm1, %v15701_v11  ;;  %v3262_v15 = vpop.f32.mrf.mxu1  ;;  %13170 = vmatmul.mubr.msk.f32.gmra.mxu1 %vm198_vm1, %v15711_v51  ;;  %v1004_v23 = vadd.f32 %v18911_v1, %v18910_v47  ;;  %v15739_v22 = vld [vmem:[#allocation2 + $0x90] sm:$0xff]  ;;  %v2208_v63 = vadd.f32 %v18916_v50, %v1818_v16  ;;  %v18918_v57 = vld [vmem:[#allocation60_spill] sm:$0xff]  ;;  %v18923_v16 = vld [vmem:[#allocation19_spill] sm:$0xff] }
 0x1f4   : > { %13220 = vmatmul.mubr.msk.f32.gmra.mxu0 %vm198_vm1, %v15703_v29  ;;  %v3662_v30 = vpop.f32.mrf.mxu0  ;;  %3826 = vst.msk [vmem:[#allocation2 + $0xd0] sm:$0xff] %vm198_vm1, %v3794_v34  ;;  %v3793_v9 = vmax.f32 %v3761_v60, 0.0  ;;  %v3764_v7 = vadd.f32 %v13130_v24, %v3374_v36  ;;  %v3373_v27 = vadd.f32 %v3262_v15, %v2983_v21  ;;  %v1820_v8 = vadd.f32 %v18917_v45, %v1430_v26  ;;  %v18919_v42 = vld [vmem:[#allocation33_spill] sm:$0xff]  ;;  %v18924_v3 = vld [vmem:[#allocation62_spill] sm:$0xff]  ;;  %v18930_v59 = vld [vmem:[#allocation36_spill] sm:$0xff] }
 0x1f5   : > { %v13083_v62 = vpop.f32.mrf.mxu1  ;;  %v15727_v52 = vld [vmem:[#allocation2 + $0x88] sm:$0xff]  ;;  %v2988_v40 = vadd.f32 %v18918_v57, %v2597_v32  ;;  %v2599_v25 = vadd.f32 %v18920_v44, %v18919_v42  ;;  %v1432_v28 = vadd.f32 %v18921_v49, %v1004_v23  ;;  %v1014_v37 = vadd.f32 %v18923_v16, %v18922_v20  ;;  %v18933_v57 = vld [vmem:[#allocation18_spill] sm:$0xff]  ;;  %v18935_v42 = vld [vmem:[#allocation21_spill] sm:$0xff] }
 0x1f6   : > { %v15729_v13 = vld [vmem:[#allocation2 + $0x87] sm:$0xff]  ;;  %v15731_v48 = vld [vmem:[#allocation2 + $0x8f] sm:$0xff]  ;;  %v13136_v19 = vpop.f32.mrf.mxu0  ;;  %3825 = vst.msk [vmem:[#allocation2 + $0xc8] sm:$0xff] %vm198_vm1, %v3793_v9  ;;  %v3796_v24 = vmax.f32 %v3764_v7, 0.0  ;;  %v3763_v2 = vadd.f32 %v3652_v33, %v3373_v27  ;;  %v3376_v54 = vadd.f32 %v13083_v62, %v2986_v10  ;;  %13172 = vmatprep.mubr.msk.f32.mxu1 %vm198_vm1, %v15727_v52  ;;  %v2987_v32 = vadd.f32 %v18924_v3, %v2596_v18  ;;  %v18939_v16 = vld [vmem:[#allocation66_spill] sm:$0xff] }
 0x1f7   : > { %18913 = vst [vmem:[#allocation52_spill] sm:$0xff] %v15729_v13  ;;  %18914 = vst [vmem:[#allocation3_spill] sm:$0xff] %v15731_v48  ;;  %13222 = vmatprep.mubr.msk.f32.mxu0 %vm198_vm1, %v15729_v13  ;;  %v3272_v21 = vpop.f32.mrf.mxu1  ;;  %13173 = vmatmul.mubr.msk.f32.gmra.mxu1 %vm198_vm1, %v15739_v22  ;;  %v18927_v27 = vld [vmem:[#allocation69_spill] sm:$0xff]  ;;  %v18928_v23 = vld [vmem:[#allocation32_spill] sm:$0xff] }
 0x1f8   : > { %13223 = vmatmul.mubr.msk.f32.gmra.mxu0 %vm198_vm1, %v15731_v48  ;;  %v3672_v33 = vpop.f32.mrf.mxu0  ;;  %3828 = vst.msk [vmem:[#allocation2 + $0xf0] sm:$0xff] %vm198_vm1, %v3796_v24  ;;  %v3795_v34 = vmax.f32 %v3763_v2, 0.0  ;;  %v3766_v60 = vadd.f32 %v13133_v35, %v3376_v54  ;;  %v3375_v36 = vadd.f32 %v3272_v21, %v2985_v41  ;;  %v2598_v14 = vadd.f32 %v18927_v27, %v2208_v63  ;;  %v15767_v1 = vld [vmem:[#allocation2 + $0xb0] sm:$0xff]  ;;  %v18931_v41 = vld [vmem:[#allocation71_spill] sm:$0xff]  ;;  %v18932_v54 = vld [vmem:[#allocation64_spill] sm:$0xff] }
 0x1f9   : > { %v13086_v15 = vpop.f32.mrf.mxu1  ;;  %v15755_v39 = vld [vmem:[#allocation2 + $0xa8] sm:$0xff]  ;;  %v2210_v31 = vadd.f32 %v18928_v23, %v1820_v8  ;;  %v18929_v18 = vld [vmem:[#allocation37_spill] sm:$0xff]  ;;  %v2601_v24 = vadd.f32 %v18931_v41, %v18930_v59  ;;  %v2990_v50 = vadd.f32 %v18932_v54, %v2599_v25  ;;  %v18934_v21 = vld [vmem:[#allocation7_spill] sm:$0xff] }
 0x1fa   : > { %v15757_v10 = vld [vmem:[#allocation2 + $0xa7] sm:$0xff]  ;;  %v15759_v9 = vld [vmem:[#allocation2 + $0xaf] sm:$0xff]  ;;  %v13139_v7 = vpop.f32.mrf.mxu0  ;;  %3827 = vst.msk [vmem:[#allocation2 + $0xe8] sm:$0xff] %vm198_vm1, %v3795_v34  ;;  %v3798_v35 = vmax.f32 %v3766_v60, 0.0  ;;  %v3765_v26 = vadd.f32 %v3662_v30, %v3375_v36  ;;  %v3378_v47 = vadd.f32 %v13086_v15, %v2988_v40  ;;  %13175 = vmatprep.mubr.msk.f32.mxu1 %vm198_vm1, %v15755_v39  ;;  %v1822_v62 = vadd.f32 %v18929_v18, %v1432_v28 }
 0x1fb   : > { %18925 = vst [vmem:[#allocation13_spill] sm:$0xff] %v15757_v10  ;;  %18926 = vst [vmem:[#allocation57_spill] sm:$0xff] %v15759_v9  ;;  %13225 = vmatprep.mubr.msk.f32.mxu0 %vm198_vm1, %v15757_v10  ;;  %v3282_v2 = vpop.f32.mrf.mxu1  ;;  %13176 = vmatmul.mubr.msk.f32.gmra.mxu1 %vm198_vm1, %v15767_v1  ;;  %v1434_v40 = vadd.f32 %v18933_v57, %v1014_v37  ;;  %v1024_v44 = vadd.f32 %v18935_v42, %v18934_v21  ;;  %v18936_v34 = vld [vmem:[#allocation73_spill] sm:$0xff]  ;;  %v18940_v27 = vld [vmem:[#allocation35_spill] sm:$0xff] }
 0x1fc   : > { %13226 = vmatmul.mubr.msk.f32.gmra.mxu0 %vm198_vm1, %v15759_v9  ;;  %v3682_v30 = vpop.f32.mrf.mxu0  ;;  %3830 = vst.msk [vmem:[#allocation2 + $0x110] sm:$0xff] %vm198_vm1, %v3798_v35  ;;  %v3797_v63 = vmax.f32 %v3765_v26, 0.0  ;;  %v3768_v45 = vadd.f32 %v13136_v19, %v3378_v47  ;;  %v3377_v8 = vadd.f32 %v3282_v2, %v2987_v32  ;;  %v2600_v60 = vadd.f32 %v18936_v34, %v2210_v31  ;;  %v15795_v15 = vld [vmem:[#allocation2 + $0xd0] sm:$0xff]  ;;  %v18941_v26 = vld [vmem:[#allocation40_spill] sm:$0xff]  ;;  %v18943_v18 = vld [vmem:[#allocation39_spill] sm:$0xff] }
 0x1fd   : > { %v13089_v36 = vpop.f32.mrf.mxu1  ;;  %v15783_v49 = vld [vmem:[#allocation2 + $0xc8] sm:$0xff]  ;;  %v2989_v3 = vadd.f32 %v18939_v16, %v2598_v14  ;;  %v2212_v35 = vadd.f32 %v18940_v27, %v1822_v62  ;;  %v1824_v47 = vadd.f32 %v18941_v26, %v1434_v40  ;;  %v18944_v59 = vld [vmem:[#allocation75_spill] sm:$0xff]  ;;  %v18948_v57 = vld [vmem:[#allocation70_spill] sm:$0xff] }
 0x1fe   : > { %v15785_v28 = vld [vmem:[#allocation2 + $0xc7] sm:$0xff]  ;;  %v15787_v20 = vld [vmem:[#allocation2 + $0xcf] sm:$0xff]  ;;  %v13142_v25 = vpop.f32.mrf.mxu0  ;;  %3829 = vst.msk [vmem:[#allocation2 + $0x108] sm:$0xff] %vm198_vm1, %v3797_v63  ;;  %v3800_v19 = vmax.f32 %v3768_v45, 0.0  ;;  %v3767_v32 = vadd.f32 %v3672_v33, %v3377_v8  ;;  %v3380_v37 = vadd.f32 %v13089_v36, %v2990_v50  ;;  %13178 = vmatprep.mubr.msk.f32.mxu1 %vm198_vm1, %v15783_v49  ;;  %v2603_v41 = vadd.f32 %v18944_v59, %v18943_v18 }
 0x1ff   : > { %18937 = vst [vmem:[#allocation53_spill] sm:$0xff] %v15785_v28  ;;  %18938 = vst [vmem:[#allocation26_spill] sm:$0xff] %v15787_v20  ;;  %13228 = vmatprep.mubr.msk.f32.mxu0 %vm198_vm1, %v15785_v28  ;;  %v18942_v23 = vld [vmem:[#allocation68_spill] sm:$0xff]  ;;  %v3292_v14 = vpop.f32.mrf.mxu1  ;;  %13179 = vmatmul.mubr.msk.f32.gmra.mxu1 %vm198_vm1, %v15795_v15  ;;  %v2991_v40 = vadd.f32 %v18948_v57, %v2600_v60  ;;  %v15823_v60 = vld [vmem:[#allocation2 + $0xf0] sm:$0xff] }
 0x200   : > { %v2992_v31 = vadd.f32 %v18942_v23, %v2601_v24  ;;  %13229 = vmatmul.mubr.msk.f32.gmra.mxu0 %vm198_vm1, %v15787_v20  ;;  %v3692_v33 = vpop.f32.mrf.mxu0  ;;  %3832 = vst.msk [vmem:[#allocation2 + $0x130] sm:$0xff] %vm198_vm1, %v3800_v19  ;;  %v3799_v2 = vmax.f32 %v3767_v32, 0.0  ;;  %v3770_v54 = vadd.f32 %v13139_v7, %v3380_v37  ;;  %v3379_v62 = vadd.f32 %v3292_v14, %v2989_v3  ;;  %v18945_v50 = vld [vmem:[#allocation20_spill] sm:$0xff]  ;;  %v18947_v24 = vld [vmem:[#allocation23_spill] sm:$0xff]  ;;  %v18952_v32 = vld [vmem:[#allocation38_spill] sm:$0xff] }
 0x201   : > { %v1436_v63 = vadd.f32 %v18945_v50, %v1024_v44  ;;  %v18946_v45 = vld [vmem:[#allocation8_spill] sm:$0xff]  ;;  %v13092_v21 = vpop.f32.mrf.mxu1  ;;  %v2602_v19 = vadd.f32 %v15551_v46, %v2212_v35  ;;  %18951 = vst [vmem:[#allocation54_spill] sm:$0xff] %v15823_v60  ;;  %v2214_v37 = vadd.f32 %v18952_v32, %v1824_v47  ;;  %v18953_v27 = vld [vmem:[#allocation43_spill] sm:$0xff]  ;;  %v18954_v23 = vld [vmem:[#allocation42_spill] sm:$0xff] }
 0x202   : > { %v1034_v8 = vadd.f32 %v18947_v24, %v18946_v45  ;;  %v15811_v42 = vld [vmem:[#allocation2 + $0xe8] sm:$0xff]  ;;  %v13145_v16 = vpop.f32.mrf.mxu0  ;;  %3831 = vst.msk [vmem:[#allocation2 + $0x128] sm:$0xff] %vm198_vm1, %v3799_v2  ;;  %v3802_v7 = vmax.f32 %v3770_v54, 0.0  ;;  %v3769_v3 = vadd.f32 %v3682_v30, %v3379_v62  ;;  %v3382_v44 = vadd.f32 %v13092_v21, %v2992_v31  ;;  %v18955_v14 = vld [vmem:[#allocation78_spill] sm:$0xff] }
 0x203   : > { %v15813_v34 = vld [vmem:[#allocation2 + $0xe7] sm:$0xff]  ;;  %v15815_v36 = vld [vmem:[#allocation2 + $0xef] sm:$0xff]  ;;  %13181 = vmatprep.mubr.msk.f32.mxu1 %vm198_vm1, %v15811_v42  ;;  %v1826_v26 = vadd.f32 %v18953_v27, %v1436_v63  ;;  %v2605_v46 = vadd.f32 %v18955_v14, %v18954_v23  ;;  %v3302_v35 = vpop.f32.mrf.mxu1  ;;  %v18957_v54 = vld [vmem:[#allocation22_spill] sm:$0xff] }
 0x204   : > { %18949 = vst [vmem:[#allocation12_spill] sm:$0xff] %v15813_v34  ;;  %18950 = vst [vmem:[#allocation29_spill] sm:$0xff] %v15815_v36  ;;  %13231 = vmatprep.mubr.msk.f32.mxu0 %vm198_vm1, %v15813_v34  ;;  %13182 = vmatmul.mubr.msk.f32.gmra.mxu1 %vm198_vm1, %v15823_v60  ;;  %v3702_v30 = vpop.f32.mrf.mxu0  ;;  %v18956_v31 = vld [vmem:[#allocation72_spill] sm:$0xff]  ;;  %v3801_v59 = vmax.f32 %v3769_v3, 0.0  ;;  %v3772_v2 = vadd.f32 %v13142_v25, %v3382_v44  ;;  %v3381_v47 = vadd.f32 %v3302_v35, %v2991_v40  ;;  %v18958_v50 = vld [vmem:[#allocation10_spill] sm:$0xff] }
 0x205   : > { %13232 = vmatmul.mubr.msk.f32.gmra.mxu0 %vm198_vm1, %v15815_v36  ;;  %v2994_v18 = vadd.f32 %v18956_v31, %v2603_v41  ;;  %3834 = vst.msk [vmem:[#allocation2 + $0x150] sm:$0xff] %vm198_vm1, %v3802_v7  ;;  %v1438_v62 = vadd.f32 %v18957_v54, %v1034_v8  ;;  %v18959_v63 = vld [vmem:[#allocation25_spill] sm:$0xff]  ;;  %v18960_v24 = vld [vmem:[#allocation80_spill] sm:$0xff]  ;;  %v13095_v21 = vpop.f32.mrf.mxu1  ;;  %v18964_v14 = vld [vmem:[#allocation74_spill] sm:$0xff] }
 0x206   : > { %v1044_v45 = vadd.f32 %v18959_v63, %v18958_v50  ;;  %v2604_v57 = vadd.f32 %v18960_v24, %v2214_v37  ;;  %v15839_v32 = vld [vmem:[#allocation2 + $0x108] sm:$0xff]  ;;  %v13148_v41 = vpop.f32.mrf.mxu0  ;;  %v2993_v7 = vadd.f32 %v18964_v14, %v2602_v19  ;;  %3833 = vst.msk [vmem:[#allocation2 + $0x148] sm:$0xff] %vm198_vm1, %v3801_v59  ;;  %v3804_v25 = vmax.f32 %v3772_v2, 0.0  ;;  %v15851_v3 = vld [vmem:[#allocation2 + $0x110] sm:$0xff]  ;;  %v18967_v35 = vld [vmem:[#allocation46_spill] sm:$0xff] }
 0x207   : > { %18961 = vst [vmem:[#allocation28_spill] sm:$0xff] %v15839_v32  ;;  %v15841_v27 = vld [vmem:[#allocation2 + $0x107] sm:$0xff]  ;;  %v15843_v23 = vld [vmem:[#allocation2 + $0x10f] sm:$0xff]  ;;  %v3771_v40 = vadd.f32 %v3692_v33, %v3381_v47  ;;  %v3384_v8 = vadd.f32 %v13095_v21, %v2994_v18  ;;  %13184 = vmatprep.mubr.msk.f32.mxu1 %vm198_vm1, %v15839_v32  ;;  %18965 = vst [vmem:[#allocation4_spill] sm:$0xff] %v15851_v3  ;;  %v1828_v31 = vadd.f32 %v18967_v35, %v1438_v62  ;;  %v3312_v19 = vpop.f32.mrf.mxu1 }
 0x208   : > { %18962 = vst [vmem:[#allocation59_spill] sm:$0xff] %v15841_v27  ;;  %18963 = vst [vmem:[#allocation11_spill] sm:$0xff] %v15843_v23  ;;  %13234 = vmatprep.mubr.msk.f32.mxu0 %vm198_vm1, %v15841_v27  ;;  %v18966_v44 = vld [vmem:[#allocation41_spill] sm:$0xff]  ;;  %v18968_v54 = vld [vmem:[#allocation76_spill] sm:$0xff]  ;;  %13185 = vmatmul.mubr.msk.f32.gmra.mxu1 %vm198_vm1, %v15851_v3  ;;  %v3712_v33 = vpop.f32.mrf.mxu0 }
 0x209   : > { %v2216_v37 = vadd.f32 %v18966_v44, %v1826_v26  ;;  %v2996_v50 = vadd.f32 %v18968_v54, %v2605_v46  ;;  %13235 = vmatmul.mubr.msk.f32.gmra.mxu0 %vm198_vm1, %v15843_v23  ;;  %v18969_v18 = vld [vmem:[#allocation45_spill] sm:$0xff]  ;;  %v18970_v59 = vld [vmem:[#allocation82_spill] sm:$0xff]  ;;  %3836 = vst.msk [vmem:[#allocation2 + $0x170] sm:$0xff] %vm198_vm1, %v3804_v25  ;;  %v3803_v47 = vmax.f32 %v3771_v40, 0.0  ;;  %v3774_v63 = vadd.f32 %v13145_v16, %v3384_v8  ;;  %v18971_v24 = vld [vmem:[#allocation24_spill] sm:$0xff]  ;;  %v13098_v14 = vpop.f32.mrf.mxu1 }
 0x20a   : > { %v2607_v2 = vadd.f32 %v18970_v59, %v18969_v18  ;;  %v3383_v26 = vadd.f32 %v3312_v19, %v2993_v7  ;;  %v1440_v62 = vadd.f32 %v18971_v24, %v1044_v45  ;;  %v18972_v21 = vld [vmem:[#allocation77_spill] sm:$0xff]  ;;  %v15865_v44 = vld [vmem:[#allocation2 + $0x128] sm:$0xff]  ;;  %v13151_v3 = vpop.f32.mrf.mxu0 }
 0x20b   : > { %v2995_v46 = vadd.f32 %v18972_v21, %v2604_v57  ;;  %v15867_v35 = vld [vmem:[#allocation2 + $0x127] sm:$0xff]  ;;  %v15869_v54 = vld [vmem:[#allocation2 + $0x12f] sm:$0xff]  ;;  %3835 = vst.msk [vmem:[#allocation2 + $0x168] sm:$0xff] %vm198_vm1, %v3803_v47  ;;  %v3806_v25 = vmax.f32 %v3774_v63, 0.0  ;;  %v3386_v16 = vadd.f32 %v13098_v14, %v2996_v50  ;;  %13187 = vmatprep.mubr.msk.f32.mxu1 %vm198_vm1, %v15865_v44 }
 0x20c   : > { %18973 = vst [vmem:[#allocation15_spill] sm:$0xff] %v15867_v35  ;;  %18974 = vst [vmem:[#allocation55_spill] sm:$0xff] %v15869_v54  ;;  %v18975_v32 = vld [vmem:[#allocation84_spill] sm:$0xff]  ;;  %v3773_v40 = vadd.f32 %v3702_v30, %v3383_v26  ;;  %13237 = vmatprep.mubr.msk.f32.mxu0 %vm198_vm1, %v15867_v35  ;;  %v15877_v45 = vld [vmem:[#allocation2 + $0x130] sm:$0xff]  ;;  %v3722_v30 = vpop.f32.mrf.mxu0 }
 0x20d   : > { %v2606_v60 = vadd.f32 %v18975_v32, %v2216_v37  ;;  %v18976_v57 = vld [vmem:[#allocation44_spill] sm:$0xff]  ;;  %v18977_v8 = vld [vmem:[#allocation49_spill] sm:$0xff]  ;;  %v3322_v37 = vpop.f32.mrf.mxu1  ;;  %13188 = vmatmul.mubr.msk.f32.gmra.mxu1 %vm198_vm1, %v15877_v45  ;;  %13238 = vmatmul.mubr.msk.f32.gmra.mxu0 %vm198_vm1, %v15869_v54  ;;  %v18979_v50 = vld [vmem:[#allocation79_spill] sm:$0xff]  ;;  %3838 = vst.msk [vmem:[#allocation2 + $0x190] sm:$0xff] %vm198_vm1, %v3806_v25  ;;  %v3776_v63 = vadd.f32 %v13148_v41, %v3386_v16 }
 0x20e   : > { %v2218_v7 = vadd.f32 %v18976_v57, %v1828_v31  ;;  %v1830_v19 = vadd.f32 %v18977_v8, %v1440_v62  ;;  %v18978_v18 = vld [vmem:[#allocation48_spill] sm:$0xff]  ;;  %v2998_v59 = vadd.f32 %v18979_v50, %v2607_v2  ;;  %v3805_v47 = vmax.f32 %v3773_v40, 0.0  ;;  %v18980_v26 = vld [vmem:[#allocation87_spill] sm:$0xff]  ;;  %v13154_v57 = vpop.f32.mrf.mxu0  ;;  %v18983_v8 = vld [vmem:[#allocation81_spill] sm:$0xff] }
 0x20f   : > { %v2609_v32 = vadd.f32 %v15573_v53, %v18978_v18  ;;  %v3385_v31 = vadd.f32 %v3322_v37, %v2995_v46  ;;  %v13101_v62 = vpop.f32.mrf.mxu1  ;;  %v15890_v21 = vld [vmem:[#allocation2 + $0x148] sm:$0xff]  ;;  %v2997_v18 = vadd.f32 %v18983_v8, %v2606_v60  ;;  %v3808_v2 = vmax.f32 %v3776_v63, 0.0  ;;  %v15902_v41 = vld [vmem:[#allocation2 + $0x150] sm:$0xff]  ;;  %v18984_v46 = vld [vmem:[#allocation47_spill] sm:$0xff] }
 0x210   : > { %v2608_v24 = vadd.f32 %v18980_v26, %v2218_v7  ;;  %v15892_v53 = vld [vmem:[#allocation2 + $0x147] sm:$0xff]  ;;  %v15894_v14 = vld [vmem:[#allocation2 + $0x14f] sm:$0xff]  ;;  %3837 = vst.msk [vmem:[#allocation2 + $0x188] sm:$0xff] %vm198_vm1, %v3805_v47  ;;  %v3388_v25 = vadd.f32 %v13101_v62, %v2998_v59  ;;  %13190 = vmatprep.mubr.msk.f32.mxu1 %vm198_vm1, %v15890_v21  ;;  %v2220_v40 = vadd.f32 %v18984_v46, %v1830_v19  ;;  %v18986_v60 = vld [vmem:[#allocation50_spill] sm:$0xff]  ;;  %v3732_v8 = vpop.f32.mrf.mxu0 }
 0x211   : > { %18981 = vst [vmem:[#allocation61_spill] sm:$0xff] %v15892_v53  ;;  %18982 = vst [vmem:[#allocation27_spill] sm:$0xff] %v15894_v14  ;;  %v3775_v50 = vadd.f32 %v3712_v33, %v3385_v31  ;;  %13240 = vmatprep.mubr.msk.f32.mxu0 %vm198_vm1, %v15892_v53  ;;  %v18985_v16 = vld [vmem:[#allocation83_spill] sm:$0xff]  ;;  %v3332_v37 = vpop.f32.mrf.mxu1  ;;  %13191 = vmatmul.mubr.msk.f32.gmra.mxu1 %vm198_vm1, %v15902_v41  ;;  %v2611_v33 = vadd.f32 %v15586_v4, %v18986_v60  ;;  %v18987_v31 = vld [vmem:[#allocation85_spill] sm:$0xff] }
 0x212   : > { %v3000_v7 = vadd.f32 %v18985_v16, %v2609_v32  ;;  %13241 = vmatmul.mubr.msk.f32.gmra.mxu0 %vm198_vm1, %v15894_v14  ;;  %3840 = vst.msk [vmem:[#allocation2 + $0x1b0] sm:$0xff] %vm198_vm1, %v3808_v2  ;;  %v3778_v47 = vadd.f32 %v13151_v3, %v3388_v25  ;;  %v3387_v63 = vadd.f32 %v3332_v37, %v2997_v18  ;;  %v15914_v62 = vld [vmem:[#allocation2 + $0x168] sm:$0xff]  ;;  %v15926_v3 = vld [vmem:[#allocation2 + $0x170] sm:$0xff]  ;;  %v18992_v18 = vld [vmem:[#allocation86_spill] sm:$0xff] }
 0x213   : > { %v3807_v59 = vmax.f32 %v3775_v50, 0.0  ;;  %v2999_v26 = vadd.f32 %v18987_v31, %v2608_v24  ;;  %v13104_v19 = vpop.f32.mrf.mxu1  ;;  %18988 = vst [vmem:[#allocation9_spill] sm:$0xff] %v15914_v62  ;;  %v15916_v32 = vld [vmem:[#allocation2 + $0x167] sm:$0xff]  ;;  %v15918_v46 = vld [vmem:[#allocation2 + $0x16f] sm:$0xff]  ;;  %v2610_v16 = vadd.f32 %v15591_v56, %v2220_v40  ;;  %13193 = vmatprep.mubr.msk.f32.mxu1 %vm198_vm1, %v15914_v62  ;;  %18991 = vst [vmem:[#allocation56_spill] sm:$0xff] %v15926_v3  ;;  %v13157_v56 = vpop.f32.mrf.mxu0 }
 0x214   : > { %18989 = vst [vmem:[#allocation31_spill] sm:$0xff] %v15916_v32  ;;  %18990 = vst [vmem:[#allocation63_spill] sm:$0xff] %v15918_v46  ;;  %v3810_v4 = vmax.f32 %v3778_v47, 0.0  ;;  %v3777_v60 = vadd.f32 %v3722_v30, %v3387_v63  ;;  %v3390_v2 = vadd.f32 %v13104_v19, %v3000_v7  ;;  %13243 = vmatprep.mubr.msk.f32.mxu0 %vm198_vm1, %v15916_v32  ;;  %v18995_v63 = vld [vmem:[#allocation88_spill] sm:$0xff] }
 0x215   : > { %3839 = vst.msk [vmem:[#allocation2 + $0x1a8] sm:$0xff] %vm198_vm1, %v3807_v59  ;;  %v3342_v24 = vpop.f32.mrf.mxu1  ;;  %13194 = vmatmul.mubr.msk.f32.gmra.mxu1 %vm198_vm1, %v15926_v3  ;;  %v3002_v50 = vadd.f32 %v18992_v18, %v2611_v33  ;;  %v3001_v31 = vadd.f32 %v18995_v63, %v2610_v16 }
 0x216   : > { %13244 = vmatmul.mubr.msk.f32.gmra.mxu0 %vm198_vm1, %v15918_v46  ;;  %3842 = vst.msk [vmem:[#allocation2 + $0x1d0] sm:$0xff] %vm198_vm1, %v3810_v4  ;;  %v3809_v30 = vmax.f32 %v3777_v60, 0.0  ;;  %v3780_v25 = vadd.f32 %v13154_v57, %v3390_v2  ;;  %v3389_v40 = vadd.f32 %v3342_v24, %v2999_v26  ;;  %v15946_v57 = vld [vmem:[#allocation2 + $0x190] sm:$0xff]  ;;  %v3742_v26 = vpop.f32.mrf.mxu0 }
 0x217   : > { %v13107_v7 = vpop.f32.mrf.mxu1  ;;  %v15934_v37 = vld [vmem:[#allocation2 + $0x188] sm:$0xff] }
 0x218   : > { %v15936_v59 = vld [vmem:[#allocation2 + $0x187] sm:$0xff]  ;;  %v15938_v47 = vld [vmem:[#allocation2 + $0x18f] sm:$0xff]  ;;  %3841 = vst.msk [vmem:[#allocation2 + $0x1c8] sm:$0xff] %vm198_vm1, %v3809_v30  ;;  %v3812_v19 = vmax.f32 %v3780_v25, 0.0  ;;  %v3779_v3 = vadd.f32 %v3732_v8, %v3389_v40  ;;  %v3392_v62 = vadd.f32 %v13107_v7, %v3002_v50  ;;  %13196 = vmatprep.mubr.msk.f32.mxu1 %vm198_vm1, %v15934_v37 }
 0x219   : > { %18993 = vst [vmem:[#allocation14_spill] sm:$0xff] %v15936_v59  ;;  %18994 = vst [vmem:[#allocation5_spill] sm:$0xff] %v15938_v47  ;;  %13246 = vmatprep.mubr.msk.f32.mxu0 %vm198_vm1, %v15936_v59  ;;  %v3352_v33 = vpop.f32.mrf.mxu1  ;;  %13197 = vmatmul.mubr.msk.f32.gmra.mxu1 %vm198_vm1, %v15946_v57  ;;  %v15964_v30 = vld [vmem:[#allocation2 + $0x1b0] sm:$0xff] }
 0x21a   : > { %13247 = vmatmul.mubr.msk.f32.gmra.mxu0 %vm198_vm1, %v15938_v47  ;;  %3844 = vst.msk [vmem:[#allocation2 + $0x1f0] sm:$0xff] %vm198_vm1, %v3812_v19  ;;  %v3811_v8 = vmax.f32 %v3779_v3, 0.0  ;;  %v3391_v16 = vadd.f32 %v3352_v33, %v3001_v31  ;;  %v3782_v4 = vadd.f32 %v13157_v56, %v3392_v62  ;;  %v4562_v7 = vld [vmem:[#allocation2 + $0x9] sm:$0xff] }
 0x21c   : > { %v15953_v60 = vld [vmem:[#allocation2 + $0x1a8] sm:$0xff]  ;;  %3843 = vst.msk [vmem:[#allocation2 + $0x1e8] sm:$0xff] %vm198_vm1, %v3811_v8  ;;  %v3814_v18 = vmax.f32 %v3782_v4, 0.0  ;;  %v3781_v50 = vadd.f32 %v3742_v26, %v3391_v16  ;;  %v4563_v26 = vld [vmem:[#allocation2 + $0x11] sm:$0xff] }
 0x21d   : > { %v15955_v2 = vld [vmem:[#allocation2 + $0x1a7] sm:$0xff]  ;;  %v15957_v24 = vld [vmem:[#allocation2 + $0x1af] sm:$0xff]  ;;  %13199 = vmatprep.mubr.msk.f32.mxu1 %vm198_vm1, %v15953_v60 }
 0x21e   : > { %18996 = vst [vmem:[#allocation17_spill] sm:$0xff] %v15955_v2  ;;  %18997 = vst [vmem:[#allocation65_spill] sm:$0xff] %v15957_v24  ;;  %13249 = vmatprep.mubr.msk.f32.mxu0 %vm198_vm1, %v15955_v2  ;;  %13200 = vmatmul.mubr.msk.f32.gmra.mxu1 %vm198_vm1, %v15964_v30  ;;  %v3813_v62 = vmax.f32 %v3781_v50, 0.0  ;;  %v15982_v40 = vld [vmem:[#allocation2 + $0x1d0] sm:$0xff] }
 0x21f   : > { %13250 = vmatmul.mubr.msk.f32.gmra.mxu0 %vm198_vm1, %v15957_v24  ;;  %3846 = vst.msk [vmem:[#allocation2 + $0x210] sm:$0xff] %vm198_vm1, %v3814_v18  ;;  %v15971_v3 = vld [vmem:[#allocation2 + $0x1c8] sm:$0xff]  ;;  %v16015_v18 = vld [vmem:[%s18614_s2 + $0x18] sm:$0xf] }
 0x220   : > { %v15973_v56 = vld [vmem:[#allocation2 + $0x1c7] sm:$0xff]  ;;  %v15975_v25 = vld [vmem:[#allocation2 + $0x1cf] sm:$0xff]  ;;  %3845 = vst.msk [vmem:[#allocation2 + $0x208] sm:$0xff] %vm198_vm1, %v3813_v62  ;;  %13202 = vmatprep.mubr.msk.f32.mxu1 %vm198_vm1, %v15971_v3  ;;  %v13162_v8 = vpop.f32.mrf.mxu1 }
 0x221   : > { %18998 = vst [vmem:[#allocation58_spill] sm:$0xff] %v15973_v56  ;;  %18999 = vst [vmem:[#allocation30_spill] sm:$0xff] %v15975_v25  ;;  %13252 = vmatprep.mubr.msk.f32.mxu0 %vm198_vm1, %v15973_v56  ;;  %v15998_v33 = vld [vmem:[#allocation2 + $0x1f0] sm:$0xff]  ;;  %v19002_v62 = vld [vmem:[#allocation51_spill] sm:$0xff] }
 0x222   : > { %13203 = vmatmul.mubr.msk.f32.gmra.mxu1 %vm198_vm1, %v15982_v40  ;;  %v16010_v4 = vld [vmem:[#allocation2 + $0x29] sm:$0xff] }
 0x223   : > { %13253 = vmatmul.mubr.msk.f32.gmra.mxu0 %vm198_vm1, %v15975_v25  ;;  %v15988_v63 = vld [vmem:[#allocation2 + $0x1e8] sm:$0xff]  ;;  %v13212_v16 = vpop.f32.mrf.mxu0 }
 0x224   : > { %v15990_v31 = vld [vmem:[#allocation2 + $0x1e7] sm:$0xff]  ;;  %v15992_v19 = vld [vmem:[#allocation2 + $0x1ef] sm:$0xff]  ;;  %13205 = vmatprep.mubr.msk.f32.mxu1 %vm198_vm1, %v15988_v63  ;;  %v16022_v50 = vadd.f32 %v13212_v16, %v13162_v8 }
 0x225   : > { %19000 = vst [vmem:[#allocation34_spill] sm:$0xff] %v15990_v31  ;;  %13255 = vmatprep.mubr.msk.f32.mxu0 %vm198_vm1, %v15990_v31  ;;  %v16060_v8 = vld [vmem:[#allocation2 + $0x71] sm:$0xff]  ;;  %v16066_v16 = vld [vmem:[#allocation2 + $0x89] sm:$0xff] }
 0x226   : > { %13206 = vmatmul.mubr.msk.f32.gmra.mxu1 %vm198_vm1, %v15998_v33  ;;  %19001 = vst [vmem:[#allocation60_spill] sm:$0xff] %v16022_v50  ;;  %v16078_v50 = vld [vmem:[#allocation2 + $0xa9] sm:$0xff] }
 0x227   : > { %13256 = vmatmul.mubr.msk.f32.gmra.mxu0 %vm198_vm1, %v15992_v19  ;;  %13260 = vmatprep.mubr.msk.f32.mxu1 %vm198_vm1, %v4562_v7  ;;  %v16042_v7 = vld [vmem:[#allocation2 + $0x49] sm:$0xff] }
 0x228   : > { %13310 = vmatprep.mubr.msk.f32.mxu0 %vm198_vm1, %v15644_v38  ;;  %v16020_v38 = vld [vmem:[%s18614_s2 + $0x1c] sm:$0xf] }
 0x22a   : > { %13261 = vmatmul.mubr.msk.f32.vlgmr.msra.gmra.mxu1 %vm198_vm1, %v4563_v26  ;;  %v16054_v26 = vld [vmem:[#allocation2 + $0x69] sm:$0xff] }
 0x22b   : > { %13311 = vmatmul.mubr.msk.f32.vlgmr.msra.gmra.mxu0 %vm198_vm1, %v15646_v5  ;;  %13359 = vmatpush3.msk.msra.mxu1 %vm499_vm0, %v19002_v62  ;;  %v16032_v5 = vld [vmem:[#allocation2 + $0x31] sm:$0xff] }
 0x22c   : > { %13263 = vmatprep.mubr.msk.f32.mxu1 %vm198_vm1, %v16010_v4  ;;  %13313 = vmatprep.mubr.msk.f32.mxu0 %vm198_vm1, %v15672_v0  ;;  %v16072_v62 = vld [vmem:[#allocation2 + $0x91] sm:$0xff] }
 0x22d   : > { %13409 = vmatpush3.msk.msra.mxu0 %vm499_vm0, %v15627_v12  ;;  %13458 = vmatprep.subr.msk.mxu1 %vm499_vm0, %v16015_v18  ;;  %v16048_v12 = vld [vmem:[#allocation2 + $0x51] sm:$0xff] }
 0x22e   : > { %13508 = vmatprep.subr.msk.mxu0 %vm499_vm0, %v16020_v38  ;;  %13264 = vmatmul.mubr.msk.f32.gmra.mxu1 %vm198_vm1, %v16032_v5 }
 0x22f   : > { %13314 = vmatmul.mubr.msk.f32.gmra.mxu0 %vm198_vm1, %v15674_v58  ;;  %13266 = vmatprep.mubr.msk.f32.mxu1 %vm198_vm1, %v16042_v7 }
 0x230   : > { %13316 = vmatprep.mubr.msk.f32.mxu0 %vm198_vm1, %v15701_v11 }
 0x232   : > { %13267 = vmatmul.mubr.msk.f32.gmra.mxu1 %vm198_vm1, %v16048_v12 }
 0x233   : > { %13317 = vmatmul.mubr.msk.f32.gmra.mxu0 %vm198_vm1, %v15703_v29  ;;  %13269 = vmatprep.mubr.msk.f32.mxu1 %vm198_vm1, %v16054_v26 }
 0x234   : > { %13319 = vmatprep.mubr.msk.f32.mxu0 %vm198_vm1, %v15729_v13  ;;  %v16200_v13 = vld [vmem:[#allocation2 + $0x207] sm:$0xff] }
 0x235   : > { %19003 = vst [vmem:[#allocation33_spill] sm:$0xff] %v16200_v13 }
 0x236   : > { %13270 = vmatmul.mubr.msk.f32.gmra.mxu1 %vm198_vm1, %v16060_v8 }
 0x237   : > { %13320 = vmatmul.mubr.msk.f32.gmra.mxu0 %vm198_vm1, %v15731_v48  ;;  %13272 = vmatprep.mubr.msk.f32.mxu1 %vm198_vm1, %v16066_v16  ;;  %v16084_v48 = vld [vmem:[#allocation2 + $0xb1] sm:$0xff] }
 0x238   : > { %13322 = vmatprep.mubr.msk.f32.mxu0 %vm198_vm1, %v15757_v10  ;;  %v16090_v10 = vld [vmem:[#allocation2 + $0xc9] sm:$0xff] }
 0x23a   : > { %13273 = vmatmul.mubr.msk.f32.gmra.mxu1 %vm198_vm1, %v16072_v62 }
 0x23b   : > { %13323 = vmatmul.mubr.msk.f32.gmra.mxu0 %vm198_vm1, %v15759_v9  ;;  %13275 = vmatprep.mubr.msk.f32.mxu1 %vm198_vm1, %v16078_v50  ;;  %v16096_v9 = vld [vmem:[#allocation2 + $0xd1] sm:$0xff] }
 0x23c   : > { %13325 = vmatprep.mubr.msk.f32.mxu0 %vm198_vm1, %v15785_v28  ;;  %v16102_v28 = vld [vmem:[#allocation2 + $0xe9] sm:$0xff] }
 0x23e   : > { %13276 = vmatmul.mubr.msk.f32.gmra.mxu1 %vm198_vm1, %v16084_v48 }
 0x23f   : > { %13326 = vmatmul.mubr.msk.f32.gmra.mxu0 %vm198_vm1, %v15787_v20  ;;  %13278 = vmatprep.mubr.msk.f32.mxu1 %vm198_vm1, %v16090_v10  ;;  %v16108_v20 = vld [vmem:[#allocation2 + $0xf1] sm:$0xff] }
 0x240   : > { %13328 = vmatprep.mubr.msk.f32.mxu0 %vm198_vm1, %v15813_v34  ;;  %v16114_v34 = vld [vmem:[#allocation2 + $0x109] sm:$0xff] }
 0x242   : > { %13279 = vmatmul.mubr.msk.f32.gmra.mxu1 %vm198_vm1, %v16096_v9 }
 0x243   : > { %13329 = vmatmul.mubr.msk.f32.gmra.mxu0 %vm198_vm1, %v15815_v36  ;;  %13281 = vmatprep.mubr.msk.f32.mxu1 %vm198_vm1, %v16102_v28  ;;  %v16120_v36 = vld [vmem:[#allocation2 + $0x111] sm:$0xff] }
 0x244   : > { %13331 = vmatprep.mubr.msk.f32.mxu0 %vm198_vm1, %v15841_v27  ;;  %v16126_v27 = vld [vmem:[#allocation2 + $0x129] sm:$0xff] }
 0x246   : > { %13282 = vmatmul.mubr.msk.f32.gmra.mxu1 %vm198_vm1, %v16108_v20 }
 0x247   : > { %13332 = vmatmul.mubr.msk.f32.gmra.mxu0 %vm198_vm1, %v15843_v23  ;;  %13284 = vmatprep.mubr.msk.f32.mxu1 %vm198_vm1, %v16114_v34  ;;  %v16132_v23 = vld [vmem:[#allocation2 + $0x131] sm:$0xff] }
 0x248   : > { %13334 = vmatprep.mubr.msk.f32.mxu0 %vm198_vm1, %v15867_v35  ;;  %v16138_v35 = vld [vmem:[#allocation2 + $0x149] sm:$0xff] }
 0x24a   : > { %13285 = vmatmul.mubr.msk.f32.gmra.mxu1 %vm198_vm1, %v16120_v36 }
 0x24b   : > { %13335 = vmatmul.mubr.msk.f32.gmra.mxu0 %vm198_vm1, %v15869_v54  ;;  %13287 = vmatprep.mubr.msk.f32.mxu1 %vm198_vm1, %v16126_v27  ;;  %v16144_v54 = vld [vmem:[#allocation2 + $0x151] sm:$0xff] }
 0x24c   : > { %13337 = vmatprep.mubr.msk.f32.mxu0 %vm198_vm1, %v15892_v53  ;;  %v16150_v53 = vld [vmem:[#allocation2 + $0x169] sm:$0xff] }
 0x24e   : > { %13288 = vmatmul.mubr.msk.f32.gmra.mxu1 %vm198_vm1, %v16132_v23 }
 0x24f   : > { %13338 = vmatmul.mubr.msk.f32.gmra.mxu0 %vm198_vm1, %v15894_v14  ;;  %13290 = vmatprep.mubr.msk.f32.mxu1 %vm198_vm1, %v16138_v35  ;;  %v16156_v14 = vld [vmem:[#allocation2 + $0x171] sm:$0xff] }
 0x250   : > { %13340 = vmatprep.mubr.msk.f32.mxu0 %vm198_vm1, %v15916_v32  ;;  %v16162_v32 = vld [vmem:[#allocation2 + $0x189] sm:$0xff] }
 0x252   : > { %13291 = vmatmul.mubr.msk.f32.gmra.mxu1 %vm198_vm1, %v16144_v54 }
 0x253   : > { %13341 = vmatmul.mubr.msk.f32.gmra.mxu0 %vm198_vm1, %v15918_v46  ;;  %13293 = vmatprep.mubr.msk.f32.mxu1 %vm198_vm1, %v16150_v53  ;;  %v16168_v46 = vld [vmem:[#allocation2 + $0x191] sm:$0xff] }
 0x254   : > { %13343 = vmatprep.mubr.msk.f32.mxu0 %vm198_vm1, %v15936_v59  ;;  %v16174_v59 = vld [vmem:[#allocation2 + $0x1a9] sm:$0xff] }
 0x256   : > { %13294 = vmatmul.mubr.msk.f32.gmra.mxu1 %vm198_vm1, %v16156_v14 }
 0x257   : > { %13344 = vmatmul.mubr.msk.f32.gmra.mxu0 %vm198_vm1, %v15938_v47  ;;  %13296 = vmatprep.mubr.msk.f32.mxu1 %vm198_vm1, %v16162_v32  ;;  %v16180_v47 = vld [vmem:[#allocation2 + $0x1b1] sm:$0xff] }
 0x258   : > { %13346 = vmatprep.mubr.msk.f32.mxu0 %vm198_vm1, %v15955_v2  ;;  %v16186_v2 = vld [vmem:[#allocation2 + $0x1c9] sm:$0xff] }
 0x25a   : > { %13297 = vmatmul.mubr.msk.f32.gmra.mxu1 %vm198_vm1, %v16168_v46 }
 0x25b   : > { %13347 = vmatmul.mubr.msk.f32.gmra.mxu0 %vm198_vm1, %v15957_v24  ;;  %13299 = vmatprep.mubr.msk.f32.mxu1 %vm198_vm1, %v16174_v59  ;;  %v16192_v24 = vld [vmem:[#allocation2 + $0x1d1] sm:$0xff] }
 0x25c   : > { %13349 = vmatprep.mubr.msk.f32.mxu0 %vm198_vm1, %v15973_v56  ;;  %v16198_v56 = vld [vmem:[#allocation2 + $0x1e9] sm:$0xff] }
 0x25e   : > { %13300 = vmatmul.mubr.msk.f32.gmra.mxu1 %vm198_vm1, %v16180_v47 }
 0x25f   : > { %13350 = vmatmul.mubr.msk.f32.gmra.mxu0 %vm198_vm1, %v15975_v25  ;;  %13302 = vmatprep.mubr.msk.f32.mxu1 %vm198_vm1, %v16186_v2  ;;  %v16206_v25 = vld [vmem:[#allocation2 + $0x1f1] sm:$0xff] }
 0x260   : > { %13352 = vmatprep.mubr.msk.f32.mxu0 %vm198_vm1, %v15990_v31  ;;  %v16208_v31 = vld [vmem:[#allocation2 + $0x20f] sm:$0xff] }
 0x262   : > { %13303 = vmatmul.mubr.msk.f32.gmra.mxu1 %vm198_vm1, %v16192_v24 }
 0x263   : > { %13353 = vmatmul.mubr.msk.f32.gmra.mxu0 %vm198_vm1, %v15992_v19  ;;  %13305 = vmatprep.mubr.msk.f32.mxu1 %vm198_vm1, %v16198_v56 }
 0x264   : > { %13355 = vmatprep.mubr.msk.f32.mxu0 %vm198_vm1, %v16200_v13  ;;  %v16225_v13 = vld [vmem:[%s18614_s2 + $0x20] sm:$0xf] }
 0x266   : > { %13306 = vmatmul.mubr.msk.f32.gmra.mxu1 %vm198_vm1, %v16206_v25 }
 0x267   : > { %13356 = vmatmul.mubr.msk.f32.gmra.mxu0 %vm198_vm1, %v16208_v31  ;;  %13360 = vmatprep.mubr.msk.f32.mxu1 %vm198_vm1, %v15642_v61  ;;  %v19004_v61 = vld [vmem:[#allocation54_spill] sm:$0xff] }
 0x268   : > { %13410 = vmatprep.mubr.msk.f32.mxu0 %vm198_vm1, %v16010_v4  ;;  %v19007_v4 = vld [vmem:[#allocation9_spill] sm:$0xff] }
 0x26a   : > { %13361 = vmatmul.mubr.msk.f32.vlgmr.msra.gmra.mxu1 %vm198_vm1, %v15654_v43  ;;  %v19005_v43 = vld [vmem:[#allocation28_spill] sm:$0xff] }
 0x26b   : > { %13411 = vmatmul.mubr.msk.f32.vlgmr.msra.gmra.mxu0 %vm198_vm1, %v16032_v5  ;;  %13459 = vmatpush3.msk.msra.mxu1 %vm499_vm0, %v16015_v18  ;;  %v19008_v18 = vld [vmem:[#allocation56_spill] sm:$0xff] }
 0x26c   : > { %13363 = vmatprep.mubr.msk.f32.mxu1 %vm198_vm1, %v15670_v55  ;;  %13413 = vmatprep.mubr.msk.f32.mxu0 %vm198_vm1, %v16042_v7 }
 0x26d   : > { %13509 = vmatpush3.msk.msra.mxu0 %vm499_vm0, %v16020_v38  ;;  %13558 = vmatprep.subr.msk.mxu1 %vm499_vm0, %v16225_v13 }
 0x26e   : > { %13364 = vmatmul.mubr.msk.f32.gmra.mxu1 %vm198_vm1, %v15682_v17  ;;  %v19006_v17 = vld [vmem:[#allocation4_spill] sm:$0xff] }
 0x26f   : > { %13414 = vmatmul.mubr.msk.f32.gmra.mxu0 %vm198_vm1, %v16048_v12  ;;  %13366 = vmatprep.mubr.msk.f32.mxu1 %vm198_vm1, %v15699_v6 }
 0x270   : > { %13416 = vmatprep.mubr.msk.f32.mxu0 %vm198_vm1, %v16054_v26 }
 0x272   : > { %13367 = vmatmul.mubr.msk.f32.gmra.mxu1 %vm198_vm1, %v15711_v51 }
 0x273   : > { %13417 = vmatmul.mubr.msk.f32.gmra.mxu0 %vm198_vm1, %v16060_v8  ;;  %13369 = vmatprep.mubr.msk.f32.mxu1 %vm198_vm1, %v15727_v52 }
 0x274   : > { %13419 = vmatprep.mubr.msk.f32.mxu0 %vm198_vm1, %v16066_v16 }
 0x276   : > { %13370 = vmatmul.mubr.msk.f32.gmra.mxu1 %vm198_vm1, %v15739_v22 }
 0x277   : > { %13420 = vmatmul.mubr.msk.f32.gmra.mxu0 %vm198_vm1, %v16072_v62  ;;  %13372 = vmatprep.mubr.msk.f32.mxu1 %vm198_vm1, %v15755_v39 }
 0x278   : > { %13422 = vmatprep.mubr.msk.f32.mxu0 %vm198_vm1, %v16078_v50 }
 0x27a   : > { %13373 = vmatmul.mubr.msk.f32.gmra.mxu1 %vm198_vm1, %v15767_v1 }
 0x27b   : > { %13423 = vmatmul.mubr.msk.f32.gmra.mxu0 %vm198_vm1, %v16084_v48  ;;  %13375 = vmatprep.mubr.msk.f32.mxu1 %vm198_vm1, %v15783_v49 }
 0x27c   : > { %13425 = vmatprep.mubr.msk.f32.mxu0 %vm198_vm1, %v16090_v10 }
 0x27e   : > { %13376 = vmatmul.mubr.msk.f32.gmra.mxu1 %vm198_vm1, %v15795_v15 }
 0x27f   : > { %13426 = vmatmul.mubr.msk.f32.gmra.mxu0 %vm198_vm1, %v16096_v9  ;;  %13378 = vmatprep.mubr.msk.f32.mxu1 %vm198_vm1, %v15811_v42 }
 0x280   : > { %13428 = vmatprep.mubr.msk.f32.mxu0 %vm198_vm1, %v16102_v28 }
 0x282   : > { %13379 = vmatmul.mubr.msk.f32.gmra.mxu1 %vm198_vm1, %v19004_v61 }
 0x283   : > { %13429 = vmatmul.mubr.msk.f32.gmra.mxu0 %vm198_vm1, %v16108_v20  ;;  %13381 = vmatprep.mubr.msk.f32.mxu1 %vm198_vm1, %v19005_v43 }
 0x284   : > { %13431 = vmatprep.mubr.msk.f32.mxu0 %vm198_vm1, %v16114_v34 }
 0x286   : > { %13382 = vmatmul.mubr.msk.f32.gmra.mxu1 %vm198_vm1, %v19006_v17 }
 0x287   : > { %13432 = vmatmul.mubr.msk.f32.gmra.mxu0 %vm198_vm1, %v16120_v36  ;;  %13384 = vmatprep.mubr.msk.f32.mxu1 %vm198_vm1, %v15865_v44 }
 0x288   : > { %13434 = vmatprep.mubr.msk.f32.mxu0 %vm198_vm1, %v16126_v27 }
 0x28a   : > { %13385 = vmatmul.mubr.msk.f32.gmra.mxu1 %vm198_vm1, %v15877_v45 }
 0x28b   : > { %13435 = vmatmul.mubr.msk.f32.gmra.mxu0 %vm198_vm1, %v16132_v23  ;;  %13387 = vmatprep.mubr.msk.f32.mxu1 %vm198_vm1, %v15890_v21 }
 0x28c   : > { %13437 = vmatprep.mubr.msk.f32.mxu0 %vm198_vm1, %v16138_v35 }
 0x28e   : > { %13388 = vmatmul.mubr.msk.f32.gmra.mxu1 %vm198_vm1, %v15902_v41 }
 0x28f   : > { %13438 = vmatmul.mubr.msk.f32.gmra.mxu0 %vm198_vm1, %v16144_v54  ;;  %13390 = vmatprep.mubr.msk.f32.mxu1 %vm198_vm1, %v19007_v4 }
 0x290   : > { %13440 = vmatprep.mubr.msk.f32.mxu0 %vm198_vm1, %v16150_v53 }
 0x292   : > { %13391 = vmatmul.mubr.msk.f32.gmra.mxu1 %vm198_vm1, %v19008_v18 }
 0x293   : > { %13441 = vmatmul.mubr.msk.f32.gmra.mxu0 %vm198_vm1, %v16156_v14  ;;  %13393 = vmatprep.mubr.msk.f32.mxu1 %vm198_vm1, %v15934_v37  ;;  %v16345_v14 = vld [vmem:[#allocation2 + $0x208] sm:$0xff] }
 0x294   : > { %13443 = vmatprep.mubr.msk.f32.mxu0 %vm198_vm1, %v16162_v32 }
 0x296   : > { %13394 = vmatmul.mubr.msk.f32.gmra.mxu1 %vm198_vm1, %v15946_v57 }
 0x297   : > { %13444 = vmatmul.mubr.msk.f32.gmra.mxu0 %vm198_vm1, %v16168_v46  ;;  %13396 = vmatprep.mubr.msk.f32.mxu1 %vm198_vm1, %v15953_v60  ;;  %v16347_v46 = vld [vmem:[#allocation2 + $0x209] sm:$0xff] }
 0x298   : > { %13446 = vmatprep.mubr.msk.f32.mxu0 %vm198_vm1, %v16174_v59  ;;  %v16353_v59 = vld [vmem:[#allocation2 + $0x210] sm:$0xff] }
 0x29a   : > { %13397 = vmatmul.mubr.msk.f32.gmra.mxu1 %vm198_vm1, %v15964_v30 }
 0x29b   : > { %13447 = vmatmul.mubr.msk.f32.gmra.mxu0 %vm198_vm1, %v16180_v47  ;;  %13399 = vmatprep.mubr.msk.f32.mxu1 %vm198_vm1, %v15971_v3  ;;  %v16355_v47 = vld [vmem:[#allocation2 + $0x211] sm:$0xff] }
 0x29c   : > { %13449 = vmatprep.mubr.msk.f32.mxu0 %vm198_vm1, %v16186_v2  ;;  %v6513_v2 = vld [vmem:[#allocation2 + $0x50] sm:$0xff] }
 0x29e   : > { %13400 = vmatmul.mubr.msk.f32.gmra.mxu1 %vm198_vm1, %v15982_v40 }
 0x29f   : > { %13450 = vmatmul.mubr.msk.f32.gmra.mxu0 %vm198_vm1, %v16192_v24  ;;  %13402 = vmatprep.mubr.msk.f32.mxu1 %vm198_vm1, %v15988_v63  ;;  %v16372_v24 = vpop.f32.mrf.mxu1 }
 0x2a0   : > { %13452 = vmatprep.mubr.msk.f32.mxu0 %vm198_vm1, %v16198_v56  ;;  %v16374_v56 = vpop.f32.mrf.mxu0 }
 0x2a2   : > { %13403 = vmatmul.mubr.msk.f32.gmra.mxu1 %vm198_vm1, %v15998_v33 }
 0x2a3   : > { %13453 = vmatmul.mubr.msk.f32.gmra.mxu0 %vm198_vm1, %v16206_v25  ;;  %13405 = vmatprep.mubr.msk.f32.mxu1 %vm198_vm1, %v16345_v14 }
 0x2a4   : > { %13455 = vmatprep.mubr.msk.f32.mxu0 %vm198_vm1, %v16347_v46 }
 0x2a6   : > { %13406 = vmatmul.mubr.msk.f32.gmra.mxu1 %vm198_vm1, %v16353_v59 }
 0x2a7   : > { %13456 = vmatmul.mubr.msk.f32.gmra.mxu0 %vm198_vm1, %v16355_v47  ;;  %13460 = vmatprep.mubr.msk.f32.mxu1 %vm198_vm1, %v15672_v0 }
 0x2a8   : > { %13510 = vmatprep.mubr.msk.f32.mxu0 %vm198_vm1, %v15670_v55 }
 0x2aa   : > { %13461 = vmatmul.mubr.msk.f32.vlgmr.msra.gmra.mxu1 %vm198_vm1, %v15674_v58 }
 0x2ab   : > { %13511 = vmatmul.mubr.msk.f32.vlgmr.msra.gmra.mxu0 %vm198_vm1, %v6513_v2  ;;  %13559 = vmatpush3.msk.msra.mxu1 %vm499_vm0, %v16225_v13  ;;  %v13165_v55 = vpop.f32.mrf.mxu1  ;;  %v19009_v13 = vld [vmem:[#allocation52_spill] sm:$0xff]  ;;  %v19010_v2 = vld [vmem:[#allocation3_spill] sm:$0xff] }
 0x2ac   : > { %13463 = vmatprep.mubr.msk.f32.mxu1 %vm198_vm1, %v15701_v11  ;;  %13513 = vmatprep.mubr.msk.f32.mxu0 %vm198_vm1, %v15699_v6  ;;  %v13215_v0 = vpop.f32.mrf.mxu0 }
 0x2ad   : > { %v16382_v58 = vadd.f32 %v13215_v0, %v13165_v55  ;;  %v4089_v11 = vpop.f32.mrf.mxu1 }
 0x2ae   : > { %13464 = vmatmul.mubr.msk.f32.gmra.mxu1 %vm198_vm1, %v15703_v29  ;;  %v4413_v25 = vpop.f32.mrf.mxu0 }
 0x2af   : > { %13514 = vmatmul.mubr.msk.f32.gmra.mxu0 %vm198_vm1, %v15711_v51  ;;  %13466 = vmatprep.mubr.msk.f32.mxu1 %vm198_vm1, %v19009_v13  ;;  %v16388_v38 = vadd.f32 %v4413_v25, %v4089_v11  ;;  %v13168_v6 = vpop.f32.mrf.mxu1  ;;  %v19011_v51 = vld [vmem:[#allocation13_spill] sm:$0xff] }
 0x2b0   : > { %13516 = vmatprep.mubr.msk.f32.mxu0 %vm198_vm1, %v15727_v52  ;;  %v13218_v5 = vpop.f32.mrf.mxu0  ;;  %v19012_v25 = vld [vmem:[#allocation57_spill] sm:$0xff] }
 0x2b1   : > { %v16394_v29 = vadd.f32 %v13218_v5, %v13168_v6  ;;  %v4099_v52 = vpop.f32.mrf.mxu1  ;;  %v19013_v6 = vld [vmem:[#allocation53_spill] sm:$0xff] }
 0x2b2   : > { %13467 = vmatmul.mubr.msk.f32.gmra.mxu1 %vm198_vm1, %v19010_v2  ;;  %v4423_v55 = vpop.f32.mrf.mxu0 }
 0x2b3   : > { %13517 = vmatmul.mubr.msk.f32.gmra.mxu0 %vm198_vm1, %v15739_v22  ;;  %13469 = vmatprep.mubr.msk.f32.mxu1 %vm198_vm1, %v19011_v51  ;;  %v16400_v0 = vadd.f32 %v4423_v55, %v4099_v52  ;;  %v13171_v13 = vpop.f32.mrf.mxu1  ;;  %v19014_v55 = vld [vmem:[#allocation26_spill] sm:$0xff] }
 0x2b4   : > { %13519 = vmatprep.mubr.msk.f32.mxu0 %vm198_vm1, %v15755_v39  ;;  %v13221_v11 = vpop.f32.mrf.mxu0 }
 0x2b5   : > { %v16406_v22 = vadd.f32 %v13221_v11, %v13171_v13  ;;  %v4109_v39 = vpop.f32.mrf.mxu1  ;;  %v19015_v13 = vld [vmem:[#allocation12_spill] sm:$0xff] }
 0x2b6   : > { %13470 = vmatmul.mubr.msk.f32.gmra.mxu1 %vm198_vm1, %v19012_v25  ;;  %v4433_v5 = vpop.f32.mrf.mxu0 }
 0x2b7   : > { %13520 = vmatmul.mubr.msk.f32.gmra.mxu0 %vm198_vm1, %v15767_v1  ;;  %13472 = vmatprep.mubr.msk.f32.mxu1 %vm198_vm1, %v19013_v6  ;;  %v16412_v2 = vadd.f32 %v4433_v5, %v4109_v39  ;;  %v13174_v51 = vpop.f32.mrf.mxu1  ;;  %v19016_v5 = vld [vmem:[#allocation29_spill] sm:$0xff] }
 0x2b8   : > { %13522 = vmatprep.mubr.msk.f32.mxu0 %vm198_vm1, %v15783_v49  ;;  %v13224_v52 = vpop.f32.mrf.mxu0 }
 0x2b9   : > { %v16418_v1 = vadd.f32 %v13224_v52, %v13174_v51  ;;  %v4119_v49 = vpop.f32.mrf.mxu1  ;;  %v19017_v51 = vld [vmem:[#allocation59_spill] sm:$0xff] }
 0x2ba   : > { %13473 = vmatmul.mubr.msk.f32.gmra.mxu1 %vm198_vm1, %v19014_v55  ;;  %v4443_v11 = vpop.f32.mrf.mxu0 }
 0x2bb   : > { %13523 = vmatmul.mubr.msk.f32.gmra.mxu0 %vm198_vm1, %v15795_v15  ;;  %13475 = vmatprep.mubr.msk.f32.mxu1 %vm198_vm1, %v19015_v13  ;;  %v16424_v25 = vadd.f32 %v4443_v11, %v4119_v49  ;;  %v13177_v6 = vpop.f32.mrf.mxu1  ;;  %v19018_v11 = vld [vmem:[#allocation11_spill] sm:$0xff] }
 0x2bc   : > { %13525 = vmatprep.mubr.msk.f32.mxu0 %vm198_vm1, %v15811_v42  ;;  %v13227_v39 = vpop.f32.mrf.mxu0 }
 0x2bd   : > { %v16430_v15 = vadd.f32 %v13227_v39, %v13177_v6  ;;  %v4129_v42 = vpop.f32.mrf.mxu1  ;;  %v19019_v6 = vld [vmem:[#allocation15_spill] sm:$0xff] }
 0x2be   : > { %13476 = vmatmul.mubr.msk.f32.gmra.mxu1 %vm198_vm1, %v19016_v5  ;;  %v4453_v52 = vpop.f32.mrf.mxu0 }
 0x2bf   : > { %13526 = vmatmul.mubr.msk.f32.gmra.mxu0 %vm198_vm1, %v19004_v61  ;;  %13478 = vmatprep.mubr.msk.f32.mxu1 %vm198_vm1, %v19017_v51  ;;  %v16436_v55 = vadd.f32 %v4453_v52, %v4129_v42  ;;  %v13180_v13 = vpop.f32.mrf.mxu1  ;;  %v19020_v52 = vld [vmem:[#allocation55_spill] sm:$0xff] }
 0x2c0   : > { %13528 = vmatprep.mubr.msk.f32.mxu0 %vm198_vm1, %v19005_v43  ;;  %v13230_v49 = vpop.f32.mrf.mxu0 }
 0x2c1   : > { %v16442_v61 = vadd.f32 %v13230_v49, %v13180_v13  ;;  %v4139_v43 = vpop.f32.mrf.mxu1  ;;  %v19021_v13 = vld [vmem:[#allocation61_spill] sm:$0xff] }
 0x2c2   : > { %13479 = vmatmul.mubr.msk.f32.gmra.mxu1 %vm198_vm1, %v19018_v11  ;;  %v4463_v39 = vpop.f32.mrf.mxu0 }
 0x2c3   : > { %13529 = vmatmul.mubr.msk.f32.gmra.mxu0 %vm198_vm1, %v19006_v17  ;;  %13481 = vmatprep.mubr.msk.f32.mxu1 %vm198_vm1, %v19019_v6  ;;  %v16448_v5 = vadd.f32 %v4463_v39, %v4139_v43  ;;  %v19022_v39 = vld [vmem:[#allocation27_spill] sm:$0xff] }
 0x2c4   : > { %13531 = vmatprep.mubr.msk.f32.mxu0 %vm198_vm1, %v15865_v44  ;;  %v13183_v51 = vpop.f32.mrf.mxu1 }
 0x2c5   : > { %v13233_v42 = vpop.f32.mrf.mxu0 }
 0x2c6   : > { %13482 = vmatmul.mubr.msk.f32.gmra.mxu1 %vm198_vm1, %v19020_v52  ;;  %v16454_v17 = vadd.f32 %v13233_v42, %v13183_v51  ;;  %v4149_v44 = vpop.f32.mrf.mxu1  ;;  %v19023_v51 = vld [vmem:[#allocation31_spill] sm:$0xff] }
 0x2c7   : > { %13532 = vmatmul.mubr.msk.f32.gmra.mxu0 %vm198_vm1, %v15877_v45  ;;  %13484 = vmatprep.mubr.msk.f32.mxu1 %vm198_vm1, %v19021_v13  ;;  %v4473_v49 = vpop.f32.mrf.mxu0 }
 0x2c8   : > { %13534 = vmatprep.mubr.msk.f32.mxu0 %vm198_vm1, %v15890_v21  ;;  %v16460_v11 = vadd.f32 %v4473_v49, %v4149_v44  ;;  %v13186_v6 = vpop.f32.mrf.mxu1  ;;  %v19024_v44 = vld [vmem:[#allocation63_spill] sm:$0xff]  ;;  %v19025_v49 = vld [vmem:[#allocation14_spill] sm:$0xff] }
 0x2c9   : > { %v13236_v43 = vpop.f32.mrf.mxu0 }
 0x2ca   : > { %13485 = vmatmul.mubr.msk.f32.gmra.mxu1 %vm198_vm1, %v19022_v39  ;;  %v16466_v45 = vadd.f32 %v13236_v43, %v13186_v6  ;;  %v16472_v21 = vpop.f32.mrf.mxu1 }
 0x2cb   : > { %13535 = vmatmul.mubr.msk.f32.gmra.mxu0 %vm198_vm1, %v15902_v41  ;;  %13487 = vmatprep.mubr.msk.f32.mxu1 %vm198_vm1, %v19023_v51  ;;  %v16474_v42 = vpop.f32.mrf.mxu0  ;;  %v19028_v51 = vld [vmem:[#allocation5_spill] sm:$0xff] }
 0x2cc   : > { %13537 = vmatprep.mubr.msk.f32.mxu0 %vm198_vm1, %v19007_v4 }
 0x2cd   : > { %v13189_v52 = vpop.f32.mrf.mxu1  ;;  %v13239_v13 = vpop.f32.mrf.mxu0 }
 0x2ce   : > { %13488 = vmatmul.mubr.msk.f32.gmra.mxu1 %vm198_vm1, %v19024_v44  ;;  %v16480_v41 = vadd.f32 %v13239_v13, %v13189_v52  ;;  %v19029_v52 = vld [vmem:[#allocation17_spill] sm:$0xff] }
 0x2cf   : > { %13538 = vmatmul.mubr.msk.f32.gmra.mxu0 %vm198_vm1, %v19008_v18  ;;  %13490 = vmatprep.mubr.msk.f32.mxu1 %vm198_vm1, %v19025_v49  ;;  %v16486_v4 = vpop.f32.mrf.mxu1  ;;  %v16488_v6 = vpop.f32.mrf.mxu0 }
 0x2d0   : > { %13540 = vmatprep.mubr.msk.f32.mxu0 %vm198_vm1, %v15934_v37  ;;  %19026 = vst [vmem:[#allocation67_spill] sm:$0xff] %v16486_v4  ;;  %19027 = vst [vmem:[#allocation16_spill] sm:$0xff] %v16488_v6  ;;  %v19032_v6 = vld [vmem:[#allocation65_spill] sm:$0xff] }
 0x2d1   : > { %v13192_v43 = vpop.f32.mrf.mxu1 }
 0x2d2   : > { %v13242_v39 = vpop.f32.mrf.mxu0  ;;  %13491 = vmatmul.mubr.msk.f32.gmra.mxu1 %vm198_vm1, %v19028_v51 }
 0x2d3   : > { %13541 = vmatmul.mubr.msk.f32.gmra.mxu0 %vm198_vm1, %v15946_v57  ;;  %v16494_v18 = vadd.f32 %v13242_v39, %v13192_v43  ;;  %13493 = vmatprep.mubr.msk.f32.mxu1 %vm198_vm1, %v19029_v52  ;;  %v16500_v37 = vpop.f32.mrf.mxu1  ;;  %v19033_v43 = vld [vmem:[#allocation58_spill] sm:$0xff] }
 0x2d4   : > { %13543 = vmatprep.mubr.msk.f32.mxu0 %vm198_vm1, %v15953_v60  ;;  %19030 = vst [vmem:[#allocation6_spill] sm:$0xff] %v16500_v37  ;;  %v16502_v13 = vpop.f32.mrf.mxu0 }
 0x2d5   : > { %19031 = vst [vmem:[#allocation19_spill] sm:$0xff] %v16502_v13  ;;  %v13195_v44 = vpop.f32.mrf.mxu1  ;;  %v19036_v13 = vld [vmem:[#allocation30_spill] sm:$0xff] }
 0x2d6   : > { %v13245_v49 = vpop.f32.mrf.mxu0  ;;  %13494 = vmatmul.mubr.msk.f32.gmra.mxu1 %vm198_vm1, %v19032_v6  ;;  %v19037_v6 = vld [vmem:[#allocation34_spill] sm:$0xff] }
 0x2d7   : > { %13544 = vmatmul.mubr.msk.f32.gmra.mxu0 %vm198_vm1, %v15964_v30  ;;  %v16508_v57 = vadd.f32 %v13245_v49, %v13195_v44  ;;  %13496 = vmatprep.mubr.msk.f32.mxu1 %vm198_vm1, %v19033_v43  ;;  %v16514_v60 = vpop.f32.mrf.mxu1 }
 0x2d8   : > { %13546 = vmatprep.mubr.msk.f32.mxu0 %vm198_vm1, %v15971_v3  ;;  %19034 = vst [vmem:[#allocation62_spill] sm:$0xff] %v16514_v60  ;;  %v16516_v39 = vpop.f32.mrf.mxu0 }
 0x2d9   : > { %19035 = vst [vmem:[#allocation69_spill] sm:$0xff] %v16516_v39  ;;  %v13198_v51 = vpop.f32.mrf.mxu1 }
 0x2da   : > { %v13248_v52 = vpop.f32.mrf.mxu0  ;;  %13497 = vmatmul.mubr.msk.f32.gmra.mxu1 %vm198_vm1, %v19036_v13  ;;  %v19040_v13 = vld [vmem:[#allocation33_spill] sm:$0xff] }
 0x2db   : > { %13547 = vmatmul.mubr.msk.f32.gmra.mxu0 %vm198_vm1, %v15982_v40  ;;  %v16522_v30 = vadd.f32 %v13248_v52, %v13198_v51  ;;  %13499 = vmatprep.mubr.msk.f32.mxu1 %vm198_vm1, %v19037_v6  ;;  %v16528_v3 = vpop.f32.mrf.mxu1  ;;  %v6152_v52 = vld [vmem:[#allocation2 + $0x227] sm:$0xff] }
 0x2dc   : > { %13549 = vmatprep.mubr.msk.f32.mxu0 %vm198_vm1, %v15988_v63  ;;  %19038 = vst [vmem:[#allocation32_spill] sm:$0xff] %v16528_v3  ;;  %v16530_v44 = vpop.f32.mrf.mxu0  ;;  %v6542_v6 = vld [vmem:[#allocation2 + $0x228] sm:$0xff] }
 0x2dd   : > { %19039 = vst [vmem:[#allocation37_spill] sm:$0xff] %v16530_v44 }
 0x2de   : > { %v13201_v49 = vpop.f32.mrf.mxu1  ;;  %13500 = vmatmul.mubr.msk.f32.gmra.mxu1 %vm198_vm1, %v15992_v19 }
 0x2df   : > { %v13251_v43 = vpop.f32.mrf.mxu0  ;;  %13550 = vmatmul.mubr.msk.f32.gmra.mxu0 %vm198_vm1, %v15998_v33  ;;  %13502 = vmatprep.mubr.msk.f32.mxu1 %vm198_vm1, %v19040_v13  ;;  %v6153_v33 = vld [vmem:[#allocation2 + $0x22f] sm:$0xff] }
 0x2e0   : > { %v16536_v40 = vadd.f32 %v13251_v43, %v13201_v49  ;;  %13552 = vmatprep.mubr.msk.f32.mxu0 %vm198_vm1, %v16345_v14  ;;  %v16542_v63 = vpop.f32.mrf.mxu1  ;;  %v6543_v14 = vld [vmem:[#allocation2 + $0x230] sm:$0xff] }
 0x2e1   : > { %19041 = vst [vmem:[#allocation36_spill] sm:$0xff] %v16542_v63  ;;  %v16544_v51 = vpop.f32.mrf.mxu0 }
 0x2e2   : > { %19042 = vst [vmem:[#allocation71_spill] sm:$0xff] %v16544_v51  ;;  %v13204_v44 = vpop.f32.mrf.mxu1  ;;  %13503 = vmatmul.mubr.msk.f32.gmra.mxu1 %vm198_vm1, %v16208_v31 }
 0x2e3   : > { %v13254_v3 = vpop.f32.mrf.mxu0  ;;  %13553 = vmatmul.mubr.msk.f32.gmra.mxu0 %vm198_vm1, %v16353_v59  ;;  %13505 = vmatprep.mubr.msk.f32.mxu1 %vm198_vm1, %v6152_v52 }
 0x2e4   : > { %v16550_v19 = vadd.f32 %v13254_v3, %v13204_v44  ;;  %13555 = vmatprep.mubr.msk.f32.mxu0 %vm198_vm1, %v6542_v6  ;;  %v16554_v49 = vpop.f32.mrf.mxu1  ;;  %v19047_v6 = vld [vmem:[#allocation60_spill] sm:$0xff] }
 0x2e5   : > { %19043 = vst [vmem:[#allocation64_spill] sm:$0xff] %v16554_v49  ;;  %v16556_v43 = vpop.f32.mrf.mxu0  ;;  %v7356_v49 = vld [vmem:[#allocation2 + $0x7] sm:$0xff] }
 0x2e6   : > { %19044 = vst [vmem:[#allocation18_spill] sm:$0xff] %v16556_v43  ;;  %v13207_v13 = vpop.f32.mrf.mxu1  ;;  %13506 = vmatmul.mubr.msk.f32.gmra.mxu1 %vm198_vm1, %v6153_v33 }
 0x2e7   : > { %v13257_v51 = vpop.f32.mrf.mxu0  ;;  %13556 = vmatmul.mubr.msk.f32.gmra.mxu0 %vm198_vm1, %v6543_v14  ;;  %13560 = vmatprep.mubr.msk.f32.mxu1 %vm198_vm1, %v16042_v7 }
 0x2e8   : > { %v16560_v31 = vadd.f32 %v13257_v51, %v13207_v13  ;;  %v16564_v59 = vpop.f32.mrf.mxu1 }
 0x2e9   : > { %19045 = vst [vmem:[#allocation7_spill] sm:$0xff] %v16564_v59  ;;  %v16566_v3 = vpop.f32.mrf.mxu0 }
 0x2ea   : > { %19046 = vst [vmem:[#allocation21_spill] sm:$0xff] %v16566_v3  ;;  %v13262_v44 = vpop.f32.mrf.mxu1  ;;  %13561 = vmatmul.mubr.msk.f32.vlgmr.msra.gmra.mxu1 %vm198_vm1, %v16048_v12 }
 0x2eb   : > { %v13312_v52 = vpop.f32.mrf.mxu0  ;;  %v4921_v43 = vadd.f32 %v13262_v44, %v19047_v6  ;;  %13563 = vmatprep.mubr.msk.f32.mxu1 %vm198_vm1, %v16054_v26 }
 0x2ec   : > { %v16573_v33 = vpop.f32.mrf.mxu1 }
 0x2ed   : > { %v16575_v51 = vpop.f32.mrf.mxu0  ;;  %v16577_v14 = vadd.f32 %v13312_v52, %v4921_v43 }
 0x2ee   : > { %v13265_v7 = vpop.f32.mrf.mxu1  ;;  %13564 = vmatmul.mubr.msk.f32.gmra.mxu1 %vm198_vm1, %v16060_v8 }
 0x2ef   : > { %v13315_v13 = vpop.f32.mrf.mxu0  ;;  %v4923_v3 = vadd.f32 %v13265_v7, %v16382_v58  ;;  %13566 = vmatprep.mubr.msk.f32.mxu1 %vm198_vm1, %v16066_v16 }
 0x2f0   : > { %v4771_v12 = vpop.f32.mrf.mxu1 }
 0x2f1   : > { %v16584_v44 = vpop.f32.mrf.mxu0  ;;  %v16586_v26 = vadd.f32 %v13315_v13, %v4923_v3  ;;  %v16589_v6 = vadd.f32 %v4771_v12, %v16388_v38 }
 0x2f2   : > { %v13268_v43 = vpop.f32.mrf.mxu1  ;;  %13567 = vmatmul.mubr.msk.f32.gmra.mxu1 %vm198_vm1, %v16072_v62 }
 0x2f3   : > { %v13318_v52 = vpop.f32.mrf.mxu0  ;;  %v4925_v8 = vadd.f32 %v13268_v43, %v16394_v29  ;;  %13569 = vmatprep.mubr.msk.f32.mxu1 %vm198_vm1, %v16078_v50  ;;  %v11508_v50 = vld [vmem:[%s18615_s3 + $0x4] sm:$0xf] }
 0x2f4   : > { %v4781_v58 = vpop.f32.mrf.mxu1  ;;  %13608 = vmatprep.subr.msk.mxu0 %vm499_vm0, %v11508_v50 }
 0x2f5   : > { %v16596_v16 = vpop.f32.mrf.mxu0  ;;  %v16598_v7 = vadd.f32 %v13318_v52, %v4925_v8  ;;  %v16601_v3 = vadd.f32 %v4781_v58, %v16400_v0  ;;  %13609 = vmatpush3.msk.msra.mxu0 %vm499_vm0, %v11508_v50 }
 0x2f6   : > { %v13271_v38 = vpop.f32.mrf.mxu1  ;;  %13570 = vmatmul.mubr.msk.f32.gmra.mxu1 %vm198_vm1, %v16084_v48 }
 0x2f7   : > { %v13321_v13 = vpop.f32.mrf.mxu0  ;;  %v4927_v62 = vadd.f32 %v13271_v38, %v16406_v22  ;;  %13572 = vmatprep.mubr.msk.f32.mxu1 %vm198_vm1, %v16090_v10 }
 0x2f8   : > { %v4791_v29 = vpop.f32.mrf.mxu1 }
 0x2f9   : > { %v16611_v12 = vpop.f32.mrf.mxu0  ;;  %v16614_v0 = vadd.f32 %v13321_v13, %v4927_v62  ;;  %v16617_v43 = vadd.f32 %v4791_v29, %v16412_v2 }
 0x2fa   : > { %v13274_v48 = vpop.f32.mrf.mxu1  ;;  %13573 = vmatmul.mubr.msk.f32.gmra.mxu1 %vm198_vm1, %v16096_v9 }
 0x2fb   : > { %v13324_v22 = vpop.f32.mrf.mxu0  ;;  %v4929_v10 = vadd.f32 %v13274_v48, %v16418_v1  ;;  %13575 = vmatprep.mubr.msk.f32.mxu1 %vm198_vm1, %v16102_v28 }
 0x2fc   : > { %v4801_v52 = vpop.f32.mrf.mxu1 }
 0x2fd   : > { %v16625_v8 = vpop.f32.mrf.mxu0  ;;  %v16627_v58 = vadd.f32 %v13324_v22, %v4929_v10  ;;  %v16630_v2 = vadd.f32 %v4801_v52, %v16424_v25 }
 0x2fe   : > { %v13277_v38 = vpop.f32.mrf.mxu1  ;;  %13576 = vmatmul.mubr.msk.f32.gmra.mxu1 %vm198_vm1, %v16108_v20 }
 0x2ff   : > { %v13327_v13 = vpop.f32.mrf.mxu0  ;;  %v4931_v9 = vadd.f32 %v13277_v38, %v16430_v15  ;;  %13578 = vmatprep.mubr.msk.f32.mxu1 %vm198_vm1, %v16114_v34 }
 0x300   : > { %v4811_v1 = vpop.f32.mrf.mxu1 }
 0x301   : > { %v16637_v28 = vpop.f32.mrf.mxu0  ;;  %v16639_v62 = vadd.f32 %v13327_v13, %v4931_v9  ;;  %v16642_v50 = vadd.f32 %v4811_v1, %v16436_v55 }
 0x302   : > { %v13280_v25 = vpop.f32.mrf.mxu1  ;;  %13579 = vmatmul.mubr.msk.f32.gmra.mxu1 %vm198_vm1, %v16120_v36 }
 0x303   : > { %v13330_v29 = vpop.f32.mrf.mxu0  ;;  %v4933_v20 = vadd.f32 %v13280_v25, %v16442_v61  ;;  %13581 = vmatprep.mubr.msk.f32.mxu1 %vm198_vm1, %v16126_v27  ;;  %v6921_v25 = vld [vmem:[#allocation2 + $0x171] sm:$0xff] }
 0x304   : > { %v4821_v15 = vpop.f32.mrf.mxu1 }
 0x305   : > { %v16649_v34 = vpop.f32.mrf.mxu0  ;;  %v16651_v48 = vadd.f32 %v13330_v29, %v4933_v20  ;;  %v16654_v22 = vadd.f32 %v4821_v15, %v16448_v5 }
 0x306   : > { %v13283_v55 = vpop.f32.mrf.mxu1  ;;  %13582 = vmatmul.mubr.msk.f32.gmra.mxu1 %vm198_vm1, %v16132_v23  ;;  %v4484_v23 = vadd.f32 %v16474_v42, %v16472_v21  ;;  %v6923_v42 = vld [vmem:[#allocation2 + $0x191] sm:$0xff] }
 0x307   : > { %v13333_v10 = vpop.f32.mrf.mxu0  ;;  %v4935_v36 = vadd.f32 %v13283_v55, %v16454_v17  ;;  %13584 = vmatprep.mubr.msk.f32.mxu1 %vm198_vm1, %v16138_v35 }
 0x308   : > { %v4831_v61 = vpop.f32.mrf.mxu1 }
 0x309   : > { %v16661_v27 = vpop.f32.mrf.mxu0  ;;  %v16663_v52 = vadd.f32 %v13333_v10, %v4935_v36  ;;  %v16666_v38 = vadd.f32 %v4831_v61, %v16460_v11  ;;  %v6924_v10 = vld [vmem:[#allocation2 + $0x1a9] sm:$0xff] }
 0x30a   : > { %19048 = vst [vmem:[#allocation73_spill] sm:$0xff] %v16661_v27  ;;  %v13286_v5 = vpop.f32.mrf.mxu1  ;;  %13585 = vmatmul.mubr.msk.f32.gmra.mxu1 %vm198_vm1, %v16144_v54 }
 0x30b   : > { %19049 = vst [vmem:[#allocation66_spill] sm:$0xff] %v16666_v38  ;;  %v13336_v13 = vpop.f32.mrf.mxu0  ;;  %v4937_v17 = vadd.f32 %v13286_v5, %v16466_v45  ;;  %13587 = vmatprep.mubr.msk.f32.mxu1 %vm198_vm1, %v16150_v53  ;;  %v6925_v5 = vld [vmem:[#allocation2 + $0x1b1] sm:$0xff] }
 0x30c   : > { %v4841_v35 = vpop.f32.mrf.mxu1 }
 0x30d   : > { %v16675_v9 = vpop.f32.mrf.mxu0  ;;  %v16677_v1 = vadd.f32 %v13336_v13, %v4937_v17  ;;  %v16679_v11 = vadd.f32 %v4841_v35, %v4484_v23  ;;  %v6926_v17 = vld [vmem:[#allocation2 + $0x1c9] sm:$0xff] }
 0x30e   : > { %19050 = vst [vmem:[#allocation35_spill] sm:$0xff] %v16675_v9  ;;  %v13289_v29 = vpop.f32.mrf.mxu1  ;;  %13588 = vmatmul.mubr.msk.f32.gmra.mxu1 %vm198_vm1, %v6921_v25 }
 0x30f   : > { %19051 = vst [vmem:[#allocation40_spill] sm:$0xff] %v16679_v11  ;;  %v13339_v20 = vpop.f32.mrf.mxu0  ;;  %v4939_v54 = vadd.f32 %v13289_v29, %v16480_v41  ;;  %13590 = vmatprep.mubr.msk.f32.mxu1 %vm198_vm1, %v16162_v32 }
 0x310   : > { %v16685_v45 = vpop.f32.mrf.mxu1 }
 0x311   : > { %19052 = vst [vmem:[#allocation68_spill] sm:$0xff] %v16685_v45  ;;  %v16687_v53 = vpop.f32.mrf.mxu0  ;;  %v16689_v21 = vadd.f32 %v13339_v20, %v4939_v54  ;;  %v6927_v20 = vld [vmem:[#allocation2 + $0x1d1] sm:$0xff] }
 0x312   : > { %19053 = vst [vmem:[#allocation39_spill] sm:$0xff] %v16687_v53  ;;  %v13292_v15 = vpop.f32.mrf.mxu1  ;;  %13591 = vmatmul.mubr.msk.f32.gmra.mxu1 %vm198_vm1, %v6923_v42 }
 0x313   : > { %v13342_v55 = vpop.f32.mrf.mxu0  ;;  %v4941_v36 = vadd.f32 %v13292_v15, %v16494_v18  ;;  %13593 = vmatprep.mubr.msk.f32.mxu1 %vm198_vm1, %v6924_v10  ;;  %v6928_v15 = vld [vmem:[#allocation2 + $0x1e9] sm:$0xff] }
 0x314   : > { %v16694_v41 = vpop.f32.mrf.mxu1 }
 0x315   : > { %19054 = vst [vmem:[#allocation75_spill] sm:$0xff] %v16694_v41  ;;  %v16696_v61 = vpop.f32.mrf.mxu0  ;;  %v16698_v32 = vadd.f32 %v13342_v55, %v4941_v36 }
 0x316   : > { %19055 = vst [vmem:[#allocation20_spill] sm:$0xff] %v16696_v61  ;;  %v13295_v13 = vpop.f32.mrf.mxu1  ;;  %13594 = vmatmul.mubr.msk.f32.gmra.mxu1 %vm198_vm1, %v6925_v5  ;;  %v6929_v5 = vld [vmem:[#allocation2 + $0x1f1] sm:$0xff] }
 0x317   : > { %v13345_v23 = vpop.f32.mrf.mxu0  ;;  %v4943_v35 = vadd.f32 %v13295_v13, %v16508_v57  ;;  %13596 = vmatprep.mubr.msk.f32.mxu1 %vm198_vm1, %v6926_v17 }
 0x318   : > { %v16703_v25 = vpop.f32.mrf.mxu1 }
 0x319   : > { %19056 = vst [vmem:[#allocation8_spill] sm:$0xff] %v16703_v25  ;;  %v16705_v18 = vpop.f32.mrf.mxu0  ;;  %v16707_v29 = vadd.f32 %v13345_v23, %v4943_v35 }
 0x31a   : > { %19057 = vst [vmem:[#allocation23_spill] sm:$0xff] %v16705_v18  ;;  %v13298_v54 = vpop.f32.mrf.mxu1  ;;  %13597 = vmatmul.mubr.msk.f32.gmra.mxu1 %vm198_vm1, %v6927_v20  ;;  %v6932_v20 = vld [vmem:[#allocation2 + $0x229] sm:$0xff] }
 0x31b   : > { %v13348_v42 = vpop.f32.mrf.mxu0  ;;  %v4945_v55 = vadd.f32 %v13298_v54, %v16522_v30  ;;  %13599 = vmatprep.mubr.msk.f32.mxu1 %vm198_vm1, %v6928_v15 }
 0x31c   : > { %v16712_v10 = vpop.f32.mrf.mxu1 }
 0x31d   : > { %19058 = vst [vmem:[#allocation70_spill] sm:$0xff] %v16712_v10  ;;  %v16714_v57 = vpop.f32.mrf.mxu0  ;;  %v16716_v36 = vadd.f32 %v13348_v42, %v4945_v55 }
 0x31e   : > { %19059 = vst [vmem:[#allocation38_spill] sm:$0xff] %v16714_v57  ;;  %v13301_v13 = vpop.f32.mrf.mxu1  ;;  %13600 = vmatmul.mubr.msk.f32.gmra.mxu1 %vm198_vm1, %v6929_v5  ;;  %v7357_v57 = vld [vmem:[#allocation2 + $0xf] sm:$0xff] }
 0x31f   : > { %v13351_v23 = vpop.f32.mrf.mxu0  ;;  %v4947_v17 = vadd.f32 %v13301_v13, %v16536_v40  ;;  %13602 = vmatprep.mubr.msk.f32.mxu1 %vm198_vm1, %v16347_v46  ;;  %v6933_v40 = vld [vmem:[#allocation2 + $0x231] sm:$0xff] }
 0x320   : > { %v16722_v35 = vpop.f32.mrf.mxu1 }
 0x321   : > { %19060 = vst [vmem:[#allocation43_spill] sm:$0xff] %v16722_v35  ;;  %v16724_v30 = vpop.f32.mrf.mxu0  ;;  %v16726_v54 = vadd.f32 %v13351_v23, %v4947_v17  ;;  %v7390_v35 = vld [vmem:[#allocation2 + $0x10] sm:$0xff] }
 0x322   : > { %19061 = vst [vmem:[#allocation42_spill] sm:$0xff] %v16724_v30  ;;  %v13304_v15 = vpop.f32.mrf.mxu1  ;;  %13603 = vmatmul.mubr.msk.f32.gmra.mxu1 %vm198_vm1, %v16355_v47 }
 0x323   : > { %v13354_v42 = vpop.f32.mrf.mxu0  ;;  %v4949_v55 = vadd.f32 %v13304_v15, %v16550_v19  ;;  %13605 = vmatprep.mubr.msk.f32.mxu1 %vm198_vm1, %v6932_v20 }
 0x324   : > { %v16732_v5 = vpop.f32.mrf.mxu1 }
 0x325   : > { %19062 = vst [vmem:[#allocation78_spill] sm:$0xff] %v16732_v5  ;;  %v16734_v46 = vpop.f32.mrf.mxu0  ;;  %v16736_v13 = vadd.f32 %v13354_v42, %v4949_v55 }
 0x326   : > { %19063 = vst [vmem:[#allocation72_spill] sm:$0xff] %v16734_v46  ;;  %v13307_v59 = vpop.f32.mrf.mxu1  ;;  %13606 = vmatmul.mubr.msk.f32.gmra.mxu1 %vm198_vm1, %v6933_v40 }
 0x327   : > { %v13357_v30 = vpop.f32.mrf.mxu0  ;;  %v4951_v23 = vadd.f32 %v13307_v59, %v16560_v31  ;;  %13660 = vmatprep.mubr.msk.f32.mxu1 %vm198_vm1, %v7356_v49 }
 0x328   : > { %v16740_v17 = vpop.f32.mrf.mxu1 }
 0x329   : > { %19064 = vst [vmem:[#allocation22_spill] sm:$0xff] %v16740_v17  ;;  %v16742_v47 = vpop.f32.mrf.mxu0  ;;  %v16744_v19 = vadd.f32 %v13357_v30, %v4951_v23  ;;  %v7389_v17 = vld [vmem:[#allocation2 + $0x8] sm:$0xff] }
 0x32a   : > { %19065 = vst [vmem:[#allocation10_spill] sm:$0xff] %v16742_v47  ;;  %v13362_v20 = vpop.f32.mrf.mxu1  ;;  %13610 = vmatprep.mubr.msk.f32.mxu0 %vm198_vm1, %v7389_v17  ;;  %v11575_v17 = vld [vmem:[%s18615_s3 + $0x8] sm:$0xf] }
 0x32b   : > { %v16746_v15 = vpop.f32.mrf.mxu0  ;;  %v16749_v5 = vadd.f32 %v13362_v20, %v16577_v14  ;;  %v7388_v14 = vld [vmem:[%s18615_s3] sm:$0xf]  ;;  %13611 = vmatmul.mubr.msk.f32.vlgmr.msra.gmra.mxu0 %vm198_vm1, %v7390_v35  ;;  %13708 = vmatprep.subr.msk.mxu0 %vm499_vm0, %v11575_v17 }
 0x32c   : > { %v16751_v42 = vpop.f32.mrf.mxu1  ;;  %13658 = vmatprep.subr.msk.mxu1 %vm499_vm0, %v7388_v14  ;;  %13709 = vmatpush3.msk.msra.mxu0 %vm499_vm0, %v11575_v17 }
 0x32d   : > { %v16753_v55 = vpop.f32.mrf.mxu0  ;;  %13659 = vmatpush3.msk.msra.mxu1 %vm499_vm0, %v7388_v14 }
 0x32e   : > { %v13365_v46 = vpop.f32.mrf.mxu1  ;;  %13661 = vmatmul.mubr.msk.f32.vlgmr.msra.gmra.mxu1 %vm198_vm1, %v7357_v57 }
 0x32f   : > { %v16755_v40 = vpop.f32.mrf.mxu0  ;;  %v16758_v31 = vadd.f32 %v13365_v46, %v16586_v26 }
 0x330   : > { %v16760_v59 = vpop.f32.mrf.mxu1 }
 0x331   : > { %v16762_v30 = vpop.f32.mrf.mxu0 }
 0x332   : > { %v13368_v23 = vpop.f32.mrf.mxu1 }
 0x333   : > { %v16764_v47 = vpop.f32.mrf.mxu0  ;;  %v16770_v20 = vadd.f32 %v13368_v23, %v16598_v7 }
 0x334   : > { %v16773_v26 = vpop.f32.mrf.mxu1 }
 0x335   : > { %v16775_v46 = vpop.f32.mrf.mxu0 }
 0x336   : > { %v13371_v7 = vpop.f32.mrf.mxu1 }
 0x337   : > { %v16781_v23 = vpop.f32.mrf.mxu0  ;;  %v16785_v63 = vadd.f32 %v13371_v7, %v16614_v0 }
 0x338   : > { %v16787_v10 = vpop.f32.mrf.mxu1 }
 0x339   : > { %v16789_v18 = vpop.f32.mrf.mxu0 }
 0x33a   : > { %v13374_v14 = vpop.f32.mrf.mxu1 }
 0x33b   : > { %v16794_v49 = vpop.f32.mrf.mxu0  ;;  %v16798_v35 = vadd.f32 %v13374_v14, %v16627_v58 }
 0x33c   : > { %v16801_v0 = vpop.f32.mrf.mxu1 }
 0x33d   : > { %v16803_v57 = vpop.f32.mrf.mxu0 }
 0x33e   : > { %v13377_v7 = vpop.f32.mrf.mxu1 }
 0x33f   : > { %v16805_v25 = vpop.f32.mrf.mxu0  ;;  %v16808_v61 = vadd.f32 %v13377_v7, %v16639_v62 }
 0x340   : > { %19066 = vst [vmem:[#allocation25_spill] sm:$0xff] %v16805_v25  ;;  %v16810_v39 = vpop.f32.mrf.mxu1 }
 0x341   : > { %19067 = vst [vmem:[#allocation80_spill] sm:$0xff] %v16808_v61  ;;  %v16812_v60 = vpop.f32.mrf.mxu0 }
 0x342   : > { %19068 = vst [vmem:[#allocation74_spill] sm:$0xff] %v16812_v60  ;;  %v13380_v41 = vpop.f32.mrf.mxu1 }
 0x343   : > { %v16814_v53 = vpop.f32.mrf.mxu0  ;;  %v16817_v58 = vadd.f32 %v13380_v41, %v16651_v48 }
 0x344   : > { %19069 = vst [vmem:[#allocation41_spill] sm:$0xff] %v16814_v53  ;;  %v16819_v17 = vpop.f32.mrf.mxu1 }
 0x345   : > { %19070 = vst [vmem:[#allocation46_spill] sm:$0xff] %v16817_v58  ;;  %19071 = vst [vmem:[#allocation76_spill] sm:$0xff] %v16819_v17  ;;  %v16821_v14 = vpop.f32.mrf.mxu0 }
 0x346   : > { %19072 = vst [vmem:[#allocation45_spill] sm:$0xff] %v16821_v14  ;;  %v13383_v37 = vpop.f32.mrf.mxu1 }
 0x347   : > { %v16823_v45 = vpop.f32.mrf.mxu0  ;;  %v16826_v62 = vadd.f32 %v13383_v37, %v16663_v52 }
 0x348   : > { %19073 = vst [vmem:[#allocation82_spill] sm:$0xff] %v16823_v45  ;;  %v16828_v7 = vpop.f32.mrf.mxu1 }
 0x349   : > { %19074 = vst [vmem:[#allocation24_spill] sm:$0xff] %v16826_v62  ;;  %19075 = vst [vmem:[#allocation77_spill] sm:$0xff] %v16828_v7  ;;  %v16830_v9 = vpop.f32.mrf.mxu0 }
 0x34a   : > { %19076 = vst [vmem:[#allocation84_spill] sm:$0xff] %v16830_v9  ;;  %v13386_v11 = vpop.f32.mrf.mxu1 }
 0x34b   : > { %v16832_v4 = vpop.f32.mrf.mxu0  ;;  %v16835_v48 = vadd.f32 %v13386_v11, %v16677_v1 }
 0x34c   : > { %19077 = vst [vmem:[#allocation44_spill] sm:$0xff] %v16832_v4  ;;  %v16837_v41 = vpop.f32.mrf.mxu1 }
 0x34d   : > { %19078 = vst [vmem:[#allocation49_spill] sm:$0xff] %v16835_v48  ;;  %19079 = vst [vmem:[#allocation48_spill] sm:$0xff] %v16837_v41  ;;  %v16839_v53 = vpop.f32.mrf.mxu0 }
 0x34e   : > { %19080 = vst [vmem:[#allocation79_spill] sm:$0xff] %v16839_v53  ;;  %v13389_v14 = vpop.f32.mrf.mxu1 }
 0x34f   : > { %v16841_v58 = vpop.f32.mrf.mxu0  ;;  %v16844_v37 = vadd.f32 %v13389_v14, %v16689_v21 }
 0x350   : > { %19081 = vst [vmem:[#allocation87_spill] sm:$0xff] %v16841_v58  ;;  %v16846_v52 = vpop.f32.mrf.mxu1 }
 0x351   : > { %19082 = vst [vmem:[#allocation81_spill] sm:$0xff] %v16844_v37  ;;  %19083 = vst [vmem:[#allocation47_spill] sm:$0xff] %v16846_v52  ;;  %v16848_v45 = vpop.f32.mrf.mxu0 }
 0x352   : > { %19084 = vst [vmem:[#allocation83_spill] sm:$0xff] %v16848_v45  ;;  %v13392_v9 = vpop.f32.mrf.mxu1 }
 0x353   : > { %v16850_v62 = vpop.f32.mrf.mxu0  ;;  %v16853_v1 = vadd.f32 %v13392_v9, %v16698_v32 }
 0x354   : > { %19085 = vst [vmem:[#allocation50_spill] sm:$0xff] %v16850_v62  ;;  %v16855_v11 = vpop.f32.mrf.mxu1 }
 0x355   : > { %19086 = vst [vmem:[#allocation85_spill] sm:$0xff] %v16853_v1  ;;  %19087 = vst [vmem:[#allocation86_spill] sm:$0xff] %v16855_v11  ;;  %v16857_v4 = vpop.f32.mrf.mxu0 }
 0x356   : > { %19088 = vst [vmem:[#allocation88_spill] sm:$0xff] %v16857_v4  ;;  %v13395_v53 = vpop.f32.mrf.mxu1 }
 0x357   : > { %v16859_v48 = vpop.f32.mrf.mxu0  ;;  %v16862_v21 = vadd.f32 %v13395_v53, %v16707_v29 }
 0x358   : > { %19089 = vst [vmem:[#allocation51_spill] sm:$0xff] %v16859_v48  ;;  %v16864_v14 = vpop.f32.mrf.mxu1 }
 0x359   : > { %19090 = vst [vmem:[#allocation54_spill] sm:$0xff] %v16862_v21  ;;  %19091 = vst [vmem:[#allocation28_spill] sm:$0xff] %v16864_v14  ;;  %v16866_v58 = vpop.f32.mrf.mxu0 }
 0x35a   : > { %19092 = vst [vmem:[#allocation4_spill] sm:$0xff] %v16866_v58  ;;  %v13398_v45 = vpop.f32.mrf.mxu1 }
 0x35b   : > { %v16868_v37 = vpop.f32.mrf.mxu0  ;;  %v16871_v9 = vadd.f32 %v13398_v45, %v16716_v36 }
 0x35c   : > { %19093 = vst [vmem:[#allocation9_spill] sm:$0xff] %v16868_v37  ;;  %v16873_v32 = vpop.f32.mrf.mxu1 }
 0x35d   : > { %19094 = vst [vmem:[#allocation56_spill] sm:$0xff] %v16871_v9  ;;  %19095 = vst [vmem:[#allocation52_spill] sm:$0xff] %v16873_v32  ;;  %v16875_v62 = vpop.f32.mrf.mxu0 }
 0x35e   : > { %19096 = vst [vmem:[#allocation3_spill] sm:$0xff] %v16875_v62  ;;  %v13401_v4 = vpop.f32.mrf.mxu1 }
 0x35f   : > { %v16877_v1 = vpop.f32.mrf.mxu0  ;;  %v16880_v53 = vadd.f32 %v13401_v4, %v16726_v54 }
 0x360   : > { %19097 = vst [vmem:[#allocation13_spill] sm:$0xff] %v16877_v1  ;;  %v16882_v29 = vpop.f32.mrf.mxu1 }
 0x361   : > { %19098 = vst [vmem:[#allocation57_spill] sm:$0xff] %v16880_v53  ;;  %19099 = vst [vmem:[#allocation53_spill] sm:$0xff] %v16882_v29  ;;  %v16884_v48 = vpop.f32.mrf.mxu0 }
 0x362   : > { %19100 = vst [vmem:[#allocation26_spill] sm:$0xff] %v16884_v48  ;;  %v13404_v58 = vpop.f32.mrf.mxu1 }
 0x363   : > { %v16886_v21 = vpop.f32.mrf.mxu0  ;;  %v16889_v45 = vadd.f32 %v13404_v58, %v16736_v13 }
 0x364   : > { %19101 = vst [vmem:[#allocation12_spill] sm:$0xff] %v16886_v21  ;;  %v16891_v36 = vpop.f32.mrf.mxu1 }
 0x365   : > { %19102 = vst [vmem:[#allocation29_spill] sm:$0xff] %v16889_v45  ;;  %19103 = vst [vmem:[#allocation59_spill] sm:$0xff] %v16891_v36  ;;  %v16893_v37 = vpop.f32.mrf.mxu0 }
 0x366   : > { %19104 = vst [vmem:[#allocation11_spill] sm:$0xff] %v16893_v37  ;;  %v13407_v62 = vpop.f32.mrf.mxu1 }
 0x367   : > { %v16895_v9 = vpop.f32.mrf.mxu0  ;;  %v16898_v4 = vadd.f32 %v13407_v62, %v16744_v19  ;;  %v11609_v19 = vld [vmem:[%s18615_s3 + $0xc] sm:$0xf]  ;;  %v16923_v62 = vld [vmem:[%s18615_s3 + $0x10] sm:$0xf] }
 0x368   : > { %19105 = vst [vmem:[#allocation15_spill] sm:$0xff] %v16895_v9  ;;  %v16900_v54 = vpop.f32.mrf.mxu1  ;;  %13758 = vmatprep.subr.msk.mxu1 %vm499_vm0, %v11609_v19  ;;  %19109 = vst [vmem:[#allocation31_spill] sm:$0xff] %v16923_v62  ;;  %13808 = vmatprep.subr.msk.mxu0 %vm499_vm0, %v16923_v62 }
 0x369   : > { %19106 = vst [vmem:[#allocation55_spill] sm:$0xff] %v16898_v4  ;;  %19107 = vst [vmem:[#allocation61_spill] sm:$0xff] %v16900_v54  ;;  %v16902_v1 = vpop.f32.mrf.mxu0  ;;  %13759 = vmatpush3.msk.msra.mxu1 %vm499_vm0, %v11609_v19 }
 0x36a   : > { %19108 = vst [vmem:[#allocation27_spill] sm:$0xff] %v16902_v1  ;;  %v13462_v48 = vpop.f32.mrf.mxu1 }
 0x36b   : > { %v16904_v53 = vpop.f32.mrf.mxu0 }
 0x36c   : > { %v6321_v21 = vpop.f32.mrf.mxu1 }
 0x36d   : > { %v16906_v13 = vpop.f32.mrf.mxu0 }
 0x36e   : > { %v16908_v58 = vpop.f32.mrf.mxu1 }
 0x36f   : > { %v16912_v37 = vpop.f32.mrf.mxu0 }
 0x370   : > { %v16910_v45 = vpop.f32.mrf.mxu1 }
 0x371   : > { %v16930_v4 = vpop.f32.mrf.mxu0 }
 0x372   : > { %v16914_v9 = vpop.f32.mrf.mxu1 }
 0x373   : > { %v16936_v29 = vpop.f32.mrf.mxu0 }
 0x374   : > { %v16925_v1 = vpop.f32.mrf.mxu1 }
 0x375   : > { %v16942_v11 = vpop.f32.mrf.mxu0 }
 0x376   : > { %v16932_v54 = vpop.f32.mrf.mxu1 }
 0x377   : > { %v16948_v41 = vpop.f32.mrf.mxu0 }
 0x378   : > { %v16934_v36 = vpop.f32.mrf.mxu1 }
 0x379   : > { %v16954_v27 = vpop.f32.mrf.mxu0 }
 0x37a   : > { %v16938_v32 = vpop.f32.mrf.mxu1  ;;  %19115 = vst [vmem:[#allocation58_spill] sm:$0xff] %v16954_v27 }
 0x37b   : > { %v16960_v60 = vpop.f32.mrf.mxu0 }
 0x37c   : > { %v16940_v14 = vpop.f32.mrf.mxu1  ;;  %19118 = vst [vmem:[#allocation33_spill] sm:$0xff] %v16960_v60 }
 0x37d   : > { %19110 = vst [vmem:[#allocation63_spill] sm:$0xff] %v16940_v14 }
 0x37e   : > { %v16944_v52 = vpop.f32.mrf.mxu1 }
 0x37f   : > { %19111 = vst [vmem:[#allocation14_spill] sm:$0xff] %v16944_v52  ;;  %v16966_v52 = vpop.f32.mrf.mxu0 }
 0x380   : > { %v16946_v19 = vpop.f32.mrf.mxu1  ;;  %19121 = vst [vmem:[#allocation90_spill] sm:$0xff] %v16966_v52 }
 0x381   : > { %19112 = vst [vmem:[#allocation5_spill] sm:$0xff] %v16946_v19 }
 0x382   : > { %v16950_v62 = vpop.f32.mrf.mxu1 }
 0x383   : > { %19113 = vst [vmem:[#allocation17_spill] sm:$0xff] %v16950_v62  ;;  %v16972_v62 = vpop.f32.mrf.mxu0 }
 0x384   : > { %v16952_v7 = vpop.f32.mrf.mxu1  ;;  %19124 = vst [vmem:[#allocation93_spill] sm:$0xff] %v16972_v62 }
 0x385   : > { %19114 = vst [vmem:[#allocation65_spill] sm:$0xff] %v16952_v7 }
 0x386   : > { %v16956_v38 = vpop.f32.mrf.mxu1 }
 0x387   : > { %19116 = vst [vmem:[#allocation30_spill] sm:$0xff] %v16956_v38  ;;  %v16978_v38 = vpop.f32.mrf.mxu0 }
 0x388   : > { %v16958_v17 = vpop.f32.mrf.mxu1  ;;  %19127 = vst [vmem:[#allocation96_spill] sm:$0xff] %v16978_v38 }
 0x389   : > { %19117 = vst [vmem:[#allocation34_spill] sm:$0xff] %v16958_v17 }
 0x38a   : > { %v16962_v14 = vpop.f32.mrf.mxu1 }
 0x38b   : > { %19119 = vst [vmem:[#allocation60_spill] sm:$0xff] %v16962_v14  ;;  %v16986_v14 = vpop.f32.mrf.mxu0 }
 0x38c   : > { %v16964_v25 = vpop.f32.mrf.mxu1 }
 0x38d   : > { %19120 = vst [vmem:[#allocation89_spill] sm:$0xff] %v16964_v25  ;;  %v4404_v25 = vadd.f32 %v16374_v56, %v16372_v24  ;;  %v5312_v56 = vadd.f32 %v16584_v44, %v16589_v6  ;;  %v6093_v44 = vadd.f32 %v16755_v40, %v16758_v31  ;;  %v6095_v40 = vadd.f32 %v16764_v47, %v16770_v20 }
 0x38e   : > { %v16968_v19 = vpop.f32.mrf.mxu1  ;;  %v6097_v47 = vadd.f32 %v16781_v23, %v16785_v63 }
 0x38f   : > { %19122 = vst [vmem:[#allocation91_spill] sm:$0xff] %v16968_v19 }
 0x390   : > { %v16970_v61 = vpop.f32.mrf.mxu1  ;;  %v6487_v63 = vadd.f32 %v16932_v54, %v6097_v47 }
 0x391   : > { %19123 = vst [vmem:[#allocation92_spill] sm:$0xff] %v16970_v61  ;;  %v4920_v61 = vadd.f32 %v16573_v33, %v4404_v25  ;;  %v6091_v33 = vadd.f32 %v16746_v15, %v16749_v5 }
 0x392   : > { %v16974_v7 = vpop.f32.mrf.mxu1 }
 0x393   : > { %19125 = vst [vmem:[#allocation94_spill] sm:$0xff] %v16974_v7  ;;  %v16993_v7 = vpop.f32.mrf.mxu0  ;;  %v5310_v38 = vadd.f32 %v16575_v51, %v4920_v61  ;;  %v5702_v51 = vadd.f32 %v16760_v59, %v5312_v56  ;;  %v6481_v61 = vadd.f32 %v13462_v48, %v6091_v33  ;;  %v6483_v59 = vadd.f32 %v16908_v58, %v6093_v44 }
 0x394   : > { %v16976_v27 = vpop.f32.mrf.mxu1  ;;  %v5318_v33 = vadd.f32 %v16625_v8, %v16630_v2 }
 0x395   : > { %19126 = vst [vmem:[#allocation95_spill] sm:$0xff] %v16976_v27  ;;  %v17001_v52 = vpop.f32.mrf.mxu0  ;;  %v6873_v58 = vadd.f32 %v16912_v37, %v6483_v59  ;;  %v19133_v59 = vld [vmem:[#allocation25_spill] sm:$0xff] }
 0x396   : > { %v16980_v17 = vpop.f32.mrf.mxu1 }
 0x397   : > { %19128 = vst [vmem:[#allocation97_spill] sm:$0xff] %v16980_v17 }
 0x398   : > { %v16982_v60 = vpop.f32.mrf.mxu1 }
 0x399   : > { %19129 = vst [vmem:[#allocation98_spill] sm:$0xff] %v16982_v60  ;;  %v5700_v60 = vadd.f32 %v16751_v42, %v5310_v38  ;;  %v5314_v38 = vadd.f32 %v16596_v16, %v16601_v3  ;;  %v17015_v42 = vpop.f32.mrf.mxu0  ;;  %v5316_v16 = vadd.f32 %v16611_v12, %v16617_v43  ;;  %v6485_v12 = vadd.f32 %v16914_v9, %v6095_v40 }
 0x39a   : > { %v16988_v19 = vpop.f32.mrf.mxu1 }
 0x39b   : > { %v5704_v5 = vadd.f32 %v16773_v26, %v5314_v38  ;;  %v17029_v3 = vpop.f32.mrf.mxu0  ;;  %v6875_v8 = vadd.f32 %v16936_v29, %v6485_v12 }
 0x39c   : > { %v16991_v62 = vpop.f32.mrf.mxu1 }
 0x39d   : > { %v17043_v20 = vpop.f32.mrf.mxu0 }
 0x39e   : > { %v16995_v27 = vpop.f32.mrf.mxu1 }
 0x39f   : > { %19130 = vst [vmem:[#allocation99_spill] sm:$0xff] %v16995_v27  ;;  %v6090_v27 = vadd.f32 %v16753_v55, %v5700_v60  ;;  %v6092_v60 = vadd.f32 %v16762_v30, %v5702_v51  ;;  %v6871_v55 = vadd.f32 %v16904_v53, %v6481_v61  ;;  %v6094_v30 = vadd.f32 %v16775_v46, %v5704_v5  ;;  %v17057_v38 = vpop.f32.mrf.mxu0 }
 0x3a0   : > { %v16998_v17 = vpop.f32.mrf.mxu1  ;;  %v5708_v51 = vadd.f32 %v16801_v0, %v5318_v33  ;;  %v19139_v33 = vld [vmem:[#allocation14_spill] sm:$0xff] }
 0x3a1   : > { %19131 = vst [vmem:[#allocation100_spill] sm:$0xff] %v16998_v17  ;;  %v6480_v6 = vadd.f32 %v6321_v21, %v6090_v27  ;;  %v6482_v31 = vadd.f32 %v16910_v45, %v6092_v60  ;;  %v5706_v21 = vadd.f32 %v16787_v10, %v5316_v16  ;;  %v6484_v10 = vadd.f32 %v16925_v1, %v6094_v30  ;;  %v17078_v16 = vpop.f32.mrf.mxu0 }
 0x3a2   : > { %v17003_v24 = vpop.f32.mrf.mxu1  ;;  %v5320_v1 = vadd.f32 %v16637_v28, %v16642_v50  ;;  %v6098_v28 = vadd.f32 %v16803_v57, %v5708_v51  ;;  %v5322_v60 = vadd.f32 %v16649_v34, %v16654_v22  ;;  %v19142_v51 = vld [vmem:[#allocation46_spill] sm:$0xff] }
 0x3a3   : > { %v6870_v27 = vadd.f32 %v16906_v13, %v6480_v6  ;;  %v6872_v46 = vadd.f32 %v16930_v4, %v6482_v31  ;;  %v6096_v9 = vadd.f32 %v16789_v18, %v5706_v21  ;;  %v6099_v4 = vadd.f32 %v16794_v49, %v16798_v35  ;;  %v17065_v6 = vld [vmem:[%s18615_s3 + $0x14] sm:$0xf]  ;;  %v19137_v21 = vld [vmem:[#allocation76_spill] sm:$0xff] }
 0x3a4   : > { %v17009_v25 = vpop.f32.mrf.mxu1  ;;  %v6874_v0 = vadd.f32 %v16942_v11, %v6484_v10  ;;  %v5710_v50 = vadd.f32 %v16810_v39, %v5320_v1  ;;  %13858 = vmatprep.subr.msk.mxu1 %vm499_vm0, %v17065_v6  ;;  %v6877_v35 = vadd.f32 %v16948_v41, %v6487_v63  ;;  %v17104_v63 = vpop.f32.mrf.mxu0 }
 0x3a5   : > { %v6486_v44 = vadd.f32 %v16934_v36, %v6096_v9  ;;  %v6489_v11 = vadd.f32 %v16938_v32, %v6099_v4  ;;  %v19145_v4 = vld [vmem:[#allocation5_spill] sm:$0xff] }
 0x3a6   : > { %v17017_v17 = vpop.f32.mrf.mxu1 }
 0x3a8   : > { %v17022_v15 = vpop.f32.mrf.mxu1 }
 0x3aa   : > { %v13562_v48 = vpop.f32.mrf.mxu1 }
 0x3ab   : > { %v7261_v26 = vadd.f32 %v13562_v48, %v6871_v55  ;;  %v19132_v55 = vld [vmem:[#allocation80_spill] sm:$0xff]  ;;  %v19134_v48 = vld [vmem:[#allocation58_spill] sm:$0xff] }
 0x3ac   : > { %v7101_v53 = vpop.f32.mrf.mxu1  ;;  %v6101_v57 = vadd.f32 %v19133_v59, %v19132_v55  ;;  %v6876_v40 = vadd.f32 %v19134_v48, %v6486_v44  ;;  %v19150_v59 = vld [vmem:[#allocation93_spill] sm:$0xff] }
 0x3ad   : > { %v7293_v43 = vmax.f32 %v7261_v26, 0.0  ;;  %v7260_v56 = vadd.f32 %v7101_v53, %v6870_v27  ;;  %v19135_v27 = vld [vmem:[#allocation63_spill] sm:$0xff]  ;;  %v19136_v26 = vld [vmem:[#allocation74_spill] sm:$0xff]  ;;  %v5712_v53 = vadd.f32 %v19137_v21, %v5322_v60 }
 0x3ae   : > { %v13565_v45 = vpop.f32.mrf.mxu1  ;;  %v6488_v31 = vadd.f32 %v19135_v27, %v6098_v28  ;;  %v6100_v30 = vadd.f32 %v19136_v26, %v5710_v50  ;;  %v6491_v47 = vadd.f32 %v19139_v33, %v6101_v57  ;;  %v19148_v50 = vld [vmem:[#allocation45_spill] sm:$0xff] }
 0x3af   : > { %7325 = vst.msk [vmem:[#allocation2 + $0x30] sm:$0xff] %vm198_vm1, %v7293_v43  ;;  %v7292_v37 = vmax.f32 %v7260_v56, 0.0  ;;  %v7263_v13 = vadd.f32 %v13565_v45, %v6873_v58  ;;  %v19138_v43 = vld [vmem:[#allocation33_spill] sm:$0xff] }
 0x3b0   : > { %v7111_v61 = vpop.f32.mrf.mxu1  ;;  %v6879_v56 = vadd.f32 %v19138_v43, %v6489_v11  ;;  %v6881_v57 = vadd.f32 %v19150_v59, %v6491_v47  ;;  %v19157_v47 = vld [vmem:[#allocation96_spill] sm:$0xff] }
 0x3b1   : > { %7324 = vst.msk [vmem:[#allocation2 + $0x28] sm:$0xff] %vm198_vm1, %v7292_v37  ;;  %v7295_v2 = vmax.f32 %v7263_v13, 0.0  ;;  %v7262_v23 = vadd.f32 %v7111_v61, %v6872_v46  ;;  %v19140_v37 = vld [vmem:[#allocation66_spill] sm:$0xff]  ;;  %v19141_v13 = vld [vmem:[#allocation73_spill] sm:$0xff] }
 0x3b2   : > { %v13568_v18 = vpop.f32.mrf.mxu1  ;;  %v5324_v9 = vadd.f32 %v19141_v13, %v19140_v37  ;;  %v19143_v61 = vld [vmem:[#allocation41_spill] sm:$0xff] }
 0x3b3   : > { %7327 = vst.msk [vmem:[#allocation2 + $0x50] sm:$0xff] %vm198_vm1, %v7295_v2  ;;  %v7294_v29 = vmax.f32 %v7262_v23, 0.0  ;;  %v7265_v54 = vadd.f32 %v13568_v18, %v6875_v8  ;;  %v6103_v8 = vadd.f32 %v19143_v61, %v19142_v51  ;;  %v19144_v23 = vld [vmem:[#allocation90_spill] sm:$0xff]  ;;  %v6490_v18 = vadd.f32 %v19145_v4, %v6100_v30  ;;  %v19154_v30 = vld [vmem:[#allocation68_spill] sm:$0xff]  ;;  %v19160_v61 = vld [vmem:[#allocation19_spill] sm:$0xff] }
 0x3b4   : > { %v7121_v49 = vpop.f32.mrf.mxu1  ;;  %v6878_v1 = vadd.f32 %v19144_v23, %v6488_v31  ;;  %v19159_v51 = vld [vmem:[#allocation6_spill] sm:$0xff] }
 0x3b5   : > { %7326 = vst.msk [vmem:[#allocation2 + $0x48] sm:$0xff] %vm198_vm1, %v7294_v29  ;;  %v7297_v36 = vmax.f32 %v7265_v54, 0.0  ;;  %v7264_v5 = vadd.f32 %v7121_v49, %v6874_v0  ;;  %v19146_v29 = vld [vmem:[#allocation67_spill] sm:$0xff]  ;;  %v19147_v54 = vld [vmem:[#allocation16_spill] sm:$0xff]  ;;  %v6102_v49 = vadd.f32 %v19148_v50, %v5712_v53 }
 0x3b6   : > { %v13571_v39 = vpop.f32.mrf.mxu1  ;;  %v17098_v10 = vld [vmem:[#allocation2 + $0x30] sm:$0xff]  ;;  %v4494_v28 = vadd.f32 %v19147_v54, %v19146_v29  ;;  %v19155_v53 = vld [vmem:[#allocation24_spill] sm:$0xff] }
 0x3b7   : > { %7329 = vst.msk [vmem:[#allocation2 + $0x70] sm:$0xff] %vm198_vm1, %v7297_v36  ;;  %v7296_v41 = vmax.f32 %v7264_v5, 0.0  ;;  %v7267_v32 = vadd.f32 %v13571_v39, %v6877_v35  ;;  %v19149_v35 = vld [vmem:[#allocation77_spill] sm:$0xff] }
 0x3b8   : > { %v7131_v58 = vpop.f32.mrf.mxu1  ;;  %v17085_v34 = vld [vmem:[#allocation2 + $0x28] sm:$0xff]  ;;  %v5714_v11 = vadd.f32 %v19149_v35, %v5324_v9  ;;  %v19151_v39 = vld [vmem:[#allocation17_spill] sm:$0xff]  ;;  %v4938_v21 = vadd.f32 %v19154_v30, %v4494_v28  ;;  %v19163_v28 = vld [vmem:[#allocation30_spill] sm:$0xff] }
 0x3b9   : > { %v17087_v22 = vld [vmem:[#allocation2 + $0x27] sm:$0xff]  ;;  %v17089_v12 = vld [vmem:[#allocation2 + $0x2f] sm:$0xff]  ;;  %7328 = vst.msk [vmem:[#allocation2 + $0x68] sm:$0xff] %vm198_vm1, %v7296_v41  ;;  %v7299_v45 = vmax.f32 %v7267_v32, 0.0  ;;  %v7266_v46 = vadd.f32 %v7131_v58, %v6876_v40  ;;  %13613 = vmatprep.mubr.msk.f32.mxu0 %vm198_vm1, %v17085_v34  ;;  %v6493_v48 = vadd.f32 %v19151_v39, %v6103_v8  ;;  %v19156_v58 = vld [vmem:[#allocation82_spill] sm:$0xff]  ;;  %v4504_v8 = vadd.f32 %v19160_v61, %v19159_v51 }
 0x3ba   : > { %13663 = vmatprep.mubr.msk.f32.mxu1 %vm198_vm1, %v17087_v22  ;;  %v13574_v2 = vpop.f32.mrf.mxu1  ;;  %13614 = vmatmul.mubr.msk.f32.gmra.mxu0 %vm198_vm1, %v17098_v10  ;;  %v17130_v31 = vld [vmem:[#allocation2 + $0x50] sm:$0xff]  ;;  %v19152_v41 = vld [vmem:[#allocation40_spill] sm:$0xff]  ;;  %v19153_v32 = vld [vmem:[#allocation35_spill] sm:$0xff]  ;;  %v6105_v43 = vadd.f32 %v19156_v58, %v19155_v53 }
 0x3bb   : > { %13664 = vmatmul.mubr.msk.f32.gmra.mxu1 %vm198_vm1, %v17089_v12  ;;  %7331 = vst.msk [vmem:[#allocation2 + $0x90] sm:$0xff] %vm198_vm1, %v7299_v45  ;;  %v7298_v0 = vmax.f32 %v7266_v46, 0.0  ;;  %v7269_v44 = vadd.f32 %v13574_v2, %v6879_v56  ;;  %v5326_v26 = vadd.f32 %v19153_v32, %v19152_v41  ;;  %v17137_v56 = vpop.f32.mrf.mxu0  ;;  %v6880_v45 = vadd.f32 %v19157_v47, %v6490_v18  ;;  %v19158_v46 = vld [vmem:[#allocation65_spill] sm:$0xff]  ;;  %v19161_v2 = vld [vmem:[#allocation84_spill] sm:$0xff]  ;;  %v19169_v58 = vld [vmem:[#allocation62_spill] sm:$0xff] }
 0x3bc   : > { %v7141_v36 = vpop.f32.mrf.mxu1  ;;  %v17117_v5 = vld [vmem:[#allocation2 + $0x48] sm:$0xff]  ;;  %v6492_v37 = vadd.f32 %v19158_v46, %v6102_v49  ;;  %v6104_v23 = vadd.f32 %v19161_v2, %v5714_v11  ;;  %v6883_v18 = vadd.f32 %v16986_v14, %v6493_v48  ;;  %v6495_v50 = vadd.f32 %v19163_v28, %v6105_v43  ;;  %v19170_v43 = vld [vmem:[#allocation69_spill] sm:$0xff]  ;;  %v19171_v47 = vld [vmem:[#allocation79_spill] sm:$0xff] }
 0x3bd   : > { %v17119_v60 = vld [vmem:[#allocation2 + $0x47] sm:$0xff]  ;;  %v17121_v55 = vld [vmem:[#allocation2 + $0x4f] sm:$0xff]  ;;  %7330 = vst.msk [vmem:[#allocation2 + $0x88] sm:$0xff] %vm198_vm1, %v7298_v0  ;;  %v7301_v40 = vmax.f32 %v7269_v44, 0.0  ;;  %v7268_v27 = vadd.f32 %v7141_v36, %v6878_v1  ;;  %13616 = vmatprep.mubr.msk.f32.mxu0 %vm198_vm1, %v17117_v5 }
 0x3be   : > { %13666 = vmatprep.mubr.msk.f32.mxu1 %vm198_vm1, %v17119_v60  ;;  %v13577_v33 = vpop.f32.mrf.mxu1  ;;  %13617 = vmatmul.mubr.msk.f32.gmra.mxu0 %vm198_vm1, %v17130_v31  ;;  %v19162_v1 = vld [vmem:[#allocation48_spill] sm:$0xff]  ;;  %v17163_v11 = vld [vmem:[#allocation2 + $0x70] sm:$0xff]  ;;  %v19164_v36 = vld [vmem:[#allocation39_spill] sm:$0xff]  ;;  %v6882_v32 = vadd.f32 %v16993_v7, %v6492_v37  ;;  %v6885_v7 = vadd.f32 %v17001_v52, %v6495_v50 }
 0x3bf   : > { %13667 = vmatmul.mubr.msk.f32.gmra.mxu1 %vm198_vm1, %v17121_v55  ;;  %7333 = vst.msk [vmem:[#allocation2 + $0xb0] sm:$0xff] %vm198_vm1, %v7301_v40  ;;  %v7300_v13 = vmax.f32 %v7268_v27, 0.0  ;;  %v7271_v9 = vadd.f32 %v13577_v33, %v6881_v57  ;;  %v5716_v4 = vadd.f32 %v19162_v1, %v5326_v26  ;;  %v5328_v59 = vadd.f32 %v19164_v36, %v4938_v21  ;;  %v19165_v57 = vld [vmem:[#allocation75_spill] sm:$0xff]  ;;  %v19166_v40 = vld [vmem:[#allocation49_spill] sm:$0xff]  ;;  %v19167_v14 = vld [vmem:[#allocation44_spill] sm:$0xff]  ;;  %v17169_v27 = vpop.f32.mrf.mxu0 }
 0x3c0   : > { %v7151_v0 = vpop.f32.mrf.mxu1  ;;  %v17150_v44 = vld [vmem:[#allocation2 + $0x68] sm:$0xff]  ;;  %v4940_v39 = vadd.f32 %v19165_v57, %v4504_v8  ;;  %v6107_v48 = vadd.f32 %v19167_v14, %v19166_v40  ;;  %v19168_v26 = vld [vmem:[#allocation34_spill] sm:$0xff]  ;;  %v4514_v33 = vadd.f32 %v19170_v43, %v19169_v58  ;;  %v19172_v46 = vld [vmem:[#allocation47_spill] sm:$0xff] }
 0x3c1   : > { %v17152_v29 = vld [vmem:[#allocation2 + $0x67] sm:$0xff]  ;;  %v17154_v54 = vld [vmem:[#allocation2 + $0x6f] sm:$0xff]  ;;  %7332 = vst.msk [vmem:[#allocation2 + $0xa8] sm:$0xff] %vm198_vm1, %v7300_v13  ;;  %v7303_v49 = vmax.f32 %v7271_v9, 0.0  ;;  %v7270_v35 = vadd.f32 %v7151_v0, %v6880_v45  ;;  %13619 = vmatprep.mubr.msk.f32.mxu0 %vm198_vm1, %v17150_v44  ;;  %v6494_v30 = vadd.f32 %v19168_v26, %v6104_v23  ;;  %v6106_v45 = vadd.f32 %v19171_v47, %v5716_v4  ;;  %v17201_v36 = vpop.f32.mrf.mxu0  ;;  %v19184_v58 = vld [vmem:[#allocation86_spill] sm:$0xff] }
 0x3c2   : > { %13669 = vmatprep.mubr.msk.f32.mxu1 %vm198_vm1, %v17152_v29  ;;  %v13580_v41 = vpop.f32.mrf.mxu1  ;;  %13620 = vmatmul.mubr.msk.f32.gmra.mxu0 %vm198_vm1, %v17163_v11  ;;  %v5718_v13 = vadd.f32 %v19172_v46, %v5328_v59  ;;  %v19175_v37 = vld [vmem:[#allocation60_spill] sm:$0xff]  ;;  %v17195_v4 = vld [vmem:[#allocation2 + $0x90] sm:$0xff]  ;;  %v19179_v52 = vld [vmem:[#allocation87_spill] sm:$0xff] }
 0x3c3   : > { %13670 = vmatmul.mubr.msk.f32.gmra.mxu1 %vm198_vm1, %v17154_v54  ;;  %7335 = vst.msk [vmem:[#allocation2 + $0xd0] sm:$0xff] %vm198_vm1, %v7303_v49  ;;  %v7302_v21 = vmax.f32 %v7270_v35, 0.0  ;;  %v7273_v53 = vadd.f32 %v13580_v41, %v6883_v18  ;;  %v6497_v2 = vadd.f32 %v19175_v37, %v6107_v48  ;;  %v19176_v0 = vld [vmem:[#allocation20_spill] sm:$0xff]  ;;  %v19178_v35 = vld [vmem:[#allocation81_spill] sm:$0xff]  ;;  %v6884_v57 = vadd.f32 %v17015_v42, %v6494_v30  ;;  %v19187_v30 = vld [vmem:[#allocation91_spill] sm:$0xff] }
 0x3c4   : > { %v7161_v9 = vpop.f32.mrf.mxu1  ;;  %v17182_v51 = vld [vmem:[#allocation2 + $0x88] sm:$0xff]  ;;  %v5330_v18 = vadd.f32 %v19176_v0, %v4940_v39  ;;  %v6109_v50 = vadd.f32 %v19179_v52, %v19178_v35  ;;  %v19180_v40 = vld [vmem:[#allocation89_spill] sm:$0xff]  ;;  %v19189_v0 = vld [vmem:[#allocation70_spill] sm:$0xff]  ;;  %v17233_v35 = vpop.f32.mrf.mxu0 }
 0x3c5   : > { %v17184_v61 = vld [vmem:[#allocation2 + $0x87] sm:$0xff]  ;;  %v17186_v8 = vld [vmem:[#allocation2 + $0x8f] sm:$0xff]  ;;  %7334 = vst.msk [vmem:[#allocation2 + $0xc8] sm:$0xff] %vm198_vm1, %v7302_v21  ;;  %v7305_v23 = vmax.f32 %v7273_v53, 0.0  ;;  %v7272_v1 = vadd.f32 %v7161_v9, %v6882_v32  ;;  %13622 = vmatprep.mubr.msk.f32.mxu0 %vm198_vm1, %v17182_v51  ;;  %v6496_v14 = vadd.f32 %v19180_v40, %v6106_v45  ;;  %v6887_v42 = vadd.f32 %v17029_v3, %v6497_v2  ;;  %v19191_v3 = vld [vmem:[#allocation50_spill] sm:$0xff] }
 0x3c6   : > { %19173 = vst [vmem:[#allocation80_spill] sm:$0xff] %v17184_v61  ;;  %19174 = vst [vmem:[#allocation25_spill] sm:$0xff] %v17186_v8  ;;  %13672 = vmatprep.mubr.msk.f32.mxu1 %vm198_vm1, %v17184_v61  ;;  %v19177_v28 = vld [vmem:[#allocation8_spill] sm:$0xff]  ;;  %v13583_v59 = vpop.f32.mrf.mxu1  ;;  %13623 = vmatmul.mubr.msk.f32.gmra.mxu0 %vm198_vm1, %v17195_v4  ;;  %v19182_v32 = vld [vmem:[#allocation37_spill] sm:$0xff]  ;;  %v5720_v43 = vadd.f32 %v19184_v58, %v5330_v18  ;;  %v6499_v45 = vadd.f32 %v19187_v30, %v6109_v50 }
 0x3c7   : > { %v4942_v49 = vadd.f32 %v19177_v28, %v4514_v33  ;;  %13673 = vmatmul.mubr.msk.f32.gmra.mxu1 %vm198_vm1, %v17186_v8  ;;  %7337 = vst.msk [vmem:[#allocation2 + $0xf0] sm:$0xff] %vm198_vm1, %v7305_v23  ;;  %v7304_v39 = vmax.f32 %v7272_v1, 0.0  ;;  %v7275_v48 = vadd.f32 %v13583_v59, %v6885_v7  ;;  %v19181_v41 = vld [vmem:[#allocation32_spill] sm:$0xff]  ;;  %v19183_v21 = vld [vmem:[#allocation83_spill] sm:$0xff]  ;;  %v19190_v28 = vld [vmem:[#allocation85_spill] sm:$0xff]  ;;  %v6886_v50 = vadd.f32 %v17043_v20, %v6496_v14 }
 0x3c8   : > { %v4524_v26 = vadd.f32 %v19182_v32, %v19181_v41  ;;  %v6108_v53 = vadd.f32 %v19183_v21, %v5718_v13  ;;  %v7171_v33 = vpop.f32.mrf.mxu1  ;;  %v17214_v47 = vld [vmem:[#allocation2 + $0xa8] sm:$0xff]  ;;  %v17227_v13 = vld [vmem:[#allocation2 + $0xb0] sm:$0xff]  ;;  %v19188_v23 = vld [vmem:[#allocation23_spill] sm:$0xff]  ;;  %v6111_v2 = vadd.f32 %v19191_v3, %v19190_v28  ;;  %v6889_v20 = vadd.f32 %v17057_v38, %v6499_v45 }
 0x3c9   : > { %v17216_v46 = vld [vmem:[#allocation2 + $0xa7] sm:$0xff]  ;;  %v17218_v9 = vld [vmem:[#allocation2 + $0xaf] sm:$0xff]  ;;  %7336 = vst.msk [vmem:[#allocation2 + $0xe8] sm:$0xff] %vm198_vm1, %v7304_v39  ;;  %v7307_v7 = vmax.f32 %v7275_v48, 0.0  ;;  %v7274_v37 = vadd.f32 %v7171_v33, %v6884_v57  ;;  %13625 = vmatprep.mubr.msk.f32.mxu0 %vm198_vm1, %v17214_v47  ;;  %v5332_v1 = vadd.f32 %v19188_v23, %v4942_v49  ;;  %v19200_v14 = vld [vmem:[#allocation94_spill] sm:$0xff] }
 0x3ca   : > { %19185 = vst [vmem:[#allocation58_spill] sm:$0xff] %v17216_v46  ;;  %19186 = vst [vmem:[#allocation63_spill] sm:$0xff] %v17218_v9  ;;  %13675 = vmatprep.mubr.msk.f32.mxu1 %vm198_vm1, %v17216_v46  ;;  %v4944_v18 = vadd.f32 %v19189_v0, %v4524_v26  ;;  %v13586_v52 = vpop.f32.mrf.mxu1  ;;  %13626 = vmatmul.mubr.msk.f32.gmra.mxu0 %vm198_vm1, %v17227_v13  ;;  %v19192_v59 = vld [vmem:[#allocation92_spill] sm:$0xff]  ;;  %v19194_v48 = vld [vmem:[#allocation71_spill] sm:$0xff] }
 0x3cb   : > { %13676 = vmatmul.mubr.msk.f32.gmra.mxu1 %vm198_vm1, %v17218_v9  ;;  %v6498_v57 = vadd.f32 %v19192_v59, %v6108_v53  ;;  %7339 = vst.msk [vmem:[#allocation2 + $0x110] sm:$0xff] %vm198_vm1, %v7307_v7  ;;  %v7306_v49 = vmax.f32 %v7274_v37, 0.0  ;;  %v7277_v40 = vadd.f32 %v13586_v52, %v6887_v42  ;;  %v19193_v39 = vld [vmem:[#allocation36_spill] sm:$0xff]  ;;  %v6501_v53 = vadd.f32 %v19200_v14, %v6111_v2  ;;  %v19202_v37 = vld [vmem:[#allocation38_spill] sm:$0xff]  ;;  %v19203_v28 = vld [vmem:[#allocation43_spill] sm:$0xff]  ;;  %v17265_v2 = vpop.f32.mrf.mxu0 }
 0x3cc   : > { %v4534_v41 = vadd.f32 %v19194_v48, %v19193_v39  ;;  %v19195_v32 = vld [vmem:[#allocation88_spill] sm:$0xff]  ;;  %v7181_v33 = vpop.f32.mrf.mxu1  ;;  %v19204_v52 = vld [vmem:[#allocation54_spill] sm:$0xff]  ;;  %v19205_v38 = vld [vmem:[#allocation51_spill] sm:$0xff] }
 0x3cd   : > { %v6110_v26 = vadd.f32 %v19195_v32, %v5720_v43  ;;  %v19196_v21 = vld [vmem:[#allocation28_spill] sm:$0xff]  ;;  %7338 = vst.msk [vmem:[#allocation2 + $0x108] sm:$0xff] %vm198_vm1, %v7306_v49  ;;  %v7309_v42 = vmax.f32 %v7277_v40, 0.0  ;;  %v7276_v7 = vadd.f32 %v7181_v33, %v6886_v50  ;;  %v17259_v43 = vld [vmem:[#allocation2 + $0xd0] sm:$0xff]  ;;  %v6113_v45 = vadd.f32 %v19205_v38, %v19204_v52  ;;  %v19206_v49 = vld [vmem:[#allocation95_spill] sm:$0xff] }
 0x3ce   : > { %v5722_v58 = vadd.f32 %v19196_v21, %v5332_v1  ;;  %v17246_v30 = vld [vmem:[#allocation2 + $0xc8] sm:$0xff]  ;;  %19201 = vst [vmem:[#allocation14_spill] sm:$0xff] %v17259_v43  ;;  %v5334_v1 = vadd.f32 %v19202_v37, %v4944_v18  ;;  %v4946_v3 = vadd.f32 %v19203_v28, %v4534_v41  ;;  %v13589_v59 = vpop.f32.mrf.mxu1  ;;  %v6888_v50 = vadd.f32 %v17078_v16, %v6498_v57  ;;  %v19208_v41 = vld [vmem:[#allocation18_spill] sm:$0xff]  ;;  %v19214_v57 = vld [vmem:[#allocation97_spill] sm:$0xff] }
 0x3cf   : > { %19197 = vst [vmem:[#allocation74_spill] sm:$0xff] %v17246_v30  ;;  %v17248_v23 = vld [vmem:[#allocation2 + $0xc7] sm:$0xff]  ;;  %v17250_v0 = vld [vmem:[#allocation2 + $0xcf] sm:$0xff]  ;;  %13628 = vmatprep.mubr.msk.f32.mxu0 %vm198_vm1, %v17246_v30  ;;  %v6500_v40 = vadd.f32 %v19206_v49, %v6110_v26  ;;  %7341 = vst.msk [vmem:[#allocation2 + $0x130] sm:$0xff] %vm198_vm1, %v7309_v42  ;;  %v7308_v18 = vmax.f32 %v7276_v7, 0.0  ;;  %v7279_v39 = vadd.f32 %v13589_v59, %v6889_v20 }
 0x3d0   : > { %19198 = vst [vmem:[#allocation76_spill] sm:$0xff] %v17248_v23  ;;  %19199 = vst [vmem:[#allocation33_spill] sm:$0xff] %v17250_v0  ;;  %13678 = vmatprep.mubr.msk.f32.mxu1 %vm198_vm1, %v17248_v23  ;;  %13629 = vmatmul.mubr.msk.f32.gmra.mxu0 %vm198_vm1, %v17259_v43  ;;  %v19207_v48 = vld [vmem:[#allocation64_spill] sm:$0xff]  ;;  %v7191_v28 = vpop.f32.mrf.mxu1  ;;  %v6891_v16 = vadd.f32 %v17104_v63, %v6501_v53  ;;  %v6503_v26 = vadd.f32 %v19214_v57, %v6113_v45  ;;  %v19216_v7 = vld [vmem:[#allocation42_spill] sm:$0xff]  ;;  %v17297_v45 = vpop.f32.mrf.mxu0 }
 0x3d1   : > { %13679 = vmatmul.mubr.msk.f32.gmra.mxu1 %vm198_vm1, %v17250_v0  ;;  %v4544_v32 = vadd.f32 %v19208_v41, %v19207_v48  ;;  %v19209_v21 = vld [vmem:[#allocation4_spill] sm:$0xff]  ;;  %7340 = vst.msk [vmem:[#allocation2 + $0x128] sm:$0xff] %vm198_vm1, %v7308_v18  ;;  %v7311_v20 = vmax.f32 %v7279_v39, 0.0  ;;  %v7278_v42 = vadd.f32 %v7191_v28, %v6888_v50  ;;  %v19217_v59 = vld [vmem:[#allocation78_spill] sm:$0xff]  ;;  %v19219_v63 = vld [vmem:[#allocation9_spill] sm:$0xff]  ;;  %v6890_v50 = vadd.f32 %v17137_v56, %v6500_v40 }
 0x3d2   : > { %v6112_v33 = vadd.f32 %v19209_v21, %v5722_v58  ;;  %v19210_v14 = vld [vmem:[#allocation52_spill] sm:$0xff]  ;;  %v17291_v58 = vld [vmem:[#allocation2 + $0xf0] sm:$0xff]  ;;  %v13592_v18 = vpop.f32.mrf.mxu1  ;;  %v19220_v39 = vld [vmem:[#allocation98_spill] sm:$0xff]  ;;  %v6893_v56 = vadd.f32 %v17169_v27, %v6503_v26 }
 0x3d3   : > { %v5724_v37 = vadd.f32 %v19210_v14, %v5334_v1  ;;  %v17278_v52 = vld [vmem:[#allocation2 + $0xe8] sm:$0xff]  ;;  %19215 = vst [vmem:[#allocation41_spill] sm:$0xff] %v17291_v58  ;;  %v5336_v1 = vadd.f32 %v19216_v7, %v4946_v3  ;;  %v4948_v49 = vadd.f32 %v19217_v59, %v4544_v32  ;;  %7343 = vst.msk [vmem:[#allocation2 + $0x150] sm:$0xff] %vm198_vm1, %v7311_v20  ;;  %v7310_v3 = vmax.f32 %v7278_v42, 0.0  ;;  %v19221_v21 = vld [vmem:[#allocation7_spill] sm:$0xff] }
 0x3d4   : > { %19211 = vst [vmem:[#allocation66_spill] sm:$0xff] %v17278_v52  ;;  %v17280_v38 = vld [vmem:[#allocation2 + $0xe7] sm:$0xff]  ;;  %v17282_v43 = vld [vmem:[#allocation2 + $0xef] sm:$0xff]  ;;  %13631 = vmatprep.mubr.msk.f32.mxu0 %vm198_vm1, %v17278_v52  ;;  %v6502_v41 = vadd.f32 %v19220_v39, %v6112_v33  ;;  %v7281_v32 = vadd.f32 %v13592_v18, %v6891_v16 }
 0x3d5   : > { %19212 = vst [vmem:[#allocation73_spill] sm:$0xff] %v17280_v38  ;;  %19213 = vst [vmem:[#allocation46_spill] sm:$0xff] %v17282_v43  ;;  %13681 = vmatprep.mubr.msk.f32.mxu1 %vm198_vm1, %v17280_v38  ;;  %v19218_v48 = vld [vmem:[#allocation56_spill] sm:$0xff]  ;;  %13632 = vmatmul.mubr.msk.f32.gmra.mxu0 %vm198_vm1, %v17291_v58  ;;  %v19222_v14 = vld [vmem:[#allocation21_spill] sm:$0xff] }
 0x3d6   : > { %v6115_v53 = vadd.f32 %v19219_v63, %v19218_v48  ;;  %13682 = vmatmul.mubr.msk.f32.gmra.mxu1 %vm198_vm1, %v17282_v43  ;;  %v4554_v28 = vadd.f32 %v19222_v14, %v19221_v21  ;;  %v19223_v57 = vld [vmem:[#allocation3_spill] sm:$0xff]  ;;  %v19224_v59 = vld [vmem:[#allocation53_spill] sm:$0xff]  ;;  %v7201_v63 = vpop.f32.mrf.mxu1  ;;  %v17310_v58 = vld [vmem:[#allocation2 + $0x108] sm:$0xff]  ;;  %7342 = vst.msk [vmem:[#allocation2 + $0x148] sm:$0xff] %vm198_vm1, %v7310_v3  ;;  %v7313_v33 = vmax.f32 %v7281_v32, 0.0 }
 0x3d7   : > { %v6114_v7 = vadd.f32 %v19223_v57, %v5724_v37  ;;  %v5726_v48 = vadd.f32 %v19224_v59, %v5336_v1  ;;  %v17312_v52 = vld [vmem:[#allocation2 + $0x107] sm:$0xff]  ;;  %v17314_v30 = vld [vmem:[#allocation2 + $0x10f] sm:$0xff]  ;;  %v7280_v16 = vadd.f32 %v7201_v63, %v6890_v50  ;;  %13634 = vmatprep.mubr.msk.f32.mxu0 %vm198_vm1, %v17310_v58  ;;  %v19228_v1 = vld [vmem:[#allocation22_spill] sm:$0xff]  ;;  %v6892_v50 = vadd.f32 %v17201_v36, %v6502_v41 }
 0x3d8   : > { %19225 = vst [vmem:[#allocation90_spill] sm:$0xff] %v17312_v52  ;;  %19226 = vst [vmem:[#allocation5_spill] sm:$0xff] %v17314_v30  ;;  %v6505_v40 = vadd.f32 %v16988_v19, %v6115_v53  ;;  %13684 = vmatprep.mubr.msk.f32.mxu1 %vm198_vm1, %v17312_v52  ;;  %v17323_v37 = vld [vmem:[#allocation2 + $0x110] sm:$0xff]  ;;  %v19227_v20 = vld [vmem:[#allocation72_spill] sm:$0xff]  ;;  %v4950_v18 = vadd.f32 %v19228_v1, %v4554_v28  ;;  %v6841_v19 = vpop.f32.mrf.mxu0  ;;  %v13595_v53 = vpop.f32.mrf.mxu1 }
 0x3d9   : > { %v5338_v42 = vadd.f32 %v19227_v20, %v4948_v49  ;;  %v19229_v39 = vld [vmem:[#allocation57_spill] sm:$0xff]  ;;  %13635 = vmatmul.mubr.msk.f32.gmra.mxu0 %vm198_vm1, %v17323_v37  ;;  %v6504_v3 = vadd.f32 %v16991_v62, %v6114_v7  ;;  %7345 = vst.msk [vmem:[#allocation2 + $0x170] sm:$0xff] %vm198_vm1, %v7313_v33  ;;  %v7312_v49 = vmax.f32 %v7280_v16, 0.0  ;;  %v7283_v32 = vadd.f32 %v13595_v53, %v6893_v56  ;;  %v19231_v21 = vld [vmem:[#allocation26_spill] sm:$0xff]  ;;  %v19232_v28 = vld [vmem:[#allocation59_spill] sm:$0xff] }
 0x3da   : > { %v19230_v27 = vld [vmem:[#allocation13_spill] sm:$0xff]  ;;  %13685 = vmatmul.mubr.msk.f32.gmra.mxu1 %vm198_vm1, %v17314_v30  ;;  %v6116_v14 = vadd.f32 %v19231_v21, %v5726_v48  ;;  %v7211_v59 = vpop.f32.mrf.mxu1  ;;  %v17338_v63 = vld [vmem:[#allocation2 + $0x128] sm:$0xff]  ;;  %v19235_v36 = vld [vmem:[#allocation99_spill] sm:$0xff] }
 0x3db   : > { %v6117_v26 = vadd.f32 %v19230_v27, %v19229_v39  ;;  %v5728_v57 = vadd.f32 %v19232_v28, %v5338_v42  ;;  %v17340_v20 = vld [vmem:[#allocation2 + $0x127] sm:$0xff]  ;;  %v17342_v1 = vld [vmem:[#allocation2 + $0x12f] sm:$0xff]  ;;  %v6895_v39 = vadd.f32 %v17233_v35, %v6505_v40  ;;  %7344 = vst.msk [vmem:[#allocation2 + $0x168] sm:$0xff] %vm198_vm1, %v7312_v49  ;;  %v7315_v62 = vmax.f32 %v7283_v32, 0.0  ;;  %13637 = vmatprep.mubr.msk.f32.mxu0 %vm198_vm1, %v17338_v63  ;;  %v19237_v56 = vld [vmem:[#allocation10_spill] sm:$0xff]  ;;  %v13554_v35 = vpop.f32.mrf.mxu0 }
 0x3dc   : > { %19233 = vst [vmem:[#allocation67_spill] sm:$0xff] %v17340_v20  ;;  %19234 = vst [vmem:[#allocation16_spill] sm:$0xff] %v17342_v1  ;;  %v7282_v7 = vadd.f32 %v7211_v59, %v6892_v50  ;;  %13687 = vmatprep.mubr.msk.f32.mxu1 %vm198_vm1, %v17340_v20  ;;  %v17351_v48 = vld [vmem:[#allocation2 + $0x130] sm:$0xff]  ;;  %v5340_v33 = vadd.f32 %v19237_v56, %v4950_v18  ;;  %v19239_v42 = vld [vmem:[#allocation12_spill] sm:$0xff]  ;;  %v13598_v40 = vpop.f32.mrf.mxu1 }
 0x3dd   : > { %v6507_v41 = vadd.f32 %v19235_v36, %v6117_v26  ;;  %19236 = vst [vmem:[#allocation45_spill] sm:$0xff] %v17351_v48  ;;  %v19238_v16 = vld [vmem:[#allocation29_spill] sm:$0xff]  ;;  %13638 = vmatmul.mubr.msk.f32.gmra.mxu0 %vm198_vm1, %v17351_v48  ;;  %v6894_v26 = vadd.f32 %v17265_v2, %v6504_v3  ;;  %v19240_v53 = vld [vmem:[#allocation100_spill] sm:$0xff]  ;;  %7347 = vst.msk [vmem:[#allocation2 + $0x190] sm:$0xff] %vm198_vm1, %v7315_v62  ;;  %v7285_v32 = vadd.f32 %v13598_v40, %v6895_v39 }
 0x3de   : > { %v6119_v27 = vadd.f32 %v19239_v42, %v19238_v16  ;;  %13688 = vmatmul.mubr.msk.f32.gmra.mxu1 %vm198_vm1, %v17342_v1  ;;  %v6506_v50 = vadd.f32 %v19240_v53, %v6116_v14  ;;  %v7314_v49 = vmax.f32 %v7282_v7, 0.0  ;;  %v19241_v18 = vld [vmem:[#allocation11_spill] sm:$0xff]  ;;  %v19242_v28 = vld [vmem:[#allocation61_spill] sm:$0xff]  ;;  %v7221_v36 = vpop.f32.mrf.mxu1  ;;  %v17365_v56 = vld [vmem:[#allocation2 + $0x148] sm:$0xff] }
 0x3df   : > { %v6118_v21 = vadd.f32 %v19241_v18, %v5728_v57  ;;  %v5730_v59 = vadd.f32 %v19242_v28, %v5340_v33  ;;  %v17367_v16 = vld [vmem:[#allocation2 + $0x147] sm:$0xff]  ;;  %v17369_v42 = vld [vmem:[#allocation2 + $0x14f] sm:$0xff]  ;;  %v6897_v48 = vadd.f32 %v17297_v45, %v6507_v41  ;;  %v7317_v3 = vmax.f32 %v7285_v32, 0.0  ;;  %13640 = vmatprep.mubr.msk.f32.mxu0 %vm198_vm1, %v17365_v56  ;;  %v6851_v33 = vpop.f32.mrf.mxu0 }
 0x3e0   : > { %19243 = vst [vmem:[#allocation77_spill] sm:$0xff] %v17367_v16  ;;  %19244 = vst [vmem:[#allocation93_spill] sm:$0xff] %v17369_v42  ;;  %v6509_v2 = vadd.f32 %v17003_v24, %v6119_v27  ;;  %v7284_v14 = vadd.f32 %v7221_v36, %v6894_v26  ;;  %13690 = vmatprep.mubr.msk.f32.mxu1 %vm198_vm1, %v17367_v16  ;;  %v17378_v57 = vld [vmem:[#allocation2 + $0x150] sm:$0xff]  ;;  %v19245_v39 = vld [vmem:[#allocation55_spill] sm:$0xff]  ;;  %v13601_v40 = vpop.f32.mrf.mxu1  ;;  %v6896_v24 = vadd.f32 %v6841_v19, %v6506_v50 }
 0x3e1   : > { %7346 = vst.msk [vmem:[#allocation2 + $0x188] sm:$0xff] %vm198_vm1, %v7314_v49  ;;  %v19246_v62 = vld [vmem:[#allocation15_spill] sm:$0xff]  ;;  %13641 = vmatmul.mubr.msk.f32.gmra.mxu0 %vm198_vm1, %v17378_v57  ;;  %v6508_v45 = vadd.f32 %v17009_v25, %v6118_v21  ;;  %7349 = vst.msk [vmem:[#allocation2 + $0x1b0] sm:$0xff] %vm198_vm1, %v7317_v3  ;;  %v7287_v27 = vadd.f32 %v13601_v40, %v6897_v48  ;;  %v13557_v49 = vpop.f32.mrf.mxu0  ;;  %v17401_v48 = vld [vmem:[#allocation2 + $0x170] sm:$0xff] }
 0x3e2   : > { %v6121_v7 = vadd.f32 %v19246_v62, %v19245_v39  ;;  %13691 = vmatmul.mubr.msk.f32.gmra.mxu1 %vm198_vm1, %v17369_v42  ;;  %v7316_v41 = vmax.f32 %v7284_v14, 0.0  ;;  %v19247_v26 = vld [vmem:[#allocation27_spill] sm:$0xff]  ;;  %v7231_v32 = vpop.f32.mrf.mxu1  ;;  %v17389_v18 = vld [vmem:[#allocation2 + $0x168] sm:$0xff]  ;;  %v6899_v39 = vadd.f32 %v13554_v35, %v6509_v2 }
 0x3e3   : > { %v6120_v53 = vadd.f32 %v19247_v26, %v5730_v59  ;;  %v17391_v28 = vld [vmem:[#allocation2 + $0x167] sm:$0xff]  ;;  %v17393_v36 = vld [vmem:[#allocation2 + $0x16f] sm:$0xff]  ;;  %v7319_v25 = vmax.f32 %v7287_v27, 0.0  ;;  %v7286_v19 = vadd.f32 %v7231_v32, %v6896_v24  ;;  %13643 = vmatprep.mubr.msk.f32.mxu0 %vm198_vm1, %v17389_v18  ;;  %v6861_v2 = vpop.f32.mrf.mxu0 }
 0x3e4   : > { %19248 = vst [vmem:[#allocation17_spill] sm:$0xff] %v17391_v28  ;;  %19249 = vst [vmem:[#allocation40_spill] sm:$0xff] %v17393_v36  ;;  %v6511_v62 = vadd.f32 %v17017_v17, %v6121_v7  ;;  %13693 = vmatprep.mubr.msk.f32.mxu1 %vm198_vm1, %v17391_v28  ;;  %v13604_v50 = vpop.f32.mrf.mxu1  ;;  %v6898_v17 = vadd.f32 %v6851_v33, %v6508_v45 }
 0x3e5   : > { %7348 = vst.msk [vmem:[#allocation2 + $0x1a8] sm:$0xff] %vm198_vm1, %v7316_v41  ;;  %13644 = vmatmul.mubr.msk.f32.gmra.mxu0 %vm198_vm1, %v17401_v48  ;;  %v6510_v35 = vadd.f32 %v17022_v15, %v6120_v53  ;;  %7351 = vst.msk [vmem:[#allocation2 + $0x1d0] sm:$0xff] %vm198_vm1, %v7319_v25  ;;  %v7318_v21 = vmax.f32 %v7286_v19, 0.0  ;;  %v7289_v59 = vadd.f32 %v13604_v50, %v6899_v39  ;;  %v17420_v15 = vld [vmem:[#allocation2 + $0x190] sm:$0xff] }
 0x3e6   : > { %13694 = vmatmul.mubr.msk.f32.gmra.mxu1 %vm198_vm1, %v17393_v36  ;;  %v7241_v3 = vpop.f32.mrf.mxu1  ;;  %v6901_v24 = vadd.f32 %v13557_v49, %v6511_v62 }
 0x3e7   : > { %7350 = vst.msk [vmem:[#allocation2 + $0x1c8] sm:$0xff] %vm198_vm1, %v7318_v21  ;;  %v7321_v41 = vmax.f32 %v7289_v59, 0.0  ;;  %v7288_v27 = vadd.f32 %v7241_v3, %v6898_v17  ;;  %v6900_v45 = vadd.f32 %v6861_v2, %v6510_v35  ;;  %v8071_v3 = vld [vmem:[#allocation2 + $0x9] sm:$0xff] }
 0x3e8   : > { %v17409_v14 = vld [vmem:[#allocation2 + $0x188] sm:$0xff]  ;;  %v13607_v33 = vpop.f32.mrf.mxu1  ;;  %v17438_v50 = vld [vmem:[#allocation2 + $0x1b0] sm:$0xff] }
 0x3e9   : > { %v17411_v7 = vld [vmem:[#allocation2 + $0x187] sm:$0xff]  ;;  %v17413_v40 = vld [vmem:[#allocation2 + $0x18f] sm:$0xff]  ;;  %13646 = vmatprep.mubr.msk.f32.mxu0 %vm198_vm1, %v17409_v14  ;;  %7353 = vst.msk [vmem:[#allocation2 + $0x1f0] sm:$0xff] %vm198_vm1, %v7321_v41  ;;  %v7320_v26 = vmax.f32 %v7288_v27, 0.0  ;;  %v7291_v53 = vadd.f32 %v13607_v33, %v6901_v24 }
 0x3ea   : > { %19250 = vst [vmem:[#allocation35_spill] sm:$0xff] %v17411_v7  ;;  %19251 = vst [vmem:[#allocation68_spill] sm:$0xff] %v17413_v40  ;;  %13696 = vmatprep.mubr.msk.f32.mxu1 %vm198_vm1, %v17411_v7  ;;  %13647 = vmatmul.mubr.msk.f32.gmra.mxu0 %vm198_vm1, %v17420_v15  ;;  %v7251_v49 = vpop.f32.mrf.mxu1 }
 0x3eb   : > { %13697 = vmatmul.mubr.msk.f32.gmra.mxu1 %vm198_vm1, %v17413_v40  ;;  %7352 = vst.msk [vmem:[#allocation2 + $0x1e8] sm:$0xff] %vm198_vm1, %v7320_v26  ;;  %v7323_v25 = vmax.f32 %v7291_v53, 0.0  ;;  %v7290_v19 = vadd.f32 %v7251_v49, %v6900_v45  ;;  %v8072_v45 = vld [vmem:[#allocation2 + $0x11] sm:$0xff]  ;;  %v17484_v26 = vld [vmem:[#allocation2 + $0x29] sm:$0xff]  ;;  %v17494_v49 = vld [vmem:[%s18615_s3 + $0x1c] sm:$0xf] }
 0x3ec   : > { %v17427_v32 = vld [vmem:[#allocation2 + $0x1a8] sm:$0xff]  ;;  %v17456_v2 = vld [vmem:[#allocation2 + $0x1d0] sm:$0xff]  ;;  %v17489_v53 = vld [vmem:[%s18615_s3 + $0x18] sm:$0xf] }
 0x3ed   : > { %v17429_v39 = vld [vmem:[#allocation2 + $0x1a7] sm:$0xff]  ;;  %v17431_v62 = vld [vmem:[#allocation2 + $0x1af] sm:$0xff]  ;;  %13649 = vmatprep.mubr.msk.f32.mxu0 %vm198_vm1, %v17427_v32  ;;  %7355 = vst.msk [vmem:[#allocation2 + $0x210] sm:$0xff] %vm198_vm1, %v7323_v25  ;;  %v7322_v17 = vmax.f32 %v7290_v19, 0.0 }
 0x3ee   : > { %19252 = vst [vmem:[#allocation24_spill] sm:$0xff] %v17429_v39  ;;  %19253 = vst [vmem:[#allocation82_spill] sm:$0xff] %v17431_v62  ;;  %13699 = vmatprep.mubr.msk.f32.mxu1 %vm198_vm1, %v17429_v39  ;;  %13650 = vmatmul.mubr.msk.f32.gmra.mxu0 %vm198_vm1, %v17438_v50  ;;  %v17445_v35 = vld [vmem:[#allocation2 + $0x1c8] sm:$0xff]  ;;  %v13662_v25 = vpop.f32.mrf.mxu1  ;;  %v19257_v19 = vld [vmem:[#allocation31_spill] sm:$0xff] }
 0x3ef   : > { %13700 = vmatmul.mubr.msk.f32.gmra.mxu1 %vm198_vm1, %v17431_v62  ;;  %v17447_v21 = vld [vmem:[#allocation2 + $0x1c7] sm:$0xff]  ;;  %v17449_v59 = vld [vmem:[#allocation2 + $0x1cf] sm:$0xff]  ;;  %7354 = vst.msk [vmem:[#allocation2 + $0x208] sm:$0xff] %vm198_vm1, %v7322_v17  ;;  %13652 = vmatprep.mubr.msk.f32.mxu0 %vm198_vm1, %v17445_v35 }
 0x3f0   : > { %19254 = vst [vmem:[#allocation96_spill] sm:$0xff] %v17447_v21  ;;  %19255 = vst [vmem:[#allocation65_spill] sm:$0xff] %v17449_v59  ;;  %13702 = vmatprep.mubr.msk.f32.mxu1 %vm198_vm1, %v17447_v21  ;;  %v17472_v33 = vld [vmem:[#allocation2 + $0x1f0] sm:$0xff] }
 0x3f1   : > { %v17506_v17 = vld [vmem:[#allocation2 + $0x31] sm:$0xff] }
 0x3f2   : > { %13653 = vmatmul.mubr.msk.f32.gmra.mxu0 %vm198_vm1, %v17456_v2  ;;  %v17462_v24 = vld [vmem:[#allocation2 + $0x1e8] sm:$0xff] }
 0x3f3   : > { %13703 = vmatmul.mubr.msk.f32.gmra.mxu1 %vm198_vm1, %v17449_v59  ;;  %v17464_v41 = vld [vmem:[#allocation2 + $0x1e7] sm:$0xff]  ;;  %v17466_v27 = vld [vmem:[#allocation2 + $0x1ef] sm:$0xff]  ;;  %13655 = vmatprep.mubr.msk.f32.mxu0 %vm198_vm1, %v17462_v24 }
 0x3f4   : > { %19256 = vst [vmem:[#allocation6_spill] sm:$0xff] %v17464_v41  ;;  %13705 = vmatprep.mubr.msk.f32.mxu1 %vm198_vm1, %v17464_v41 }
 0x3f6   : > { %13656 = vmatmul.mubr.msk.f32.gmra.mxu0 %vm198_vm1, %v17472_v33 }
 0x3f7   : > { %13706 = vmatmul.mubr.msk.f32.gmra.mxu1 %vm198_vm1, %v17466_v27  ;;  %13710 = vmatprep.mubr.msk.f32.mxu0 %vm198_vm1, %v8071_v3  ;;  %v17516_v3 = vld [vmem:[#allocation2 + $0x49] sm:$0xff] }
 0x3f8   : > { %13760 = vmatprep.mubr.msk.f32.mxu1 %vm198_vm1, %v17087_v22  ;;  %v13612_v22 = vpop.f32.mrf.mxu0 }
 0x3fa   : > { %13711 = vmatmul.mubr.msk.f32.vlgmr.msra.gmra.mxu0 %vm198_vm1, %v8072_v45  ;;  %v17528_v45 = vld [vmem:[#allocation2 + $0x69] sm:$0xff] }
 0x3fb   : > { %13761 = vmatmul.mubr.msk.f32.vlgmr.msra.gmra.mxu1 %vm198_vm1, %v17089_v12  ;;  %13809 = vmatpush3.msk.msra.mxu0 %vm499_vm0, %v19257_v19  ;;  %v17500_v12 = vadd.f32 %v13662_v25, %v13612_v22  ;;  %v17534_v22 = vld [vmem:[#allocation2 + $0x71] sm:$0xff]  ;;  %v17540_v25 = vld [vmem:[#allocation2 + $0x89] sm:$0xff] }
 0x3fc   : > { %13713 = vmatprep.mubr.msk.f32.mxu0 %vm198_vm1, %v17484_v26  ;;  %13763 = vmatprep.mubr.msk.f32.mxu1 %vm198_vm1, %v17119_v60  ;;  %v17546_v19 = vld [vmem:[#allocation2 + $0x91] sm:$0xff] }
 0x3fd   : > { %19258 = vst [vmem:[#allocation19_spill] sm:$0xff] %v17500_v12  ;;  %13859 = vmatpush3.msk.msra.mxu1 %vm499_vm0, %v17065_v6  ;;  %13908 = vmatprep.subr.msk.mxu0 %vm499_vm0, %v17489_v53  ;;  %v17522_v6 = vld [vmem:[#allocation2 + $0x51] sm:$0xff]  ;;  %v17552_v12 = vld [vmem:[#allocation2 + $0xa9] sm:$0xff] }
 0x3fe   : > { %13958 = vmatprep.subr.msk.mxu1 %vm499_vm0, %v17494_v49  ;;  %13714 = vmatmul.mubr.msk.f32.gmra.mxu0 %vm198_vm1, %v17506_v17 }
 0x3ff   : > { %13764 = vmatmul.mubr.msk.f32.gmra.mxu1 %vm198_vm1, %v17121_v55  ;;  %13716 = vmatprep.mubr.msk.f32.mxu0 %vm198_vm1, %v17516_v3 }
 0x400   : > { %13766 = vmatprep.mubr.msk.f32.mxu1 %vm198_vm1, %v17152_v29 }
 0x402   : > { %13717 = vmatmul.mubr.msk.f32.gmra.mxu0 %vm198_vm1, %v17522_v6 }
 0x403   : > { %13767 = vmatmul.mubr.msk.f32.gmra.mxu1 %vm198_vm1, %v17154_v54  ;;  %13719 = vmatprep.mubr.msk.f32.mxu0 %vm198_vm1, %v17528_v45 }
 0x404   : > { %13769 = vmatprep.mubr.msk.f32.mxu1 %vm198_vm1, %v17184_v61  ;;  %v17674_v61 = vld [vmem:[#allocation2 + $0x207] sm:$0xff] }
 0x405   : > { %19259 = vst [vmem:[#allocation84_spill] sm:$0xff] %v17674_v61 }
 0x406   : > { %13720 = vmatmul.mubr.msk.f32.gmra.mxu0 %vm198_vm1, %v17534_v22 }
 0x407   : > { %13770 = vmatmul.mubr.msk.f32.gmra.mxu1 %vm198_vm1, %v17186_v8  ;;  %13722 = vmatprep.mubr.msk.f32.mxu0 %vm198_vm1, %v17540_v25  ;;  %v17558_v8 = vld [vmem:[#allocation2 + $0xb1] sm:$0xff] }
 0x408   : > { %13772 = vmatprep.mubr.msk.f32.mxu1 %vm198_vm1, %v17216_v46  ;;  %v17564_v46 = vld [vmem:[#allocation2 + $0xc9] sm:$0xff] }
 0x40a   : > { %13723 = vmatmul.mubr.msk.f32.gmra.mxu0 %vm198_vm1, %v17546_v19 }
 0x40b   : > { %13773 = vmatmul.mubr.msk.f32.gmra.mxu1 %vm198_vm1, %v17218_v9  ;;  %13725 = vmatprep.mubr.msk.f32.mxu0 %vm198_vm1, %v17552_v12  ;;  %v17570_v9 = vld [vmem:[#allocation2 + $0xd1] sm:$0xff] }
 0x40c   : > { %13775 = vmatprep.mubr.msk.f32.mxu1 %vm198_vm1, %v17248_v23  ;;  %v17576_v23 = vld [vmem:[#allocation2 + $0xe9] sm:$0xff] }
 0x40e   : > { %13726 = vmatmul.mubr.msk.f32.gmra.mxu0 %vm198_vm1, %v17558_v8 }
 0x40f   : > { %13776 = vmatmul.mubr.msk.f32.gmra.mxu1 %vm198_vm1, %v17250_v0  ;;  %13728 = vmatprep.mubr.msk.f32.mxu0 %vm198_vm1, %v17564_v46  ;;  %v17582_v0 = vld [vmem:[#allocation2 + $0xf1] sm:$0xff] }
 0x410   : > { %13778 = vmatprep.mubr.msk.f32.mxu1 %vm198_vm1, %v17280_v38  ;;  %v17588_v38 = vld [vmem:[#allocation2 + $0x109] sm:$0xff] }
 0x412   : > { %13729 = vmatmul.mubr.msk.f32.gmra.mxu0 %vm198_vm1, %v17570_v9 }
 0x413   : > { %13779 = vmatmul.mubr.msk.f32.gmra.mxu1 %vm198_vm1, %v17282_v43  ;;  %13731 = vmatprep.mubr.msk.f32.mxu0 %vm198_vm1, %v17576_v23  ;;  %v17594_v43 = vld [vmem:[#allocation2 + $0x111] sm:$0xff] }
 0x414   : > { %13781 = vmatprep.mubr.msk.f32.mxu1 %vm198_vm1, %v17312_v52  ;;  %v17600_v52 = vld [vmem:[#allocation2 + $0x129] sm:$0xff] }
 0x416   : > { %13732 = vmatmul.mubr.msk.f32.gmra.mxu0 %vm198_vm1, %v17582_v0 }
 0x417   : > { %13782 = vmatmul.mubr.msk.f32.gmra.mxu1 %vm198_vm1, %v17314_v30  ;;  %13734 = vmatprep.mubr.msk.f32.mxu0 %vm198_vm1, %v17588_v38  ;;  %v17606_v30 = vld [vmem:[#allocation2 + $0x131] sm:$0xff] }
 0x418   : > { %13784 = vmatprep.mubr.msk.f32.mxu1 %vm198_vm1, %v17340_v20  ;;  %v17612_v20 = vld [vmem:[#allocation2 + $0x149] sm:$0xff] }
 0x41a   : > { %13735 = vmatmul.mubr.msk.f32.gmra.mxu0 %vm198_vm1, %v17594_v43 }
 0x41b   : > { %13785 = vmatmul.mubr.msk.f32.gmra.mxu1 %vm198_vm1, %v17342_v1  ;;  %13737 = vmatprep.mubr.msk.f32.mxu0 %vm198_vm1, %v17600_v52  ;;  %v17618_v1 = vld [vmem:[#allocation2 + $0x151] sm:$0xff] }
 0x41c   : > { %13787 = vmatprep.mubr.msk.f32.mxu1 %vm198_vm1, %v17367_v16  ;;  %v17624_v16 = vld [vmem:[#allocation2 + $0x169] sm:$0xff] }
 0x41e   : > { %13738 = vmatmul.mubr.msk.f32.gmra.mxu0 %vm198_vm1, %v17606_v30 }
 0x41f   : > { %13788 = vmatmul.mubr.msk.f32.gmra.mxu1 %vm198_vm1, %v17369_v42  ;;  %13740 = vmatprep.mubr.msk.f32.mxu0 %vm198_vm1, %v17612_v20  ;;  %v17630_v42 = vld [vmem:[#allocation2 + $0x171] sm:$0xff] }
 0x420   : > { %13790 = vmatprep.mubr.msk.f32.mxu1 %vm198_vm1, %v17391_v28  ;;  %v17636_v28 = vld [vmem:[#allocation2 + $0x189] sm:$0xff] }
 0x422   : > { %13741 = vmatmul.mubr.msk.f32.gmra.mxu0 %vm198_vm1, %v17618_v1 }
 0x423   : > { %13791 = vmatmul.mubr.msk.f32.gmra.mxu1 %vm198_vm1, %v17393_v36  ;;  %13743 = vmatprep.mubr.msk.f32.mxu0 %vm198_vm1, %v17624_v16  ;;  %v17642_v36 = vld [vmem:[#allocation2 + $0x191] sm:$0xff] }
 0x424   : > { %13793 = vmatprep.mubr.msk.f32.mxu1 %vm198_vm1, %v17411_v7  ;;  %v17648_v7 = vld [vmem:[#allocation2 + $0x1a9] sm:$0xff] }
 0x426   : > { %13744 = vmatmul.mubr.msk.f32.gmra.mxu0 %vm198_vm1, %v17630_v42 }
 0x427   : > { %13794 = vmatmul.mubr.msk.f32.gmra.mxu1 %vm198_vm1, %v17413_v40  ;;  %13746 = vmatprep.mubr.msk.f32.mxu0 %vm198_vm1, %v17636_v28  ;;  %v17654_v40 = vld [vmem:[#allocation2 + $0x1b1] sm:$0xff] }
 0x428   : > { %13796 = vmatprep.mubr.msk.f32.mxu1 %vm198_vm1, %v17429_v39  ;;  %v17660_v39 = vld [vmem:[#allocation2 + $0x1c9] sm:$0xff] }
 0x42a   : > { %13747 = vmatmul.mubr.msk.f32.gmra.mxu0 %vm198_vm1, %v17642_v36 }
 0x42b   : > { %13797 = vmatmul.mubr.msk.f32.gmra.mxu1 %vm198_vm1, %v17431_v62  ;;  %13749 = vmatprep.mubr.msk.f32.mxu0 %vm198_vm1, %v17648_v7  ;;  %v17666_v62 = vld [vmem:[#allocation2 + $0x1d1] sm:$0xff] }
 0x42c   : > { %13799 = vmatprep.mubr.msk.f32.mxu1 %vm198_vm1, %v17447_v21  ;;  %v17672_v21 = vld [vmem:[#allocation2 + $0x1e9] sm:$0xff] }
 0x42e   : > { %13750 = vmatmul.mubr.msk.f32.gmra.mxu0 %vm198_vm1, %v17654_v40 }
 0x42f   : > { %13800 = vmatmul.mubr.msk.f32.gmra.mxu1 %vm198_vm1, %v17449_v59  ;;  %13752 = vmatprep.mubr.msk.f32.mxu0 %vm198_vm1, %v17660_v39  ;;  %v17680_v59 = vld [vmem:[#allocation2 + $0x1f1] sm:$0xff] }
 0x430   : > { %13802 = vmatprep.mubr.msk.f32.mxu1 %vm198_vm1, %v17464_v41  ;;  %v17682_v41 = vld [vmem:[#allocation2 + $0x20f] sm:$0xff] }
 0x432   : > { %13753 = vmatmul.mubr.msk.f32.gmra.mxu0 %vm198_vm1, %v17666_v62 }
 0x433   : > { %13803 = vmatmul.mubr.msk.f32.gmra.mxu1 %vm198_vm1, %v17466_v27  ;;  %13755 = vmatprep.mubr.msk.f32.mxu0 %vm198_vm1, %v17672_v21 }
 0x434   : > { %13805 = vmatprep.mubr.msk.f32.mxu1 %vm198_vm1, %v17674_v61  ;;  %v17699_v61 = vld [vmem:[%s18615_s3 + $0x20] sm:$0xf] }
 0x436   : > { %13756 = vmatmul.mubr.msk.f32.gmra.mxu0 %vm198_vm1, %v17680_v59 }
 0x437   : > { %13806 = vmatmul.mubr.msk.f32.gmra.mxu1 %vm198_vm1, %v17682_v41  ;;  %13810 = vmatprep.mubr.msk.f32.mxu0 %vm198_vm1, %v17085_v34  ;;  %v19260_v34 = vld [vmem:[#allocation74_spill] sm:$0xff] }
 0x438   : > { %13860 = vmatprep.mubr.msk.f32.mxu1 %vm198_vm1, %v17484_v26  ;;  %v19262_v26 = vld [vmem:[#allocation66_spill] sm:$0xff] }
 0x43a   : > { %13811 = vmatmul.mubr.msk.f32.vlgmr.msra.gmra.mxu0 %vm198_vm1, %v17098_v10  ;;  %v19261_v10 = vld [vmem:[#allocation14_spill] sm:$0xff] }
 0x43b   : > { %13861 = vmatmul.mubr.msk.f32.vlgmr.msra.gmra.mxu1 %vm198_vm1, %v17506_v17  ;;  %13909 = vmatpush3.msk.msra.mxu0 %vm499_vm0, %v17489_v53  ;;  %v19263_v53 = vld [vmem:[#allocation41_spill] sm:$0xff] }
 0x43c   : > { %13813 = vmatprep.mubr.msk.f32.mxu0 %vm198_vm1, %v17117_v5  ;;  %13863 = vmatprep.mubr.msk.f32.mxu1 %vm198_vm1, %v17516_v3  ;;  %v19266_v17 = vld [vmem:[#allocation25_spill] sm:$0xff] }
 0x43d   : > { %13959 = vmatpush3.msk.msra.mxu1 %vm499_vm0, %v17494_v49  ;;  %14008 = vmatprep.subr.msk.mxu0 %vm499_vm0, %v17699_v61  ;;  %v19264_v49 = vld [vmem:[#allocation45_spill] sm:$0xff] }
 0x43e   : > { %13814 = vmatmul.mubr.msk.f32.gmra.mxu0 %vm198_vm1, %v17130_v31 }
 0x43f   : > { %13864 = vmatmul.mubr.msk.f32.gmra.mxu1 %vm198_vm1, %v17522_v6  ;;  %13816 = vmatprep.mubr.msk.f32.mxu0 %vm198_vm1, %v17150_v44 }
 0x440   : > { %13866 = vmatprep.mubr.msk.f32.mxu1 %vm198_vm1, %v17528_v45 }
 0x442   : > { %13817 = vmatmul.mubr.msk.f32.gmra.mxu0 %vm198_vm1, %v17163_v11 }
 0x443   : > { %13867 = vmatmul.mubr.msk.f32.gmra.mxu1 %vm198_vm1, %v17534_v22  ;;  %13819 = vmatprep.mubr.msk.f32.mxu0 %vm198_vm1, %v17182_v51 }
 0x444   : > { %13869 = vmatprep.mubr.msk.f32.mxu1 %vm198_vm1, %v17540_v25 }
 0x446   : > { %13820 = vmatmul.mubr.msk.f32.gmra.mxu0 %vm198_vm1, %v17195_v4 }
 0x447   : > { %13870 = vmatmul.mubr.msk.f32.gmra.mxu1 %vm198_vm1, %v17546_v19  ;;  %13822 = vmatprep.mubr.msk.f32.mxu0 %vm198_vm1, %v17214_v47 }
 0x448   : > { %13872 = vmatprep.mubr.msk.f32.mxu1 %vm198_vm1, %v17552_v12 }
 0x44a   : > { %13823 = vmatmul.mubr.msk.f32.gmra.mxu0 %vm198_vm1, %v17227_v13 }
 0x44b   : > { %13873 = vmatmul.mubr.msk.f32.gmra.mxu1 %vm198_vm1, %v17558_v8  ;;  %13825 = vmatprep.mubr.msk.f32.mxu0 %vm198_vm1, %v19260_v34 }
 0x44c   : > { %13875 = vmatprep.mubr.msk.f32.mxu1 %vm198_vm1, %v17564_v46 }
 0x44e   : > { %13826 = vmatmul.mubr.msk.f32.gmra.mxu0 %vm198_vm1, %v19261_v10 }
 0x44f   : > { %13876 = vmatmul.mubr.msk.f32.gmra.mxu1 %vm198_vm1, %v17570_v9  ;;  %13828 = vmatprep.mubr.msk.f32.mxu0 %vm198_vm1, %v19262_v26 }
 0x450   : > { %13878 = vmatprep.mubr.msk.f32.mxu1 %vm198_vm1, %v17576_v23 }
 0x452   : > { %13829 = vmatmul.mubr.msk.f32.gmra.mxu0 %vm198_vm1, %v19263_v53 }
 0x453   : > { %13879 = vmatmul.mubr.msk.f32.gmra.mxu1 %vm198_vm1, %v17582_v0  ;;  %13831 = vmatprep.mubr.msk.f32.mxu0 %vm198_vm1, %v17310_v58 }
 0x454   : > { %13881 = vmatprep.mubr.msk.f32.mxu1 %vm198_vm1, %v17588_v38 }
 0x456   : > { %13832 = vmatmul.mubr.msk.f32.gmra.mxu0 %vm198_vm1, %v17323_v37 }
 0x457   : > { %13882 = vmatmul.mubr.msk.f32.gmra.mxu1 %vm198_vm1, %v17594_v43  ;;  %13834 = vmatprep.mubr.msk.f32.mxu0 %vm198_vm1, %v17338_v63 }
 0x458   : > { %13884 = vmatprep.mubr.msk.f32.mxu1 %vm198_vm1, %v17600_v52 }
 0x45a   : > { %13835 = vmatmul.mubr.msk.f32.gmra.mxu0 %vm198_vm1, %v19264_v49 }
 0x45b   : > { %13885 = vmatmul.mubr.msk.f32.gmra.mxu1 %vm198_vm1, %v17606_v30  ;;  %13837 = vmatprep.mubr.msk.f32.mxu0 %vm198_vm1, %v17365_v56 }
 0x45c   : > { %13887 = vmatprep.mubr.msk.f32.mxu1 %vm198_vm1, %v17612_v20 }
 0x45e   : > { %13838 = vmatmul.mubr.msk.f32.gmra.mxu0 %vm198_vm1, %v17378_v57 }
 0x45f   : > { %13888 = vmatmul.mubr.msk.f32.gmra.mxu1 %vm198_vm1, %v17618_v1  ;;  %13840 = vmatprep.mubr.msk.f32.mxu0 %vm198_vm1, %v17389_v18 }
 0x460   : > { %13890 = vmatprep.mubr.msk.f32.mxu1 %vm198_vm1, %v17624_v16 }
 0x462   : > { %13841 = vmatmul.mubr.msk.f32.gmra.mxu0 %vm198_vm1, %v17401_v48 }
 0x463   : > { %13891 = vmatmul.mubr.msk.f32.gmra.mxu1 %vm198_vm1, %v17630_v42  ;;  %13843 = vmatprep.mubr.msk.f32.mxu0 %vm198_vm1, %v17409_v14  ;;  %v17819_v42 = vld [vmem:[#allocation2 + $0x208] sm:$0xff] }
 0x464   : > { %13893 = vmatprep.mubr.msk.f32.mxu1 %vm198_vm1, %v17636_v28 }
 0x466   : > { %13844 = vmatmul.mubr.msk.f32.gmra.mxu0 %vm198_vm1, %v17420_v15 }
 0x467   : > { %13894 = vmatmul.mubr.msk.f32.gmra.mxu1 %vm198_vm1, %v17642_v36  ;;  %13846 = vmatprep.mubr.msk.f32.mxu0 %vm198_vm1, %v17427_v32  ;;  %v17821_v36 = vld [vmem:[#allocation2 + $0x209] sm:$0xff] }
 0x468   : > { %13896 = vmatprep.mubr.msk.f32.mxu1 %vm198_vm1, %v17648_v7  ;;  %v17827_v7 = vld [vmem:[#allocation2 + $0x210] sm:$0xff] }
 0x46a   : > { %13847 = vmatmul.mubr.msk.f32.gmra.mxu0 %vm198_vm1, %v17438_v50 }
 0x46b   : > { %13897 = vmatmul.mubr.msk.f32.gmra.mxu1 %vm198_vm1, %v17654_v40  ;;  %13849 = vmatprep.mubr.msk.f32.mxu0 %vm198_vm1, %v17445_v35  ;;  %v17829_v40 = vld [vmem:[#allocation2 + $0x211] sm:$0xff] }
 0x46c   : > { %13899 = vmatprep.mubr.msk.f32.mxu1 %vm198_vm1, %v17660_v39  ;;  %v17847_v39 = vpop.f32.mrf.mxu0 }
 0x46e   : > { %13850 = vmatmul.mubr.msk.f32.gmra.mxu0 %vm198_vm1, %v17456_v2 }
 0x46f   : > { %13900 = vmatmul.mubr.msk.f32.gmra.mxu1 %vm198_vm1, %v17666_v62  ;;  %13852 = vmatprep.mubr.msk.f32.mxu0 %vm198_vm1, %v17462_v24  ;;  %v17849_v62 = vpop.f32.mrf.mxu1 }
 0x470   : > { %13902 = vmatprep.mubr.msk.f32.mxu1 %vm198_vm1, %v17672_v21 }
 0x472   : > { %13853 = vmatmul.mubr.msk.f32.gmra.mxu0 %vm198_vm1, %v17472_v33 }
 0x473   : > { %13903 = vmatmul.mubr.msk.f32.gmra.mxu1 %vm198_vm1, %v17680_v59  ;;  %13855 = vmatprep.mubr.msk.f32.mxu0 %vm198_vm1, %v17819_v42 }
 0x474   : > { %13905 = vmatprep.mubr.msk.f32.mxu1 %vm198_vm1, %v17821_v36 }
 0x476   : > { %13856 = vmatmul.mubr.msk.f32.gmra.mxu0 %vm198_vm1, %v17827_v7 }
 0x477   : > { %13906 = vmatmul.mubr.msk.f32.gmra.mxu1 %vm198_vm1, %v17829_v40  ;;  %13910 = vmatprep.mubr.msk.f32.mxu0 %vm198_vm1, %v17119_v60 }
 0x478   : > { %13960 = vmatprep.mubr.msk.f32.mxu1 %vm198_vm1, %v17117_v5 }
 0x47a   : > { %13911 = vmatmul.mubr.msk.f32.vlgmr.msra.gmra.mxu0 %vm198_vm1, %v17121_v55  ;;  %v13615_v5 = vpop.f32.mrf.mxu0 }
 0x47b   : > { %13961 = vmatmul.mubr.msk.f32.vlgmr.msra.gmra.mxu1 %vm198_vm1, %v17130_v31  ;;  %14009 = vmatpush3.msk.msra.mxu0 %vm499_vm0, %v17699_v61  ;;  %v13665_v60 = vpop.f32.mrf.mxu1  ;;  %v19265_v31 = vld [vmem:[#allocation80_spill] sm:$0xff] }
 0x47c   : > { %13913 = vmatprep.mubr.msk.f32.mxu0 %vm198_vm1, %v17152_v29  ;;  %13963 = vmatprep.mubr.msk.f32.mxu1 %vm198_vm1, %v17150_v44  ;;  %v17857_v55 = vadd.f32 %v13665_v60, %v13615_v5  ;;  %v7598_v29 = vpop.f32.mrf.mxu0 }
 0x47d   : > { %v7922_v61 = vpop.f32.mrf.mxu1 }
 0x47e   : > { %13914 = vmatmul.mubr.msk.f32.gmra.mxu0 %vm198_vm1, %v17154_v54  ;;  %v17863_v21 = vadd.f32 %v7922_v61, %v7598_v29  ;;  %v13618_v44 = vpop.f32.mrf.mxu0  ;;  %v19268_v61 = vld [vmem:[#allocation63_spill] sm:$0xff] }
 0x47f   : > { %13964 = vmatmul.mubr.msk.f32.gmra.mxu1 %vm198_vm1, %v17163_v11  ;;  %13916 = vmatprep.mubr.msk.f32.mxu0 %vm198_vm1, %v19265_v31  ;;  %v13668_v59 = vpop.f32.mrf.mxu1  ;;  %v19267_v11 = vld [vmem:[#allocation58_spill] sm:$0xff] }
 0x480   : > { %13966 = vmatprep.mubr.msk.f32.mxu1 %vm198_vm1, %v17182_v51  ;;  %v17869_v54 = vadd.f32 %v13668_v59, %v13618_v44  ;;  %v7608_v51 = vpop.f32.mrf.mxu0  ;;  %v19269_v44 = vld [vmem:[#allocation76_spill] sm:$0xff] }
 0x481   : > { %v7932_v5 = vpop.f32.mrf.mxu1 }
 0x482   : > { %13917 = vmatmul.mubr.msk.f32.gmra.mxu0 %vm198_vm1, %v19266_v17  ;;  %v17875_v60 = vadd.f32 %v7932_v5, %v7608_v51  ;;  %v13621_v31 = vpop.f32.mrf.mxu0  ;;  %v19270_v5 = vld [vmem:[#allocation33_spill] sm:$0xff] }
 0x483   : > { %13967 = vmatmul.mubr.msk.f32.gmra.mxu1 %vm198_vm1, %v17195_v4  ;;  %13919 = vmatprep.mubr.msk.f32.mxu0 %vm198_vm1, %v19267_v11  ;;  %v13671_v29 = vpop.f32.mrf.mxu1 }
 0x484   : > { %13969 = vmatprep.mubr.msk.f32.mxu1 %vm198_vm1, %v17214_v47  ;;  %v17881_v4 = vadd.f32 %v13671_v29, %v13621_v31  ;;  %v7618_v47 = vpop.f32.mrf.mxu0  ;;  %v19271_v31 = vld [vmem:[#allocation73_spill] sm:$0xff] }
 0x485   : > { %v7942_v59 = vpop.f32.mrf.mxu1 }
 0x486   : > { %13920 = vmatmul.mubr.msk.f32.gmra.mxu0 %vm198_vm1, %v19268_v61  ;;  %v17887_v17 = vadd.f32 %v7942_v59, %v7618_v47  ;;  %v13624_v11 = vpop.f32.mrf.mxu0  ;;  %v19272_v59 = vld [vmem:[#allocation46_spill] sm:$0xff] }
 0x487   : > { %13970 = vmatmul.mubr.msk.f32.gmra.mxu1 %vm198_vm1, %v17227_v13  ;;  %13922 = vmatprep.mubr.msk.f32.mxu0 %vm198_vm1, %v19269_v44  ;;  %v13674_v51 = vpop.f32.mrf.mxu1 }
 0x488   : > { %13972 = vmatprep.mubr.msk.f32.mxu1 %vm198_vm1, %v19260_v34  ;;  %v17893_v13 = vadd.f32 %v13674_v51, %v13624_v11  ;;  %v7628_v34 = vpop.f32.mrf.mxu0  ;;  %v19273_v11 = vld [vmem:[#allocation90_spill] sm:$0xff] }
 0x489   : > { %v7952_v29 = vpop.f32.mrf.mxu1 }
 0x48a   : > { %13923 = vmatmul.mubr.msk.f32.gmra.mxu0 %vm198_vm1, %v19270_v5  ;;  %v17899_v61 = vadd.f32 %v7952_v29, %v7628_v34  ;;  %v13627_v44 = vpop.f32.mrf.mxu0  ;;  %v19274_v29 = vld [vmem:[#allocation5_spill] sm:$0xff] }
 0x48b   : > { %13973 = vmatmul.mubr.msk.f32.gmra.mxu1 %vm198_vm1, %v19261_v10  ;;  %13925 = vmatprep.mubr.msk.f32.mxu0 %vm198_vm1, %v19271_v31  ;;  %v13677_v47 = vpop.f32.mrf.mxu1 }
 0x48c   : > { %13975 = vmatprep.mubr.msk.f32.mxu1 %vm198_vm1, %v19262_v26  ;;  %v17905_v10 = vadd.f32 %v13677_v47, %v13627_v44  ;;  %v7638_v26 = vpop.f32.mrf.mxu0  ;;  %v19275_v44 = vld [vmem:[#allocation67_spill] sm:$0xff] }
 0x48d   : > { %v7962_v51 = vpop.f32.mrf.mxu1 }
 0x48e   : > { %13926 = vmatmul.mubr.msk.f32.gmra.mxu0 %vm198_vm1, %v19272_v59  ;;  %v17911_v5 = vadd.f32 %v7962_v51, %v7638_v26  ;;  %v19276_v51 = vld [vmem:[#allocation16_spill] sm:$0xff] }
 0x48f   : > { %13976 = vmatmul.mubr.msk.f32.gmra.mxu1 %vm198_vm1, %v19263_v53  ;;  %13928 = vmatprep.mubr.msk.f32.mxu0 %vm198_vm1, %v19273_v11 }
 0x490   : > { %13978 = vmatprep.mubr.msk.f32.mxu1 %vm198_vm1, %v17310_v58  ;;  %v13630_v31 = vpop.f32.mrf.mxu0 }
 0x491   : > { %v13680_v34 = vpop.f32.mrf.mxu1 }
 0x492   : > { %13929 = vmatmul.mubr.msk.f32.gmra.mxu0 %vm198_vm1, %v19274_v29  ;;  %v17917_v53 = vadd.f32 %v13680_v34, %v13630_v31  ;;  %v7648_v58 = vpop.f32.mrf.mxu0  ;;  %v19277_v31 = vld [vmem:[#allocation77_spill] sm:$0xff] }
 0x493   : > { %13979 = vmatmul.mubr.msk.f32.gmra.mxu1 %vm198_vm1, %v17323_v37  ;;  %13931 = vmatprep.mubr.msk.f32.mxu0 %vm198_vm1, %v19275_v44  ;;  %v7972_v47 = vpop.f32.mrf.mxu1 }
 0x494   : > { %13981 = vmatprep.mubr.msk.f32.mxu1 %vm198_vm1, %v17338_v63  ;;  %v17923_v59 = vadd.f32 %v7972_v47, %v7648_v58  ;;  %v19278_v47 = vld [vmem:[#allocation93_spill] sm:$0xff] }
 0x495   : > { %v13633_v11 = vpop.f32.mrf.mxu0 }
 0x496   : > { %v13683_v26 = vpop.f32.mrf.mxu1  ;;  %13932 = vmatmul.mubr.msk.f32.gmra.mxu0 %vm198_vm1, %v19276_v51 }
 0x497   : > { %13982 = vmatmul.mubr.msk.f32.gmra.mxu1 %vm198_vm1, %v19264_v49  ;;  %v17929_v37 = vadd.f32 %v13683_v26, %v13633_v11  ;;  %13934 = vmatprep.mubr.msk.f32.mxu0 %vm198_vm1, %v19277_v31  ;;  %v7658_v63 = vpop.f32.mrf.mxu0  ;;  %v19279_v11 = vld [vmem:[#allocation17_spill] sm:$0xff] }
 0x498   : > { %13984 = vmatprep.mubr.msk.f32.mxu1 %vm198_vm1, %v17365_v56  ;;  %v7982_v34 = vpop.f32.mrf.mxu1 }
 0x499   : > { %v17935_v29 = vadd.f32 %v7982_v34, %v7658_v63  ;;  %v13636_v44 = vpop.f32.mrf.mxu0  ;;  %v19280_v34 = vld [vmem:[#allocation40_spill] sm:$0xff] }
 0x49a   : > { %v13686_v58 = vpop.f32.mrf.mxu1  ;;  %13935 = vmatmul.mubr.msk.f32.gmra.mxu0 %vm198_vm1, %v19278_v47 }
 0x49b   : > { %13985 = vmatmul.mubr.msk.f32.gmra.mxu1 %vm198_vm1, %v17378_v57  ;;  %v17941_v49 = vadd.f32 %v13686_v58, %v13636_v44  ;;  %13937 = vmatprep.mubr.msk.f32.mxu0 %vm198_vm1, %v19279_v11  ;;  %v7668_v56 = vpop.f32.mrf.mxu0  ;;  %v19281_v44 = vld [vmem:[#allocation35_spill] sm:$0xff] }
 0x49c   : > { %13987 = vmatprep.mubr.msk.f32.mxu1 %vm198_vm1, %v17389_v18  ;;  %v7992_v26 = vpop.f32.mrf.mxu1 }
 0x49d   : > { %v17947_v51 = vadd.f32 %v7992_v26, %v7668_v56  ;;  %v13639_v31 = vpop.f32.mrf.mxu0  ;;  %v19282_v26 = vld [vmem:[#allocation68_spill] sm:$0xff] }
 0x49e   : > { %v13689_v63 = vpop.f32.mrf.mxu1  ;;  %13938 = vmatmul.mubr.msk.f32.gmra.mxu0 %vm198_vm1, %v19280_v34 }
 0x49f   : > { %13988 = vmatmul.mubr.msk.f32.gmra.mxu1 %vm198_vm1, %v17401_v48  ;;  %v17953_v57 = vadd.f32 %v13689_v63, %v13639_v31  ;;  %13940 = vmatprep.mubr.msk.f32.mxu0 %vm198_vm1, %v19281_v44  ;;  %v7678_v18 = vpop.f32.mrf.mxu0  ;;  %v19283_v31 = vld [vmem:[#allocation24_spill] sm:$0xff] }
 0x4a0   : > { %13990 = vmatprep.mubr.msk.f32.mxu1 %vm198_vm1, %v17409_v14  ;;  %v8002_v58 = vpop.f32.mrf.mxu1 }
 0x4a1   : > { %v17959_v47 = vadd.f32 %v8002_v58, %v7678_v18  ;;  %v13642_v11 = vpop.f32.mrf.mxu0  ;;  %v19284_v58 = vld [vmem:[#allocation82_spill] sm:$0xff] }
 0x4a2   : > { %v13692_v56 = vpop.f32.mrf.mxu1  ;;  %13941 = vmatmul.mubr.msk.f32.gmra.mxu0 %vm198_vm1, %v19282_v26 }
 0x4a3   : > { %13991 = vmatmul.mubr.msk.f32.gmra.mxu1 %vm198_vm1, %v17420_v15  ;;  %v17965_v48 = vadd.f32 %v13692_v56, %v13642_v11  ;;  %13943 = vmatprep.mubr.msk.f32.mxu0 %vm198_vm1, %v19283_v31  ;;  %v7688_v14 = vpop.f32.mrf.mxu0  ;;  %v19285_v11 = vld [vmem:[#allocation96_spill] sm:$0xff] }
 0x4a4   : > { %13993 = vmatprep.mubr.msk.f32.mxu1 %vm198_vm1, %v17427_v32  ;;  %v8012_v63 = vpop.f32.mrf.mxu1 }
 0x4a5   : > { %v17971_v34 = vadd.f32 %v8012_v63, %v7688_v14  ;;  %v13645_v44 = vpop.f32.mrf.mxu0  ;;  %v19286_v63 = vld [vmem:[#allocation65_spill] sm:$0xff] }
 0x4a6   : > { %v13695_v18 = vpop.f32.mrf.mxu1  ;;  %13944 = vmatmul.mubr.msk.f32.gmra.mxu0 %vm198_vm1, %v19284_v58 }
 0x4a7   : > { %13994 = vmatmul.mubr.msk.f32.gmra.mxu1 %vm198_vm1, %v17438_v50  ;;  %v17977_v15 = vadd.f32 %v13695_v18, %v13645_v44  ;;  %13946 = vmatprep.mubr.msk.f32.mxu0 %vm198_vm1, %v19285_v11  ;;  %v7698_v32 = vpop.f32.mrf.mxu0  ;;  %v19287_v44 = vld [vmem:[#allocation6_spill] sm:$0xff] }
 0x4a8   : > { %13996 = vmatprep.mubr.msk.f32.mxu1 %vm198_vm1, %v17445_v35  ;;  %v8022_v56 = vpop.f32.mrf.mxu1 }
 0x4a9   : > { %v17983_v26 = vadd.f32 %v8022_v56, %v7698_v32  ;;  %v19288_v56 = vld [vmem:[#allocation84_spill] sm:$0xff] }
 0x4aa   : > { %v13648_v31 = vpop.f32.mrf.mxu0  ;;  %13947 = vmatmul.mubr.msk.f32.gmra.mxu0 %vm198_vm1, %v19286_v63  ;;  %v10051_v63 = vld [vmem:[#allocation2 + $0x228] sm:$0xff] }
 0x4ab   : > { %v13698_v14 = vpop.f32.mrf.mxu1  ;;  %13997 = vmatmul.mubr.msk.f32.gmra.mxu1 %vm198_vm1, %v17456_v2  ;;  %13949 = vmatprep.mubr.msk.f32.mxu0 %vm198_vm1, %v19287_v44 }
 0x4ac   : > { %v17989_v50 = vadd.f32 %v13698_v14, %v13648_v31  ;;  %13999 = vmatprep.mubr.msk.f32.mxu1 %vm198_vm1, %v17462_v24  ;;  %v7708_v35 = vpop.f32.mrf.mxu0  ;;  %v9661_v14 = vld [vmem:[#allocation2 + $0x227] sm:$0xff] }
 0x4ad   : > { %v8032_v18 = vpop.f32.mrf.mxu1 }
 0x4ae   : > { %v17995_v58 = vadd.f32 %v8032_v18, %v7708_v35  ;;  %v13651_v11 = vpop.f32.mrf.mxu0  ;;  %13950 = vmatmul.mubr.msk.f32.gmra.mxu0 %vm198_vm1, %v17466_v27 }
 0x4af   : > { %v13701_v32 = vpop.f32.mrf.mxu1  ;;  %14000 = vmatmul.mubr.msk.f32.gmra.mxu1 %vm198_vm1, %v17472_v33  ;;  %13952 = vmatprep.mubr.msk.f32.mxu0 %vm198_vm1, %v19288_v56  ;;  %v9662_v33 = vld [vmem:[#allocation2 + $0x22f] sm:$0xff] }
 0x4b0   : > { %v18001_v2 = vadd.f32 %v13701_v32, %v13651_v11  ;;  %14002 = vmatprep.mubr.msk.f32.mxu1 %vm198_vm1, %v17819_v42  ;;  %v7718_v24 = vpop.f32.mrf.mxu0  ;;  %v10052_v42 = vld [vmem:[#allocation2 + $0x230] sm:$0xff] }
 0x4b1   : > { %v8042_v31 = vpop.f32.mrf.mxu1 }
 0x4b2   : > { %v18007_v44 = vadd.f32 %v8042_v31, %v7718_v24  ;;  %v13654_v35 = vpop.f32.mrf.mxu0  ;;  %13953 = vmatmul.mubr.msk.f32.gmra.mxu0 %vm198_vm1, %v17682_v41 }
 0x4b3   : > { %v13704_v18 = vpop.f32.mrf.mxu1  ;;  %14003 = vmatmul.mubr.msk.f32.gmra.mxu1 %vm198_vm1, %v17827_v7  ;;  %13955 = vmatprep.mubr.msk.f32.mxu0 %vm198_vm1, %v9661_v14 }
 0x4b4   : > { %v18013_v27 = vadd.f32 %v13704_v18, %v13654_v35  ;;  %14005 = vmatprep.mubr.msk.f32.mxu1 %vm198_vm1, %v10051_v63  ;;  %v7728_v11 = vpop.f32.mrf.mxu0 }
 0x4b5   : > { %v8052_v32 = vpop.f32.mrf.mxu1 }
 0x4b6   : > { %v18017_v56 = vadd.f32 %v8052_v32, %v7728_v11  ;;  %v13657_v24 = vpop.f32.mrf.mxu0  ;;  %13956 = vmatmul.mubr.msk.f32.gmra.mxu0 %vm198_vm1, %v9662_v33  ;;  %v7913_v11 = vadd.f32 %v17849_v62, %v17847_v39  ;;  %v19290_v33 = vld [vmem:[#allocation19_spill] sm:$0xff] }
 0x4b7   : > { %v13707_v31 = vpop.f32.mrf.mxu1  ;;  %14006 = vmatmul.mubr.msk.f32.gmra.mxu1 %vm198_vm1, %v10052_v42  ;;  %14010 = vmatprep.mubr.msk.f32.mxu0 %vm198_vm1, %v17516_v3 }
 0x4b8   : > { %v18021_v41 = vadd.f32 %v13707_v31, %v13657_v24  ;;  %v7738_v7 = vpop.f32.mrf.mxu0 }
 0x4b9   : > { %v8062_v14 = vpop.f32.mrf.mxu1 }
 0x4ba   : > { %v18025_v35 = vadd.f32 %v8062_v14, %v7738_v7  ;;  %v13712_v63 = vpop.f32.mrf.mxu0  ;;  %14011 = vmatmul.mubr.msk.f32.vlgmr.msra.gmra.mxu0 %vm198_vm1, %v17522_v6 }
 0x4bb   : > { %v13762_v18 = vpop.f32.mrf.mxu1  ;;  %v8430_v32 = vadd.f32 %v13712_v63, %v19290_v33  ;;  %14013 = vmatprep.mubr.msk.f32.mxu0 %vm198_vm1, %v17528_v45 }
 0x4bc   : > { %19289 = vst [vmem:[#allocation48_spill] sm:$0xff] %v18025_v35  ;;  %v8270_v42 = vpop.f32.mrf.mxu0 }
 0x4bd   : > { %v8660_v24 = vpop.f32.mrf.mxu1  ;;  %v18034_v3 = vadd.f32 %v13762_v18, %v8430_v32  ;;  %v8429_v31 = vadd.f32 %v8270_v42, %v7913_v11 }
 0x4be   : > { %v13715_v7 = vpop.f32.mrf.mxu0  ;;  %14014 = vmatmul.mubr.msk.f32.gmra.mxu0 %vm198_vm1, %v17534_v22 }
 0x4bf   : > { %v13765_v14 = vpop.f32.mrf.mxu1  ;;  %v18038_v35 = vadd.f32 %v8660_v24, %v8429_v31  ;;  %v8432_v6 = vadd.f32 %v13715_v7, %v17857_v55  ;;  %14016 = vmatprep.mubr.msk.f32.mxu0 %vm198_vm1, %v17540_v25 }
 0x4c0   : > { %v8280_v39 = vpop.f32.mrf.mxu0 }
 0x4c1   : > { %v8670_v62 = vpop.f32.mrf.mxu1  ;;  %v18043_v45 = vadd.f32 %v13765_v14, %v8432_v6  ;;  %v8431_v63 = vadd.f32 %v8280_v39, %v17863_v21 }
 0x4c2   : > { %v13718_v18 = vpop.f32.mrf.mxu0  ;;  %14017 = vmatmul.mubr.msk.f32.gmra.mxu0 %vm198_vm1, %v17546_v19 }
 0x4c3   : > { %v13768_v11 = vpop.f32.mrf.mxu1  ;;  %v18048_v33 = vadd.f32 %v8670_v62, %v8431_v63  ;;  %v8434_v22 = vadd.f32 %v13718_v18, %v17869_v54  ;;  %14019 = vmatprep.mubr.msk.f32.mxu0 %vm198_vm1, %v17552_v12 }
 0x4c4   : > { %v8290_v55 = vpop.f32.mrf.mxu0 }
 0x4c5   : > { %v8680_v25 = vpop.f32.mrf.mxu1  ;;  %v18053_v32 = vadd.f32 %v13768_v11, %v8434_v22  ;;  %v8433_v42 = vadd.f32 %v8290_v55, %v17875_v60 }
 0x4c6   : > { %v13721_v24 = vpop.f32.mrf.mxu0  ;;  %14020 = vmatmul.mubr.msk.f32.gmra.mxu0 %vm198_vm1, %v17558_v8 }
 0x4c7   : > { %v13771_v21 = vpop.f32.mrf.mxu1  ;;  %v18058_v31 = vadd.f32 %v8680_v25, %v8433_v42  ;;  %v8436_v19 = vadd.f32 %v13721_v24, %v17881_v4  ;;  %14022 = vmatprep.mubr.msk.f32.mxu0 %vm198_vm1, %v17564_v46 }
 0x4c8   : > { %v8300_v54 = vpop.f32.mrf.mxu0 }
 0x4c9   : > { %v8690_v12 = vpop.f32.mrf.mxu1  ;;  %v18063_v7 = vadd.f32 %v13771_v21, %v8436_v19  ;;  %v8435_v14 = vadd.f32 %v8300_v54, %v17887_v17 }
 0x4ca   : > { %v13724_v6 = vpop.f32.mrf.mxu0  ;;  %14023 = vmatmul.mubr.msk.f32.gmra.mxu0 %vm198_vm1, %v17570_v9 }
 0x4cb   : > { %v13774_v60 = vpop.f32.mrf.mxu1  ;;  %v18068_v39 = vadd.f32 %v8690_v12, %v8435_v14  ;;  %v8438_v8 = vadd.f32 %v13724_v6, %v17893_v13  ;;  %14025 = vmatprep.mubr.msk.f32.mxu0 %vm198_vm1, %v17576_v23 }
 0x4cc   : > { %v8310_v4 = vpop.f32.mrf.mxu0 }
 0x4cd   : > { %v8700_v46 = vpop.f32.mrf.mxu1  ;;  %v18073_v62 = vadd.f32 %v13774_v60, %v8438_v8  ;;  %v8437_v63 = vadd.f32 %v8310_v4, %v17899_v61 }
 0x4ce   : > { %v13727_v18 = vpop.f32.mrf.mxu0  ;;  %14026 = vmatmul.mubr.msk.f32.gmra.mxu0 %vm198_vm1, %v17582_v0 }
 0x4cf   : > { %v13777_v17 = vpop.f32.mrf.mxu1  ;;  %v18078_v11 = vadd.f32 %v8700_v46, %v8437_v63  ;;  %v8440_v9 = vadd.f32 %v13727_v18, %v17905_v10  ;;  %14028 = vmatprep.mubr.msk.f32.mxu0 %vm198_vm1, %v17588_v38  ;;  %v10430_v46 = vld [vmem:[#allocation2 + $0x171] sm:$0xff] }
 0x4d0   : > { %v8320_v13 = vpop.f32.mrf.mxu0 }
 0x4d1   : > { %v8710_v23 = vpop.f32.mrf.mxu1  ;;  %v18083_v22 = vadd.f32 %v13777_v17, %v8440_v9  ;;  %v8439_v55 = vadd.f32 %v8320_v13, %v17911_v5  ;;  %v10432_v13 = vld [vmem:[#allocation2 + $0x191] sm:$0xff] }
 0x4d2   : > { %v13730_v25 = vpop.f32.mrf.mxu0  ;;  %14029 = vmatmul.mubr.msk.f32.gmra.mxu0 %vm198_vm1, %v17594_v43 }
 0x4d3   : > { %v13780_v61 = vpop.f32.mrf.mxu1  ;;  %v18088_v42 = vadd.f32 %v8710_v23, %v8439_v55  ;;  %v8442_v0 = vadd.f32 %v13730_v25, %v17917_v53  ;;  %14031 = vmatprep.mubr.msk.f32.mxu0 %vm198_vm1, %v17600_v52  ;;  %v10433_v55 = vld [vmem:[#allocation2 + $0x1a9] sm:$0xff] }
 0x4d4   : > { %v8330_v10 = vpop.f32.mrf.mxu0 }
 0x4d5   : > { %v8720_v38 = vpop.f32.mrf.mxu1  ;;  %v18093_v24 = vadd.f32 %v13780_v61, %v8442_v0  ;;  %v8441_v21 = vadd.f32 %v8330_v10, %v17923_v59 }
 0x4d6   : > { %v13733_v19 = vpop.f32.mrf.mxu0  ;;  %14032 = vmatmul.mubr.msk.f32.gmra.mxu0 %vm198_vm1, %v17606_v30 }
 0x4d7   : > { %v13783_v5 = vpop.f32.mrf.mxu1  ;;  %v18098_v54 = vadd.f32 %v8720_v38, %v8441_v21  ;;  %v8444_v43 = vadd.f32 %v13733_v19, %v17929_v37  ;;  %14034 = vmatprep.mubr.msk.f32.mxu0 %vm198_vm1, %v17612_v20  ;;  %v10434_v38 = vld [vmem:[#allocation2 + $0x1b1] sm:$0xff]  ;;  %v10435_v19 = vld [vmem:[#allocation2 + $0x1c9] sm:$0xff] }
 0x4d8   : > { %v8340_v53 = vpop.f32.mrf.mxu0 }
 0x4d9   : > { %v8730_v52 = vpop.f32.mrf.mxu1  ;;  %v18103_v12 = vadd.f32 %v13783_v5, %v8444_v43  ;;  %v8443_v14 = vadd.f32 %v8340_v53, %v17935_v29 }
 0x4da   : > { %v13736_v6 = vpop.f32.mrf.mxu0  ;;  %14035 = vmatmul.mubr.msk.f32.gmra.mxu0 %vm198_vm1, %v17618_v1 }
 0x4db   : > { %v13786_v59 = vpop.f32.mrf.mxu1  ;;  %v18108_v60 = vadd.f32 %v8730_v52, %v8443_v14  ;;  %v8446_v30 = vadd.f32 %v13736_v6, %v17941_v49  ;;  %14037 = vmatprep.mubr.msk.f32.mxu0 %vm198_vm1, %v17624_v16  ;;  %v10436_v6 = vld [vmem:[#allocation2 + $0x1d1] sm:$0xff] }
 0x4dc   : > { %v8350_v37 = vpop.f32.mrf.mxu0 }
 0x4dd   : > { %v8740_v20 = vpop.f32.mrf.mxu1  ;;  %v18113_v8 = vadd.f32 %v13786_v59, %v8446_v30  ;;  %v8445_v4 = vadd.f32 %v8350_v37, %v17947_v51  ;;  %v10437_v30 = vld [vmem:[#allocation2 + $0x1e9] sm:$0xff] }
 0x4de   : > { %v13739_v29 = vpop.f32.mrf.mxu0  ;;  %14038 = vmatmul.mubr.msk.f32.gmra.mxu0 %vm198_vm1, %v10430_v46 }
 0x4df   : > { %v13789_v63 = vpop.f32.mrf.mxu1  ;;  %v18117_v18 = vadd.f32 %v8740_v20, %v8445_v4  ;;  %v8448_v1 = vadd.f32 %v13739_v29, %v17953_v57  ;;  %14040 = vmatprep.mubr.msk.f32.mxu0 %vm198_vm1, %v17636_v28 }
 0x4e0   : > { %v8360_v49 = vpop.f32.mrf.mxu0 }
 0x4e1   : > { %v8750_v16 = vpop.f32.mrf.mxu1  ;;  %v18122_v17 = vadd.f32 %v13789_v63, %v8448_v1  ;;  %v8447_v9 = vadd.f32 %v8360_v49, %v17959_v47  ;;  %v10438_v63 = vld [vmem:[#allocation2 + $0x1f1] sm:$0xff] }
 0x4e2   : > { %v13742_v51 = vpop.f32.mrf.mxu0  ;;  %14041 = vmatmul.mubr.msk.f32.gmra.mxu0 %vm198_vm1, %v10432_v13  ;;  %v10441_v13 = vld [vmem:[#allocation2 + $0x229] sm:$0xff] }
 0x4e3   : > { %v13792_v23 = vpop.f32.mrf.mxu1  ;;  %v18126_v25 = vadd.f32 %v8750_v16, %v8447_v9  ;;  %v8450_v61 = vadd.f32 %v13742_v51, %v17965_v48  ;;  %14043 = vmatprep.mubr.msk.f32.mxu0 %vm198_vm1, %v10433_v55 }
 0x4e4   : > { %v8370_v57 = vpop.f32.mrf.mxu0 }
 0x4e5   : > { %v8760_v28 = vpop.f32.mrf.mxu1  ;;  %v18130_v0 = vadd.f32 %v13792_v23, %v8450_v61  ;;  %v8449_v10 = vadd.f32 %v8370_v57, %v17971_v34 }
 0x4e6   : > { %v13745_v47 = vpop.f32.mrf.mxu0  ;;  %14044 = vmatmul.mubr.msk.f32.gmra.mxu0 %vm198_vm1, %v10434_v38 }
 0x4e7   : > { %v13795_v21 = vpop.f32.mrf.mxu1  ;;  %v18134_v5 = vadd.f32 %v8760_v28, %v8449_v10  ;;  %v8452_v43 = vadd.f32 %v13745_v47, %v17977_v15  ;;  %14046 = vmatprep.mubr.msk.f32.mxu0 %vm198_vm1, %v10435_v19 }
 0x4e8   : > { %v8380_v48 = vpop.f32.mrf.mxu0 }
 0x4e9   : > { %v8770_v53 = vpop.f32.mrf.mxu1  ;;  %v18138_v52 = vadd.f32 %v13795_v21, %v8452_v43  ;;  %v8451_v14 = vadd.f32 %v8380_v48, %v17983_v26  ;;  %v19291_v48 = vld [vmem:[#allocation48_spill] sm:$0xff] }
 0x4ea   : > { %v13748_v34 = vpop.f32.mrf.mxu0  ;;  %14047 = vmatmul.mubr.msk.f32.gmra.mxu0 %vm198_vm1, %v10436_v6 }
 0x4eb   : > { %v13798_v59 = vpop.f32.mrf.mxu1  ;;  %v18142_v37 = vadd.f32 %v8770_v53, %v8451_v14  ;;  %v8454_v20 = vadd.f32 %v13748_v34, %v17989_v50  ;;  %14049 = vmatprep.mubr.msk.f32.mxu0 %vm198_vm1, %v10437_v30 }
 0x4ec   : > { %v8390_v15 = vpop.f32.mrf.mxu0 }
 0x4ed   : > { %v8780_v4 = vpop.f32.mrf.mxu1  ;;  %v18146_v46 = vadd.f32 %v13798_v59, %v8454_v20  ;;  %v8453_v29 = vadd.f32 %v8390_v15, %v17995_v58 }
 0x4ee   : > { %v13751_v26 = vpop.f32.mrf.mxu0  ;;  %14050 = vmatmul.mubr.msk.f32.gmra.mxu0 %vm198_vm1, %v10438_v63 }
 0x4ef   : > { %v13801_v1 = vpop.f32.mrf.mxu1  ;;  %v18150_v49 = vadd.f32 %v8780_v4, %v8453_v29  ;;  %v8456_v16 = vadd.f32 %v13751_v26, %v18001_v2  ;;  %14052 = vmatprep.mubr.msk.f32.mxu0 %vm198_vm1, %v17821_v36  ;;  %v10442_v2 = vld [vmem:[#allocation2 + $0x231] sm:$0xff] }
 0x4f0   : > { %v8400_v50 = vpop.f32.mrf.mxu0 }
 0x4f1   : > { %v8790_v9 = vpop.f32.mrf.mxu1  ;;  %v18155_v51 = vadd.f32 %v13801_v1, %v8456_v16  ;;  %v8455_v23 = vadd.f32 %v8400_v50, %v18007_v44 }
 0x4f2   : > { %v13754_v58 = vpop.f32.mrf.mxu0  ;;  %14053 = vmatmul.mubr.msk.f32.gmra.mxu0 %vm198_vm1, %v17829_v40 }
 0x4f3   : > { %v13804_v55 = vpop.f32.mrf.mxu1  ;;  %v18160_v61 = vadd.f32 %v8790_v9, %v8455_v23  ;;  %v8458_v57 = vadd.f32 %v13754_v58, %v18013_v27  ;;  %14055 = vmatprep.mubr.msk.f32.mxu0 %vm198_vm1, %v10441_v13 }
 0x4f4   : > { %v8410_v36 = vpop.f32.mrf.mxu0 }
 0x4f5   : > { %v8800_v28 = vpop.f32.mrf.mxu1  ;;  %v18164_v10 = vadd.f32 %v13804_v55, %v8458_v57  ;;  %v8457_v38 = vadd.f32 %v8410_v36, %v18017_v56 }
 0x4f6   : > { %v13757_v47 = vpop.f32.mrf.mxu0  ;;  %14056 = vmatmul.mubr.msk.f32.gmra.mxu0 %vm198_vm1, %v10442_v2 }
 0x4f7   : > { %v13807_v44 = vpop.f32.mrf.mxu1  ;;  %v18168_v21 = vadd.f32 %v8800_v28, %v8457_v38  ;;  %v8460_v40 = vadd.f32 %v13757_v47, %v18021_v41 }
 0x4f8   : > { %v8420_v19 = vpop.f32.mrf.mxu0 }
 0x4f9   : > { %v8810_v43 = vpop.f32.mrf.mxu1  ;;  %v18171_v27 = vadd.f32 %v13807_v44, %v8460_v40  ;;  %v8459_v53 = vadd.f32 %v8420_v19, %v19291_v48 }
 0x4fa   : > { %v13812_v14 = vpop.f32.mrf.mxu0 }
 0x4fb   : > { %v18174_v6 = vpop.f32.mrf.mxu1  ;;  %v18176_v34 = vadd.f32 %v8810_v43, %v8459_v53  ;;  %v18179_v56 = vadd.f32 %v13812_v14, %v18034_v3 }
 0x4fc   : > { %v9050_v59 = vpop.f32.mrf.mxu0 }
 0x4fd   : > { %v18181_v30 = vpop.f32.mrf.mxu1  ;;  %v18184_v20 = vadd.f32 %v9050_v59, %v18038_v35 }
 0x4fe   : > { %v13815_v41 = vpop.f32.mrf.mxu0 }
 0x4ff   : > { %v18186_v15 = vpop.f32.mrf.mxu1  ;;  %v18189_v4 = vadd.f32 %v13815_v41, %v18043_v45 }
 0x500   : > { %v9060_v29 = vpop.f32.mrf.mxu0 }
 0x501   : > { %v18191_v63 = vpop.f32.mrf.mxu1  ;;  %v18194_v26 = vadd.f32 %v9060_v29, %v18048_v33 }
 0x502   : > { %v13818_v3 = vpop.f32.mrf.mxu0 }
 0x503   : > { %v18196_v1 = vpop.f32.mrf.mxu1  ;;  %v18199_v16 = vadd.f32 %v13818_v3, %v18053_v32 }
 0x504   : > { %v9070_v35 = vpop.f32.mrf.mxu0 }
 0x505   : > { %v18201_v50 = vpop.f32.mrf.mxu1  ;;  %v18204_v9 = vadd.f32 %v9070_v35, %v18058_v31 }
 0x506   : > { %v13821_v45 = vpop.f32.mrf.mxu0 }
 0x507   : > { %v18206_v13 = vpop.f32.mrf.mxu1  ;;  %v18209_v23 = vadd.f32 %v13821_v45, %v18063_v7 }
 0x508   : > { %v9080_v33 = vpop.f32.mrf.mxu0 }
 0x509   : > { %v18211_v58 = vpop.f32.mrf.mxu1  ;;  %v18214_v55 = vadd.f32 %v9080_v33, %v18068_v39 }
 0x50a   : > { %v13824_v32 = vpop.f32.mrf.mxu0 }
 0x50b   : > { %v18216_v57 = vpop.f32.mrf.mxu1  ;;  %v18219_v2 = vadd.f32 %v13824_v32, %v18073_v62 }
 0x50c   : > { %v9090_v31 = vpop.f32.mrf.mxu0 }
 0x50d   : > { %v18221_v36 = vpop.f32.mrf.mxu1  ;;  %v18224_v28 = vadd.f32 %v9090_v31, %v18078_v11 }
 0x50e   : > { %v13827_v7 = vpop.f32.mrf.mxu0 }
 0x50f   : > { %v18226_v38 = vpop.f32.mrf.mxu1  ;;  %v18229_v47 = vadd.f32 %v13827_v7, %v18083_v22 }
 0x510   : > { %v9100_v39 = vpop.f32.mrf.mxu0 }
 0x511   : > { %v18231_v44 = vpop.f32.mrf.mxu1  ;;  %v18234_v40 = vadd.f32 %v9100_v39, %v18088_v42 }
 0x512   : > { %v13830_v62 = vpop.f32.mrf.mxu0 }
 0x513   : > { %v18236_v19 = vpop.f32.mrf.mxu1  ;;  %v18239_v43 = vadd.f32 %v13830_v62, %v18093_v24 }
 0x514   : > { %v9110_v11 = vpop.f32.mrf.mxu0 }
 0x515   : > { %v18241_v48 = vpop.f32.mrf.mxu1  ;;  %v18244_v53 = vadd.f32 %v9110_v11, %v18098_v54 }
 0x516   : > { %v13833_v22 = vpop.f32.mrf.mxu0 }
 0x517   : > { %v18246_v14 = vpop.f32.mrf.mxu1  ;;  %v18249_v59 = vadd.f32 %v13833_v22, %v18103_v12 }
 0x518   : > { %19292 = vst [vmem:[#allocation30_spill] sm:$0xff] %v18246_v14  ;;  %v9120_v42 = vpop.f32.mrf.mxu0 }
 0x519   : > { %v18251_v41 = vpop.f32.mrf.mxu1  ;;  %v18254_v29 = vadd.f32 %v9120_v42, %v18108_v60 }
 0x51a   : > { %19293 = vst [vmem:[#allocation39_spill] sm:$0xff] %v18251_v41  ;;  %v13836_v24 = vpop.f32.mrf.mxu0 }
 0x51b   : > { %19294 = vst [vmem:[#allocation75_spill] sm:$0xff] %v18254_v29  ;;  %v18256_v3 = vpop.f32.mrf.mxu1  ;;  %v18259_v35 = vadd.f32 %v13836_v24, %v18113_v8 }
 0x51c   : > { %19295 = vst [vmem:[#allocation49_spill] sm:$0xff] %v18256_v3  ;;  %v9130_v54 = vpop.f32.mrf.mxu0 }
 0x51d   : > { %19296 = vst [vmem:[#allocation44_spill] sm:$0xff] %v18259_v35  ;;  %v18261_v45 = vpop.f32.mrf.mxu1  ;;  %v18264_v33 = vadd.f32 %v9130_v54, %v18117_v18 }
 0x51e   : > { %19297 = vst [vmem:[#allocation34_spill] sm:$0xff] %v18261_v45  ;;  %v13839_v12 = vpop.f32.mrf.mxu0 }
 0x51f   : > { %19298 = vst [vmem:[#allocation62_spill] sm:$0xff] %v18264_v33  ;;  %v18266_v32 = vpop.f32.mrf.mxu1  ;;  %v18269_v31 = vadd.f32 %v13839_v12, %v18122_v17 }
 0x520   : > { %19299 = vst [vmem:[#allocation69_spill] sm:$0xff] %v18266_v32  ;;  %v9140_v60 = vpop.f32.mrf.mxu0 }
 0x521   : > { %19300 = vst [vmem:[#allocation79_spill] sm:$0xff] %v18269_v31  ;;  %v18271_v7 = vpop.f32.mrf.mxu1  ;;  %v18274_v39 = vadd.f32 %v9140_v60, %v18126_v25 }
 0x522   : > { %19301 = vst [vmem:[#allocation47_spill] sm:$0xff] %v18271_v7  ;;  %v13842_v8 = vpop.f32.mrf.mxu0 }
 0x523   : > { %19302 = vst [vmem:[#allocation60_spill] sm:$0xff] %v18274_v39  ;;  %v18276_v62 = vpop.f32.mrf.mxu1  ;;  %v18279_v11 = vadd.f32 %v13842_v8, %v18130_v0 }
 0x524   : > { %19303 = vst [vmem:[#allocation20_spill] sm:$0xff] %v18276_v62  ;;  %v9150_v18 = vpop.f32.mrf.mxu0 }
 0x525   : > { %19304 = vst [vmem:[#allocation8_spill] sm:$0xff] %v18279_v11  ;;  %v18281_v22 = vpop.f32.mrf.mxu1  ;;  %v18284_v42 = vadd.f32 %v9150_v18, %v18134_v5 }
 0x526   : > { %19305 = vst [vmem:[#allocation81_spill] sm:$0xff] %v18281_v22  ;;  %v13845_v17 = vpop.f32.mrf.mxu0 }
 0x527   : > { %19306 = vst [vmem:[#allocation87_spill] sm:$0xff] %v18284_v42  ;;  %v18286_v24 = vpop.f32.mrf.mxu1  ;;  %v18289_v54 = vadd.f32 %v13845_v17, %v18138_v52 }
 0x528   : > { %19307 = vst [vmem:[#allocation89_spill] sm:$0xff] %v18286_v24  ;;  %v9160_v25 = vpop.f32.mrf.mxu0 }
 0x529   : > { %19308 = vst [vmem:[#allocation32_spill] sm:$0xff] %v18289_v54  ;;  %v18291_v12 = vpop.f32.mrf.mxu1  ;;  %v18294_v60 = vadd.f32 %v9160_v25, %v18142_v37 }
 0x52a   : > { %19309 = vst [vmem:[#allocation37_spill] sm:$0xff] %v18291_v12  ;;  %v13848_v0 = vpop.f32.mrf.mxu0 }
 0x52b   : > { %19310 = vst [vmem:[#allocation83_spill] sm:$0xff] %v18294_v60  ;;  %v18296_v8 = vpop.f32.mrf.mxu1  ;;  %v18299_v22 = vadd.f32 %v13848_v0, %v18146_v46 }
 0x52c   : > { %19311 = vst [vmem:[#allocation86_spill] sm:$0xff] %v18296_v8  ;;  %v9170_v5 = vpop.f32.mrf.mxu0 }
 0x52d   : > { %19312 = vst [vmem:[#allocation91_spill] sm:$0xff] %v18299_v22  ;;  %v18301_v18 = vpop.f32.mrf.mxu1  ;;  %v18304_v24 = vadd.f32 %v9170_v5, %v18150_v49 }
 0x52e   : > { %19313 = vst [vmem:[#allocation23_spill] sm:$0xff] %v18301_v18  ;;  %v13851_v52 = vpop.f32.mrf.mxu0 }
 0x52f   : > { %19314 = vst [vmem:[#allocation70_spill] sm:$0xff] %v18304_v24  ;;  %v18306_v17 = vpop.f32.mrf.mxu1  ;;  %v18309_v12 = vadd.f32 %v13851_v52, %v18155_v51 }
 0x530   : > { %19315 = vst [vmem:[#allocation85_spill] sm:$0xff] %v18306_v17  ;;  %v9180_v37 = vpop.f32.mrf.mxu0 }
 0x531   : > { %19316 = vst [vmem:[#allocation50_spill] sm:$0xff] %v18309_v12  ;;  %v18311_v25 = vpop.f32.mrf.mxu1  ;;  %v18314_v8 = vadd.f32 %v9180_v37, %v18160_v61 }
 0x532   : > { %19317 = vst [vmem:[#allocation92_spill] sm:$0xff] %v18311_v25  ;;  %v13854_v46 = vpop.f32.mrf.mxu0 }
 0x533   : > { %19318 = vst [vmem:[#allocation36_spill] sm:$0xff] %v18314_v8  ;;  %v18316_v0 = vpop.f32.mrf.mxu1  ;;  %v18319_v18 = vadd.f32 %v13854_v46, %v18164_v10 }
 0x534   : > { %19319 = vst [vmem:[#allocation71_spill] sm:$0xff] %v18316_v0  ;;  %v9190_v49 = vpop.f32.mrf.mxu0 }
 0x535   : > { %19320 = vst [vmem:[#allocation88_spill] sm:$0xff] %v18319_v18  ;;  %v18321_v5 = vpop.f32.mrf.mxu1  ;;  %v18324_v17 = vadd.f32 %v9190_v49, %v18168_v21 }
 0x536   : > { %19321 = vst [vmem:[#allocation28_spill] sm:$0xff] %v18321_v5  ;;  %v13857_v51 = vpop.f32.mrf.mxu0 }
 0x537   : > { %19322 = vst [vmem:[#allocation94_spill] sm:$0xff] %v18324_v17  ;;  %v18326_v52 = vpop.f32.mrf.mxu1  ;;  %v18329_v25 = vadd.f32 %v13857_v51, %v18171_v27 }
 0x538   : > { %19323 = vst [vmem:[#allocation38_spill] sm:$0xff] %v18326_v52  ;;  %v9200_v61 = vpop.f32.mrf.mxu0 }
 0x539   : > { %19324 = vst [vmem:[#allocation43_spill] sm:$0xff] %v18329_v25  ;;  %v18331_v37 = vpop.f32.mrf.mxu1  ;;  %v18334_v0 = vadd.f32 %v9200_v61, %v18176_v34 }
 0x53a   : > { %19325 = vst [vmem:[#allocation54_spill] sm:$0xff] %v18331_v37  ;;  %v13912_v10 = vpop.f32.mrf.mxu0 }
 0x53b   : > { %19326 = vst [vmem:[#allocation51_spill] sm:$0xff] %v18334_v0  ;;  %v13962_v46 = vpop.f32.mrf.mxu1 }
 0x53c   : > { %v9830_v18 = vpop.f32.mrf.mxu0 }
 0x53d   : > { %v10220_v8 = vpop.f32.mrf.mxu1 }
 0x53e   : > { %v13915_v5 = vpop.f32.mrf.mxu0 }
 0x53f   : > { %v13965_v21 = vpop.f32.mrf.mxu1 }
 0x540   : > { %v9840_v12 = vpop.f32.mrf.mxu0 }
 0x541   : > { %v18338_v52 = vpop.f32.mrf.mxu1 }
 0x542   : > { %v13918_v49 = vpop.f32.mrf.mxu0 }
 0x543   : > { %v18344_v37 = vpop.f32.mrf.mxu1 }
 0x544   : > { %v18336_v17 = vpop.f32.mrf.mxu0 }
 0x545   : > { %v18350_v0 = vpop.f32.mrf.mxu1 }
 0x546   : > { %v18340_v27 = vpop.f32.mrf.mxu0 }
 0x547   : > { %v18356_v22 = vpop.f32.mrf.mxu1 }
 0x548   : > { %v18342_v51 = vpop.f32.mrf.mxu0 }
 0x549   : > { %v18362_v42 = vpop.f32.mrf.mxu1 }
 0x54a   : > { %v18346_v34 = vpop.f32.mrf.mxu0 }
 0x54b   : > { %v18368_v7 = vpop.f32.mrf.mxu1 }
 0x54c   : > { %v18348_v61 = vpop.f32.mrf.mxu0 }
 0x54d   : > { %v18374_v31 = vpop.f32.mrf.mxu1 }
 0x54e   : > { %v18352_v25 = vpop.f32.mrf.mxu0 }
 0x54f   : > { %v18380_v3 = vpop.f32.mrf.mxu1 }
 0x550   : > { %v18354_v24 = vpop.f32.mrf.mxu0 }
 0x552   : > { %v18358_v60 = vpop.f32.mrf.mxu0 }
 0x554   : > { %v18360_v54 = vpop.f32.mrf.mxu0 }
 0x555   : > { %19327 = vst [vmem:[#allocation95_spill] sm:$0xff] %v18360_v54 }
 0x556   : > { %v18364_v62 = vpop.f32.mrf.mxu0 }
 0x557   : > { %19328 = vst [vmem:[#allocation64_spill] sm:$0xff] %v18364_v62  ;;  %v18386_v62 = vpop.f32.mrf.mxu1 }
 0x558   : > { %v18366_v11 = vpop.f32.mrf.mxu0 }
 0x559   : > { %19329 = vst [vmem:[#allocation18_spill] sm:$0xff] %v18366_v11 }
 0x55a   : > { %v18370_v39 = vpop.f32.mrf.mxu0 }
 0x55b   : > { %19330 = vst [vmem:[#allocation4_spill] sm:$0xff] %v18370_v39  ;;  %v18392_v39 = vpop.f32.mrf.mxu1 }
 0x55c   : > { %v18372_v32 = vpop.f32.mrf.mxu0  ;;  %19338 = vst [vmem:[#allocation7_spill] sm:$0xff] %v18392_v39 }
 0x55d   : > { %19331 = vst [vmem:[#allocation52_spill] sm:$0xff] %v18372_v32 }
 0x55e   : > { %v18376_v45 = vpop.f32.mrf.mxu0 }
 0x55f   : > { %19332 = vst [vmem:[#allocation97_spill] sm:$0xff] %v18376_v45  ;;  %v18398_v45 = vpop.f32.mrf.mxu1 }
 0x560   : > { %v18378_v33 = vpop.f32.mrf.mxu0  ;;  %19341 = vst [vmem:[#allocation53_spill] sm:$0xff] %v18398_v45 }
 0x561   : > { %19333 = vst [vmem:[#allocation42_spill] sm:$0xff] %v18378_v33 }
 0x562   : > { %v18382_v35 = vpop.f32.mrf.mxu0 }
 0x563   : > { %19334 = vst [vmem:[#allocation78_spill] sm:$0xff] %v18382_v35 }
 0x564   : > { %v18384_v41 = vpop.f32.mrf.mxu0 }
 0x565   : > { %19335 = vst [vmem:[#allocation56_spill] sm:$0xff] %v18384_v41  ;;  %v18404_v41 = vpop.f32.mrf.mxu1 }
 0x566   : > { %v18388_v11 = vpop.f32.mrf.mxu0  ;;  %19344 = vst [vmem:[#allocation57_spill] sm:$0xff] %v18404_v41 }
 0x567   : > { %19336 = vst [vmem:[#allocation9_spill] sm:$0xff] %v18388_v11  ;;  %v18414_v39 = vpop.f32.mrf.mxu1 }
 0x568   : > { %v18390_v29 = vpop.f32.mrf.mxu0 }
 0x569   : > { %19337 = vst [vmem:[#allocation98_spill] sm:$0xff] %v18390_v29  ;;  %v9600_v29 = vadd.f32 %v18174_v6, %v18179_v56 }
 0x56a   : > { %v18394_v32 = vpop.f32.mrf.mxu0 }
 0x56b   : > { %19339 = vst [vmem:[#allocation21_spill] sm:$0xff] %v18394_v32  ;;  %v9599_v32 = vadd.f32 %v18181_v30, %v18184_v20  ;;  %v9604_v20 = vadd.f32 %v18196_v1, %v18199_v16 }
 0x56c   : > { %v18396_v54 = vpop.f32.mrf.mxu0 }
 0x56d   : > { %19340 = vst [vmem:[#allocation3_spill] sm:$0xff] %v18396_v54  ;;  %v9990_v54 = vadd.f32 %v13912_v10, %v9600_v29  ;;  %v9606_v10 = vadd.f32 %v18206_v13, %v18209_v23 }
 0x56e   : > { %v18400_v33 = vpop.f32.mrf.mxu0 }
 0x56f   : > { %19342 = vst [vmem:[#allocation72_spill] sm:$0xff] %v18400_v33  ;;  %v9989_v33 = vadd.f32 %v9830_v18, %v9599_v32  ;;  %v10380_v6 = vadd.f32 %v13962_v46, %v9990_v54  ;;  %v9994_v32 = vadd.f32 %v13918_v49, %v9604_v20 }
 0x570   : > { %v18402_v14 = vpop.f32.mrf.mxu0 }
 0x571   : > { %19343 = vst [vmem:[#allocation22_spill] sm:$0xff] %v18402_v14  ;;  %v9602_v14 = vadd.f32 %v18186_v15, %v18189_v4  ;;  %v10379_v15 = vadd.f32 %v10220_v8, %v9989_v33  ;;  %v10384_v33 = vadd.f32 %v18344_v37, %v9994_v32  ;;  %v9607_v37 = vadd.f32 %v18221_v36, %v18224_v28  ;;  %v19351_v32 = vld [vmem:[#allocation7_spill] sm:$0xff] }
 0x572   : > { %v18406_v35 = vpop.f32.mrf.mxu0 }
 0x573   : > { %19345 = vst [vmem:[#allocation13_spill] sm:$0xff] %v18406_v35  ;;  %v9601_v35 = vadd.f32 %v18191_v63, %v18194_v26  ;;  %v9992_v56 = vadd.f32 %v13915_v5, %v9602_v14  ;;  %v9603_v14 = vadd.f32 %v18201_v50, %v18204_v9 }
 0x574   : > { %v18410_v11 = vpop.f32.mrf.mxu0 }
 0x575   : > { %19346 = vst [vmem:[#allocation26_spill] sm:$0xff] %v18410_v11  ;;  %v18424_v11 = vpop.f32.mrf.mxu1  ;;  %v9991_v4 = vadd.f32 %v9840_v12, %v9601_v35  ;;  %v10382_v29 = vadd.f32 %v13965_v21, %v9992_v56  ;;  %v9993_v16 = vadd.f32 %v18336_v17, %v9603_v14  ;;  %v9605_v35 = vadd.f32 %v18211_v58, %v18214_v55 }
 0x576   : > { %v18416_v45 = vpop.f32.mrf.mxu0  ;;  %v9996_v12 = vadd.f32 %v18340_v27, %v9606_v10  ;;  %v9608_v17 = vadd.f32 %v18216_v57, %v18219_v2  ;;  %v9610_v27 = vadd.f32 %v18226_v38, %v18229_v47 }
 0x577   : > { %v18439_v18 = vpop.f32.mrf.mxu1  ;;  %v10381_v1 = vadd.f32 %v18338_v52, %v9991_v4  ;;  %v10383_v52 = vadd.f32 %v18350_v0, %v9993_v16  ;;  %v9995_v46 = vadd.f32 %v18342_v51, %v9605_v35  ;;  %v19355_v35 = vld [vmem:[#allocation53_spill] sm:$0xff] }
 0x578   : > { %v18420_v41 = vpop.f32.mrf.mxu0  ;;  %v10386_v21 = vadd.f32 %v18356_v22, %v9996_v12  ;;  %v9998_v49 = vadd.f32 %v18346_v34, %v9608_v17  ;;  %v9609_v22 = vadd.f32 %v18231_v44, %v18234_v40  ;;  %v10000_v56 = vadd.f32 %v18352_v25, %v9610_v27  ;;  %v19356_v12 = vld [vmem:[#allocation18_spill] sm:$0xff] }
 0x579   : > { %v18453_v23 = vpop.f32.mrf.mxu1  ;;  %v10385_v51 = vadd.f32 %v18362_v42, %v9995_v46  ;;  %v19358_v46 = vld [vmem:[#allocation34_spill] sm:$0xff] }
 0x57a   : > { %v14012_v30 = vpop.f32.mrf.mxu0  ;;  %v10388_v34 = vadd.f32 %v18368_v7, %v9998_v49  ;;  %v9999_v20 = vadd.f32 %v18354_v24, %v9609_v22  ;;  %v9611_v7 = vadd.f32 %v18241_v48, %v18244_v53  ;;  %v10390_v25 = vadd.f32 %v18380_v3, %v10000_v56  ;;  %v19347_v24 = vld [vmem:[#allocation30_spill] sm:$0xff]  ;;  %v19349_v3 = vld [vmem:[#allocation75_spill] sm:$0xff]  ;;  %v19363_v22 = vld [vmem:[#allocation52_spill] sm:$0xff] }
 0x57b   : > { %v10770_v63 = vadd.f32 %v14012_v30, %v10380_v6  ;;  %v18467_v2 = vpop.f32.mrf.mxu1  ;;  %v9997_v6 = vadd.f32 %v18348_v61, %v9607_v37  ;;  %v9612_v61 = vadd.f32 %v18236_v19, %v18239_v43  ;;  %v9614_v4 = vadd.f32 %v19347_v24, %v18249_v59 }
 0x57c   : > { %v10610_v26 = vpop.f32.mrf.mxu0 }
 0x57d   : > { %10803 = vst.msk [vmem:[%s18431_s6 + $0x8] sm:$0xff] %vm10801_vm2, %v10770_v63  ;;  %v10769_v54 = vadd.f32 %v10610_v26, %v10379_v15  ;;  %v18481_v47 = vpop.f32.mrf.mxu1  ;;  %v10387_v30 = vadd.f32 %v18374_v31, %v9997_v6  ;;  %v10002_v15 = vadd.f32 %v18358_v60, %v9612_v61  ;;  %v10389_v63 = vadd.f32 %v18386_v62, %v9999_v20  ;;  %v19348_v26 = vld [vmem:[#allocation95_spill] sm:$0xff]  ;;  %v19353_v62 = vld [vmem:[#allocation44_spill] sm:$0xff]  ;;  %v19362_v6 = vld [vmem:[#allocation69_spill] sm:$0xff] }
 0x57e   : > { %v14015_v5 = vpop.f32.mrf.mxu0  ;;  %v10001_v14 = vadd.f32 %v19348_v26, %v9611_v7  ;;  %v19350_v60 = vld [vmem:[#allocation39_spill] sm:$0xff] }
 0x57f   : > { %10802 = vst.msk [vmem:[%s18431_s6] sm:$0xff] %vm10801_vm2, %v10769_v54  ;;  %v10772_v50 = vadd.f32 %v14015_v5, %v10382_v29  ;;  %v18495_v43 = vpop.f32.mrf.mxu1  ;;  %v9613_v29 = vadd.f32 %v19350_v60, %v19349_v3  ;;  %v10392_v54 = vadd.f32 %v19351_v32, %v10002_v15  ;;  %v19352_v5 = vld [vmem:[#allocation64_spill] sm:$0xff]  ;;  %v19365_v61 = vld [vmem:[#allocation47_spill] sm:$0xff]  ;;  %v19372_v60 = vld [vmem:[#allocation78_spill] sm:$0xff] }
 0x580   : > { %v10620_v9 = vpop.f32.mrf.mxu0  ;;  %v10004_v10 = vadd.f32 %v19352_v5, %v9614_v4  ;;  %v19369_v4 = vld [vmem:[#allocation42_spill] sm:$0xff] }
 0x581   : > { %10805 = vst.msk [vmem:[%s18431_s6 + $0x18] sm:$0xff] %vm10801_vm2, %v10772_v50  ;;  %v10771_v13 = vadd.f32 %v10620_v9, %v10381_v1  ;;  %v13995_v1 = vpop.f32.mrf.mxu1  ;;  %v19354_v50 = vld [vmem:[#allocation49_spill] sm:$0xff] }
 0x582   : > { %v14018_v8 = vpop.f32.mrf.mxu0  ;;  %v9616_v9 = vadd.f32 %v19354_v50, %v19353_v62  ;;  %v19375_v62 = vld [vmem:[#allocation56_spill] sm:$0xff] }
 0x583   : > { %10804 = vst.msk [vmem:[%s18431_s6 + $0x10] sm:$0xff] %vm10801_vm2, %v10771_v13  ;;  %v10774_v58 = vadd.f32 %v14018_v8, %v10384_v33  ;;  %v10391_v33 = vadd.f32 %v19355_v35, %v10001_v14  ;;  %v10003_v13 = vadd.f32 %v19356_v12, %v9613_v29 }
 0x584   : > { %v10630_v55 = vpop.f32.mrf.mxu0 }
 0x585   : > { %10807 = vst.msk [vmem:[%s18431_s6 + $0x28] sm:$0xff] %vm10801_vm2, %v10774_v58  ;;  %v10773_v57 = vadd.f32 %v10630_v55, %v10383_v52  ;;  %v19357_v52 = vld [vmem:[#allocation62_spill] sm:$0xff]  ;;  %v19359_v55 = vld [vmem:[#allocation57_spill] sm:$0xff] }
 0x586   : > { %v14021_v0 = vpop.f32.mrf.mxu0  ;;  %v9615_v58 = vadd.f32 %v19358_v46, %v19357_v52  ;;  %v10394_v37 = vadd.f32 %v19359_v55, %v10004_v10  ;;  %v19374_v10 = vld [vmem:[#allocation89_spill] sm:$0xff]  ;;  %v19380_v55 = vld [vmem:[#allocation86_spill] sm:$0xff] }
 0x587   : > { %10806 = vst.msk [vmem:[%s18431_s6 + $0x20] sm:$0xff] %vm10801_vm2, %v10773_v57  ;;  %v10776_v36 = vadd.f32 %v14021_v0, %v10386_v21  ;;  %v19360_v21 = vld [vmem:[#allocation4_spill] sm:$0xff]  ;;  %v10330_v0 = vpop.f32.mrf.mxu1 }
 0x588   : > { %v10640_v28 = vpop.f32.mrf.mxu0  ;;  %v10006_v49 = vadd.f32 %v19360_v21, %v9616_v9 }
 0x589   : > { %10809 = vst.msk [vmem:[%s18431_s6 + $0x38] sm:$0xff] %vm10801_vm2, %v10776_v36  ;;  %v10775_v38 = vadd.f32 %v10640_v28, %v10385_v51  ;;  %v19361_v51 = vld [vmem:[#allocation79_spill] sm:$0xff]  ;;  %v10393_v28 = vadd.f32 %v18414_v39, %v10003_v13  ;;  %v19367_v39 = vld [vmem:[#allocation8_spill] sm:$0xff] }
 0x58a   : > { %v14024_v42 = vpop.f32.mrf.mxu0  ;;  %v9618_v36 = vadd.f32 %v19362_v6, %v19361_v51  ;;  %v10396_v20 = vadd.f32 %v18424_v11, %v10006_v49  ;;  %v19370_v11 = vld [vmem:[#allocation87_spill] sm:$0xff]  ;;  %v19381_v49 = vld [vmem:[#allocation98_spill] sm:$0xff] }
 0x58b   : > { %10808 = vst.msk [vmem:[%s18431_s6 + $0x30] sm:$0xff] %vm10801_vm2, %v10775_v38  ;;  %v10778_v44 = vadd.f32 %v14024_v42, %v10388_v34  ;;  %v10005_v34 = vadd.f32 %v19363_v22, %v9615_v58  ;;  %v19364_v42 = vld [vmem:[#allocation60_spill] sm:$0xff]  ;;  %v19383_v6 = vld [vmem:[#allocation23_spill] sm:$0xff]  ;;  %v19384_v22 = vld [vmem:[#allocation21_spill] sm:$0xff] }
 0x58c   : > { %v10650_v40 = vpop.f32.mrf.mxu0 }
 0x58d   : > { %10811 = vst.msk [vmem:[%s18431_s6 + $0x48] sm:$0xff] %vm10801_vm2, %v10778_v44  ;;  %v10777_v19 = vadd.f32 %v10650_v40, %v10387_v30  ;;  %v9617_v30 = vadd.f32 %v19365_v61, %v19364_v42  ;;  %v19366_v44 = vld [vmem:[#allocation97_spill] sm:$0xff]  ;;  %v10395_v24 = vadd.f32 %v18439_v18, %v10005_v34  ;;  %v19373_v18 = vld [vmem:[#allocation32_spill] sm:$0xff]  ;;  %v19385_v61 = vld [vmem:[#allocation50_spill] sm:$0xff] }
 0x58e   : > { %v14027_v31 = vpop.f32.mrf.mxu0  ;;  %v10008_v40 = vadd.f32 %v19366_v44, %v9618_v36  ;;  %v19387_v44 = vld [vmem:[#allocation3_spill] sm:$0xff] }
 0x58f   : > { %10810 = vst.msk [vmem:[%s18431_s6 + $0x40] sm:$0xff] %vm10801_vm2, %v10777_v19  ;;  %v10780_v48 = vadd.f32 %v14027_v31, %v10390_v25  ;;  %v13998_v25 = vpop.f32.mrf.mxu1  ;;  %v19368_v19 = vld [vmem:[#allocation20_spill] sm:$0xff] }
 0x590   : > { %v10660_v53 = vpop.f32.mrf.mxu0  ;;  %v9620_v31 = vadd.f32 %v19368_v19, %v19367_v39  ;;  %v10398_v3 = vadd.f32 %v18453_v23, %v10008_v40  ;;  %v19376_v23 = vld [vmem:[#allocation83_spill] sm:$0xff]  ;;  %v19388_v39 = vld [vmem:[#allocation36_spill] sm:$0xff] }
 0x591   : > { %10813 = vst.msk [vmem:[%s18431_s6 + $0x58] sm:$0xff] %vm10801_vm2, %v10780_v48  ;;  %v10779_v59 = vadd.f32 %v10660_v53, %v10389_v63  ;;  %v10007_v63 = vadd.f32 %v19369_v4, %v9617_v30  ;;  %v19371_v48 = vld [vmem:[#allocation81_spill] sm:$0xff] }
 0x592   : > { %v14030_v16 = vpop.f32.mrf.mxu0  ;;  %v9619_v53 = vadd.f32 %v19371_v48, %v19370_v11  ;;  %v10010_v29 = vadd.f32 %v19372_v60, %v9620_v31  ;;  %v19391_v11 = vld [vmem:[#allocation88_spill] sm:$0xff] }
 0x593   : > { %10812 = vst.msk [vmem:[%s18431_s6 + $0x50] sm:$0xff] %vm10801_vm2, %v10779_v59  ;;  %v10782_v8 = vadd.f32 %v14030_v16, %v10392_v54  ;;  %v10340_v54 = vpop.f32.mrf.mxu1  ;;  %v9622_v59 = vadd.f32 %v19374_v10, %v19373_v18  ;;  %v10397_v16 = vadd.f32 %v18467_v2, %v10007_v63  ;;  %v19379_v2 = vld [vmem:[#allocation91_spill] sm:$0xff] }
 0x594   : > { %v10670_v17 = vpop.f32.mrf.mxu0  ;;  %v10009_v50 = vadd.f32 %v19375_v62, %v9619_v53  ;;  %v10400_v13 = vadd.f32 %v18481_v47, %v10010_v29  ;;  %v19382_v47 = vld [vmem:[#allocation70_spill] sm:$0xff] }
 0x595   : > { %10815 = vst.msk [vmem:[%s18431_s6 + $0x68] sm:$0xff] %vm10801_vm2, %v10782_v8  ;;  %v10781_v57 = vadd.f32 %v10670_v17, %v10391_v33  ;;  %v19377_v33 = vld [vmem:[#allocation37_spill] sm:$0xff]  ;;  %v14001_v46 = vpop.f32.mrf.mxu1  ;;  %v9623_v36 = vadd.f32 %v19383_v6, %v19382_v47 }
 0x596   : > { %v14033_v27 = vpop.f32.mrf.mxu0  ;;  %v9621_v12 = vadd.f32 %v19377_v33, %v19376_v23  ;;  %v19378_v8 = vld [vmem:[#allocation9_spill] sm:$0xff]  ;;  %v10399_v21 = vadd.f32 %v18495_v43, %v10009_v50 }
 0x597   : > { %10814 = vst.msk [vmem:[%s18431_s6 + $0x60] sm:$0xff] %vm10801_vm2, %v10781_v57  ;;  %v10784_v56 = vadd.f32 %v14033_v27, %v10394_v37  ;;  %v10012_v17 = vadd.f32 %v19378_v8, %v9622_v59  ;;  %v9624_v37 = vadd.f32 %v19380_v55, %v19379_v2  ;;  %v19386_v43 = vld [vmem:[#allocation85_spill] sm:$0xff]  ;;  %v10013_v40 = vadd.f32 %v19387_v44, %v9623_v36 }
 0x598   : > { %v10680_v38 = vpop.f32.mrf.mxu0  ;;  %v10011_v57 = vadd.f32 %v19381_v49, %v9621_v12  ;;  %v9626_v30 = vadd.f32 %v19386_v43, %v19385_v61  ;;  %v19396_v59 = vld [vmem:[#allocation13_spill] sm:$0xff]  ;;  %v19399_v12 = vld [vmem:[#allocation26_spill] sm:$0xff] }
 0x599   : > { %10817 = vst.msk [vmem:[%s18431_s6 + $0x78] sm:$0xff] %vm10801_vm2, %v10784_v56  ;;  %v10783_v7 = vadd.f32 %v10680_v38, %v10393_v28  ;;  %v10402_v28 = vadd.f32 %v13995_v1, %v10012_v17  ;;  %v10014_v34 = vadd.f32 %v19384_v22, %v9624_v37  ;;  %v10350_v38 = vpop.f32.mrf.mxu1  ;;  %v19389_v1 = vld [vmem:[#allocation92_spill] sm:$0xff]  ;;  %v10403_v53 = vadd.f32 %v10340_v54, %v10013_v40  ;;  %v19398_v54 = vld [vmem:[#allocation38_spill] sm:$0xff] }
 0x59a   : > { %v14036_v15 = vpop.f32.mrf.mxu0  ;;  %v9625_v19 = vadd.f32 %v19389_v1, %v19388_v39 }
 0x59b   : > { %10816 = vst.msk [vmem:[%s18431_s6 + $0x70] sm:$0xff] %vm10801_vm2, %v10783_v7  ;;  %v10786_v26 = vadd.f32 %v14036_v15, %v10396_v20  ;;  %v10401_v20 = vadd.f32 %v10330_v0, %v10011_v57  ;;  %v10404_v31 = vadd.f32 %v13998_v25, %v10014_v34  ;;  %v19392_v0 = vld [vmem:[#allocation71_spill] sm:$0xff]  ;;  %v19395_v25 = vld [vmem:[#allocation28_spill] sm:$0xff] }
 0x59c   : > { %v10690_v14 = vpop.f32.mrf.mxu0  ;;  %v9628_v48 = vadd.f32 %v19392_v0, %v19391_v11 }
 0x59d   : > { %10819 = vst.msk [vmem:[%s18431_s6 + $0x88] sm:$0xff] %vm10801_vm2, %v10786_v26  ;;  %v10785_v32 = vadd.f32 %v10690_v14, %v10395_v24  ;;  %v19390_v24 = vld [vmem:[#allocation72_spill] sm:$0xff]  ;;  %v14004_v26 = vpop.f32.mrf.mxu1 }
 0x59e   : > { %v14039_v5 = vpop.f32.mrf.mxu0  ;;  %v10016_v4 = vadd.f32 %v19390_v24, %v9626_v30 }
 0x59f   : > { %10818 = vst.msk [vmem:[%s18431_s6 + $0x80] sm:$0xff] %vm10801_vm2, %v10785_v32  ;;  %v10788_v9 = vadd.f32 %v14039_v5, %v10398_v3  ;;  %v19393_v3 = vld [vmem:[#allocation22_spill] sm:$0xff]  ;;  %v10360_v50 = vpop.f32.mrf.mxu1 }
 0x5a0   : > { %v10700_v35 = vpop.f32.mrf.mxu0  ;;  %v10015_v60 = vadd.f32 %v19393_v3, %v9625_v19  ;;  %v19394_v5 = vld [vmem:[#allocation94_spill] sm:$0xff]  ;;  %v10406_v10 = vadd.f32 %v14001_v46, %v10016_v4  ;;  %v19400_v46 = vld [vmem:[#allocation51_spill] sm:$0xff] }
 0x5a1   : > { %10821 = vst.msk [vmem:[%s18431_s6 + $0x98] sm:$0xff] %vm10801_vm2, %v10788_v9  ;;  %v10787_v52 = vadd.f32 %v10700_v35, %v10397_v16  ;;  %v9627_v18 = vadd.f32 %v19395_v25, %v19394_v5  ;;  %v10018_v16 = vadd.f32 %v19396_v59, %v9628_v48  ;;  %v19397_v35 = vld [vmem:[#allocation43_spill] sm:$0xff]  ;;  %v14007_v17 = vpop.f32.mrf.mxu1 }
 0x5a2   : > { %v14042_v58 = vpop.f32.mrf.mxu0  ;;  %v9630_v23 = vadd.f32 %v19398_v54, %v19397_v35  ;;  %v10405_v33 = vadd.f32 %v10350_v38, %v10015_v60 }
 0x5a3   : > { %10820 = vst.msk [vmem:[%s18431_s6 + $0x90] sm:$0xff] %vm10801_vm2, %v10787_v52  ;;  %v10790_v27 = vadd.f32 %v14042_v58, %v10400_v13  ;;  %v10017_v13 = vadd.f32 %v19399_v12, %v9627_v18  ;;  %v19401_v58 = vld [vmem:[#allocation54_spill] sm:$0xff]  ;;  %v10408_v55 = vadd.f32 %v14004_v26, %v10018_v16  ;;  %v10370_v47 = vpop.f32.mrf.mxu1 }
 0x5a4   : > { %v10710_v51 = vpop.f32.mrf.mxu0  ;;  %v9629_v2 = vadd.f32 %v19401_v58, %v19400_v46  ;;  %v10020_v37 = vadd.f32 %v18416_v45, %v9630_v23 }
 0x5a5   : > { %10823 = vst.msk [vmem:[%s18431_s6 + $0xa8] sm:$0xff] %vm10801_vm2, %v10790_v27  ;;  %v10789_v56 = vadd.f32 %v10710_v51, %v10399_v21  ;;  %v10407_v57 = vadd.f32 %v10360_v50, %v10017_v13 }
 0x5a6   : > { %v14045_v42 = vpop.f32.mrf.mxu0  ;;  %v10019_v27 = vadd.f32 %v18420_v41, %v9629_v2  ;;  %v10410_v36 = vadd.f32 %v14007_v17, %v10020_v37 }
 0x5a7   : > { %10822 = vst.msk [vmem:[%s18431_s6 + $0xa0] sm:$0xff] %vm10801_vm2, %v10789_v56  ;;  %v10792_v7 = vadd.f32 %v14045_v42, %v10402_v28 }
 0x5a8   : > { %v10720_v15 = vpop.f32.mrf.mxu0  ;;  %v10409_v45 = vadd.f32 %v10370_v47, %v10019_v27 }
 0x5a9   : > { %10825 = vst.msk [vmem:[%s18431_s6 + $0xb8] sm:$0xff] %vm10801_vm2, %v10792_v7  ;;  %v10791_v63 = vadd.f32 %v10720_v15, %v10401_v20 }
 0x5aa   : > { %v14048_v14 = vpop.f32.mrf.mxu0 }
 0x5ab   : > { %10824 = vst.msk [vmem:[%s18431_s6 + $0xb0] sm:$0xff] %vm10801_vm2, %v10791_v63  ;;  %v10794_v29 = vadd.f32 %v14048_v14, %v10404_v31 }
 0x5ac   : > { %v10730_v32 = vpop.f32.mrf.mxu0 }
 0x5ad   : > { %10827 = vst.msk [vmem:[%s18431_s6 + $0xc8] sm:$0xff] %vm10801_vm2, %v10794_v29  ;;  %v10793_v62 = vadd.f32 %v10730_v32, %v10403_v53 }
 0x5ae   : > { %v14051_v9 = vpop.f32.mrf.mxu0 }
 0x5af   : > { %10826 = vst.msk [vmem:[%s18431_s6 + $0xc0] sm:$0xff] %vm10801_vm2, %v10793_v62  ;;  %v10796_v8 = vadd.f32 %v14051_v9, %v10406_v10 }
 0x5b0   : > { %v10740_v52 = vpop.f32.mrf.mxu0 }
 0x5b1   : > { %10829 = vst.msk [vmem:[%s18431_s6 + $0xd8] sm:$0xff] %vm10801_vm2, %v10796_v8  ;;  %v10795_v21 = vadd.f32 %v10740_v52, %v10405_v33 }
 0x5b2   : > { %v14054_v49 = vpop.f32.mrf.mxu0 }
 0x5b3   : > { %10828 = vst.msk [vmem:[%s18431_s6 + $0xd0] sm:$0xff] %vm10801_vm2, %v10795_v21  ;;  %v10798_v51 = vadd.f32 %v14054_v49, %v10408_v55 }
 0x5b4   : > { %v10750_v6 = vpop.f32.mrf.mxu0 }
 0x5b5   : > { %10831 = vst.msk [vmem:[%s18431_s6 + $0xe8] sm:$0xff] %vm10801_vm2, %v10798_v51  ;;  %v10797_v28 = vadd.f32 %v10750_v6, %v10407_v57 }
 0x5b6   : > { %v14057_v22 = vpop.f32.mrf.mxu0 }
 0x5b7   : > { %10830 = vst.msk [vmem:[%s18431_s6 + $0xe0] sm:$0xff] %vm10801_vm2, %v10797_v28  ;;  %v10800_v34 = vadd.f32 %v14057_v22, %v10410_v36 }
 0x5b8   : > { %v10760_v56 = vpop.f32.mrf.mxu0 }
 0x5b9   : > { %10833 = vst.msk [vmem:[%s18431_s6 + $0xf8] sm:$0xff] %vm10801_vm2, %v10800_v34  ;;  %v10799_v38 = vadd.f32 %v10760_v56, %v10409_v45 }
 0x5bb   : > { %10832 = vst.msk [vmem:[%s18431_s6 + $0xf0] sm:$0xff] %vm10801_vm2, %v10799_v38 }
 0x5bc PF: > { %s14_s15 = sadd.s32 1, %s14075_s15  }
 0x5bd   : > { %p11_p4 = scmp.ge.s32.totalorder %s14_s15, 4  }
 0x5bf   :  { %13 = sbr.rel (!%p11_p4) target bundleno = 1 (0x1), region = 92 }

</bundles_post_ra>
